<compile_context>
chip_gen: v5e
topology: v5e:2x2
jax: 0.10.0
libtpu: 0.0.40
codegen_flags: <defaults>
</compile_context>

<pallas_src>
import functools

import jax
import jax.numpy as jnp
import numpy as np
from jax.experimental import pallas as pl
from jax.experimental.pallas import tpu as pltpu

LATENT_DIM = 10
H1 = 512
H2 = 512
IMG_SHAPE = (1, 28, 28)
IMG_FLAT = int(np.prod(IMG_SHAPE))  # 784
BN_EPS = 1e-5


def _decoder_kernel(z_ref, w1_ref, b1_ref, w2_ref, scale_ref, shift_ref,
                    w3_ref, b3_ref, out_ref, *, tanh_dtype):
    """Fused Decoder MLP for one batch tile; all activations stay in VMEM."""
    compute_dtype = w1_ref.dtype  # bf16 (or f32 when use_bf16=False)

    # Layer 1: Linear(10, 512) + LeakyReLU(0.2).  MXU accumulates in f32.
    h1 = jnp.dot(z_ref[...], w1_ref[...],
                 preferred_element_type=jnp.float32) + b1_ref[...]
    h1 = jnp.where(h1 > 0, h1, 0.2 * h1)

    # Layer 2: Linear(512, 512) with BatchNorm1d (+ its bias) pre-folded into a
    # per-feature f32 scale/shift by the wrapper: one mul + add, no rsqrt.
    h2 = jnp.dot(h1.astype(compute_dtype), w2_ref[...],
                 preferred_element_type=jnp.float32)
    h2 = h2 * scale_ref[...] + shift_ref[...]
    h2 = jnp.where(h2 > 0, h2, 0.2 * h2)

    # Layer 3: Linear(512, 784) + Tanh.  tanh in bf16 on v6e/v7x (bf16 EUP),
    # f32 on v5e and older.
    h3 = jnp.dot(h2.astype(compute_dtype), w3_ref[...],
                 preferred_element_type=jnp.float32) + b3_ref[...]
    out_ref[...] = jnp.tanh(h3.astype(tanh_dtype)).astype(out_ref.dtype)


def _device_supports_bf16_eup():
    """bf16 VPU/EUP exists on v6e/v7x; keep f32 tanh on v5e and older."""
    try:
        kind = jax.devices()[0].device_kind.lower()
    except Exception:
        return False
    if "tpu" not in kind:
        return False
    return not any(tag in kind for tag in ("v2", "v3", "v4", "v5"))


def _auto_tile_b(batch):
    """Fewer, fatter grid steps amortize the ~0.35us/step overhead, but keep
    at least 2 'parallel' grid steps so both v7x TensorCores get work."""
    if batch <= 16:
        return max(8, -(-batch // 8) * 8)
    if batch <= 512:
        half = -(-batch // 2)
        return -(-half // 8) * 8      # grid == 2; no padding when B % 16 == 0
    return 256                        # fills the 256-row MXU on v6e/v7x, grid >= 2


@functools.partial(
    jax.jit,
    static_argnames=("tile_b", "use_bf16", "out_dtype", "tanh_dtype",
                     "vmem_limit_bytes"))
def _decoder_forward_impl(z, params, *, tile_b, use_bf16, out_dtype,
                          tanh_dtype, vmem_limit_bytes):
    B = z.shape[0]
    compute_dtype = jnp.bfloat16 if use_bf16 else jnp.float32

    # Pad batch to a multiple of tile_b; padded rows never affect real rows
    # (BN stats are supplied, not computed from the batch) and are sliced off.
    b_pad = pl.cdiv(B, tile_b) * tile_b
    if b_pad != B:
        z = jnp.pad(z, ((0, b_pad - B), (0, 0)))
    grid = (b_pad // tile_b,)

    # bf16 weights halve the weight DMA; matmuls still accumulate in f32.
    w1 = params["w1"].astype(compute_dtype)
    w2 = params["w2"].astype(compute_dtype)
    w3 = params["w3"].astype(compute_dtype)
    b1, b3 = params["b1"], params["b3"]

    # Fold BatchNorm1d (+ layer-2 bias) into per-feature scale/shift (f32):
    #   (x@w2 + b2 - mean) * gamma * rsqrt(var+eps) + beta
    #     == (x@w2) * scale + shift
    # TODO(synk): PyTorch training-mode BN uses per-batch statistics; here the
    # supplied mean/var (eval mode / externally computed batch stats) are used
    # so the kernel stays tileable over the batch.
    inv_std = jax.lax.rsqrt(params["bn_var"] + BN_EPS)
    scale = params["bn_gamma"] * inv_std
    shift = (params["b2"] - params["bn_mean"]) * scale + params["bn_beta"]

    zc = z.astype(compute_dtype)

    w_itemsize = jnp.dtype(compute_dtype).itemsize
    out_itemsize = jnp.dtype(out_dtype).itemsize
    n_weight_elems = LATENT_DIM * H1 + H1 * H2 + H2 * IMG_FLAT
    cost = pl.CostEstimate(
        flops=2 * b_pad * n_weight_elems,
        transcendentals=b_pad * IMG_FLAT,
        bytes_accessed=(b_pad * LATENT_DIM * w_itemsize       # z
                        + n_weight_elems * w_itemsize         # weights
                        + (H1 + IMG_FLAT + 2 * H2) * 4        # biases + scale/shift
                        + b_pad * IMG_FLAT * out_itemsize),   # output
    )

    full = lambda i: (0, 0)          # weights/biases resident across all tiles
    batch_tile = lambda i: (i, 0)

    cp_kwargs = dict(dimension_semantics=("parallel",))
    if vmem_limit_bytes is not None:
        cp_kwargs["vmem_limit_bytes"] = vmem_limit_bytes

    img_flat = pl.pallas_call(
        functools.partial(_decoder_kernel, tanh_dtype=tanh_dtype),
        out_shape=jax.ShapeDtypeStruct((b_pad, IMG_FLAT), out_dtype),
        grid=grid,
        in_specs=[
            pl.BlockSpec((tile_b, LATENT_DIM), batch_tile),   # z tile
            pl.BlockSpec((LATENT_DIM, H1), full),             # w1
            pl.BlockSpec((1, H1), full),                      # b1
            pl.BlockSpec((H1, H2), full),                     # w2
            pl.BlockSpec((1, H2), full),                      # bn scale (folded)
            pl.BlockSpec((1, H2), full),                      # bn shift (folded, incl. b2)
            pl.BlockSpec((H2, IMG_FLAT), full),               # w3
            pl.BlockSpec((1, IMG_FLAT), full),                # b3
        ],
        out_specs=pl.BlockSpec((tile_b, IMG_FLAT), batch_tile),
        compiler_params=pltpu.CompilerParams(**cp_kwargs),
        cost_estimate=cost,
    )(zc, w1, b1, w2, scale, shift, w3, b3)

    img_flat = img_flat[:B]
    return img_flat.reshape(B, *IMG_SHAPE)


def decoder_forward(z, params, *, tile_b=None, use_bf16=True,
                    out_dtype=jnp.bfloat16):
    """Decoder forward.  Output dtype defaults to bf16 (the output writeback
    is the dominant HBM term); pass out_dtype=jnp.float32 for an f32 image."""
    B = z.shape[0]
    if tile_b is None:
        tile_b = _auto_tile_b(B)
    tanh_dtype = (jnp.bfloat16
                  if (use_bf16 and _device_supports_bf16_eup())
                  else jnp.float32)

    # Only bump the scoped-VMEM limit when large tiles would exceed v5e's
    # 16 MiB default (not hit at the auto-chosen tile sizes).
    est_bytes = (2 * jnp.dtype(out_dtype).itemsize * tile_b * IMG_FLAT    # 2x out bufs
                 + 4 * tile_b * (H1 + H2 + IMG_FLAT)                      # f32 activations
                 + 2 * 2 * (LATENT_DIM * H1 + H1 * H2 + H2 * IMG_FLAT))   # 2x bf16 weights
    vmem_limit_bytes = None
    if est_bytes > 12 * 1024 * 1024:
        vmem_limit_bytes = int(min(2 * est_bytes, 60 * 1024 * 1024))

    return _decoder_forward_impl(
        z, params, tile_b=int(tile_b), use_bf16=use_bf16, out_dtype=out_dtype,
        tanh_dtype=tanh_dtype, vmem_limit_bytes=vmem_limit_bytes)


def init_params(key):
    """PyTorch nn.Linear default init: U(-1/sqrt(fan_in), 1/sqrt(fan_in));
    BatchNorm1d default init: gamma=1, beta=0, running_mean=0, running_var=1."""
    def linear(k, fan_in, fan_out):
        kw, kb = jax.random.split(k)
        bound = 1.0 / float(np.sqrt(fan_in))
        w = jax.random.uniform(kw, (fan_in, fan_out), jnp.float32, -bound, bound)
        b = jax.random.uniform(kb, (1, fan_out), jnp.float32, -bound, bound)
        return w, b

    k1, k2, k3 = jax.random.split(key, 3)
    w1, b1 = linear(k1, LATENT_DIM, H1)
    w2, b2 = linear(k2, H1, H2)
    w3, b3 = linear(k3, H2, IMG_FLAT)
    return {
        "w1": w1, "b1": b1,
        "w2": w2, "b2": b2,
        "w3": w3, "b3": b3,
        "bn_gamma": jnp.ones((1, H2), jnp.float32),
        "bn_beta": jnp.zeros((1, H2), jnp.float32),
        "bn_mean": jnp.zeros((1, H2), jnp.float32),
        "bn_var": jnp.ones((1, H2), jnp.float32),
    }


def reference_forward(z, params, compute_dtype=jnp.float32,
                      tanh_dtype=jnp.float32, out_dtype=jnp.float32):
    """Pure-JAX reference (un-folded BN) mirroring the kernel's precision."""
    w1 = params["w1"].astype(compute_dtype)
    w2 = params["w2"].astype(compute_dtype)
    w3 = params["w3"].astype(compute_dtype)

    h1 = jnp.dot(z.astype(compute_dtype), w1,
                 preferred_element_type=jnp.float32) + params["b1"]
    h1 = jnp.where(h1 > 0, h1, 0.2 * h1)
    h2 = jnp.dot(h1.astype(compute_dtype), w2,
                 preferred_element_type=jnp.float32) + params["b2"]
    inv_std = jax.lax.rsqrt(params["bn_var"] + BN_EPS)
    h2 = (h2 - params["bn_mean"]) * (params["bn_gamma"] * inv_std) + params["bn_beta"]
    h2 = jnp.where(h2 > 0, h2, 0.2 * h2)
    h3 = jnp.dot(h2.astype(compute_dtype), w3,
                 preferred_element_type=jnp.float32) + params["b3"]
    img = jnp.tanh(h3.astype(tanh_dtype)).astype(out_dtype)
    return img.reshape(z.shape[0], *IMG_SHAPE)


if __name__ == "__main__":
    key = jax.random.PRNGKey(0)
    k_params, k_z = jax.random.split(key)

    params = init_params(k_params)
    batch = 256  # auto tile -> tile_b=128, grid=2 (keeps both v7x TCs busy), no padding
    z = jax.random.normal(k_z, (batch, LATENT_DIM), dtype=jnp.float32)

    img = decoder_forward(z, params)  # bf16 weights + bf16 output
    img = jax.block_until_ready(img)
    assert img.shape == (batch, *IMG_SHAPE), img.shape

    tanh_dtype = jnp.bfloat16 if _device_supports_bf16_eup() else jnp.float32

    # Primary check: against a pure-JAX reference with matched precision.
    ref_matched = reference_forward(z, params, compute_dtype=jnp.bfloat16,
                                    tanh_dtype=tanh_dtype,
                                    out_dtype=jnp.bfloat16)
    assert jnp.allclose(img.astype(jnp.float32),
                        ref_matched.astype(jnp.float32),
                        atol=1e-2, rtol=1e-2), (
        "Pallas output mismatch vs precision-matched reference")

    # Sanity check: bf16 kernel stays close to the full-f32 forward.
    ref_f32 = reference_forward(z, params)
    max_err = float(jnp.max(jnp.abs(img.astype(jnp.float32) - ref_f32)))
    assert max_err < 5e-2, (
        f"bf16 kernel drifted too far from f32 reference: {max_err}")

    print("KERNEL_OK")
</pallas_src>

<mosaic_0001>
module attributes {stable_mosaic.version = 11 : i64} {
  func.func @_decoder_kernel(%arg0: i32, %arg1: memref<128x10xbf16, #tpu.memory_space<vmem>>, %arg2: memref<10x512xbf16, #tpu.memory_space<vmem>>, %arg3: memref<1x512xf32, #tpu.memory_space<vmem>>, %arg4: memref<512x512xbf16, #tpu.memory_space<vmem>>, %arg5: memref<1x512xf32, #tpu.memory_space<vmem>>, %arg6: memref<1x512xf32, #tpu.memory_space<vmem>>, %arg7: memref<512x784xbf16, #tpu.memory_space<vmem>>, %arg8: memref<1x784xf32, #tpu.memory_space<vmem>>, %arg9: memref<128x784xbf16, #tpu.memory_space<vmem>>) attributes {dimension_semantics = [#tpu.dimension_semantics<parallel>], iteration_bounds = array<i64: 2>, scalar_prefetch = 0 : i64, scratch_operands = 0 : i64, tpu.core_type = #tpu.core_type<tc>, window_params = [{transform_indices = @transform_0, window_bounds = array<i64: 128, 10>}, {pipeline_mode = #tpu.pipeline_mode<synchronous>, transform_indices = @transform_1, window_bounds = array<i64: 10, 512>}, {pipeline_mode = #tpu.pipeline_mode<synchronous>, transform_indices = @transform_2, window_bounds = array<i64: 1, 512>}, {pipeline_mode = #tpu.pipeline_mode<synchronous>, transform_indices = @transform_3, window_bounds = array<i64: 512, 512>}, {pipeline_mode = #tpu.pipeline_mode<synchronous>, transform_indices = @transform_4, window_bounds = array<i64: 1, 512>}, {pipeline_mode = #tpu.pipeline_mode<synchronous>, transform_indices = @transform_5, window_bounds = array<i64: 1, 512>}, {pipeline_mode = #tpu.pipeline_mode<synchronous>, transform_indices = @transform_6, window_bounds = array<i64: 512, 784>}, {pipeline_mode = #tpu.pipeline_mode<synchronous>, transform_indices = @transform_7, window_bounds = array<i64: 1, 784>}, {transform_indices = @transform_8, window_bounds = array<i64: 128, 784>}]} {
    %c0 = arith.constant 0 : index
    %c0_0 = arith.constant 0 : index
    %0 = vector.load %arg1[%c0, %c0_0] : memref<128x10xbf16, #tpu.memory_space<vmem>>, vector<128x10xbf16>
    %c0_1 = arith.constant 0 : index
    %c0_2 = arith.constant 0 : index
    %1 = vector.load %arg2[%c0_1, %c0_2] : memref<10x512xbf16, #tpu.memory_space<vmem>>, vector<10x512xbf16>
    %cst = arith.constant dense<0.000000e+00> : vector<128x512xf32>
    %2 = tpu.matmul %0, %1, %cst {dimension_numbers = #tpu.dot_dimension_numbers<[1], [0], [0], [1], [0, 0, 1, 1], [], []>} : vector<128x10xbf16>, vector<10x512xbf16>, vector<128x512xf32> -> vector<128x512xf32>
    %c0_3 = arith.constant 0 : index
    %c0_4 = arith.constant 0 : index
    %3 = vector.load %arg3[%c0_3, %c0_4] : memref<1x512xf32, #tpu.memory_space<vmem>>, vector<1x512xf32>
    %4 = vector.broadcast %3 : vector<1x512xf32> to vector<128x512xf32>
    %5 = arith.addf %2, %4 : vector<128x512xf32>
    %cst_5 = arith.constant 0.000000e+00 : f32
    %6 = vector.broadcast %cst_5 : f32 to vector<128x512xf32>
    %7 = arith.cmpf ogt, %5, %6 : vector<128x512xf32>
    %cst_6 = arith.constant 2.000000e-01 : f32
    %8 = vector.broadcast %cst_6 : f32 to vector<128x512xf32>
    %9 = arith.mulf %8, %5 : vector<128x512xf32>
    %10 = arith.select %7, %5, %9 : vector<128x512xi1>, vector<128x512xf32>
    %11 = arith.truncf %10 : vector<128x512xf32> to vector<128x512xbf16>
    %c0_7 = arith.constant 0 : index
    %c0_8 = arith.constant 0 : index
    %12 = vector.load %arg4[%c0_7, %c0_8] : memref<512x512xbf16, #tpu.memory_space<vmem>>, vector<512x512xbf16>
    %cst_9 = arith.constant dense<0.000000e+00> : vector<128x512xf32>
    %13 = tpu.matmul %11, %12, %cst_9 {dimension_numbers = #tpu.dot_dimension_numbers<[1], [0], [0], [1], [0, 0, 1, 1], [], []>} : vector<128x512xbf16>, vector<512x512xbf16>, vector<128x512xf32> -> vector<128x512xf32>
    %c0_10 = arith.constant 0 : index
    %c0_11 = arith.constant 0 : index
    %14 = vector.load %arg5[%c0_10, %c0_11] : memref<1x512xf32, #tpu.memory_space<vmem>>, vector<1x512xf32>
    %15 = vector.broadcast %14 : vector<1x512xf32> to vector<128x512xf32>
    %16 = arith.mulf %13, %15 : vector<128x512xf32>
    %c0_12 = arith.constant 0 : index
    %c0_13 = arith.constant 0 : index
    %17 = vector.load %arg6[%c0_12, %c0_13] : memref<1x512xf32, #tpu.memory_space<vmem>>, vector<1x512xf32>
    %18 = vector.broadcast %17 : vector<1x512xf32> to vector<128x512xf32>
    %19 = arith.addf %16, %18 : vector<128x512xf32>
    %cst_14 = arith.constant 0.000000e+00 : f32
    %20 = vector.broadcast %cst_14 : f32 to vector<128x512xf32>
    %21 = arith.cmpf ogt, %19, %20 : vector<128x512xf32>
    %cst_15 = arith.constant 2.000000e-01 : f32
    %22 = vector.broadcast %cst_15 : f32 to vector<128x512xf32>
    %23 = arith.mulf %22, %19 : vector<128x512xf32>
    %24 = arith.select %21, %19, %23 : vector<128x512xi1>, vector<128x512xf32>
    %25 = arith.truncf %24 : vector<128x512xf32> to vector<128x512xbf16>
    %c0_16 = arith.constant 0 : index
    %c0_17 = arith.constant 0 : index
    %26 = vector.load %arg7[%c0_16, %c0_17] : memref<512x784xbf16, #tpu.memory_space<vmem>>, vector<512x784xbf16>
    %cst_18 = arith.constant dense<0.000000e+00> : vector<128x784xf32>
    %27 = tpu.matmul %25, %26, %cst_18 {dimension_numbers = #tpu.dot_dimension_numbers<[1], [0], [0], [1], [0, 0, 1, 1], [], []>} : vector<128x512xbf16>, vector<512x784xbf16>, vector<128x784xf32> -> vector<128x784xf32>
    %c0_19 = arith.constant 0 : index
    %c0_20 = arith.constant 0 : index
    %28 = vector.load %arg8[%c0_19, %c0_20] : memref<1x784xf32, #tpu.memory_space<vmem>>, vector<1x784xf32>
    %29 = vector.broadcast %28 : vector<1x784xf32> to vector<128x784xf32>
    %30 = arith.addf %27, %29 : vector<128x784xf32>
    %31 = math.tanh %30 : vector<128x784xf32>
    %32 = arith.truncf %31 : vector<128x784xf32> to vector<128x784xbf16>
    %c0_21 = arith.constant 0 : index
    %c0_22 = arith.constant 0 : index
    %33 = vector.load %arg9[%c0_21, %c0_22] : memref<128x784xbf16, #tpu.memory_space<vmem>>, vector<128x784xbf16>
    tpu.vector_store %arg9[%c0_21, %c0_22], %32 {strides = array<i32>} : memref<128x784xbf16, #tpu.memory_space<vmem>>, vector<128x784xbf16>,
    return
  }
  func.func @transform_0(%arg0: i32) -> (i32, i32) {
    %c0_i32 = arith.constant 0 : i32
    %c0_i32_0 = arith.constant 0 : i32
    return %arg0, %c0_i32 : i32, i32
  }
  func.func @transform_1(%arg0: i32) -> (i32, i32) {
    %c0_i32 = arith.constant 0 : i32
    %c0_i32_0 = arith.constant 0 : i32
    %c0_i32_1 = arith.constant 0 : i32
    return %c0_i32, %c0_i32_0 : i32, i32
  }
  func.func @transform_2(%arg0: i32) -> (i32, i32) {
    %c0_i32 = arith.constant 0 : i32
    %c0_i32_0 = arith.constant 0 : i32
    %c0_i32_1 = arith.constant 0 : i32
    return %c0_i32, %c0_i32_0 : i32, i32
  }
  func.func @transform_3(%arg0: i32) -> (i32, i32) {
    %c0_i32 = arith.constant 0 : i32
    %c0_i32_0 = arith.constant 0 : i32
    %c0_i32_1 = arith.constant 0 : i32
    return %c0_i32, %c0_i32_0 : i32, i32
  }
  func.func @transform_4(%arg0: i32) -> (i32, i32) {
    %c0_i32 = arith.constant 0 : i32
    %c0_i32_0 = arith.constant 0 : i32
    %c0_i32_1 = arith.constant 0 : i32
    return %c0_i32, %c0_i32_0 : i32, i32
  }
  func.func @transform_5(%arg0: i32) -> (i32, i32) {
    %c0_i32 = arith.constant 0 : i32
    %c0_i32_0 = arith.constant 0 : i32
    %c0_i32_1 = arith.constant 0 : i32
    return %c0_i32, %c0_i32_0 : i32, i32
  }
  func.func @transform_6(%arg0: i32) -> (i32, i32) {
    %c0_i32 = arith.constant 0 : i32
    %c0_i32_0 = arith.constant 0 : i32
    %c0_i32_1 = arith.constant 0 : i32
    return %c0_i32, %c0_i32_0 : i32, i32
  }
  func.func @transform_7(%arg0: i32) -> (i32, i32) {
    %c0_i32 = arith.constant 0 : i32
    %c0_i32_0 = arith.constant 0 : i32
    %c0_i32_1 = arith.constant 0 : i32
    return %c0_i32, %c0_i32_0 : i32, i32
  }
  func.func @transform_8(%arg0: i32) -> (i32, i32) {
    %c0_i32 = arith.constant 0 : i32
    %c0_i32_0 = arith.constant 0 : i32
    return %arg0, %c0_i32 : i32, i32
  }
}

</mosaic_0001>

<bundles_post_ra>
// kernel: _decoder_forward_impl.1
= control target key start
LH: loop header
LB: loop body
LE: loop exit
PB: predicated region body
PF: predicated region fallthrough
CT: control target
= control target key end

     0   :  { %s8029_s27 = smov 0   ;;  %s11657_s0 = inlined_call_operand.vmem [shape: bf16[256,10], index: 0, kind: input, shape index: {}]   ;;  %s11658_s1 = inlined_call_operand.vmem [shape: bf16[10,512], index: 1, kind: input, shape index: {}]   ;;  %s11659_s2 = inlined_call_operand.vmem [shape: f32[1,512], index: 2, kind: input, shape index: {}]   ;;  %s11660_s3 = inlined_call_operand.vmem [shape: bf16[512,512], index: 3, kind: input, shape index: {}]   ;;  %s11661_s4 = inlined_call_operand.vmem [shape: f32[1,512], index: 4, kind: input, shape index: {}]   ;;  %s11662_s5 = inlined_call_operand.vmem [shape: f32[1,512], index: 5, kind: input, shape index: {}]   ;;  %s11663_s6 = inlined_call_operand.vmem [shape: bf16[512,784], index: 6, kind: input, shape index: {}]   ;;  %s11664_s7 = inlined_call_operand.vmem [shape: f32[1,784], index: 7, kind: input, shape index: {}]   ;;  %s11665_s8 = inlined_call_operand.vmem [shape: bf16[256,784], index: 8, kind: output, shape index: {}]  }
   0x1 LB: > { %s5875_s28 = sadd.s32 4294967295, %s7982_s27   ;;  %p5879_p0 = scmp.ge.s32.totalorder %s7982_s27, 1  ;;  %s7982_s27 = sphi %s8029_s27, %s18_s27  }
   0x2   : > { %p263_p1 = scmp.lt.s32.totalorder %s7982_s27, 3 }
   0x4   : > { %p264_p2 = pnand %p5879_p0, %p263_p1 }
   0x6   : > { %267 = sbr.rel (%p264_p2) target bundleno = 1739 (0x6cb), region = 52 }
   0xb   : > { %v5918_v0 = vld [vmem:[%s11658_s1] sm:$0xf]  ;;  %v7384_v1 = vld [vmem:[%s11658_s1 + $0xc] sm:$0x10]  ;;  %vm423_vm0 = vcmask 1044480   ;;  %s5880_s11 = sshll.u32 %s5875_s28, 4 }
   0xc   : > { %v5919_v2 = vor.u32 %v7384_v1, %v5918_v0  ;;  %v7382_v3 = vld [vmem:[%s11658_s1 + $0x4] sm:$0xf]  ;;  %v5920_v4 = vld [vmem:[%s11658_s1 + $0x10] sm:$0x10]  ;;  %v5926_v5 = vld [vmem:[%s11658_s1 + $0x8] sm:$0xf] }
   0xd   : > { %v5923_v6 = vor.u32 %v7382_v3, %v5920_v4  ;;  %v7385_v7 = vld [vmem:[%s11658_s1 + $0x14] sm:$0x10]  ;;  %v7383_v8 = vld [vmem:[%s11658_s1 + $0xc] sm:$0xf]  ;;  %v5928_v9 = vld [vmem:[%s11658_s1 + $0x18] sm:$0x10] }
   0xe   : > { %v425_v10 = vsel %vm423_vm0, %v5919_v2, 0  ;;  %v5927_v11 = vor.u32 %v7385_v7, %v5926_v5  ;;  %v5931_v12 = vor.u32 %v7383_v8, %v5928_v9  ;;  %p299_p3 = scmp.lt.s32.totalorder %s5880_s11, 31  ;;  %v6334_v13 = vld [vmem:[%s11660_s3 + $0x2e0] sm:$0xf]  ;;  %v7480_v15 = vld [vmem:[%s11660_s3 + $0x2ec] sm:$0xf0] }
   0xf   : > { %443 = vmatpush.bf16.msra.mxu0 %v425_v10  ;;  %v428_v14 = vsel %vm423_vm0, %v5923_v6, 0  ;;  %v6462_v16 = vld [vmem:[%s11660_s3 + $0x3e0] sm:$0xf]  ;;  %v6335_v19 = vor.u32 %v7480_v15, %v6334_v13  ;;  %v7512_v20 = vld [vmem:[%s11660_s3 + $0x3ec] sm:$0xf0]  ;;  %vm398_vm1 = vcmask 80896  }
  0x10   : > { %492 = vmatpush.bf16.msra.mxu1 %v428_v14  ;;  %v431_v17 = vsel %vm423_vm0, %v5927_v11, 0  ;;  %v434_v18 = vsel %vm423_vm0, %v5931_v12, 0  ;;  %s11746_s11 = smov (!%p299_p3, %s5880_s11), 31  ;;  %v6463_v21 = vor.u32 %v7512_v20, %v6462_v16  ;;  %v6078_v22 = vld [vmem:[%s11660_s3 + $0xe0] sm:$0xf] }
  0x11   : > { %541 = vmatpush.bf16.msra.mxu2 %v431_v17  ;;  %590 = vmatpush.bf16.msra.mxu3 %v434_v18  ;;  %v7416_v23 = vld [vmem:[%s11660_s3 + $0xec] sm:$0xf0]  ;;  %v6206_v24 = vld [vmem:[%s11660_s3 + $0x1e0] sm:$0xf]  ;;  %s5881_s18 = sshll.u32 %s11746_s11, 2  ;;  %s7738_s13 = smul.u32 28, %s11746_s11 }
  0x12   : > { %v6079_v25 = vor.u32 %v7416_v23, %v6078_v22  ;;  %v7448_v26 = vld [vmem:[%s11660_s3 + $0x1ec] sm:$0xf0]  ;;  %s8095_s23 = scalar_lea.vmem %s11657_s0, %s5881_s18  ;;  %v6318_v29 = vld [vmem:[%s11660_s3 + $0x2c0] sm:$0xf] }
  0x13   : > { %v6207_v27 = vor.u32 %v7448_v26, %v6206_v24  ;;  %v7374_v28 = vld [vmem:[%s8095_s23] sm:$0xff]  ;;  %v7476_v30 = vld [vmem:[%s11660_s3 + $0x2cc] sm:$0xf0]  ;;  %v7375_v41 = vld [vmem:[%s8095_s23 + $0x8] sm:$0xff]  ;;  %s10214_s10 = scalar_lea.vmem %s11665_s8, %s7738_s13 }
  0x14   : > { %1624 = vmatpush.bf16.msrb.mxu0 %v6079_v25  ;;  %5940 = vmatmul.msk.bf16.vlgmr.msra.gmra.mxu1 %vm398_vm1, %v7374_v28  ;;  %v6446_v31 = vld [vmem:[%s11660_s3 + $0x3c0] sm:$0xf]  ;;  %v6319_v32 = vor.u32 %v7476_v30, %v6318_v29  ;;  %v7508_v33 = vld [vmem:[%s11660_s3 + $0x3cc] sm:$0xf0]  ;;  %v7377_v3 = vld [vmem:[%s8095_s23 + $0x18] sm:$0xff] }
  0x15   : > { %1722 = vmatpush.bf16.msrb.mxu2 %v6335_v19  ;;  %1771 = vmatpush.bf16.msrb.mxu3 %v6463_v21  ;;  %v6062_v34 = vld [vmem:[%s11660_s3 + $0xc0] sm:$0xf]  ;;  %v7412_v35 = vld [vmem:[%s11660_s3 + $0xcc] sm:$0xf0]  ;;  %v6447_v36 = vor.u32 %v7508_v33, %v6446_v31  ;;  %v7379_v29 = vld [vmem:[%s8095_s23 + $0x28] sm:$0xff] }
  0x16   : > { %1673 = vmatpush.bf16.msrb.mxu1 %v6207_v27  ;;  %5932 = vmatmul.msk.bf16.vlgmr.msra.gmra.mxu0 %vm398_vm1, %v7374_v28  ;;  %v6063_v37 = vor.u32 %v7412_v35, %v6062_v34  ;;  %v6190_v38 = vld [vmem:[%s11660_s3 + $0x1c0] sm:$0xf]  ;;  %v7444_v39 = vld [vmem:[%s11660_s3 + $0x1cc] sm:$0xf0] }
  0x17   : > { %5948 = vmatmul.msk.bf16.vlgmr.msra.gmra.mxu2 %vm398_vm1, %v7374_v28  ;;  %5956 = vmatmul.msk.bf16.vlgmr.msra.gmra.mxu3 %vm398_vm1, %v7374_v28  ;;  %v6191_v40 = vor.u32 %v7444_v39, %v6190_v38  ;;  %v6302_v42 = vld [vmem:[%s11660_s3 + $0x2a0] sm:$0xf]  ;;  %v7472_v43 = vld [vmem:[%s11660_s3 + $0x2ac] sm:$0xf0] }
  0x18   : > { %1625 = vmatpush.bf16.msrb.mxu0 %v6063_v37  ;;  %v6430_v44 = vld [vmem:[%s11660_s3 + $0x3a0] sm:$0xf]  ;;  %v6303_v45 = vor.u32 %v7472_v43, %v6302_v42  ;;  %v7504_v46 = vld [vmem:[%s11660_s3 + $0x3ac] sm:$0xf0] }
  0x19   : > { %1723 = vmatpush.bf16.msrb.mxu2 %v6319_v32  ;;  %1772 = vmatpush.bf16.msrb.mxu3 %v6447_v36  ;;  %v6046_v47 = vld [vmem:[%s11660_s3 + $0xa0] sm:$0xf]  ;;  %v7408_v48 = vld [vmem:[%s11660_s3 + $0xac] sm:$0xf0]  ;;  %v6431_v49 = vor.u32 %v7504_v46, %v6430_v44 }
  0x1a   : > { %1674 = vmatpush.bf16.msrb.mxu1 %v6191_v40  ;;  %v6047_v50 = vor.u32 %v7408_v48, %v6046_v47  ;;  %v6174_v51 = vld [vmem:[%s11660_s3 + $0x1a0] sm:$0xf]  ;;  %v7440_v52 = vld [vmem:[%s11660_s3 + $0x1ac] sm:$0xf0] }
  0x1b   : > { %v6175_v53 = vor.u32 %v7440_v52, %v6174_v51  ;;  %v7376_v54 = vld [vmem:[%s8095_s23 + $0x10] sm:$0xff]  ;;  %v6286_v55 = vld [vmem:[%s11660_s3 + $0x280] sm:$0xf] }
  0x1c   : > { %1626 = vmatpush.bf16.msrb.mxu0 %v6047_v50  ;;  %v7468_v56 = vld [vmem:[%s11660_s3 + $0x28c] sm:$0xf0]  ;;  %v6414_v57 = vld [vmem:[%s11660_s3 + $0x380] sm:$0xf] }
  0x1d   : > { %1724 = vmatpush.bf16.msrb.mxu2 %v6303_v45  ;;  %1773 = vmatpush.bf16.msrb.mxu3 %v6431_v49  ;;  %v6287_v58 = vor.u32 %v7468_v56, %v6286_v55  ;;  %v7500_v59 = vld [vmem:[%s11660_s3 + $0x38c] sm:$0xf0]  ;;  %v6030_v60 = vld [vmem:[%s11660_s3 + $0x80] sm:$0xf] }
  0x1e   : > { %1675 = vmatpush.bf16.msrb.mxu1 %v6175_v53  ;;  %v7404_v61 = vld [vmem:[%s11660_s3 + $0x8c] sm:$0xf0]  ;;  %v6415_v62 = vor.u32 %v7500_v59, %v6414_v57  ;;  %v6158_v0 = vld [vmem:[%s11660_s3 + $0x180] sm:$0xf]  ;;  %v7478_v57 = vld [vmem:[%s11660_s3 + $0x2e4] sm:$0xf] }
  0x1f   : > { %v6031_v63 = vor.u32 %v7404_v61, %v6030_v60  ;;  %v7436_v1 = vld [vmem:[%s11660_s3 + $0x18c] sm:$0xf0]  ;;  %v6270_v4 = vld [vmem:[%s11660_s3 + $0x260] sm:$0xf] }
  0x20   : > { %v6159_v2 = vor.u32 %v7436_v1, %v6158_v0  ;;  %v7464_v5 = vld [vmem:[%s11660_s3 + $0x26c] sm:$0xf0]  ;;  %v6398_v6 = vld [vmem:[%s11660_s3 + $0x360] sm:$0xf]  ;;  %v7414_v0 = vld [vmem:[%s11660_s3 + $0xe4] sm:$0xf] }
  0x21   : > { %1725 = vmatpush.bf16.msrb.mxu2 %v6287_v58  ;;  %1774 = vmatpush.bf16.msrb.mxu3 %v6415_v62  ;;  %v6271_v7 = vor.u32 %v7464_v5, %v6270_v4  ;;  %v7496_v8 = vld [vmem:[%s11660_s3 + $0x36c] sm:$0xf0]  ;;  %v6014_v9 = vld [vmem:[%s11660_s3 + $0x60] sm:$0xf]  ;;  %v6336_v58 = vld [vmem:[%s11660_s3 + $0x2f0] sm:$0xf0] }
  0x22   : > { %1627 = vmatpush.bf16.msrb.mxu0 %v6031_v63  ;;  %1676 = vmatpush.bf16.msrb.mxu1 %v6159_v2  ;;  %v7400_v10 = vld [vmem:[%s11660_s3 + $0x6c] sm:$0xf0]  ;;  %v6399_v11 = vor.u32 %v7496_v8, %v6398_v6  ;;  %v6142_v13 = vld [vmem:[%s11660_s3 + $0x160] sm:$0xf]  ;;  %v6339_v61 = vor.u32 %v7478_v57, %v6336_v58  ;;  %v7510_v62 = vld [vmem:[%s11660_s3 + $0x3e4] sm:$0xf] }
  0x23   : > { %v6015_v12 = vor.u32 %v7400_v10, %v6014_v9  ;;  %v7432_v14 = vld [vmem:[%s11660_s3 + $0x16c] sm:$0xf0]  ;;  %v7378_v16 = vld [vmem:[%s8095_s23 + $0x20] sm:$0xff]  ;;  %v6464_v63 = vld [vmem:[%s11660_s3 + $0x3f0] sm:$0xf0] }
  0x24   : > { %5941 = vmatmul.msk.bf16.gmra.mxu1 %vm398_vm1, %v7375_v41  ;;  %v6143_v15 = vor.u32 %v7432_v14, %v6142_v13  ;;  %v6254_v17 = vld [vmem:[%s11660_s3 + $0x240] sm:$0xf]  ;;  %v7460_v18 = vld [vmem:[%s11660_s3 + $0x24c] sm:$0xf0]  ;;  %v6467_v1 = vor.u32 %v7510_v62, %v6464_v63  ;;  %v6080_v2 = vld [vmem:[%s11660_s3 + $0xf0] sm:$0xf0] }
  0x25   : > { %1726 = vmatpush.bf16.msrb.mxu2 %v6271_v7  ;;  %1775 = vmatpush.bf16.msrb.mxu3 %v6399_v11  ;;  %v6382_v19 = vld [vmem:[%s11660_s3 + $0x340] sm:$0xf]  ;;  %v6255_v20 = vor.u32 %v7460_v18, %v6254_v17  ;;  %v7492_v21 = vld [vmem:[%s11660_s3 + $0x34c] sm:$0xf0]  ;;  %v6208_v4 = vld [vmem:[%s11660_s3 + $0x1f0] sm:$0xf0]  ;;  %v6083_v7 = vor.u32 %v7414_v0, %v6080_v2 }
  0x26   : > { %5933 = vmatmul.msk.bf16.gmra.mxu0 %vm398_vm1, %v7375_v41  ;;  %1677 = vmatpush.bf16.msrb.mxu1 %v6143_v15  ;;  %v5998_v22 = vld [vmem:[%s11660_s3 + $0x40] sm:$0xf]  ;;  %v7396_v23 = vld [vmem:[%s11660_s3 + $0x4c] sm:$0xf0]  ;;  %v6383_v24 = vor.u32 %v7492_v21, %v6382_v19 }
  0x27   : > { %5949 = vmatmul.msk.bf16.gmra.mxu2 %vm398_vm1, %v7375_v41  ;;  %5957 = vmatmul.msk.bf16.gmra.mxu3 %vm398_vm1, %v7375_v41  ;;  %v5999_v25 = vor.u32 %v7396_v23, %v5998_v22  ;;  %v6126_v26 = vld [vmem:[%s11660_s3 + $0x140] sm:$0xf]  ;;  %v7428_v27 = vld [vmem:[%s11660_s3 + $0x14c] sm:$0xf0] }
  0x28   : > { %1628 = vmatpush.bf16.msrb.mxu0 %v6015_v12  ;;  %v6127_v28 = vor.u32 %v7428_v27, %v6126_v26  ;;  %v6238_v30 = vld [vmem:[%s11660_s3 + $0x220] sm:$0xf]  ;;  %v7456_v31 = vld [vmem:[%s11660_s3 + $0x22c] sm:$0xf0]  ;;  %v7474_v27 = vld [vmem:[%s11660_s3 + $0x2c4] sm:$0xf] }
  0x29   : > { %1727 = vmatpush.bf16.msrb.mxu2 %v6255_v20  ;;  %1776 = vmatpush.bf16.msrb.mxu3 %v6383_v24  ;;  %v6366_v32 = vld [vmem:[%s11660_s3 + $0x320] sm:$0xf]  ;;  %v6239_v33 = vor.u32 %v7456_v31, %v6238_v30  ;;  %v7488_v34 = vld [vmem:[%s11660_s3 + $0x32c] sm:$0xf0] }
  0x2a   : > { %1678 = vmatpush.bf16.msrb.mxu1 %v6127_v28  ;;  %v5982_v35 = vld [vmem:[%s11660_s3 + $0x20] sm:$0xf]  ;;  %v7392_v36 = vld [vmem:[%s11660_s3 + $0x2c] sm:$0xf0]  ;;  %v6367_v37 = vor.u32 %v7488_v34, %v6366_v32  ;;  %v6320_v28 = vld [vmem:[%s11660_s3 + $0x2d0] sm:$0xf0] }
  0x2b   : > { %v5983_v38 = vor.u32 %v7392_v36, %v5982_v35  ;;  %v6110_v39 = vld [vmem:[%s11660_s3 + $0x120] sm:$0xf]  ;;  %v7424_v40 = vld [vmem:[%s11660_s3 + $0x12c] sm:$0xf0]  ;;  %v6323_v32 = vor.u32 %v7474_v27, %v6320_v28  ;;  %v7506_v35 = vld [vmem:[%s11660_s3 + $0x3c4] sm:$0xf] }
  0x2c   : > { %1629 = vmatpush.bf16.msrb.mxu0 %v5999_v25  ;;  %v6111_v41 = vor.u32 %v7424_v40, %v6110_v39  ;;  %v7380_v42 = vld [vmem:[%s8095_s23 + $0x30] sm:$0xff]  ;;  %v5966_v43 = vld [vmem:[%s11660_s3] sm:$0xf] }
  0x2d   : > { %1728 = vmatpush.bf16.msrb.mxu2 %v6239_v33  ;;  %1777 = vmatpush.bf16.msrb.mxu3 %v6367_v37  ;;  %v7388_v44 = vld [vmem:[%s11660_s3 + $0xc] sm:$0xf0]  ;;  %v6094_v45 = vld [vmem:[%s11660_s3 + $0x100] sm:$0xf]  ;;  %v6448_v36 = vld [vmem:[%s11660_s3 + $0x3d0] sm:$0xf0] }
  0x2e   : > { %1679 = vmatpush.bf16.msrb.mxu1 %v6111_v41  ;;  %v6222_v46 = vld [vmem:[%s11660_s3 + $0x200] sm:$0xf]  ;;  %v7452_v47 = vld [vmem:[%s11660_s3 + $0x20c] sm:$0xf0]  ;;  %v5967_v48 = vor.u32 %v7388_v44, %v5966_v43  ;;  %v7410_v37 = vld [vmem:[%s11660_s3 + $0xc4] sm:$0xf]  ;;  %v6451_v40 = vor.u32 %v7506_v35, %v6448_v36 }
  0x2f   : > { %v7420_v49 = vld [vmem:[%s11660_s3 + $0x10c] sm:$0xf0]  ;;  %v6223_v50 = vor.u32 %v7452_v47, %v6222_v46  ;;  %v6350_v52 = vld [vmem:[%s11660_s3 + $0x300] sm:$0xf]  ;;  %v6064_v41 = vld [vmem:[%s11660_s3 + $0xd0] sm:$0xf0] }
  0x30   : > { %1630 = vmatpush.bf16.msrb.mxu0 %v5983_v38  ;;  %v6095_v51 = vor.u32 %v7420_v49, %v6094_v45  ;;  %v7484_v53 = vld [vmem:[%s11660_s3 + $0x30c] sm:$0xf0]  ;;  %v332_v56 = vld [vmem:[%s11659_s2] sm:$0xf]  ;;  %v6192_v43 = vld [vmem:[%s11660_s3 + $0x1d0] sm:$0xf0]  ;;  %v6067_v49 = vor.u32 %v7410_v37, %v6064_v41 }
  0x31   : > { %1729 = vmatpush.bf16.msrb.mxu2 %v6223_v50  ;;  %v6351_v55 = vor.u32 %v7484_v53, %v6350_v52  ;;  %v8314_v59 = vperm.slane %v332_v56, 0  ;;  %v8316_v60 = vperm.slane %v332_v56, 1  ;;  %v8338_v11 = vperm.slane %v332_v56, 2 }
  0x32   : > { %1680 = vmatpush.bf16.msrb.mxu1 %v6095_v51  ;;  %v8341_v17 = vperm.slane %v332_v56, 3 }
  0x33   : > { %1778 = vmatpush.bf16.msrb.mxu3 %v6351_v55 }
  0x34   : > { %5942 = vmatmul.msk.bf16.gmra.mxu1 %vm398_vm1, %v7376_v54  ;;  %1631 = vmatpush.bf16.msrb.mxu0 %v5967_v48 }
  0x35   : > { %1918 = vmatpush.bf16.msra.mxu2 %v6339_v61 }
  0x36   : > { %5934 = vmatmul.msk.bf16.gmra.mxu0 %vm398_vm1, %v7376_v54 }
  0x37   : > { %5950 = vmatmul.msk.bf16.gmra.mxu2 %vm398_vm1, %v7376_v54  ;;  %5958 = vmatmul.msk.bf16.gmra.mxu3 %vm398_vm1, %v7376_v54  ;;  %v7381_v54 = vld [vmem:[%s8095_s23 + $0x38] sm:$0xff] }
  0x38   : > { %1967 = vmatpush.bf16.msra.mxu3 %v6467_v1  ;;  %1820 = vmatpush.bf16.msra.mxu0 %v6083_v7 }
  0x39   : > { %1919 = vmatpush.bf16.msra.mxu2 %v6323_v32 }
  0x3c   : > { %1968 = vmatpush.bf16.msra.mxu3 %v6451_v40  ;;  %1821 = vmatpush.bf16.msra.mxu0 %v6067_v49 }
  0x44   : > { %5943 = vmatmul.msk.bf16.gmra.mxu1 %vm398_vm1, %v7377_v3 }
  0x46   : > { %5935 = vmatmul.msk.bf16.gmra.mxu0 %vm398_vm1, %v7377_v3 }
  0x47   : > { %5951 = vmatmul.msk.bf16.gmra.mxu2 %vm398_vm1, %v7377_v3  ;;  %5959 = vmatmul.msk.bf16.gmra.mxu3 %vm398_vm1, %v7377_v3  ;;  %v7446_v3 = vld [vmem:[%s11660_s3 + $0x1e4] sm:$0xf] }
  0x48   : > { %v6211_v8 = vor.u32 %v7446_v3, %v6208_v4 }
  0x4a   : > { %1869 = vmatpush.bf16.msra.mxu1 %v6211_v8 }
  0x54   : > { %5944 = vmatmul.msk.bf16.gmra.mxu1 %vm398_vm1, %v7378_v16 }
  0x56   : > { %5936 = vmatmul.msk.bf16.gmra.mxu0 %vm398_vm1, %v7378_v16 }
  0x57   : > { %5952 = vmatmul.msk.bf16.gmra.mxu2 %vm398_vm1, %v7378_v16  ;;  %5960 = vmatmul.msk.bf16.gmra.mxu3 %vm398_vm1, %v7378_v16 }
  0x64   : > { %5945 = vmatmul.msk.bf16.gmra.mxu1 %vm398_vm1, %v7379_v29 }
  0x66   : > { %5937 = vmatmul.msk.bf16.gmra.mxu0 %vm398_vm1, %v7379_v29 }
  0x67   : > { %5953 = vmatmul.msk.bf16.gmra.mxu2 %vm398_vm1, %v7379_v29  ;;  %5961 = vmatmul.msk.bf16.gmra.mxu3 %vm398_vm1, %v7379_v29 }
  0x74   : > { %5946 = vmatmul.msk.bf16.gmra.mxu1 %vm398_vm1, %v7380_v42 }
  0x76   : > { %5938 = vmatmul.msk.bf16.gmra.mxu0 %vm398_vm1, %v7380_v42 }
  0x77   : > { %5954 = vmatmul.msk.bf16.gmra.mxu2 %vm398_vm1, %v7380_v42  ;;  %5962 = vmatmul.msk.bf16.gmra.mxu3 %vm398_vm1, %v7380_v42  ;;  %v7442_v42 = vld [vmem:[%s11660_s3 + $0x1c4] sm:$0xf] }
  0x78   : > { %v6195_v52 = vor.u32 %v7442_v42, %v6192_v43 }
  0x7a   : > { %1870 = vmatpush.bf16.msra.mxu1 %v6195_v52 }
  0x84   : > { %5947 = vmatmul.msk.bf16.gmra.mxu1 %vm398_vm1, %v7381_v54 }
  0x86   : > { %5939 = vmatmul.msk.bf16.gmra.mxu0 %vm398_vm1, %v7381_v54 }
  0x87   : > { %5955 = vmatmul.msk.bf16.gmra.mxu2 %vm398_vm1, %v7381_v54  ;;  %5963 = vmatmul.msk.bf16.gmra.mxu3 %vm398_vm1, %v7381_v54 }
  0x91   : > { %v494_v6 = vpop.f32.mrf.mxu1 }
  0x92   : > { %v495_v10 = vadd.f32 %v494_v6, %v8316_v60 }
  0x93   : > { %v445_v5 = vpop.f32.mrf.mxu0 }
  0x94   : > { %v446_v9 = vadd.f32 %v445_v5, %v8314_v59  ;;  %v697_v13 = vmul.f32 0.2, %v495_v10  ;;  %vm633_vm3 = vcmp.gt.f32.partialorder %v495_v10, 0.0 }
  0x96   : > { %v696_v12 = vmul.f32 0.2, %v446_v9  ;;  %vm632_vm2 = vcmp.gt.f32.partialorder %v446_v9, 0.0  ;;  %v761_v23 = vsel %vm633_vm3, %v495_v10, %v697_v13 }
  0x98   : > { %v760_v22 = vsel %vm632_vm2, %v446_v9, %v696_v12 }
  0x99   : > { %v496_v19 = vpop.f32.mrf.mxu1 }
  0x9a   : > { %v543_v14 = vpop.f32.mrf.mxu2  ;;  %v592_v15 = vpop.f32.mrf.mxu3  ;;  %v497_v21 = vadd.f32 %v496_v19, %v8316_v60 }
  0x9b   : > { %v544_v16 = vadd.f32 %v543_v14, %v8338_v11  ;;  %v447_v18 = vpop.f32.mrf.mxu0  ;;  %v593_v26 = vadd.f32 %v592_v15, %v8341_v17  ;;  %v7470_v14 = vld [vmem:[%s11660_s3 + $0x2a4] sm:$0xf]  ;;  %v6304_v15 = vld [vmem:[%s11660_s3 + $0x2b0] sm:$0xf0] }
  0x9c   : > { %v448_v20 = vadd.f32 %v447_v18, %v8314_v59  ;;  %vm637_vm5 = vcmp.gt.f32.partialorder %v497_v21, 0.0  ;;  %v701_v25 = vmul.f32 0.2, %v497_v21 }
  0x9d   : > { %vm634_vm6 = vcmp.gt.f32.partialorder %v544_v16, 0.0  ;;  %v698_v29 = vmul.f32 0.2, %v544_v16  ;;  %v699_v44 = vmul.f32 0.2, %v593_v26  ;;  %vm635_vm7 = vcmp.gt.f32.partialorder %v593_v26, 0.0 }
  0x9e   : > { %vm636_vm4 = vcmp.gt.f32.partialorder %v448_v20, 0.0  ;;  %v700_v24 = vmul.f32 0.2, %v448_v20  ;;  %v765_v31 = vsel %vm637_vm5, %v497_v21, %v701_v25  ;;  %v7406_v25 = vld [vmem:[%s11660_s3 + $0xa4] sm:$0xf] }
  0x9f   : > { %v8354_v34 = vpack.c.bf16 %v765_v31, %v761_v23  ;;  %v762_v55 = vsel %vm634_vm6, %v544_v16, %v698_v29  ;;  %v763_v56 = vsel %vm635_vm7, %v593_v26, %v699_v44  ;;  %v7502_v23 = vld [vmem:[%s11660_s3 + $0x3a4] sm:$0xf]  ;;  %v6048_v29 = vld [vmem:[%s11660_s3 + $0xb0] sm:$0xf0] }
  0xa0   : > { %v764_v30 = vsel %vm636_vm4, %v448_v20, %v700_v24  ;;  %v6307_v20 = vor.u32 %v7470_v14, %v6304_v15  ;;  %v6432_v24 = vld [vmem:[%s11660_s3 + $0x3b0] sm:$0xf0]  ;;  %v7498_v14 = vld [vmem:[%s11660_s3 + $0x384] sm:$0xf] }
  0xa1   : > { %v8352_v33 = vpack.c.bf16 %v764_v30, %v760_v22  ;;  %v499_v48 = vpop.f32.mrf.mxu1  ;;  %1681 = vmatmul.bf16.vlgmr.msrb.gmra.mxu1 %v8354_v34  ;;  %v6435_v28 = vor.u32 %v7502_v23, %v6432_v24  ;;  %v7438_v30 = vld [vmem:[%s11660_s3 + $0x1a4] sm:$0xf]  ;;  %v6176_v31 = vld [vmem:[%s11660_s3 + $0x1b0] sm:$0xf0] }
  0xa2   : > { %v545_v38 = vpop.f32.mrf.mxu2  ;;  %v594_v39 = vpop.f32.mrf.mxu3  ;;  %v500_v51 = vadd.f32 %v499_v48, %v8316_v60  ;;  %1920 = vmatpush.bf16.msra.mxu2 %v6307_v20  ;;  %v6179_v42 = vor.u32 %v7438_v30, %v6176_v31  ;;  %v6416_v15 = vld [vmem:[%s11660_s3 + $0x390] sm:$0xf0]  ;;  %v7434_v24 = vld [vmem:[%s11660_s3 + $0x184] sm:$0xf] }
  0xa3   : > { %v546_v45 = vadd.f32 %v545_v38, %v8338_v11  ;;  %v595_v46 = vadd.f32 %v594_v39, %v8341_v17  ;;  %v450_v47 = vpop.f32.mrf.mxu0  ;;  %1632 = vmatmul.bf16.vlgmr.msrb.gmra.mxu0 %v8352_v33  ;;  %v6051_v39 = vor.u32 %v7406_v25, %v6048_v29  ;;  %1969 = vmatpush.bf16.msra.mxu3 %v6435_v28  ;;  %v6032_v23 = vld [vmem:[%s11660_s3 + $0x90] sm:$0xf0] }
  0xa4   : > { %v451_v50 = vadd.f32 %v450_v47, %v8314_v59  ;;  %v705_v0 = vmul.f32 0.2, %v500_v51  ;;  %vm641_vm11 = vcmp.gt.f32.partialorder %v500_v51, 0.0  ;;  %1871 = vmatpush.bf16.msra.mxu1 %v6179_v42  ;;  %v6419_v20 = vor.u32 %v7498_v14, %v6416_v15  ;;  %v6160_v25 = vld [vmem:[%s11660_s3 + $0x190] sm:$0xf0] }
  0xa5   : > { %vm638_vm8 = vcmp.gt.f32.partialorder %v546_v45, 0.0  ;;  %v702_v53 = vmul.f32 0.2, %v546_v45  ;;  %vm639_vm9 = vcmp.gt.f32.partialorder %v595_v46, 0.0  ;;  %v703_v54 = vmul.f32 0.2, %v595_v46  ;;  %1822 = vmatpush.bf16.msra.mxu0 %v6051_v39 }
  0xa6   : > { %v704_v63 = vmul.f32 0.2, %v451_v50  ;;  %vm640_vm10 = vcmp.gt.f32.partialorder %v451_v50, 0.0  ;;  %v769_v9 = vsel %vm641_vm11, %v500_v51, %v705_v0  ;;  %v7398_v14 = vld [vmem:[%s11660_s3 + $0x64] sm:$0xf] }
  0xa7   : > { %v766_v57 = vsel %vm638_vm8, %v546_v45, %v702_v53  ;;  %v767_v58 = vsel %vm639_vm9, %v595_v46, %v703_v54  ;;  %1970 = vmatpush.bf16.msra.mxu3 %v6419_v20  ;;  %v7430_v20 = vld [vmem:[%s11660_s3 + $0x164] sm:$0xf] }
  0xa8   : > { %v8381_v61 = vpack.c.bf16 %v766_v57, %v762_v55  ;;  %v8383_v62 = vpack.c.bf16 %v767_v58, %v763_v56  ;;  %v768_v8 = vsel %vm640_vm10, %v451_v50, %v704_v63 }
  0xa9   : > { %v501_v5 = vpop.f32.mrf.mxu1 }
  0xaa   : > { %v548_v1 = vpop.f32.mrf.mxu2  ;;  %v597_v2 = vpop.f32.mrf.mxu3  ;;  %1730 = vmatmul.bf16.vlgmr.msrb.gmra.mxu2 %v8381_v61  ;;  %1779 = vmatmul.bf16.vlgmr.msrb.gmra.mxu3 %v8383_v62  ;;  %v502_v7 = vadd.f32 %v501_v5, %v8316_v60  ;;  %v7466_v5 = vld [vmem:[%s11660_s3 + $0x284] sm:$0xf] }
  0xab   : > { %v549_v3 = vadd.f32 %v548_v1, %v8338_v11  ;;  %v452_v4 = vpop.f32.mrf.mxu0  ;;  %v598_v13 = vadd.f32 %v597_v2, %v8341_v17 }
  0xac   : > { %v453_v6 = vadd.f32 %v452_v4, %v8314_v59  ;;  %vm645_vm13 = vcmp.gt.f32.partialorder %v502_v7, 0.0  ;;  %v709_v12 = vmul.f32 0.2, %v502_v7 }
  0xad   : > { %vm642_vm14 = vcmp.gt.f32.partialorder %v549_v3, 0.0  ;;  %v706_v16 = vmul.f32 0.2, %v549_v3  ;;  %v707_v32 = vmul.f32 0.2, %v598_v13  ;;  %vm643_vm15 = vcmp.gt.f32.partialorder %v598_v13, 0.0 }
  0xae   : > { %vm644_vm12 = vcmp.gt.f32.partialorder %v453_v6, 0.0  ;;  %v708_v10 = vmul.f32 0.2, %v453_v6  ;;  %v773_v19 = vsel %vm645_vm13, %v502_v7, %v709_v12 }
  0xaf   : > { %v8399_v22 = vpack.c.bf16 %v773_v19, %v769_v9  ;;  %v770_v45 = vsel %vm642_vm14, %v549_v3, %v706_v16  ;;  %v771_v46 = vsel %vm643_vm15, %v598_v13, %v707_v32  ;;  %v7402_v16 = vld [vmem:[%s11660_s3 + $0x84] sm:$0xf] }
  0xb0   : > { %v772_v18 = vsel %vm644_vm12, %v453_v6, %v708_v10  ;;  %v6288_v6 = vld [vmem:[%s11660_s3 + $0x290] sm:$0xf0]  ;;  %v6035_v31 = vor.u32 %v7402_v16, %v6032_v23 }
  0xb1   : > { %v8397_v21 = vpack.c.bf16 %v772_v18, %v768_v8  ;;  %v504_v38 = vpop.f32.mrf.mxu1  ;;  %1686 = vmatmul.bf16.gmra.mxu1 %v8399_v22  ;;  %v6291_v10 = vor.u32 %v7466_v5, %v6288_v6  ;;  %v6144_v23 = vld [vmem:[%s11660_s3 + $0x170] sm:$0xf0] }
  0xb2   : > { %v550_v26 = vpop.f32.mrf.mxu2  ;;  %v599_v27 = vpop.f32.mrf.mxu3  ;;  %v505_v41 = vadd.f32 %v504_v38, %v8316_v60  ;;  %1823 = vmatpush.bf16.msra.mxu0 %v6035_v31 }
  0xb3   : > { %v551_v35 = vadd.f32 %v550_v26, %v8338_v11  ;;  %v600_v36 = vadd.f32 %v599_v27, %v8341_v17  ;;  %v455_v37 = vpop.f32.mrf.mxu0  ;;  %1637 = vmatmul.bf16.gmra.mxu0 %v8397_v21  ;;  %1921 = vmatpush.bf16.msra.mxu2 %v6291_v10  ;;  %v6400_v10 = vld [vmem:[%s11660_s3 + $0x370] sm:$0xf0] }
  0xb4   : > { %v456_v40 = vadd.f32 %v455_v37, %v8314_v59  ;;  %v713_v52 = vmul.f32 0.2, %v505_v41  ;;  %vm649_vm3 = vcmp.gt.f32.partialorder %v505_v41, 0.0 }
  0xb5   : > { %vm646_vm0 = vcmp.gt.f32.partialorder %v551_v35, 0.0  ;;  %v710_v43 = vmul.f32 0.2, %v551_v35  ;;  %vm647_vm1 = vcmp.gt.f32.partialorder %v600_v36, 0.0  ;;  %v711_v44 = vmul.f32 0.2, %v600_v36 }
  0xb6   : > { %v712_v51 = vmul.f32 0.2, %v456_v40  ;;  %vm648_vm2 = vcmp.gt.f32.partialorder %v456_v40, 0.0  ;;  %v777_v1 = vsel %vm649_vm3, %v505_v41, %v713_v52 }
  0xb7   : > { %v774_v47 = vsel %vm646_vm0, %v551_v35, %v710_v43  ;;  %v775_v48 = vsel %vm647_vm1, %v600_v36, %v711_v44  ;;  %v6163_v36 = vor.u32 %v7434_v24, %v6160_v25 }
  0xb8   : > { %v8426_v49 = vpack.c.bf16 %v774_v47, %v770_v45  ;;  %v8428_v50 = vpack.c.bf16 %v775_v48, %v771_v46  ;;  %v776_v0 = vsel %vm648_vm2, %v456_v40, %v712_v51 }
  0xb9   : > { %v506_v57 = vpop.f32.mrf.mxu1  ;;  %1872 = vmatpush.bf16.msra.mxu1 %v6163_v36 }
  0xba   : > { %v553_v53 = vpop.f32.mrf.mxu2  ;;  %v602_v54 = vpop.f32.mrf.mxu3  ;;  %1735 = vmatmul.bf16.gmra.mxu2 %v8426_v49  ;;  %1784 = vmatmul.bf16.gmra.mxu3 %v8428_v50  ;;  %v507_v63 = vadd.f32 %v506_v57, %v8316_v60 }
  0xbb   : > { %v554_v55 = vadd.f32 %v553_v53, %v8338_v11  ;;  %v457_v56 = vpop.f32.mrf.mxu0  ;;  %v603_v4 = vadd.f32 %v602_v54, %v8341_v17 }
  0xbc   : > { %v458_v58 = vadd.f32 %v457_v56, %v8314_v59  ;;  %vm653_vm5 = vcmp.gt.f32.partialorder %v507_v63, 0.0  ;;  %v717_v3 = vmul.f32 0.2, %v507_v63 }
  0xbd   : > { %vm650_vm6 = vcmp.gt.f32.partialorder %v554_v55, 0.0  ;;  %v714_v7 = vmul.f32 0.2, %v554_v55  ;;  %v715_v26 = vmul.f32 0.2, %v603_v4  ;;  %vm651_vm7 = vcmp.gt.f32.partialorder %v603_v4, 0.0 }
  0xbe   : > { %vm652_vm4 = vcmp.gt.f32.partialorder %v458_v58, 0.0  ;;  %v716_v2 = vmul.f32 0.2, %v458_v58  ;;  %v781_v9 = vsel %vm653_vm5, %v507_v63, %v717_v3 }
  0xbf   : > { %v8444_v13 = vpack.c.bf16 %v781_v9, %v777_v1  ;;  %v778_v39 = vsel %vm650_vm6, %v554_v55, %v714_v7  ;;  %v779_v40 = vsel %vm651_vm7, %v603_v4, %v715_v26  ;;  %v7462_v1 = vld [vmem:[%s11660_s3 + $0x264] sm:$0xf] }
  0xc0   : > { %v780_v8 = vsel %vm652_vm4, %v458_v58, %v716_v2  ;;  %v6272_v2 = vld [vmem:[%s11660_s3 + $0x270] sm:$0xf0]  ;;  %v7494_v9 = vld [vmem:[%s11660_s3 + $0x364] sm:$0xf] }
  0xc1   : > { %v8442_v12 = vpack.c.bf16 %v780_v8, %v776_v0  ;;  %v509_v30 = vpop.f32.mrf.mxu1  ;;  %1691 = vmatmul.bf16.gmra.mxu1 %v8444_v13  ;;  %v6275_v6 = vor.u32 %v7462_v1, %v6272_v2  ;;  %v7458_v1 = vld [vmem:[%s11660_s3 + $0x244] sm:$0xf]  ;;  %v6256_v2 = vld [vmem:[%s11660_s3 + $0x250] sm:$0xf0] }
  0xc2   : > { %v555_v18 = vpop.f32.mrf.mxu2  ;;  %v604_v19 = vpop.f32.mrf.mxu3  ;;  %v510_v35 = vadd.f32 %v509_v30, %v8316_v60 }
  0xc3   : > { %v556_v27 = vadd.f32 %v555_v18, %v8338_v11  ;;  %v605_v28 = vadd.f32 %v604_v19, %v8341_v17  ;;  %v460_v29 = vpop.f32.mrf.mxu0  ;;  %1642 = vmatmul.bf16.gmra.mxu0 %v8442_v12  ;;  %1922 = vmatpush.bf16.msra.mxu2 %v6275_v6  ;;  %v6403_v18 = vor.u32 %v7494_v9, %v6400_v10  ;;  %v6016_v19 = vld [vmem:[%s11660_s3 + $0x70] sm:$0xf0] }
  0xc4   : > { %v461_v32 = vadd.f32 %v460_v29, %v8314_v59  ;;  %v721_v46 = vmul.f32 0.2, %v510_v35  ;;  %vm657_vm11 = vcmp.gt.f32.partialorder %v510_v35, 0.0  ;;  %v6019_v29 = vor.u32 %v7398_v14, %v6016_v19  ;;  %v7490_v14 = vld [vmem:[%s11660_s3 + $0x344] sm:$0xf] }
  0xc5   : > { %vm654_vm8 = vcmp.gt.f32.partialorder %v556_v27, 0.0  ;;  %v718_v37 = vmul.f32 0.2, %v556_v27  ;;  %vm655_vm9 = vcmp.gt.f32.partialorder %v605_v28, 0.0  ;;  %v719_v38 = vmul.f32 0.2, %v605_v28  ;;  %1971 = vmatpush.bf16.msra.mxu3 %v6403_v18 }
  0xc6   : > { %v720_v45 = vmul.f32 0.2, %v461_v32  ;;  %vm656_vm10 = vcmp.gt.f32.partialorder %v461_v32, 0.0  ;;  %v785_v57 = vsel %vm657_vm11, %v510_v35, %v721_v46  ;;  %1824 = vmatpush.bf16.msra.mxu0 %v6019_v29  ;;  %v6259_v6 = vor.u32 %v7458_v1, %v6256_v2 }
  0xc7   : > { %v782_v41 = vsel %vm654_vm8, %v556_v27, %v718_v37  ;;  %v783_v42 = vsel %vm655_vm9, %v605_v28, %v719_v38 }
  0xc8   : > { %v8471_v43 = vpack.c.bf16 %v782_v41, %v778_v39  ;;  %v8473_v44 = vpack.c.bf16 %v783_v42, %v779_v40  ;;  %v784_v56 = vsel %vm656_vm10, %v461_v32, %v720_v45  ;;  %v6147_v32 = vor.u32 %v7430_v20, %v6144_v23  ;;  %1923 = vmatpush.bf16.msra.mxu2 %v6259_v6  ;;  %v6000_v23 = vld [vmem:[%s11660_s3 + $0x50] sm:$0xf0] }
  0xc9   : > { %v511_v53 = vpop.f32.mrf.mxu1  ;;  %v6240_v6 = vld [vmem:[%s11660_s3 + $0x230] sm:$0xf0] }
  0xca   : > { %v558_v47 = vpop.f32.mrf.mxu2  ;;  %v607_v48 = vpop.f32.mrf.mxu3  ;;  %1740 = vmatmul.bf16.gmra.mxu2 %v8471_v43  ;;  %1789 = vmatmul.bf16.gmra.mxu3 %v8473_v44  ;;  %v512_v55 = vadd.f32 %v511_v53, %v8316_v60 }
  0xcb   : > { %v559_v51 = vadd.f32 %v558_v47, %v8338_v11  ;;  %v462_v52 = vpop.f32.mrf.mxu0  ;;  %v608_v0 = vadd.f32 %v607_v48, %v8341_v17  ;;  %1873 = vmatpush.bf16.msra.mxu1 %v6147_v32 }
  0xcc   : > { %v463_v54 = vadd.f32 %v462_v52, %v8314_v59  ;;  %vm661_vm13 = vcmp.gt.f32.partialorder %v512_v55, 0.0  ;;  %v725_v63 = vmul.f32 0.2, %v512_v55 }
  0xcd   : > { %vm658_vm14 = vcmp.gt.f32.partialorder %v559_v51, 0.0  ;;  %v722_v3 = vmul.f32 0.2, %v559_v51  ;;  %v723_v24 = vmul.f32 0.2, %v608_v0  ;;  %vm659_vm15 = vcmp.gt.f32.partialorder %v608_v0, 0.0 }
  0xce   : > { %vm660_vm12 = vcmp.gt.f32.partialorder %v463_v54, 0.0  ;;  %v724_v58 = vmul.f32 0.2, %v463_v54  ;;  %v789_v5 = vsel %vm661_vm13, %v512_v55, %v725_v63 }
  0xcf   : > { %v8489_v8 = vpack.c.bf16 %v789_v5, %v785_v57  ;;  %v786_v37 = vsel %vm658_vm14, %v559_v51, %v722_v3  ;;  %v787_v38 = vsel %vm659_vm15, %v608_v0, %v723_v24  ;;  %v7426_v24 = vld [vmem:[%s11660_s3 + $0x144] sm:$0xf] }
  0xd0   : > { %v788_v4 = vsel %vm660_vm12, %v463_v54, %v724_v58 }
  0xd1   : > { %v8487_v7 = vpack.c.bf16 %v788_v4, %v784_v56  ;;  %v514_v28 = vpop.f32.mrf.mxu1  ;;  %1696 = vmatmul.bf16.gmra.mxu1 %v8489_v8 }
  0xd2   : > { %v560_v15 = vpop.f32.mrf.mxu2  ;;  %v609_v16 = vpop.f32.mrf.mxu3  ;;  %v515_v31 = vadd.f32 %v514_v28, %v8316_v60 }
  0xd3   : > { %v561_v25 = vadd.f32 %v560_v15, %v8338_v11  ;;  %v610_v26 = vadd.f32 %v609_v16, %v8341_v17  ;;  %v465_v27 = vpop.f32.mrf.mxu0  ;;  %1647 = vmatmul.bf16.gmra.mxu0 %v8487_v7  ;;  %v6384_v15 = vld [vmem:[%s11660_s3 + $0x350] sm:$0xf0]  ;;  %v7394_v16 = vld [vmem:[%s11660_s3 + $0x44] sm:$0xf] }
  0xd4   : > { %v466_v30 = vadd.f32 %v465_v27, %v8314_v59  ;;  %v729_v46 = vmul.f32 0.2, %v515_v31  ;;  %vm665_vm3 = vcmp.gt.f32.partialorder %v515_v31, 0.0  ;;  %v6387_v20 = vor.u32 %v7490_v14, %v6384_v15 }
  0xd5   : > { %vm662_vm0 = vcmp.gt.f32.partialorder %v561_v25, 0.0  ;;  %v726_v35 = vmul.f32 0.2, %v561_v25  ;;  %vm663_vm1 = vcmp.gt.f32.partialorder %v610_v26, 0.0  ;;  %v727_v36 = vmul.f32 0.2, %v610_v26 }
  0xd6   : > { %v728_v45 = vmul.f32 0.2, %v466_v30  ;;  %vm664_vm2 = vcmp.gt.f32.partialorder %v466_v30, 0.0  ;;  %v793_v57 = vsel %vm665_vm3, %v515_v31, %v729_v46  ;;  %v6003_v31 = vor.u32 %v7394_v16, %v6000_v23  ;;  %1972 = vmatpush.bf16.msra.mxu3 %v6387_v20  ;;  %v7486_v23 = vld [vmem:[%s11660_s3 + $0x324] sm:$0xf] }
  0xd7   : > { %v790_v39 = vsel %vm662_vm0, %v561_v25, %v726_v35  ;;  %v791_v40 = vsel %vm663_vm1, %v610_v26, %v727_v36  ;;  %v6128_v25 = vld [vmem:[%s11660_s3 + $0x150] sm:$0xf0] }
  0xd8   : > { %v8516_v41 = vpack.c.bf16 %v790_v39, %v786_v37  ;;  %v8518_v42 = vpack.c.bf16 %v791_v40, %v787_v38  ;;  %v792_v56 = vsel %vm664_vm2, %v466_v30, %v728_v45  ;;  %v6131_v36 = vor.u32 %v7426_v24, %v6128_v25  ;;  %1825 = vmatpush.bf16.msra.mxu0 %v6003_v31  ;;  %v6368_v24 = vld [vmem:[%s11660_s3 + $0x330] sm:$0xf0]  ;;  %v7390_v25 = vld [vmem:[%s11660_s3 + $0x24] sm:$0xf] }
  0xd9   : > { %v516_v53 = vpop.f32.mrf.mxu1  ;;  %v6112_v31 = vld [vmem:[%s11660_s3 + $0x130] sm:$0xf0] }
  0xda   : > { %v563_v47 = vpop.f32.mrf.mxu2  ;;  %v612_v48 = vpop.f32.mrf.mxu3  ;;  %1745 = vmatmul.bf16.gmra.mxu2 %v8516_v41  ;;  %1794 = vmatmul.bf16.gmra.mxu3 %v8518_v42  ;;  %v517_v55 = vadd.f32 %v516_v53, %v8316_v60 }
  0xdb   : > { %v564_v52 = vadd.f32 %v563_v47, %v8338_v11  ;;  %v467_v51 = vpop.f32.mrf.mxu0  ;;  %v613_v0 = vadd.f32 %v612_v48, %v8341_v17  ;;  %1874 = vmatpush.bf16.msra.mxu1 %v6131_v36 }
  0xdc   : > { %v468_v54 = vadd.f32 %v467_v51, %v8314_v59  ;;  %vm669_vm5 = vcmp.gt.f32.partialorder %v517_v55, 0.0  ;;  %v733_v63 = vmul.f32 0.2, %v517_v55 }
  0xdd   : > { %vm666_vm6 = vcmp.gt.f32.partialorder %v564_v52, 0.0  ;;  %v730_v3 = vmul.f32 0.2, %v564_v52  ;;  %v731_v26 = vmul.f32 0.2, %v613_v0  ;;  %vm667_vm7 = vcmp.gt.f32.partialorder %v613_v0, 0.0 }
  0xde   : > { %vm668_vm4 = vcmp.gt.f32.partialorder %v468_v54, 0.0  ;;  %v732_v58 = vmul.f32 0.2, %v468_v54  ;;  %v797_v5 = vsel %vm669_vm5, %v517_v55, %v733_v63 }
  0xdf   : > { %v8534_v10 = vpack.c.bf16 %v797_v5, %v793_v57  ;;  %v794_v39 = vsel %vm666_vm6, %v564_v52, %v730_v3  ;;  %v795_v40 = vsel %vm667_vm7, %v613_v0, %v731_v26  ;;  %v7454_v5 = vld [vmem:[%s11660_s3 + $0x224] sm:$0xf] }
  0xe0   : > { %v796_v4 = vsel %vm668_vm4, %v468_v54, %v732_v58 }
  0xe1   : > { %v8532_v9 = vpack.c.bf16 %v796_v4, %v792_v56  ;;  %v519_v30 = vpop.f32.mrf.mxu1  ;;  %1701 = vmatmul.bf16.gmra.mxu1 %v8534_v10 }
  0xe2   : > { %v565_v18 = vpop.f32.mrf.mxu2  ;;  %v614_v19 = vpop.f32.mrf.mxu3  ;;  %v520_v35 = vadd.f32 %v519_v30, %v8316_v60  ;;  %v7422_v30 = vld [vmem:[%s11660_s3 + $0x124] sm:$0xf] }
  0xe3   : > { %v566_v27 = vadd.f32 %v565_v18, %v8338_v11  ;;  %v615_v28 = vadd.f32 %v614_v19, %v8341_v17  ;;  %v470_v29 = vpop.f32.mrf.mxu0  ;;  %1652 = vmatmul.bf16.gmra.mxu0 %v8532_v9  ;;  %v6243_v18 = vor.u32 %v7454_v5, %v6240_v6  ;;  %v7482_v5 = vld [vmem:[%s11660_s3 + $0x304] sm:$0xf] }
  0xe4   : > { %v471_v32 = vadd.f32 %v470_v29, %v8314_v59  ;;  %v737_v53 = vmul.f32 0.2, %v520_v35  ;;  %vm673_vm11 = vcmp.gt.f32.partialorder %v520_v35, 0.0  ;;  %v5984_v29 = vld [vmem:[%s11660_s3 + $0x30] sm:$0xf0] }
  0xe5   : > { %vm670_vm8 = vcmp.gt.f32.partialorder %v566_v27, 0.0  ;;  %v734_v37 = vmul.f32 0.2, %v566_v27  ;;  %vm671_vm9 = vcmp.gt.f32.partialorder %v615_v28, 0.0  ;;  %v735_v38 = vmul.f32 0.2, %v615_v28  ;;  %1924 = vmatpush.bf16.msra.mxu2 %v6243_v18 }
  0xe6   : > { %v736_v51 = vmul.f32 0.2, %v471_v32  ;;  %vm672_vm10 = vcmp.gt.f32.partialorder %v471_v32, 0.0  ;;  %v801_v1 = vsel %vm673_vm11, %v520_v35, %v737_v53  ;;  %v7386_v18 = vld [vmem:[%s11660_s3 + $0x4] sm:$0xf] }
  0xe7   : > { %v798_v45 = vsel %vm670_vm8, %v566_v27, %v734_v37  ;;  %v799_v46 = vsel %vm671_vm9, %v615_v28, %v735_v38  ;;  %v6371_v28 = vor.u32 %v7486_v23, %v6368_v24  ;;  %v5968_v23 = vld [vmem:[%s11660_s3 + $0x10] sm:$0xf0] }
  0xe8   : > { %v8561_v47 = vpack.c.bf16 %v798_v45, %v794_v39  ;;  %v8563_v48 = vpack.c.bf16 %v799_v46, %v795_v40  ;;  %v800_v0 = vsel %vm672_vm10, %v471_v32, %v736_v51  ;;  %v5987_v39 = vor.u32 %v7390_v25, %v5984_v29  ;;  %v6096_v29 = vld [vmem:[%s11660_s3 + $0x110] sm:$0xf0] }
  0xe9   : > { %v521_v57 = vpop.f32.mrf.mxu1  ;;  %1973 = vmatpush.bf16.msra.mxu3 %v6371_v28  ;;  %v6115_v46 = vor.u32 %v7422_v30, %v6112_v31  ;;  %v7418_v28 = vld [vmem:[%s11660_s3 + $0x104] sm:$0xf] }
  0xea   : > { %v568_v54 = vpop.f32.mrf.mxu2  ;;  %v617_v55 = vpop.f32.mrf.mxu3  ;;  %1750 = vmatmul.bf16.gmra.mxu2 %v8561_v47  ;;  %1799 = vmatmul.bf16.gmra.mxu3 %v8563_v48  ;;  %v522_v63 = vadd.f32 %v521_v57, %v8316_v60 }
  0xeb   : > { %v569_v56 = vadd.f32 %v568_v54, %v8338_v11  ;;  %v472_v52 = vpop.f32.mrf.mxu0  ;;  %v618_v4 = vadd.f32 %v617_v55, %v8341_v17  ;;  %1826 = vmatpush.bf16.msra.mxu0 %v5987_v39  ;;  %1875 = vmatpush.bf16.msra.mxu1 %v6115_v46 }
  0xec   : > { %v473_v58 = vadd.f32 %v472_v52, %v8314_v59  ;;  %vm677_vm13 = vcmp.gt.f32.partialorder %v522_v63, 0.0  ;;  %v741_v3 = vmul.f32 0.2, %v522_v63 }
  0xed   : > { %vm674_vm14 = vcmp.gt.f32.partialorder %v569_v56, 0.0  ;;  %v738_v14 = vmul.f32 0.2, %v569_v56  ;;  %v739_v32 = vmul.f32 0.2, %v618_v4  ;;  %vm675_vm15 = vcmp.gt.f32.partialorder %v618_v4, 0.0 }
  0xee   : > { %vm676_vm12 = vcmp.gt.f32.partialorder %v473_v58, 0.0  ;;  %v740_v2 = vmul.f32 0.2, %v473_v58  ;;  %v805_v16 = vsel %vm677_vm13, %v522_v63, %v741_v3 }
  0xef   : > { %v8579_v20 = vpack.c.bf16 %v805_v16, %v801_v1  ;;  %v802_v54 = vsel %vm674_vm14, %v569_v56, %v738_v14  ;;  %v803_v55 = vsel %vm675_vm15, %v618_v4, %v739_v32  ;;  %v7450_v56 = vld [vmem:[%s11660_s3 + $0x204] sm:$0xf]  ;;  %v6224_v4 = vld [vmem:[%s11660_s3 + $0x210] sm:$0xf0] }
  0xf0   : > { %v804_v15 = vsel %vm676_vm12, %v473_v58, %v740_v2  ;;  %v6352_v16 = vld [vmem:[%s11660_s3 + $0x310] sm:$0xf0] }
  0xf1   : > { %v8577_v19 = vpack.c.bf16 %v804_v15, %v800_v0  ;;  %v524_v38 = vpop.f32.mrf.mxu1  ;;  %1706 = vmatmul.bf16.gmra.mxu1 %v8579_v20  ;;  %v6227_v15 = vor.u32 %v7450_v56, %v6224_v4 }
  0xf2   : > { %v570_v26 = vpop.f32.mrf.mxu2  ;;  %v619_v27 = vpop.f32.mrf.mxu3  ;;  %v525_v45 = vadd.f32 %v524_v38, %v8316_v60  ;;  %v6099_v38 = vor.u32 %v7418_v28, %v6096_v29  ;;  %v7481_v28 = vld [vmem:[%s11660_s3 + $0x2f4] sm:$0xf0]  ;;  %v6470_v29 = vld [vmem:[%s11660_s3 + $0x3e8] sm:$0xf] }
  0xf3   : > { %v571_v35 = vadd.f32 %v570_v26, %v8338_v11  ;;  %v620_v36 = vadd.f32 %v619_v27, %v8341_v17  ;;  %v475_v37 = vpop.f32.mrf.mxu0  ;;  %1657 = vmatmul.bf16.gmra.mxu0 %v8577_v19  ;;  %v6355_v26 = vor.u32 %v7482_v5, %v6352_v16  ;;  %v5971_v27 = vor.u32 %v7386_v18, %v5968_v23 }
  0xf4   : > { %v476_v40 = vadd.f32 %v475_v37, %v8314_v59  ;;  %vm681_vm3 = vcmp.gt.f32.partialorder %v525_v45, 0.0  ;;  %v745_v1 = vmul.f32 0.2, %v525_v45  ;;  %1925 = vmatpush.bf16.msra.mxu2 %v6227_v15  ;;  %1876 = vmatpush.bf16.msra.mxu1 %v6099_v38 }
  0xf5   : > { %vm678_vm0 = vcmp.gt.f32.partialorder %v571_v35, 0.0  ;;  %v742_v51 = vmul.f32 0.2, %v571_v35  ;;  %vm679_vm1 = vcmp.gt.f32.partialorder %v620_v36, 0.0  ;;  %v743_v53 = vmul.f32 0.2, %v620_v36  ;;  %1974 = vmatpush.bf16.msra.mxu3 %v6355_v26  ;;  %1827 = vmatpush.bf16.msra.mxu0 %v5971_v27 }
  0xf6   : > { %vm680_vm2 = vcmp.gt.f32.partialorder %v476_v40, 0.0  ;;  %v744_v0 = vmul.f32 0.2, %v476_v40  ;;  %v809_v31 = vsel %vm681_vm3, %v525_v45, %v745_v1  ;;  %v6342_v27 = vld [vmem:[%s11660_s3 + $0x2e8] sm:$0xf] }
  0xf7   : > { %v806_v52 = vsel %vm678_vm0, %v571_v35, %v742_v51  ;;  %v807_v57 = vsel %vm679_vm1, %v620_v36, %v743_v53 }
  0xf8   : > { %v8606_v58 = vpack.c.bf16 %v806_v52, %v802_v54  ;;  %v8608_v63 = vpack.c.bf16 %v807_v57, %v803_v55  ;;  %v808_v30 = vsel %vm680_vm2, %v476_v40, %v744_v0 }
  0xf9   : > { %v526_v14 = vpop.f32.mrf.mxu1 }
  0xfa   : > { %v573_v2 = vpop.f32.mrf.mxu2  ;;  %v622_v3 = vpop.f32.mrf.mxu3  ;;  %1755 = vmatmul.bf16.gmra.mxu2 %v8606_v58  ;;  %1804 = vmatmul.bf16.gmra.mxu3 %v8608_v63  ;;  %v527_v25 = vadd.f32 %v526_v14, %v8316_v60 }
  0xfb   : > { %v477_v6 = vpop.f32.mrf.mxu0  ;;  %v574_v36 = vadd.f32 %v573_v2, %v8338_v11  ;;  %v623_v37 = vadd.f32 %v622_v3, %v8341_v17 }
  0xfc   : > { %v478_v24 = vadd.f32 %v477_v6, %v8314_v59  ;;  %vm685_vm5 = vcmp.gt.f32.partialorder %v527_v25, 0.0  ;;  %v749_v35 = vmul.f32 0.2, %v527_v25 }
  0xfd   : > { %v746_v54 = vmul.f32 0.2, %v574_v36  ;;  %v747_v55 = vmul.f32 0.2, %v623_v37  ;;  %vm682_vm6 = vcmp.gt.f32.partialorder %v574_v36, 0.0  ;;  %vm683_vm7 = vcmp.gt.f32.partialorder %v623_v37, 0.0 }
  0xfe   : > { %vm684_vm4 = vcmp.gt.f32.partialorder %v478_v24, 0.0  ;;  %v748_v32 = vmul.f32 0.2, %v478_v24  ;;  %v813_v46 = vsel %vm685_vm5, %v527_v25, %v749_v35  ;;  %v7513_v35 = vld [vmem:[%s11660_s3 + $0x3f4] sm:$0xf0] }
  0xff   : > { %v8644_v53 = vpack.c.bf16 %v813_v46, %v809_v31  ;;  %v810_v5 = vsel %vm682_vm6, %v574_v36, %v746_v54  ;;  %v811_v6 = vsel %vm683_vm7, %v623_v37, %v747_v55  ;;  %v6471_v38 = vor.u32 %v7513_v35, %v6470_v29  ;;  %v7449_v29 = vld [vmem:[%s11660_s3 + $0x1f4] sm:$0xf0] }
 0x100   : > { %v812_v39 = vsel %vm684_vm4, %v478_v24, %v748_v32  ;;  %v6343_v32 = vor.u32 %v7481_v28, %v6342_v27  ;;  %v6214_v27 = vld [vmem:[%s11660_s3 + $0x1e8] sm:$0xf] }
 0x101   : > { %v8642_v51 = vpack.c.bf16 %v812_v39, %v808_v30  ;;  %v529_v1 = vpop.f32.mrf.mxu1  ;;  %1711 = vmatmul.bf16.gmra.mxu1 %v8644_v53  ;;  %2163 = vmatpush.bf16.msrb.mxu3 %v6471_v38  ;;  %v6454_v38 = vld [vmem:[%s11660_s3 + $0x3c8] sm:$0xf] }
 0x102   : > { %v575_v40 = vpop.f32.mrf.mxu2  ;;  %v624_v45 = vpop.f32.mrf.mxu3  ;;  %v530_v3 = vadd.f32 %v529_v1, %v8316_v60  ;;  %2114 = vmatpush.bf16.msrb.mxu2 %v6343_v32 }
 0x103   : > { %v576_v52 = vadd.f32 %v575_v40, %v8338_v11  ;;  %v625_v57 = vadd.f32 %v624_v45, %v8341_v17  ;;  %v480_v0 = vpop.f32.mrf.mxu0  ;;  %1662 = vmatmul.bf16.gmra.mxu0 %v8642_v51 }
 0x104   : > { %v481_v2 = vadd.f32 %v480_v0, %v8314_v59  ;;  %vm689_vm11 = vcmp.gt.f32.partialorder %v530_v3, 0.0  ;;  %v753_v24 = vmul.f32 0.2, %v530_v3 }
 0x105   : > { %vm686_vm8 = vcmp.gt.f32.partialorder %v576_v52, 0.0  ;;  %v750_v56 = vmul.f32 0.2, %v576_v52  ;;  %vm687_vm9 = vcmp.gt.f32.partialorder %v625_v57, 0.0  ;;  %v751_v4 = vmul.f32 0.2, %v625_v57 }
 0x106   : > { %vm688_vm10 = vcmp.gt.f32.partialorder %v481_v2, 0.0  ;;  %v752_v23 = vmul.f32 0.2, %v481_v2  ;;  %v817_v46 = vsel %vm689_vm11, %v530_v3, %v753_v24 }
 0x107   : > { %v814_v14 = vsel %vm686_vm8, %v576_v52, %v750_v56  ;;  %v815_v15 = vsel %vm687_vm9, %v625_v57, %v751_v4 }
 0x108   : > { %v8652_v16 = vpack.c.bf16 %v814_v14, %v810_v5  ;;  %v8654_v18 = vpack.c.bf16 %v815_v15, %v811_v6  ;;  %v816_v39 = vsel %vm688_vm10, %v481_v2, %v752_v23 }
 0x109   : > { %v531_v31 = vpop.f32.mrf.mxu1 }
 0x10a   : > { %v578_v25 = vpop.f32.mrf.mxu2  ;;  %v627_v26 = vpop.f32.mrf.mxu3  ;;  %1760 = vmatmul.bf16.gmra.mxu2 %v8652_v16  ;;  %1809 = vmatmul.bf16.gmra.mxu3 %v8654_v18  ;;  %v532_v37 = vadd.f32 %v531_v31, %v8316_v60 }
 0x10b   : > { %v482_v30 = vpop.f32.mrf.mxu0  ;;  %v579_v54 = vadd.f32 %v578_v25, %v8338_v11  ;;  %v628_v55 = vadd.f32 %v627_v26, %v8341_v17 }
 0x10c   : > { %v483_v36 = vadd.f32 %v482_v30, %v8314_v59  ;;  %vm693_vm13 = vcmp.gt.f32.partialorder %v532_v37, 0.0  ;;  %v757_v45 = vmul.f32 0.2, %v532_v37  ;;  %v6215_v30 = vor.u32 %v7449_v29, %v6214_v27  ;;  %v6310_v27 = vld [vmem:[%s11660_s3 + $0x2a8] sm:$0xf] }
 0x10d   : > { %v754_v2 = vmul.f32 0.2, %v579_v54  ;;  %v755_v3 = vmul.f32 0.2, %v628_v55  ;;  %vm690_vm14 = vcmp.gt.f32.partialorder %v579_v54, 0.0  ;;  %vm691_vm15 = vcmp.gt.f32.partialorder %v628_v55, 0.0 }
 0x10e   : > { %vm692_vm12 = vcmp.gt.f32.partialorder %v483_v36, 0.0  ;;  %v756_v40 = vmul.f32 0.2, %v483_v36  ;;  %v821_v57 = vsel %vm693_vm13, %v532_v37, %v757_v45  ;;  %2065 = vmatpush.bf16.msrb.mxu1 %v6215_v30  ;;  %v7477_v37 = vld [vmem:[%s11660_s3 + $0x2d4] sm:$0xf0] }
 0x10f   : > { %v8678_v60 = vpack.c.bf16 %v821_v57, %v817_v46  ;;  %v818_v14 = vsel %vm690_vm14, %v579_v54, %v754_v2  ;;  %v819_v15 = vsel %vm691_vm15, %v628_v55, %v755_v3  ;;  %v7509_v46 = vld [vmem:[%s11660_s3 + $0x3d4] sm:$0xf0]  ;;  %v6070_v55 = vld [vmem:[%s11660_s3 + $0xc8] sm:$0xf] }
 0x110   : > { %v820_v52 = vsel %vm692_vm12, %v483_v36, %v756_v40  ;;  %v6326_v36 = vld [vmem:[%s11660_s3 + $0x2c8] sm:$0xf]  ;;  %v6455_v40 = vor.u32 %v7509_v46, %v6454_v38  ;;  %v7445_v2 = vld [vmem:[%s11660_s3 + $0x1d4] sm:$0xf0] }
 0x111   : > { %v8676_v59 = vpack.c.bf16 %v820_v52, %v816_v39  ;;  %1716 = vmatmul.bf16.gmra.mxu1 %v8678_v60  ;;  %v6327_v39 = vor.u32 %v7477_v37, %v6326_v36  ;;  %v7413_v52 = vld [vmem:[%s11660_s3 + $0xd4] sm:$0xf0]  ;;  %v6198_v57 = vld [vmem:[%s11660_s3 + $0x1c8] sm:$0xf] }
 0x112   : > { %v580_v0 = vpop.f32.mrf.mxu2  ;;  %v629_v1 = vpop.f32.mrf.mxu3  ;;  %2164 = vmatpush.bf16.msrb.mxu3 %v6455_v40  ;;  %v6199_v3 = vor.u32 %v7445_v2, %v6198_v57  ;;  %v6438_v29 = vld [vmem:[%s11660_s3 + $0x3a8] sm:$0xf] }
 0x113   : > { %v581_v56 = vadd.f32 %v580_v0, %v8338_v11  ;;  %v630_v4 = vadd.f32 %v629_v1, %v8341_v17  ;;  %1667 = vmatmul.bf16.gmra.mxu0 %v8676_v59  ;;  %v6086_v11 = vld [vmem:[%s11660_s3 + $0xe8] sm:$0xf]  ;;  %v7417_v17 = vld [vmem:[%s11660_s3 + $0xf4] sm:$0xf0]  ;;  %2115 = vmatpush.bf16.msrb.mxu2 %v6327_v39  ;;  %v6071_v1 = vor.u32 %v7413_v52, %v6070_v55 }
 0x114   : > { %v6087_v28 = vor.u32 %v7417_v17, %v6086_v11  ;;  %2066 = vmatpush.bf16.msrb.mxu1 %v6199_v3  ;;  %v6054_v55 = vld [vmem:[%s11660_s3 + $0xa8] sm:$0xf]  ;;  %v7409_v52 = vld [vmem:[%s11660_s3 + $0xb4] sm:$0xf0] }
 0x115   : > { %vm694_vm0 = vcmp.gt.f32.partialorder %v581_v56, 0.0  ;;  %v758_v5 = vmul.f32 0.2, %v581_v56  ;;  %vm695_vm1 = vcmp.gt.f32.partialorder %v630_v4, 0.0  ;;  %v759_v6 = vmul.f32 0.2, %v630_v4 }
 0x116   : > { %2016 = vmatpush.bf16.msrb.mxu0 %v6087_v28  ;;  %v7473_v28 = vld [vmem:[%s11660_s3 + $0x2b4] sm:$0xf0]  ;;  %v6182_v57 = vld [vmem:[%s11660_s3 + $0x1a8] sm:$0xf]  ;;  %v6055_v2 = vor.u32 %v7409_v52, %v6054_v55 }
 0x117   : > { %v822_v23 = vsel %vm694_vm0, %v581_v56, %v758_v5  ;;  %v823_v24 = vsel %vm695_vm1, %v630_v4, %v759_v6  ;;  %v8733_v5 = vld [vmem:[%s11661_s4] sm:$0xf]  ;;  %v6311_v30 = vor.u32 %v7473_v28, %v6310_v27 }
 0x118   : > { %v8684_v25 = vpack.c.bf16 %v822_v23, %v818_v14  ;;  %v8686_v26 = vpack.c.bf16 %v823_v24, %v819_v15  ;;  %v8736_v15 = vperm.slane %v8733_v5, 0  ;;  %v8741_v23 = vld [vmem:[%s11662_s5] sm:$0xf] }
 0x119   : > { %v8759_v36 = vperm.slane %v8741_v23, 0  ;;  %2116 = vmatpush.bf16.msrb.mxu2 %v6311_v30 }
 0x11a   : > { %1765 = vmatmul.bf16.gmra.mxu2 %v8684_v25  ;;  %1814 = vmatmul.bf16.gmra.mxu3 %v8686_v26 }
 0x11b   : > { %2017 = vmatpush.bf16.msrb.mxu0 %v6071_v1 }
 0x11e   : > { %v1682_v32 = vpop.f32.mrf.mxu1 }
 0x11f   : > { %2018 = vmatpush.bf16.msrb.mxu0 %v6055_v2 }
 0x120   : > { %v1633_v31 = vpop.f32.mrf.mxu0 }
 0x121   : > { %v1683_v35 = vadd.f32 %v1682_v32, %v1633_v31  ;;  %1877 = vmatmul.bf16.vlgmr.msra.gmra.mxu1 %v8354_v34  ;;  %v7505_v31 = vld [vmem:[%s11660_s3 + $0x3b4] sm:$0xf0] }
 0x122   : > { %v6439_v32 = vor.u32 %v7505_v31, %v6438_v29 }
 0x123   : > { %1828 = vmatmul.bf16.vlgmr.msra.gmra.mxu0 %v8352_v33 }
 0x124   : > { %2165 = vmatpush.bf16.msrb.mxu3 %v6439_v32 }
 0x126   : > { %v1684_v54 = vpop.f32.mrf.mxu1 }
 0x128   : > { %v1635_v45 = vpop.f32.mrf.mxu0 }
 0x129   : > { %v1685_v0 = vadd.f32 %v1684_v54, %v1635_v45 }
 0x12a   : > { %1926 = vmatmul.bf16.vlgmr.msra.gmra.mxu2 %v8381_v61  ;;  %1975 = vmatmul.bf16.vlgmr.msra.gmra.mxu3 %v8383_v62 }
 0x12d   : > { %v1731_v56 = vpop.f32.mrf.mxu2  ;;  %v1780_v4 = vpop.f32.mrf.mxu3 }
 0x12e   : > { %v1732_v6 = vadd.f32 %v1731_v56, %v1683_v35  ;;  %v1687_v11 = vpop.f32.mrf.mxu1 }
 0x130   : > { %v1781_v14 = vadd.f32 %v1780_v4, %v1732_v6  ;;  %v1638_v24 = vpop.f32.mrf.mxu0 }
 0x131   : > { %v1688_v17 = vadd.f32 %v1687_v11, %v1638_v24  ;;  %1882 = vmatmul.bf16.gmra.mxu1 %v8399_v22 }
 0x132   : > { %v2418_v35 = vmul.f32 %v8736_v15, %v1781_v14 }
 0x133   : > { %1833 = vmatmul.bf16.gmra.mxu0 %v8397_v21 }
 0x134   : > { %v2492_v46 = vadd.f32 %v8759_v36, %v2418_v35 }
 0x135   : > { %v1733_v37 = vpop.f32.mrf.mxu2  ;;  %v1782_v38 = vpop.f32.mrf.mxu3 }
 0x136   : > { %v1734_v39 = vadd.f32 %v1733_v37, %v1685_v0  ;;  %v1689_v54 = vpop.f32.mrf.mxu1  ;;  %v7441_v0 = vld [vmem:[%s11660_s3 + $0x1b4] sm:$0xf0]  ;;  %v2620_v4 = vmul.f32 0.2, %v2492_v46  ;;  %vm2556_vm2 = vcmp.gt.f32.partialorder %v2492_v46, 0.0 }
 0x137   : > { %v6183_v56 = vor.u32 %v7441_v0, %v6182_v57 }
 0x138   : > { %v1783_v40 = vadd.f32 %v1782_v38, %v1734_v39  ;;  %v1640_v45 = vpop.f32.mrf.mxu0  ;;  %v2684_v28 = vsel %vm2556_vm2, %v2492_v46, %v2620_v4  ;;  %v6294_v38 = vld [vmem:[%s11660_s3 + $0x288] sm:$0xf]  ;;  %v7469_v39 = vld [vmem:[%s11660_s3 + $0x294] sm:$0xf0] }
 0x139   : > { %v1690_v1 = vadd.f32 %v1689_v54, %v1640_v45  ;;  %2067 = vmatpush.bf16.msrb.mxu1 %v6183_v56  ;;  %v6295_v46 = vor.u32 %v7469_v39, %v6294_v38  ;;  %v6038_v4 = vld [vmem:[%s11660_s3 + $0x88] sm:$0xf] }
 0x13a   : > { %v2422_v3 = vmul.f32 %v8736_v15, %v1783_v40  ;;  %1931 = vmatmul.bf16.gmra.mxu2 %v8426_v49  ;;  %1980 = vmatmul.bf16.gmra.mxu3 %v8428_v50  ;;  %v7501_v40 = vld [vmem:[%s11660_s3 + $0x394] sm:$0xf0] }
 0x13b   : > { %2117 = vmatpush.bf16.msrb.mxu2 %v6295_v46 }
 0x13c   : > { %v2496_v6 = vadd.f32 %v8759_v36, %v2422_v3 }
 0x13d   : > { %v1736_v14 = vpop.f32.mrf.mxu2  ;;  %v1785_v24 = vpop.f32.mrf.mxu3 }
 0x13e   : > { %vm2560_vm3 = vcmp.gt.f32.partialorder %v2496_v6, 0.0  ;;  %v2624_v11 = vmul.f32 0.2, %v2496_v6  ;;  %v1737_v27 = vadd.f32 %v1736_v14, %v1688_v17  ;;  %v1692_v32 = vpop.f32.mrf.mxu1  ;;  %v6422_v17 = vld [vmem:[%s11660_s3 + $0x388] sm:$0xf] }
 0x13f   : > { %v6423_v45 = vor.u32 %v7501_v40, %v6422_v17  ;;  %v6166_v14 = vld [vmem:[%s11660_s3 + $0x188] sm:$0xf] }
 0x140   : > { %v2688_v29 = vsel %vm2560_vm3, %v2496_v6, %v2624_v11  ;;  %v1786_v30 = vadd.f32 %v1785_v24, %v1737_v27  ;;  %v1643_v31 = vpop.f32.mrf.mxu0  ;;  %v7405_v6 = vld [vmem:[%s11660_s3 + $0x94] sm:$0xf0] }
 0x141   : > { %v8778_v35 = vpack.c.bf16 %v2688_v29, %v2684_v28  ;;  %v1693_v37 = vadd.f32 %v1692_v32, %v1643_v31  ;;  %1887 = vmatmul.bf16.gmra.mxu1 %v8444_v13  ;;  %2166 = vmatpush.bf16.msrb.mxu3 %v6423_v45  ;;  %v6039_v11 = vor.u32 %v7405_v6, %v6038_v4 }
 0x142   : > { %v2426_v54 = vmul.f32 %v8736_v15, %v1786_v30 }
 0x143   : > { %11699 = vst [vmem:[#allocation2_spill] sm:$0xff] %v8778_v35  ;;  %1838 = vmatmul.bf16.gmra.mxu0 %v8442_v12 }
 0x144   : > { %v2500_v2 = vadd.f32 %v8759_v36, %v2426_v54  ;;  %2019 = vmatpush.bf16.msrb.mxu0 %v6039_v11 }
 0x145   : > { %v1738_v55 = vpop.f32.mrf.mxu2  ;;  %v1787_v52 = vpop.f32.mrf.mxu3 }
 0x146   : > { %v1739_v57 = vadd.f32 %v1738_v55, %v1690_v1  ;;  %v1694_v56 = vpop.f32.mrf.mxu1  ;;  %v7437_v1 = vld [vmem:[%s11660_s3 + $0x194] sm:$0xf0]  ;;  %v2628_v29 = vmul.f32 0.2, %v2500_v2  ;;  %vm2564_vm4 = vcmp.gt.f32.partialorder %v2500_v2, 0.0 }
 0x147   : > { %v6167_v28 = vor.u32 %v7437_v1, %v6166_v14 }
 0x148   : > { %v1788_v0 = vadd.f32 %v1787_v52, %v1739_v57  ;;  %v1645_v3 = vpop.f32.mrf.mxu0  ;;  %v2692_v17 = vsel %vm2564_vm4, %v2500_v2, %v2628_v29  ;;  %v6278_v57 = vld [vmem:[%s11660_s3 + $0x268] sm:$0xf] }
 0x149   : > { %v1695_v24 = vadd.f32 %v1694_v56, %v1645_v3  ;;  %2068 = vmatpush.bf16.msrb.mxu1 %v6167_v28  ;;  %v7497_v3 = vld [vmem:[%s11660_s3 + $0x374] sm:$0xf0] }
 0x14a   : > { %v2430_v27 = vmul.f32 %v8736_v15, %v1788_v0  ;;  %1936 = vmatmul.bf16.gmra.mxu2 %v8471_v43  ;;  %1985 = vmatmul.bf16.gmra.mxu3 %v8473_v44  ;;  %v7465_v0 = vld [vmem:[%s11660_s3 + $0x274] sm:$0xf0] }
 0x14b   : > { %v6279_v2 = vor.u32 %v7465_v0, %v6278_v57 }
 0x14c   : > { %v2504_v30 = vadd.f32 %v8759_v36, %v2430_v27 }
 0x14d   : > { %v1741_v31 = vpop.f32.mrf.mxu2  ;;  %v1790_v32 = vpop.f32.mrf.mxu3  ;;  %2118 = vmatpush.bf16.msrb.mxu2 %v6279_v2 }
 0x14e   : > { %vm2568_vm5 = vcmp.gt.f32.partialorder %v2504_v30, 0.0  ;;  %v2632_v38 = vmul.f32 0.2, %v2504_v30  ;;  %v1742_v39 = vadd.f32 %v1741_v31, %v1693_v37  ;;  %v1697_v54 = vpop.f32.mrf.mxu1  ;;  %v6406_v37 = vld [vmem:[%s11660_s3 + $0x368] sm:$0xf] }
 0x14f   : > { %v6407_v56 = vor.u32 %v7497_v3, %v6406_v37  ;;  %v7401_v31 = vld [vmem:[%s11660_s3 + $0x74] sm:$0xf0] }
 0x150   : > { %v2696_v46 = vsel %vm2568_vm5, %v2504_v30, %v2632_v38  ;;  %v1791_v40 = vadd.f32 %v1790_v32, %v1742_v39  ;;  %v1648_v45 = vpop.f32.mrf.mxu0  ;;  %v6022_v30 = vld [vmem:[%s11660_s3 + $0x68] sm:$0xf] }
 0x151   : > { %v8812_v55 = vpack.c.bf16 %v2696_v46, %v2692_v17  ;;  %v1698_v52 = vadd.f32 %v1697_v54, %v1648_v45  ;;  %1892 = vmatmul.bf16.gmra.mxu1 %v8489_v8  ;;  %2167 = vmatpush.bf16.msrb.mxu3 %v6407_v56  ;;  %v6150_v32 = vld [vmem:[%s11660_s3 + $0x168] sm:$0xf]  ;;  %v6023_v39 = vor.u32 %v7401_v31, %v6022_v30 }
 0x152   : > { %v2434_v4 = vmul.f32 %v8736_v15, %v1791_v40 }
 0x153   : > { %11700 = vst [vmem:[#allocation3_spill] sm:$0xff] %v8812_v55  ;;  %1843 = vmatmul.bf16.gmra.mxu0 %v8487_v7 }
 0x154   : > { %v2508_v1 = vadd.f32 %v8759_v36, %v2434_v4  ;;  %2020 = vmatpush.bf16.msrb.mxu0 %v6023_v39 }
 0x155   : > { %v1743_v6 = vpop.f32.mrf.mxu2  ;;  %v1792_v14 = vpop.f32.mrf.mxu3 }
 0x156   : > { %v1744_v11 = vadd.f32 %v1743_v6, %v1695_v24  ;;  %v1699_v29 = vpop.f32.mrf.mxu1  ;;  %v7433_v24 = vld [vmem:[%s11660_s3 + $0x174] sm:$0xf0]  ;;  %v2636_v40 = vmul.f32 0.2, %v2508_v1  ;;  %vm2572_vm6 = vcmp.gt.f32.partialorder %v2508_v1, 0.0 }
 0x157   : > { %v6151_v46 = vor.u32 %v7433_v24, %v6150_v32 }
 0x158   : > { %v1793_v27 = vadd.f32 %v1792_v14, %v1744_v11  ;;  %v1650_v28 = vpop.f32.mrf.mxu0  ;;  %v2700_v2 = vsel %vm2572_vm6, %v2508_v1, %v2636_v40 }
 0x159   : > { %v1700_v38 = vadd.f32 %v1699_v29, %v1650_v28  ;;  %2069 = vmatpush.bf16.msrb.mxu1 %v6151_v46  ;;  %v7461_v28 = vld [vmem:[%s11660_s3 + $0x254] sm:$0xf0] }
 0x15a   : > { %v2438_v17 = vmul.f32 %v8736_v15, %v1793_v27  ;;  %1941 = vmatmul.bf16.gmra.mxu2 %v8516_v41  ;;  %1990 = vmatmul.bf16.gmra.mxu3 %v8518_v42  ;;  %v6262_v27 = vld [vmem:[%s11660_s3 + $0x248] sm:$0xf]  ;;  %v7493_v29 = vld [vmem:[%s11660_s3 + $0x354] sm:$0xf0] }
 0x15b   : > { %v6263_v1 = vor.u32 %v7461_v28, %v6262_v27 }
 0x15c   : > { %v2512_v45 = vadd.f32 %v8759_v36, %v2438_v17 }
 0x15d   : > { %v1746_v54 = vpop.f32.mrf.mxu2  ;;  %v1795_v57 = vpop.f32.mrf.mxu3  ;;  %2119 = vmatpush.bf16.msrb.mxu2 %v6263_v1 }
 0x15e   : > { %vm2576_vm7 = vcmp.gt.f32.partialorder %v2512_v45, 0.0  ;;  %v2640_v0 = vmul.f32 0.2, %v2512_v45  ;;  %v1747_v37 = vadd.f32 %v1746_v54, %v1698_v52  ;;  %v1702_v6 = vpop.f32.mrf.mxu1  ;;  %v6390_v52 = vld [vmem:[%s11660_s3 + $0x348] sm:$0xf] }
 0x15f   : > { %v6391_v30 = vor.u32 %v7493_v29, %v6390_v52  ;;  %v6006_v54 = vld [vmem:[%s11660_s3 + $0x48] sm:$0xf] }
 0x160   : > { %v2704_v3 = vsel %vm2576_vm7, %v2512_v45, %v2640_v0  ;;  %v1796_v56 = vadd.f32 %v1795_v57, %v1747_v37  ;;  %v1653_v4 = vpop.f32.mrf.mxu0  ;;  %v7397_v57 = vld [vmem:[%s11660_s3 + $0x54] sm:$0xf0]  ;;  %v6134_v0 = vld [vmem:[%s11660_s3 + $0x148] sm:$0xf] }
 0x161   : > { %v8846_v14 = vpack.c.bf16 %v2704_v3, %v2700_v2  ;;  %v1703_v11 = vadd.f32 %v1702_v6, %v1653_v4  ;;  %1897 = vmatmul.bf16.gmra.mxu1 %v8534_v10  ;;  %2168 = vmatpush.bf16.msrb.mxu3 %v6391_v30  ;;  %v6007_v2 = vor.u32 %v7397_v57, %v6006_v54  ;;  %v7489_v54 = vld [vmem:[%s11660_s3 + $0x334] sm:$0xf0] }
 0x162   : > { %v2442_v31 = vmul.f32 %v8736_v15, %v1796_v56 }
 0x163   : > { %1848 = vmatmul.bf16.gmra.mxu0 %v8532_v9 }
 0x164   : > { %v2516_v17 = vadd.f32 %v8759_v36, %v2442_v31  ;;  %2021 = vmatpush.bf16.msrb.mxu0 %v6007_v2 }
 0x165   : > { %v1748_v32 = vpop.f32.mrf.mxu2  ;;  %v1797_v39 = vpop.f32.mrf.mxu3 }
 0x166   : > { %v1749_v24 = vadd.f32 %v1748_v32, %v1700_v38  ;;  %v1704_v45 = vpop.f32.mrf.mxu1  ;;  %v7429_v38 = vld [vmem:[%s11660_s3 + $0x154] sm:$0xf0]  ;;  %v2644_v4 = vmul.f32 0.2, %v2516_v17  ;;  %vm2580_vm8 = vcmp.gt.f32.partialorder %v2516_v17, 0.0 }
 0x167   : > { %v6135_v56 = vor.u32 %v7429_v38, %v6134_v0 }
 0x168   : > { %v1798_v46 = vadd.f32 %v1797_v39, %v1749_v24  ;;  %v1655_v40 = vpop.f32.mrf.mxu0  ;;  %v2708_v29 = vsel %vm2580_vm8, %v2516_v17, %v2644_v4 }
 0x169   : > { %v1705_v37 = vadd.f32 %v1704_v45, %v1655_v40  ;;  %2070 = vmatpush.bf16.msrb.mxu1 %v6135_v56  ;;  %v6246_v40 = vld [vmem:[%s11660_s3 + $0x228] sm:$0xf]  ;;  %v7457_v45 = vld [vmem:[%s11660_s3 + $0x234] sm:$0xf0] }
 0x16a   : > { %v2446_v3 = vmul.f32 %v8736_v15, %v1798_v46  ;;  %1946 = vmatmul.bf16.gmra.mxu2 %v8561_v47  ;;  %1995 = vmatmul.bf16.gmra.mxu3 %v8563_v48  ;;  %v6247_v17 = vor.u32 %v7457_v45, %v6246_v40 }
 0x16c   : > { %v2520_v6 = vadd.f32 %v8759_v36, %v2446_v3  ;;  %2120 = vmatpush.bf16.msrb.mxu2 %v6247_v17 }
 0x16d   : > { %v1751_v27 = vpop.f32.mrf.mxu2  ;;  %v1800_v28 = vpop.f32.mrf.mxu3 }
 0x16e   : > { %vm2584_vm9 = vcmp.gt.f32.partialorder %v2520_v6, 0.0  ;;  %v2648_v52 = vmul.f32 0.2, %v2520_v6  ;;  %v1752_v1 = vadd.f32 %v1751_v27, %v1703_v11  ;;  %v1707_v39 = vpop.f32.mrf.mxu1  ;;  %v6374_v11 = vld [vmem:[%s11660_s3 + $0x328] sm:$0xf] }
 0x16f   : > { %v6375_v0 = vor.u32 %v7489_v54, %v6374_v11 }
 0x170   : > { %v2712_v30 = vsel %vm2584_vm9, %v2520_v6, %v2648_v52  ;;  %v1801_v31 = vadd.f32 %v1800_v28, %v1752_v1  ;;  %v1658_v32 = vpop.f32.mrf.mxu0  ;;  %v5990_v28 = vld [vmem:[%s11660_s3 + $0x28] sm:$0xf]  ;;  %v7393_v52 = vld [vmem:[%s11660_s3 + $0x34] sm:$0xf0] }
 0x171   : > { %v8880_v24 = vpack.c.bf16 %v2712_v30, %v2708_v29  ;;  %v1708_v46 = vadd.f32 %v1707_v39, %v1658_v32  ;;  %1902 = vmatmul.bf16.gmra.mxu1 %v8579_v20  ;;  %2169 = vmatpush.bf16.msrb.mxu3 %v6375_v0  ;;  %v6118_v1 = vld [vmem:[%s11660_s3 + $0x128] sm:$0xf]  ;;  %v5991_v30 = vor.u32 %v7393_v52, %v5990_v28 }
 0x172   : > { %v2450_v57 = vmul.f32 %v8736_v15, %v1801_v31 }
 0x173   : > { %1853 = vmatmul.bf16.gmra.mxu0 %v8577_v19 }
 0x174   : > { %v2524_v56 = vadd.f32 %v8759_v36, %v2450_v57  ;;  %2022 = vmatpush.bf16.msrb.mxu0 %v5991_v30  ;;  %v5974_v57 = vld [vmem:[%s11660_s3 + $0x8] sm:$0xf] }
 0x175   : > { %v1753_v2 = vpop.f32.mrf.mxu2  ;;  %v1802_v38 = vpop.f32.mrf.mxu3  ;;  %v6230_v30 = vld [vmem:[%s11660_s3 + $0x208] sm:$0xf] }
 0x176   : > { %v1754_v3 = vadd.f32 %v1753_v2, %v1705_v37  ;;  %v1709_v27 = vpop.f32.mrf.mxu1  ;;  %v7425_v37 = vld [vmem:[%s11660_s3 + $0x134] sm:$0xf0]  ;;  %v2652_v39 = vmul.f32 0.2, %v2524_v56  ;;  %vm2588_vm10 = vcmp.gt.f32.partialorder %v2524_v56, 0.0 }
 0x177   : > { %v6119_v32 = vor.u32 %v7425_v37, %v6118_v1  ;;  %v7389_v2 = vld [vmem:[%s11660_s3 + $0x14] sm:$0xf0] }
 0x178   : > { %v1803_v4 = vadd.f32 %v1802_v38, %v1754_v3  ;;  %v1660_v6 = vpop.f32.mrf.mxu0  ;;  %v2716_v0 = vsel %vm2588_vm10, %v2524_v56, %v2652_v39  ;;  %v6102_v38 = vld [vmem:[%s11660_s3 + $0x108] sm:$0xf]  ;;  %v7421_v3 = vld [vmem:[%s11660_s3 + $0x114] sm:$0xf0]  ;;  %v5975_v28 = vor.u32 %v7389_v2, %v5974_v57 }
 0x179   : > { %v1710_v29 = vadd.f32 %v1709_v27, %v1660_v6  ;;  %2071 = vmatpush.bf16.msrb.mxu1 %v6119_v32  ;;  %v6103_v52 = vor.u32 %v7421_v3, %v6102_v38  ;;  %v7453_v37 = vld [vmem:[%s11660_s3 + $0x214] sm:$0xf0] }
 0x17a   : > { %v2454_v31 = vmul.f32 %v8736_v15, %v1803_v4  ;;  %1951 = vmatmul.bf16.gmra.mxu2 %v8606_v58  ;;  %2000 = vmatmul.bf16.gmra.mxu3 %v8608_v63  ;;  %v6231_v32 = vor.u32 %v7453_v37, %v6230_v30  ;;  %v7485_v39 = vld [vmem:[%s11660_s3 + $0x314] sm:$0xf0] }
 0x17b   : > { %2023 = vmatpush.bf16.msrb.mxu0 %v5975_v28 }
 0x17c   : > { %v2528_v40 = vadd.f32 %v8759_v36, %v2454_v31  ;;  %v6358_v31 = vld [vmem:[%s11660_s3 + $0x308] sm:$0xf]  ;;  %2121 = vmatpush.bf16.msrb.mxu2 %v6231_v32 }
 0x17d   : > { %v1756_v45 = vpop.f32.mrf.mxu2  ;;  %v1805_v11 = vpop.f32.mrf.mxu3  ;;  %2072 = vmatpush.bf16.msrb.mxu1 %v6103_v52 }
 0x17e   : > { %vm2592_vm11 = vcmp.gt.f32.partialorder %v2528_v40, 0.0  ;;  %v2656_v17 = vmul.f32 0.2, %v2528_v40  ;;  %v1757_v54 = vadd.f32 %v1756_v45, %v1708_v46  ;;  %v1712_v27 = vpop.f32.mrf.mxu1 }
 0x180   : > { %v2720_v4 = vsel %vm2592_vm11, %v2528_v40, %v2656_v17  ;;  %v1806_v6 = vadd.f32 %v1805_v11, %v1757_v54  ;;  %v1663_v46 = vpop.f32.mrf.mxu0  ;;  %v6359_v40 = vor.u32 %v7485_v39, %v6358_v31 }
 0x181   : > { %v8926_v1 = vpack.c.bf16 %v2720_v4, %v2716_v0  ;;  %v1713_v56 = vadd.f32 %v1712_v27, %v1663_v46  ;;  %1907 = vmatmul.bf16.gmra.mxu1 %v8644_v53 }
 0x182   : > { %v2458_v45 = vmul.f32 %v8736_v15, %v1806_v6  ;;  %2170 = vmatpush.bf16.msrb.mxu3 %v6359_v40 }
 0x183   : > { %1858 = vmatmul.bf16.gmra.mxu0 %v8642_v51 }
 0x184   : > { %v2532_v57 = vadd.f32 %v8759_v36, %v2458_v45 }
 0x185   : > { %v1758_v11 = vpop.f32.mrf.mxu2  ;;  %v1807_v17 = vpop.f32.mrf.mxu3 }
 0x186   : > { %v1759_v54 = vadd.f32 %v1758_v11, %v1710_v29  ;;  %v1714_v38 = vpop.f32.mrf.mxu1  ;;  %v2660_v46 = vmul.f32 0.2, %v2532_v57  ;;  %vm2596_vm12 = vcmp.gt.f32.partialorder %v2532_v57, 0.0  ;;  %v7479_v11 = vld [vmem:[%s11660_s3 + $0x2ec] sm:$0xf] }
 0x188   : > { %v1808_v0 = vadd.f32 %v1807_v17, %v1759_v54  ;;  %v1665_v2 = vpop.f32.mrf.mxu0  ;;  %v2724_v30 = vsel %vm2596_vm12, %v2532_v57, %v2660_v46  ;;  %v6344_v17 = vld [vmem:[%s11660_s3 + $0x2f8] sm:$0xf0] }
 0x189   : > { %v1715_v3 = vadd.f32 %v1714_v38, %v1665_v2  ;;  %v6347_v54 = vor.u32 %v7479_v11, %v6344_v17  ;;  %v6472_v57 = vld [vmem:[%s11660_s3 + $0x3f8] sm:$0xf0] }
 0x18a   : > { %v2462_v4 = vmul.f32 %v8736_v15, %v1808_v0  ;;  %1956 = vmatmul.bf16.gmra.mxu2 %v8652_v16  ;;  %2005 = vmatmul.bf16.gmra.mxu3 %v8654_v18 }
 0x18b   : > { %2310 = vmatpush.bf16.msra.mxu2 %v6347_v54 }
 0x18c   : > { %v2536_v6 = vadd.f32 %v8759_v36, %v2462_v4 }
 0x18d   : > { %v1761_v27 = vpop.f32.mrf.mxu2  ;;  %v1810_v28 = vpop.f32.mrf.mxu3 }
 0x18e   : > { %vm2600_vm13 = vcmp.gt.f32.partialorder %v2536_v6, 0.0  ;;  %v2664_v29 = vmul.f32 0.2, %v2536_v6  ;;  %v1762_v52 = vadd.f32 %v1761_v27, %v1713_v56  ;;  %v1717_v39 = vpop.f32.mrf.mxu1  ;;  %v7511_v56 = vld [vmem:[%s11660_s3 + $0x3ec] sm:$0xf] }
 0x18f   : > { %v6475_v0 = vor.u32 %v7511_v56, %v6472_v57 }
 0x190   : > { %v2728_v37 = vsel %vm2600_vm13, %v2536_v6, %v2664_v29  ;;  %v1811_v31 = vadd.f32 %v1810_v28, %v1762_v52  ;;  %v1668_v32 = vpop.f32.mrf.mxu0  ;;  %v7415_v52 = vld [vmem:[%s11660_s3 + $0xec] sm:$0xf] }
 0x191   : > { %v8948_v40 = vpack.c.bf16 %v2728_v37, %v2724_v30  ;;  %v1718_v45 = vadd.f32 %v1717_v39, %v1668_v32  ;;  %1912 = vmatmul.bf16.gmra.mxu1 %v8678_v60  ;;  %2359 = vmatpush.bf16.msra.mxu3 %v6475_v0  ;;  %v6088_v30 = vld [vmem:[%s11660_s3 + $0xf8] sm:$0xf0]  ;;  %v7447_v37 = vld [vmem:[%s11660_s3 + $0x1ec] sm:$0xf] }
 0x192   : > { %v2466_v2 = vmul.f32 %v8736_v15, %v1811_v31  ;;  %v6091_v32 = vor.u32 %v7415_v52, %v6088_v30  ;;  %v7475_v30 = vld [vmem:[%s11660_s3 + $0x2cc] sm:$0xf] }
 0x193   : > { %11701 = vst [vmem:[#allocation4_spill] sm:$0xff] %v8948_v40  ;;  %1863 = vmatmul.bf16.gmra.mxu0 %v8676_v59 }
 0x194   : > { %v2540_v6 = vadd.f32 %v8759_v36, %v2466_v2  ;;  %2212 = vmatpush.bf16.msra.mxu0 %v6091_v32  ;;  %v6456_v32 = vld [vmem:[%s11660_s3 + $0x3d8] sm:$0xf0] }
 0x195   : > { %v1763_v38 = vpop.f32.mrf.mxu2  ;;  %v1812_v4 = vpop.f32.mrf.mxu3 }
 0x196   : > { %v1764_v46 = vadd.f32 %v1763_v38, %v1715_v3  ;;  %v1719_v29 = vpop.f32.mrf.mxu1  ;;  %v6216_v3 = vld [vmem:[%s11660_s3 + $0x1f8] sm:$0xf0]  ;;  %v2668_v17 = vmul.f32 0.2, %v2540_v6  ;;  %vm2604_vm14 = vcmp.gt.f32.partialorder %v2540_v6, 0.0 }
 0x197   : > { %v6219_v11 = vor.u32 %v7447_v37, %v6216_v3  ;;  %v6328_v37 = vld [vmem:[%s11660_s3 + $0x2d8] sm:$0xf0] }
 0x198   : > { %v1813_v27 = vadd.f32 %v1812_v4, %v1764_v46  ;;  %v1670_v28 = vpop.f32.mrf.mxu0  ;;  %v2732_v38 = vsel %vm2604_vm14, %v2540_v6, %v2668_v17  ;;  %v6331_v6 = vor.u32 %v7475_v30, %v6328_v37 }
 0x199   : > { %v1720_v31 = vadd.f32 %v1719_v29, %v1670_v28  ;;  %2261 = vmatpush.bf16.msra.mxu1 %v6219_v11 }
 0x19a   : > { %v2470_v39 = vmul.f32 %v8736_v15, %v1813_v27  ;;  %1961 = vmatmul.bf16.gmra.mxu2 %v8684_v25  ;;  %2010 = vmatmul.bf16.gmra.mxu3 %v8686_v26 }
 0x19b   : > { %2311 = vmatpush.bf16.msra.mxu2 %v6331_v6 }
 0x19c   : > { %v2544_v56 = vadd.f32 %v8759_v36, %v2470_v39 }
 0x19d   : > { %v1766_v54 = vpop.f32.mrf.mxu2  ;;  %v1815_v57 = vpop.f32.mrf.mxu3 }
 0x19e   : > { %vm2608_vm15 = vcmp.gt.f32.partialorder %v2544_v56, 0.0  ;;  %v2672_v0 = vmul.f32 0.2, %v2544_v56  ;;  %v1767_v2 = vadd.f32 %v1766_v54, %v1718_v45  ;;  %v1878_v28 = vpop.f32.mrf.mxu1  ;;  %v7507_v45 = vld [vmem:[%s11660_s3 + $0x3cc] sm:$0xf] }
 0x19f   : > { %v6459_v3 = vor.u32 %v7507_v45, %v6456_v32 }
 0x1a0   : > { %v2736_v4 = vsel %vm2608_vm15, %v2544_v56, %v2672_v0  ;;  %v1816_v46 = vadd.f32 %v1815_v57, %v1767_v2  ;;  %v1829_v27 = vpop.f32.mrf.mxu0 }
 0x1a1   : > { %v8982_v29 = vpack.c.bf16 %v2736_v4, %v2732_v38  ;;  %v1879_v52 = vadd.f32 %v1878_v28, %v1829_v27  ;;  %2073 = vmatmul.bf16.vlgmr.msrb.gmra.mxu1 %v8354_v34  ;;  %2360 = vmatpush.bf16.msra.mxu3 %v6459_v3  ;;  %v7411_v38 = vld [vmem:[%s11660_s3 + $0xcc] sm:$0xf]  ;;  %v6072_v4 = vld [vmem:[%s11660_s3 + $0xd8] sm:$0xf0] }
 0x1a2   : > { %v2474_v39 = vmul.f32 %v8736_v15, %v1816_v46  ;;  %v7443_v46 = vld [vmem:[%s11660_s3 + $0x1cc] sm:$0xf]  ;;  %v6075_v28 = vor.u32 %v7411_v38, %v6072_v4 }
 0x1a3   : > { %11702 = vst [vmem:[#allocation5_spill] sm:$0xff] %v8982_v29  ;;  %2024 = vmatmul.bf16.vlgmr.msrb.gmra.mxu0 %v8352_v33 }
 0x1a4   : > { %v2548_v54 = vadd.f32 %v8759_v36, %v2474_v39  ;;  %2213 = vmatpush.bf16.msra.mxu0 %v6075_v28 }
 0x1a5   : > { %v1768_v11 = vpop.f32.mrf.mxu2  ;;  %v1817_v17 = vpop.f32.mrf.mxu3 }
 0x1a6   : > { %v1769_v56 = vadd.f32 %v1768_v11, %v1720_v31  ;;  %v1880_v2 = vpop.f32.mrf.mxu1  ;;  %v6200_v31 = vld [vmem:[%s11660_s3 + $0x1d8] sm:$0xf0]  ;;  %v2676_v45 = vmul.f32 0.2, %v2548_v54  ;;  %vm2612_vm0 = vcmp.gt.f32.partialorder %v2548_v54, 0.0 }
 0x1a7   : > { %v6203_v37 = vor.u32 %v7443_v46, %v6200_v31  ;;  %v6312_v46 = vld [vmem:[%s11660_s3 + $0x2b8] sm:$0xf0] }
 0x1a8   : > { %v1818_v57 = vadd.f32 %v1817_v17, %v1769_v56  ;;  %v1831_v0 = vpop.f32.mrf.mxu0  ;;  %v2740_v17 = vsel %vm2612_vm0, %v2548_v54, %v2676_v45 }
 0x1a9   : > { %v1881_v27 = vadd.f32 %v1880_v2, %v1831_v0  ;;  %2262 = vmatpush.bf16.msra.mxu1 %v6203_v37 }
 0x1aa   : > { %v2478_v30 = vmul.f32 %v8736_v15, %v1818_v57  ;;  %2122 = vmatmul.bf16.vlgmr.msrb.gmra.mxu2 %v8381_v61  ;;  %2171 = vmatmul.bf16.vlgmr.msrb.gmra.mxu3 %v8383_v62  ;;  %v9017_v15 = vperm.slane %v8733_v5, 1  ;;  %v6440_v5 = vld [vmem:[%s11660_s3 + $0x3b8] sm:$0xf0] }
 0x1ac   : > { %v2552_v6 = vadd.f32 %v8759_v36, %v2478_v30  ;;  %v7471_v36 = vld [vmem:[%s11660_s3 + $0x2ac] sm:$0xf]  ;;  %v9037_v30 = vperm.slane %v8741_v23, 1 }
 0x1ad   : > { %v1927_v32 = vpop.f32.mrf.mxu2  ;;  %v1976_v3 = vpop.f32.mrf.mxu3  ;;  %v6315_v54 = vor.u32 %v7471_v36, %v6312_v46  ;;  %v7439_v23 = vld [vmem:[%s11660_s3 + $0x1ac] sm:$0xf] }
 0x1ae   : > { %vm2616_vm1 = vcmp.gt.f32.partialorder %v2552_v6, 0.0  ;;  %v2680_v39 = vmul.f32 0.2, %v2552_v6  ;;  %v1928_v11 = vadd.f32 %v1927_v32, %v1879_v52  ;;  %v1883_v2 = vpop.f32.mrf.mxu1  ;;  %v7503_v52 = vld [vmem:[%s11660_s3 + $0x3ac] sm:$0xf] }
 0x1af   : > { %v6443_v28 = vor.u32 %v7503_v52, %v6440_v5  ;;  %2312 = vmatpush.bf16.msra.mxu2 %v6315_v54 }
 0x1b0   : > { %v2744_v56 = vsel %vm2616_vm1, %v2552_v6, %v2680_v39  ;;  %v1977_v0 = vadd.f32 %v1976_v3, %v1928_v11  ;;  %v1834_v57 = vpop.f32.mrf.mxu0 }
 0x1b1   : > { %v9019_v38 = vpack.c.bf16 %v2744_v56, %v2740_v17  ;;  %v1884_v4 = vadd.f32 %v1883_v2, %v1834_v57  ;;  %2078 = vmatmul.bf16.gmra.mxu1 %v8399_v22  ;;  %2361 = vmatpush.bf16.msra.mxu3 %v6443_v28  ;;  %v7407_v17 = vld [vmem:[%s11660_s3 + $0xac] sm:$0xf]  ;;  %v6056_v56 = vld [vmem:[%s11660_s3 + $0xb8] sm:$0xf0] }
 0x1b2   : > { %v2419_v31 = vmul.f32 %v9017_v15, %v1977_v0  ;;  %v6059_v57 = vor.u32 %v7407_v17, %v6056_v56  ;;  %v7467_v56 = vld [vmem:[%s11660_s3 + $0x28c] sm:$0xf] }
 0x1b3   : > { %11703 = vst [vmem:[#allocation6_spill] sm:$0xff] %v9019_v38  ;;  %2029 = vmatmul.bf16.gmra.mxu0 %v8397_v21 }
 0x1b4   : > { %v2493_v32 = vadd.f32 %v9037_v30, %v2419_v31  ;;  %2214 = vmatpush.bf16.msra.mxu0 %v6059_v57  ;;  %v6424_v57 = vld [vmem:[%s11660_s3 + $0x398] sm:$0xf0] }
 0x1b5   : > { %v1929_v37 = vpop.f32.mrf.mxu2  ;;  %v1978_v45 = vpop.f32.mrf.mxu3 }
 0x1b6   : > { %v1930_v6 = vadd.f32 %v1929_v37, %v1881_v27  ;;  %v1885_v11 = vpop.f32.mrf.mxu1  ;;  %v6184_v27 = vld [vmem:[%s11660_s3 + $0x1b8] sm:$0xf0]  ;;  %v2621_v46 = vmul.f32 0.2, %v2493_v32  ;;  %vm2557_vm2 = vcmp.gt.f32.partialorder %v2493_v32, 0.0 }
 0x1b7   : > { %v6187_v36 = vor.u32 %v7439_v23, %v6184_v27  ;;  %v6296_v23 = vld [vmem:[%s11660_s3 + $0x298] sm:$0xf0] }
 0x1b8   : > { %v1979_v3 = vadd.f32 %v1978_v45, %v1930_v6  ;;  %v1836_v39 = vpop.f32.mrf.mxu0  ;;  %v2685_v37 = vsel %vm2557_vm2, %v2493_v32, %v2621_v46  ;;  %v6299_v32 = vor.u32 %v7467_v56, %v6296_v23 }
 0x1b9   : > { %v1886_v0 = vadd.f32 %v1885_v11, %v1836_v39  ;;  %2263 = vmatpush.bf16.msra.mxu1 %v6187_v36 }
 0x1ba   : > { %v2423_v2 = vmul.f32 %v9017_v15, %v1979_v3  ;;  %2127 = vmatmul.bf16.gmra.mxu2 %v8426_v49  ;;  %2176 = vmatmul.bf16.gmra.mxu3 %v8428_v50 }
 0x1bb   : > { %2313 = vmatpush.bf16.msra.mxu2 %v6299_v32 }
 0x1bc   : > { %v2497_v52 = vadd.f32 %v9037_v30, %v2423_v2 }
 0x1bd   : > { %v1932_v54 = vpop.f32.mrf.mxu2  ;;  %v1981_v5 = vpop.f32.mrf.mxu3 }
 0x1be   : > { %vm2561_vm3 = vcmp.gt.f32.partialorder %v2497_v52, 0.0  ;;  %v2625_v28 = vmul.f32 0.2, %v2497_v52  ;;  %v1933_v31 = vadd.f32 %v1932_v54, %v1884_v4  ;;  %v1888_v39 = vpop.f32.mrf.mxu1  ;;  %v7499_v4 = vld [vmem:[%s11660_s3 + $0x38c] sm:$0xf] }
 0x1bf   : > { %v6427_v27 = vor.u32 %v7499_v4, %v6424_v57 }
 0x1c0   : > { %v2689_v45 = vsel %vm2561_vm3, %v2497_v52, %v2625_v28  ;;  %v1982_v6 = vadd.f32 %v1981_v5, %v1933_v31  ;;  %v1839_v3 = vpop.f32.mrf.mxu0 }
 0x1c1   : > { %v9056_v11 = vpack.c.bf16 %v2689_v45, %v2685_v37  ;;  %v1889_v17 = vadd.f32 %v1888_v39, %v1839_v3  ;;  %2083 = vmatmul.bf16.gmra.mxu1 %v8444_v13  ;;  %2362 = vmatpush.bf16.msra.mxu3 %v6427_v27  ;;  %v7403_v37 = vld [vmem:[%s11660_s3 + $0x8c] sm:$0xf]  ;;  %v6040_v45 = vld [vmem:[%s11660_s3 + $0x98] sm:$0xf0] }
 0x1c2   : > { %v2427_v2 = vmul.f32 %v9017_v15, %v1982_v6  ;;  %v7435_v6 = vld [vmem:[%s11660_s3 + $0x18c] sm:$0xf]  ;;  %v6043_v39 = vor.u32 %v7403_v37, %v6040_v45 }
 0x1c3   : > { %11704 = vst [vmem:[#allocation7_spill] sm:$0xff] %v9056_v11  ;;  %2034 = vmatmul.bf16.gmra.mxu0 %v8442_v12 }
 0x1c4   : > { %v2501_v54 = vadd.f32 %v9037_v30, %v2427_v2  ;;  %2215 = vmatpush.bf16.msra.mxu0 %v6043_v39  ;;  %v6280_v39 = vld [vmem:[%s11660_s3 + $0x278] sm:$0xf0] }
 0x1c5   : > { %v1934_v36 = vpop.f32.mrf.mxu2  ;;  %v1983_v46 = vpop.f32.mrf.mxu3 }
 0x1c6   : > { %v1935_v52 = vadd.f32 %v1934_v36, %v1886_v0  ;;  %v1890_v31 = vpop.f32.mrf.mxu1  ;;  %v6168_v0 = vld [vmem:[%s11660_s3 + $0x198] sm:$0xf0]  ;;  %v2629_v4 = vmul.f32 0.2, %v2501_v54  ;;  %vm2565_vm4 = vcmp.gt.f32.partialorder %v2501_v54, 0.0 }
 0x1c7   : > { %v6171_v23 = vor.u32 %v7435_v6, %v6168_v0  ;;  %v7463_v6 = vld [vmem:[%s11660_s3 + $0x26c] sm:$0xf]  ;;  %v6408_v0 = vld [vmem:[%s11660_s3 + $0x378] sm:$0xf0] }
 0x1c8   : > { %v1984_v5 = vadd.f32 %v1983_v46, %v1935_v52  ;;  %v1841_v28 = vpop.f32.mrf.mxu0  ;;  %v2693_v46 = vsel %vm2565_vm4, %v2501_v54, %v2629_v4  ;;  %v6283_v54 = vor.u32 %v7463_v6, %v6280_v39 }
 0x1c9   : > { %v1891_v3 = vadd.f32 %v1890_v31, %v1841_v28  ;;  %2264 = vmatpush.bf16.msra.mxu1 %v6171_v23 }
 0x1ca   : > { %v2431_v56 = vmul.f32 %v9017_v15, %v1984_v5  ;;  %2132 = vmatmul.bf16.gmra.mxu2 %v8471_v43  ;;  %2181 = vmatmul.bf16.gmra.mxu3 %v8473_v44 }
 0x1cb   : > { %2314 = vmatpush.bf16.msra.mxu2 %v6283_v54 }
 0x1cc   : > { %v2505_v32 = vadd.f32 %v9037_v30, %v2431_v56 }
 0x1cd   : > { %v1937_v57 = vpop.f32.mrf.mxu2  ;;  %v1986_v27 = vpop.f32.mrf.mxu3 }
 0x1ce   : > { %vm2569_vm5 = vcmp.gt.f32.partialorder %v2505_v32, 0.0  ;;  %v2633_v2 = vmul.f32 0.2, %v2505_v32  ;;  %v1938_v36 = vadd.f32 %v1937_v57, %v1889_v17  ;;  %v1893_v31 = vpop.f32.mrf.mxu1  ;;  %v7495_v17 = vld [vmem:[%s11660_s3 + $0x36c] sm:$0xf] }
 0x1cf   : > { %v6411_v56 = vor.u32 %v7495_v17, %v6408_v0 }
 0x1d0   : > { %v2697_v52 = vsel %vm2569_vm5, %v2505_v32, %v2633_v2  ;;  %v1987_v28 = vadd.f32 %v1986_v27, %v1938_v36  ;;  %v1844_v5 = vpop.f32.mrf.mxu0 }
 0x1d1   : > { %v9090_v37 = vpack.c.bf16 %v2697_v52, %v2693_v46  ;;  %v1894_v45 = vadd.f32 %v1893_v31, %v1844_v5  ;;  %2088 = vmatmul.bf16.gmra.mxu1 %v8489_v8  ;;  %2363 = vmatpush.bf16.msra.mxu3 %v6411_v56  ;;  %v7399_v52 = vld [vmem:[%s11660_s3 + $0x6c] sm:$0xf]  ;;  %v6024_v5 = vld [vmem:[%s11660_s3 + $0x78] sm:$0xf0] }
 0x1d2   : > { %v2435_v23 = vmul.f32 %v9017_v15, %v1987_v28  ;;  %v7431_v28 = vld [vmem:[%s11660_s3 + $0x16c] sm:$0xf]  ;;  %v6027_v6 = vor.u32 %v7399_v52, %v6024_v5 }
 0x1d3   : > { %11705 = vst [vmem:[#allocation8_spill] sm:$0xff] %v9090_v37  ;;  %2039 = vmatmul.bf16.gmra.mxu0 %v8487_v7 }
 0x1d4   : > { %v2509_v27 = vadd.f32 %v9037_v30, %v2435_v23  ;;  %2216 = vmatpush.bf16.msra.mxu0 %v6027_v6  ;;  %v6264_v6 = vld [vmem:[%s11660_s3 + $0x258] sm:$0xf0] }
 0x1d5   : > { %v1939_v4 = vpop.f32.mrf.mxu2  ;;  %v1988_v32 = vpop.f32.mrf.mxu3 }
 0x1d6   : > { %v1940_v57 = vadd.f32 %v1939_v4, %v1891_v3  ;;  %v1895_v46 = vpop.f32.mrf.mxu1  ;;  %v6152_v3 = vld [vmem:[%s11660_s3 + $0x178] sm:$0xf0]  ;;  %v2637_v54 = vmul.f32 0.2, %v2509_v27  ;;  %vm2573_vm6 = vcmp.gt.f32.partialorder %v2509_v27, 0.0 }
 0x1d7   : > { %v6155_v17 = vor.u32 %v7431_v28, %v6152_v3  ;;  %v7459_v28 = vld [vmem:[%s11660_s3 + $0x24c] sm:$0xf]  ;;  %v6392_v3 = vld [vmem:[%s11660_s3 + $0x358] sm:$0xf0] }
 0x1d8   : > { %v1989_v2 = vadd.f32 %v1988_v32, %v1940_v57  ;;  %v1846_v36 = vpop.f32.mrf.mxu0  ;;  %v2701_v57 = vsel %vm2573_vm6, %v2509_v27, %v2637_v54  ;;  %v6267_v27 = vor.u32 %v7459_v28, %v6264_v6 }
 0x1d9   : > { %v1896_v31 = vadd.f32 %v1895_v46, %v1846_v36  ;;  %2265 = vmatpush.bf16.msra.mxu1 %v6155_v17 }
 0x1da   : > { %v2439_v39 = vmul.f32 %v9017_v15, %v1989_v2  ;;  %2137 = vmatmul.bf16.gmra.mxu2 %v8516_v41  ;;  %2186 = vmatmul.bf16.gmra.mxu3 %v8518_v42 }
 0x1db   : > { %2315 = vmatpush.bf16.msra.mxu2 %v6267_v27 }
 0x1dc   : > { %v2513_v0 = vadd.f32 %v9037_v30, %v2439_v39 }
 0x1dd   : > { %v1942_v56 = vpop.f32.mrf.mxu2  ;;  %v1991_v23 = vpop.f32.mrf.mxu3 }
 0x1de   : > { %vm2577_vm7 = vcmp.gt.f32.partialorder %v2513_v0, 0.0  ;;  %v2641_v4 = vmul.f32 0.2, %v2513_v0  ;;  %v1943_v32 = vadd.f32 %v1942_v56, %v1894_v45  ;;  %v1898_v52 = vpop.f32.mrf.mxu1  ;;  %v7491_v45 = vld [vmem:[%s11660_s3 + $0x34c] sm:$0xf] }
 0x1df   : > { %v6395_v39 = vor.u32 %v7491_v45, %v6392_v3 }
 0x1e0   : > { %v2705_v36 = vsel %vm2577_vm7, %v2513_v0, %v2641_v4  ;;  %v1992_v46 = vadd.f32 %v1991_v23, %v1943_v32  ;;  %v1849_v2 = vpop.f32.mrf.mxu0 }
 0x1e1   : > { %v9124_v5 = vpack.c.bf16 %v2705_v36, %v2701_v57  ;;  %v1899_v38 = vadd.f32 %v1898_v52, %v1849_v2  ;;  %2093 = vmatmul.bf16.gmra.mxu1 %v8534_v10  ;;  %2364 = vmatpush.bf16.msra.mxu3 %v6395_v39  ;;  %v7395_v36 = vld [vmem:[%s11660_s3 + $0x4c] sm:$0xf]  ;;  %v6008_v2 = vld [vmem:[%s11660_s3 + $0x58] sm:$0xf0] }
 0x1e2   : > { %v2443_v17 = vmul.f32 %v9017_v15, %v1992_v46  ;;  %v7427_v46 = vld [vmem:[%s11660_s3 + $0x14c] sm:$0xf]  ;;  %v6011_v28 = vor.u32 %v7395_v36, %v6008_v2 }
 0x1e3   : > { %11706 = vst [vmem:[#allocation9_spill] sm:$0xff] %v9124_v5  ;;  %2044 = vmatmul.bf16.gmra.mxu0 %v8532_v9 }
 0x1e4   : > { %v2517_v23 = vadd.f32 %v9037_v30, %v2443_v17  ;;  %2217 = vmatpush.bf16.msra.mxu0 %v6011_v28  ;;  %v6248_v28 = vld [vmem:[%s11660_s3 + $0x238] sm:$0xf0] }
 0x1e5   : > { %v1944_v54 = vpop.f32.mrf.mxu2  ;;  %v1993_v0 = vpop.f32.mrf.mxu3 }
 0x1e6   : > { %v1945_v56 = vadd.f32 %v1944_v54, %v1896_v31  ;;  %v1900_v57 = vpop.f32.mrf.mxu1  ;;  %v6136_v31 = vld [vmem:[%s11660_s3 + $0x158] sm:$0xf0]  ;;  %v2645_v27 = vmul.f32 0.2, %v2517_v23  ;;  %vm2581_vm8 = vcmp.gt.f32.partialorder %v2517_v23, 0.0 }
 0x1e7   : > { %v6139_v45 = vor.u32 %v7427_v46, %v6136_v31  ;;  %v7455_v46 = vld [vmem:[%s11660_s3 + $0x22c] sm:$0xf]  ;;  %v6376_v31 = vld [vmem:[%s11660_s3 + $0x338] sm:$0xf0] }
 0x1e8   : > { %v1994_v4 = vadd.f32 %v1993_v0, %v1945_v56  ;;  %v1851_v32 = vpop.f32.mrf.mxu0  ;;  %v2709_v56 = vsel %vm2581_vm8, %v2517_v23, %v2645_v27  ;;  %v6251_v23 = vor.u32 %v7455_v46, %v6248_v28 }
 0x1e9   : > { %v1901_v52 = vadd.f32 %v1900_v57, %v1851_v32  ;;  %2266 = vmatpush.bf16.msra.mxu1 %v6139_v45 }
 0x1ea   : > { %v2447_v6 = vmul.f32 %v9017_v15, %v1994_v4  ;;  %2142 = vmatmul.bf16.gmra.mxu2 %v8561_v47  ;;  %2191 = vmatmul.bf16.gmra.mxu3 %v8563_v48 }
 0x1eb   : > { %2316 = vmatpush.bf16.msra.mxu2 %v6251_v23 }
 0x1ec   : > { %v2521_v3 = vadd.f32 %v9037_v30, %v2447_v6 }
 0x1ed   : > { %v1947_v39 = vpop.f32.mrf.mxu2  ;;  %v1996_v17 = vpop.f32.mrf.mxu3 }
 0x1ee   : > { %vm2585_vm9 = vcmp.gt.f32.partialorder %v2521_v3, 0.0  ;;  %v2649_v54 = vmul.f32 0.2, %v2521_v3  ;;  %v1948_v0 = vadd.f32 %v1947_v39, %v1899_v38  ;;  %v1903_v36 = vpop.f32.mrf.mxu1  ;;  %v7487_v38 = vld [vmem:[%s11660_s3 + $0x32c] sm:$0xf] }
 0x1ef   : > { %v6379_v45 = vor.u32 %v7487_v38, %v6376_v31 }
 0x1f0   : > { %v2713_v32 = vsel %vm2585_vm9, %v2521_v3, %v2649_v54  ;;  %v1997_v57 = vadd.f32 %v1996_v17, %v1948_v0  ;;  %v1854_v4 = vpop.f32.mrf.mxu0 }
 0x1f1   : > { %v9158_v2 = vpack.c.bf16 %v2713_v32, %v2709_v56  ;;  %v1904_v29 = vadd.f32 %v1903_v36, %v1854_v4  ;;  %2098 = vmatmul.bf16.gmra.mxu1 %v8579_v20  ;;  %2365 = vmatpush.bf16.msra.mxu3 %v6379_v45  ;;  %v7391_v32 = vld [vmem:[%s11660_s3 + $0x2c] sm:$0xf] }
 0x1f2   : > { %v2451_v6 = vmul.f32 %v9017_v15, %v1997_v57  ;;  %v5992_v57 = vld [vmem:[%s11660_s3 + $0x38] sm:$0xf0]  ;;  %v7423_v4 = vld [vmem:[%s11660_s3 + $0x12c] sm:$0xf] }
 0x1f3   : > { %2049 = vmatmul.bf16.gmra.mxu0 %v8577_v19  ;;  %v5995_v46 = vor.u32 %v7391_v32, %v5992_v57  ;;  %v6104_v32 = vld [vmem:[%s11660_s3 + $0x118] sm:$0xf0] }
 0x1f4   : > { %v2525_v17 = vadd.f32 %v9037_v30, %v2451_v6 }
 0x1f5   : > { %v1949_v27 = vpop.f32.mrf.mxu2  ;;  %v1998_v3 = vpop.f32.mrf.mxu3  ;;  %2218 = vmatpush.bf16.msra.mxu0 %v5995_v46 }
 0x1f6   : > { %v1950_v39 = vadd.f32 %v1949_v27, %v1901_v52  ;;  %v1905_v56 = vpop.f32.mrf.mxu1  ;;  %v6120_v52 = vld [vmem:[%s11660_s3 + $0x138] sm:$0xf0]  ;;  %v2653_v23 = vmul.f32 0.2, %v2525_v17  ;;  %vm2589_vm10 = vcmp.gt.f32.partialorder %v2525_v17, 0.0 }
 0x1f7   : > { %v6123_v38 = vor.u32 %v7423_v4, %v6120_v52 }
 0x1f8   : > { %v1999_v54 = vadd.f32 %v1998_v3, %v1950_v39  ;;  %v1856_v0 = vpop.f32.mrf.mxu0  ;;  %v7387_v39 = vld [vmem:[%s11660_s3 + $0xc] sm:$0xf] }
 0x1f9   : > { %v1906_v36 = vadd.f32 %v1905_v56, %v1856_v0  ;;  %2267 = vmatpush.bf16.msra.mxu1 %v6123_v38  ;;  %v5976_v0 = vld [vmem:[%s11660_s3 + $0x18] sm:$0xf0]  ;;  %v7419_v56 = vld [vmem:[%s11660_s3 + $0x10c] sm:$0xf] }
 0x1fa   : > { %v2455_v28 = vmul.f32 %v9017_v15, %v1999_v54  ;;  %2147 = vmatmul.bf16.gmra.mxu2 %v8606_v58  ;;  %2196 = vmatmul.bf16.gmra.mxu3 %v8608_v63  ;;  %v2717_v54 = vsel %vm2589_vm10, %v2525_v17, %v2653_v23  ;;  %v5979_v52 = vor.u32 %v7387_v39, %v5976_v0  ;;  %v7451_v23 = vld [vmem:[%s11660_s3 + $0x20c] sm:$0xf] }
 0x1fc   : > { %v2529_v31 = vadd.f32 %v9037_v30, %v2455_v28  ;;  %v6107_v28 = vor.u32 %v7419_v56, %v6104_v32  ;;  %2219 = vmatpush.bf16.msra.mxu0 %v5979_v52 }
 0x1fd   : > { %v1952_v6 = vpop.f32.mrf.mxu2  ;;  %v2001_v45 = vpop.f32.mrf.mxu3 }
 0x1fe   : > { %vm2593_vm11 = vcmp.gt.f32.partialorder %v2529_v31, 0.0  ;;  %v2657_v27 = vmul.f32 0.2, %v2529_v31  ;;  %v1953_v3 = vadd.f32 %v1952_v6, %v1904_v29  ;;  %v1908_v46 = vpop.f32.mrf.mxu1  ;;  %v6232_v6 = vld [vmem:[%s11660_s3 + $0x218] sm:$0xf0]  ;;  %2268 = vmatpush.bf16.msra.mxu1 %v6107_v28 }
 0x200   : > { %v2721_v57 = vsel %vm2593_vm11, %v2529_v31, %v2657_v27  ;;  %v2002_v4 = vadd.f32 %v2001_v45, %v1953_v3  ;;  %v1859_v29 = vpop.f32.mrf.mxu0  ;;  %v7483_v31 = vld [vmem:[%s11660_s3 + $0x30c] sm:$0xf]  ;;  %v6235_v45 = vor.u32 %v7451_v23, %v6232_v6  ;;  %v6360_v27 = vld [vmem:[%s11660_s3 + $0x318] sm:$0xf0] }
 0x201   : > { %v9204_v38 = vpack.c.bf16 %v2721_v57, %v2717_v54  ;;  %v1909_v17 = vadd.f32 %v1908_v46, %v1859_v29  ;;  %2103 = vmatmul.bf16.gmra.mxu1 %v8644_v53  ;;  %v6363_v3 = vor.u32 %v7483_v31, %v6360_v27 }
 0x202   : > { %v2459_v39 = vmul.f32 %v9017_v15, %v2002_v4  ;;  %2317 = vmatpush.bf16.msra.mxu2 %v6235_v45 }
 0x203   : > { %11707 = vst [vmem:[#allocation10_spill] sm:$0xff] %v9204_v38  ;;  %2054 = vmatmul.bf16.gmra.mxu0 %v8642_v51  ;;  %2366 = vmatpush.bf16.msra.mxu3 %v6363_v3 }
 0x204   : > { %v2533_v32 = vadd.f32 %v9037_v30, %v2459_v39 }
 0x205   : > { %v1954_v54 = vpop.f32.mrf.mxu2  ;;  %v2003_v0 = vpop.f32.mrf.mxu3 }
 0x206   : > { %v1955_v56 = vadd.f32 %v1954_v54, %v1906_v36  ;;  %v1910_v46 = vpop.f32.mrf.mxu1  ;;  %v2661_v28 = vmul.f32 0.2, %v2533_v32  ;;  %vm2597_vm12 = vcmp.gt.f32.partialorder %v2533_v32, 0.0 }
 0x208   : > { %v2004_v57 = vadd.f32 %v2003_v0, %v1955_v56  ;;  %v1861_v29 = vpop.f32.mrf.mxu0  ;;  %v2725_v27 = vsel %vm2597_vm12, %v2533_v32, %v2661_v28 }
 0x209   : > { %v1911_v23 = vadd.f32 %v1910_v46, %v1861_v29 }
 0x20a   : > { %v2463_v52 = vmul.f32 %v9017_v15, %v2004_v57  ;;  %2152 = vmatmul.bf16.gmra.mxu2 %v8652_v16  ;;  %2201 = vmatmul.bf16.gmra.mxu3 %v8654_v18 }
 0x20c   : > { %v2537_v4 = vadd.f32 %v9037_v30, %v2463_v52 }
 0x20d   : > { %v1957_v6 = vpop.f32.mrf.mxu2  ;;  %v2006_v31 = vpop.f32.mrf.mxu3 }
 0x20e   : > { %vm2601_vm13 = vcmp.gt.f32.partialorder %v2537_v4, 0.0  ;;  %v2665_v36 = vmul.f32 0.2, %v2537_v4  ;;  %v1958_v45 = vadd.f32 %v1957_v6, %v1909_v17  ;;  %v1913_v0 = vpop.f32.mrf.mxu1 }
 0x210   : > { %v2729_v3 = vsel %vm2601_vm13, %v2537_v4, %v2665_v36  ;;  %v2007_v39 = vadd.f32 %v2006_v31, %v1958_v45  ;;  %v1864_v54 = vpop.f32.mrf.mxu0 }
 0x211   : > { %v9226_v56 = vpack.c.bf16 %v2729_v3, %v2725_v27  ;;  %v1914_v57 = vadd.f32 %v1913_v0, %v1864_v54  ;;  %2108 = vmatmul.bf16.gmra.mxu1 %v8678_v60 }
 0x212   : > { %v2467_v29 = vmul.f32 %v9017_v15, %v2007_v39 }
 0x213   : > { %11708 = vst [vmem:[#allocation11_spill] sm:$0xff] %v9226_v56  ;;  %2059 = vmatmul.bf16.gmra.mxu0 %v8676_v59 }
 0x214   : > { %v2541_v38 = vadd.f32 %v9037_v30, %v2467_v29 }
 0x215   : > { %v1959_v46 = vpop.f32.mrf.mxu2  ;;  %v2008_v52 = vpop.f32.mrf.mxu3 }
 0x216   : > { %v1960_v40 = vadd.f32 %v1959_v46, %v1911_v23  ;;  %v1915_v28 = vpop.f32.mrf.mxu1  ;;  %v2669_v31 = vmul.f32 0.2, %v2541_v38  ;;  %vm2605_vm14 = vcmp.gt.f32.partialorder %v2541_v38, 0.0 }
 0x218   : > { %v2009_v17 = vadd.f32 %v2008_v52, %v1960_v40  ;;  %v1866_v32 = vpop.f32.mrf.mxu0  ;;  %v2733_v39 = vsel %vm2605_vm14, %v2541_v38, %v2669_v31 }
 0x219   : > { %v1916_v4 = vadd.f32 %v1915_v28, %v1866_v32 }
 0x21a   : > { %v2471_v6 = vmul.f32 %v9017_v15, %v2009_v17  ;;  %2157 = vmatmul.bf16.gmra.mxu2 %v8684_v25  ;;  %2206 = vmatmul.bf16.gmra.mxu3 %v8686_v26 }
 0x21c   : > { %v2545_v36 = vadd.f32 %v9037_v30, %v2471_v6 }
 0x21d   : > { %v1962_v45 = vpop.f32.mrf.mxu2  ;;  %v2011_v27 = vpop.f32.mrf.mxu3 }
 0x21e   : > { %vm2609_vm15 = vcmp.gt.f32.partialorder %v2545_v36, 0.0  ;;  %v2673_v23 = vmul.f32 0.2, %v2545_v36  ;;  %v1963_v3 = vadd.f32 %v1962_v45, %v1914_v57  ;;  %v2074_v29 = vpop.f32.mrf.mxu1 }
 0x220   : > { %v2737_v40 = vsel %vm2609_vm15, %v2545_v36, %v2673_v23  ;;  %v2012_v54 = vadd.f32 %v2011_v27, %v1963_v3  ;;  %v2025_v0 = vpop.f32.mrf.mxu0  ;;  %v7122_v36 = vld [vmem:[%s11663_s6 + $0x508] sm:$0xf]  ;;  %v7734_v3 = vld [vmem:[%s11663_s6 + $0x6e0] sm:$0xf0] }
 0x221   : > { %v9236_v46 = vpack.c.bf16 %v2737_v40, %v2733_v39  ;;  %v2075_v52 = vadd.f32 %v2074_v29, %v2025_v0  ;;  %2269 = vmatmul.bf16.vlgmr.msra.gmra.mxu1 %v8354_v34  ;;  %v6674_v34 = vld [vmem:[%s11663_s6 + $0x188] sm:$0xf] }
 0x222   : > { %v2475_v17 = vmul.f32 %v9017_v15, %v2012_v54  ;;  %v7346_v23 = vld [vmem:[%s11663_s6 + $0x6c8] sm:$0xf] }
 0x223   : > { %2220 = vmatmul.bf16.vlgmr.msra.gmra.mxu0 %v8352_v33  ;;  %v7678_v33 = vld [vmem:[%s11663_s6 + $0x520] sm:$0xf0]  ;;  %v7347_v54 = vor.u32 %v7734_v3, %v7346_v23 }
 0x224   : > { %v2549_v56 = vadd.f32 %v9037_v30, %v2475_v17  ;;  %v7123_v27 = vor.u32 %v7678_v33, %v7122_v36 }
 0x225   : > { %v1964_v32 = vpop.f32.mrf.mxu2  ;;  %v2013_v28 = vpop.f32.mrf.mxu3  ;;  %4351 = vmatpush.bf16.msrb.mxu3 %v7347_v54 }
 0x226   : > { %v1965_v6 = vadd.f32 %v1964_v32, %v1916_v4  ;;  %v2076_v31 = vpop.f32.mrf.mxu1  ;;  %v7566_v4 = vld [vmem:[%s11663_s6 + $0x1a0] sm:$0xf0]  ;;  %4302 = vmatpush.bf16.msrb.mxu2 %v7123_v27  ;;  %v2677_v0 = vmul.f32 0.2, %v2549_v56  ;;  %vm2613_vm0 = vcmp.gt.f32.partialorder %v2549_v56, 0.0 }
 0x227   : > { %v6675_v40 = vor.u32 %v7566_v4, %v6674_v34  ;;  %v9286_v4 = vld [vmem:[%s11662_s5] sm:$0xf] }
 0x228   : > { %v2014_v57 = vadd.f32 %v2013_v28, %v1965_v6  ;;  %v2027_v38 = vpop.f32.mrf.mxu0  ;;  %v9289_v23 = vperm.slane %v9286_v4, 2 }
 0x229   : > { %v2077_v45 = vadd.f32 %v2076_v31, %v2027_v38  ;;  %4204 = vmatpush.bf16.msrb.mxu0 %v6675_v40  ;;  %v2741_v38 = vsel %vm2613_vm0, %v2549_v56, %v2677_v0  ;;  %v7622_v56 = vld [vmem:[%s11663_s6 + $0x360] sm:$0xf0] }
 0x22a   : > { %v2479_v39 = vmul.f32 %v9017_v15, %v2014_v57  ;;  %2318 = vmatmul.bf16.vlgmr.msra.gmra.mxu2 %v8381_v61  ;;  %2367 = vmatmul.bf16.vlgmr.msra.gmra.mxu3 %v8383_v62  ;;  %v9267_v61 = vld [vmem:[%s11661_s4] sm:$0xf] }
 0x22b   : > { %v9270_v62 = vperm.slane %v9267_v61, 2 }
 0x22c   : > { %v2553_v29 = vadd.f32 %v9037_v30, %v2479_v39 }
 0x22d   : > { %v2123_v17 = vpop.f32.mrf.mxu2  ;;  %v2172_v32 = vpop.f32.mrf.mxu3 }
 0x22e   : > { %vm2617_vm1 = vcmp.gt.f32.partialorder %v2553_v29, 0.0  ;;  %v2681_v28 = vmul.f32 0.2, %v2553_v29  ;;  %v2124_v6 = vadd.f32 %v2123_v17, %v2075_v52  ;;  %v2079_v31 = vpop.f32.mrf.mxu1  ;;  %v6898_v52 = vld [vmem:[%s11663_s6 + $0x348] sm:$0xf] }
 0x22f   : > { %v6899_v34 = vor.u32 %v7622_v56, %v6898_v52  ;;  %v7671_v17 = vld [vmem:[%s11663_s6 + $0x4e8] sm:$0xf0] }
 0x230   : > { %v2745_v15 = vsel %vm2617_vm1, %v2553_v29, %v2681_v28  ;;  %v2173_v57 = vadd.f32 %v2172_v32, %v2124_v6  ;;  %v2030_v30 = vpop.f32.mrf.mxu0  ;;  %v6646_v32 = vld [vmem:[%s11663_s6 + $0x150] sm:$0xf] }
 0x231   : > { %v9272_v36 = vpack.c.bf16 %v2745_v15, %v2741_v38  ;;  %v2080_v33 = vadd.f32 %v2079_v31, %v2030_v30  ;;  %2274 = vmatmul.bf16.gmra.mxu1 %v8399_v22  ;;  %v7094_v22 = vld [vmem:[%s11663_s6 + $0x4d0] sm:$0xf]  ;;  %v7727_v15 = vld [vmem:[%s11663_s6 + $0x6a8] sm:$0xf0] }
 0x232   : > { %v2420_v27 = vmul.f32 %v9270_v62, %v2173_v57  ;;  %4253 = vmatpush.bf16.msrb.mxu1 %v6899_v34  ;;  %v7095_v6 = vor.u32 %v7671_v17, %v7094_v22  ;;  %v7318_v38 = vld [vmem:[%s11663_s6 + $0x690] sm:$0xf] }
 0x233   : > { %11709 = vst [vmem:[#allocation12_spill] sm:$0xff] %v9272_v36  ;;  %2225 = vmatmul.bf16.gmra.mxu0 %v8397_v21  ;;  %v7319_v31 = vor.u32 %v7727_v15, %v7318_v38  ;;  %v6870_v17 = vld [vmem:[%s11663_s6 + $0x310] sm:$0xf] }
 0x234   : > { %v2494_v54 = vadd.f32 %v9289_v23, %v2420_v27  ;;  %4303 = vmatpush.bf16.msrb.mxu2 %v7095_v6 }
 0x235   : > { %v2125_v3 = vpop.f32.mrf.mxu2  ;;  %v2174_v39 = vpop.f32.mrf.mxu3  ;;  %4352 = vmatpush.bf16.msrb.mxu3 %v7319_v31 }
 0x236   : > { %v2126_v40 = vadd.f32 %v2125_v3, %v2077_v45  ;;  %v2081_v29 = vpop.f32.mrf.mxu1  ;;  %v7559_v45 = vld [vmem:[%s11663_s6 + $0x168] sm:$0xf0]  ;;  %v2622_v52 = vmul.f32 0.2, %v2494_v54  ;;  %vm2558_vm2 = vcmp.gt.f32.partialorder %v2494_v54, 0.0 }
 0x237   : > { %v6647_v30 = vor.u32 %v7559_v45, %v6646_v32  ;;  %v7615_v32 = vld [vmem:[%s11663_s6 + $0x328] sm:$0xf0] }
 0x238   : > { %v2175_v0 = vadd.f32 %v2174_v39, %v2126_v40  ;;  %v2032_v21 = vpop.f32.mrf.mxu0  ;;  %v2686_v40 = vsel %vm2558_vm2, %v2494_v54, %v2622_v52  ;;  %v6871_v6 = vor.u32 %v7615_v32, %v6870_v17  ;;  %v7066_v52 = vld [vmem:[%s11663_s6 + $0x498] sm:$0xf] }
 0x239   : > { %v2082_v28 = vadd.f32 %v2081_v29, %v2032_v21  ;;  %4205 = vmatpush.bf16.msrb.mxu0 %v6647_v30 }
 0x23a   : > { %v2424_v57 = vmul.f32 %v9270_v62, %v2175_v0  ;;  %2323 = vmatmul.bf16.gmra.mxu2 %v8426_v49  ;;  %2372 = vmatmul.bf16.gmra.mxu3 %v8428_v50 }
 0x23b   : > { %4254 = vmatpush.bf16.msrb.mxu1 %v6871_v6 }
 0x23c   : > { %v2498_v56 = vadd.f32 %v9289_v23, %v2424_v57 }
 0x23d   : > { %v2128_v34 = vpop.f32.mrf.mxu2  ;;  %v2177_v27 = vpop.f32.mrf.mxu3 }
 0x23e   : > { %vm2562_vm3 = vcmp.gt.f32.partialorder %v2498_v56, 0.0  ;;  %v2626_v3 = vmul.f32 0.2, %v2498_v56  ;;  %v2129_v39 = vadd.f32 %v2128_v34, %v2080_v33  ;;  %v2084_v29 = vpop.f32.mrf.mxu1 }
 0x240   : > { %v2690_v0 = vsel %vm2562_vm3, %v2498_v56, %v2626_v3  ;;  %v2178_v21 = vadd.f32 %v2177_v27, %v2129_v39  ;;  %v2035_v49 = vpop.f32.mrf.mxu0  ;;  %v7290_v27 = vld [vmem:[%s11663_s6 + $0x658] sm:$0xf]  ;;  %v7720_v3 = vld [vmem:[%s11663_s6 + $0x670] sm:$0xf0] }
 0x241   : > { %v9314_v50 = vpack.c.bf16 %v2690_v0, %v2686_v40  ;;  %v2085_v22 = vadd.f32 %v2084_v29, %v2035_v49  ;;  %2279 = vmatmul.bf16.gmra.mxu1 %v8444_v13  ;;  %v6618_v13 = vld [vmem:[%s11663_s6 + $0x118] sm:$0xf]  ;;  %v7291_v0 = vor.u32 %v7720_v3, %v7290_v27 }
 0x242   : > { %v2428_v33 = vmul.f32 %v9270_v62, %v2178_v21 }
 0x243   : > { %2230 = vmatmul.bf16.gmra.mxu0 %v8442_v12  ;;  %v7664_v12 = vld [vmem:[%s11663_s6 + $0x4b0] sm:$0xf0]  ;;  %4353 = vmatpush.bf16.msrb.mxu3 %v7291_v0 }
 0x244   : > { %v2502_v15 = vadd.f32 %v9289_v23, %v2428_v33  ;;  %v7067_v34 = vor.u32 %v7664_v12, %v7066_v52 }
 0x245   : > { %v2130_v54 = vpop.f32.mrf.mxu2  ;;  %v2179_v45 = vpop.f32.mrf.mxu3 }
 0x246   : > { %v2131_v38 = vadd.f32 %v2130_v54, %v2082_v28  ;;  %v2086_v31 = vpop.f32.mrf.mxu1  ;;  %v7552_v28 = vld [vmem:[%s11663_s6 + $0x130] sm:$0xf0]  ;;  %4304 = vmatpush.bf16.msrb.mxu2 %v7067_v34  ;;  %v2630_v21 = vmul.f32 0.2, %v2502_v15  ;;  %vm2566_vm4 = vcmp.gt.f32.partialorder %v2502_v15, 0.0 }
 0x247   : > { %v6619_v40 = vor.u32 %v7552_v28, %v6618_v13 }
 0x248   : > { %v2180_v57 = vadd.f32 %v2179_v45, %v2131_v38  ;;  %v2037_v30 = vpop.f32.mrf.mxu0  ;;  %v2694_v33 = vsel %vm2566_vm4, %v2502_v15, %v2630_v21  ;;  %v7262_v21 = vld [vmem:[%s11663_s6 + $0x620] sm:$0xf] }
 0x249   : > { %v2087_v56 = vadd.f32 %v2086_v31, %v2037_v30  ;;  %4206 = vmatpush.bf16.msrb.mxu0 %v6619_v40  ;;  %v6842_v30 = vld [vmem:[%s11663_s6 + $0x2d8] sm:$0xf]  ;;  %v7608_v31 = vld [vmem:[%s11663_s6 + $0x2f0] sm:$0xf0] }
 0x24a   : > { %v2432_v39 = vmul.f32 %v9270_v62, %v2180_v57  ;;  %2328 = vmatmul.bf16.gmra.mxu2 %v8471_v43  ;;  %2377 = vmatmul.bf16.gmra.mxu3 %v8473_v44  ;;  %v6843_v52 = vor.u32 %v7608_v31, %v6842_v30 }
 0x24c   : > { %v2506_v49 = vadd.f32 %v9289_v23, %v2432_v39  ;;  %4255 = vmatpush.bf16.msrb.mxu1 %v6843_v52  ;;  %v7038_v39 = vld [vmem:[%s11663_s6 + $0x460] sm:$0xf] }
 0x24d   : > { %v2133_v29 = vpop.f32.mrf.mxu2  ;;  %v2182_v17 = vpop.f32.mrf.mxu3 }
 0x24e   : > { %vm2570_vm5 = vcmp.gt.f32.partialorder %v2506_v49, 0.0  ;;  %v2634_v32 = vmul.f32 0.2, %v2506_v49  ;;  %v2134_v6 = vadd.f32 %v2133_v29, %v2085_v22  ;;  %v2089_v38 = vpop.f32.mrf.mxu1 }
 0x250   : > { %v2698_v54 = vsel %vm2570_vm5, %v2506_v49, %v2634_v32  ;;  %v2183_v45 = vadd.f32 %v2182_v17, %v2134_v6  ;;  %v2040_v43 = vpop.f32.mrf.mxu0  ;;  %v7713_v49 = vld [vmem:[%s11663_s6 + $0x638] sm:$0xf0] }
 0x251   : > { %v9348_v44 = vpack.c.bf16 %v2698_v54, %v2694_v33  ;;  %v2090_v57 = vadd.f32 %v2089_v38, %v2040_v43  ;;  %2284 = vmatmul.bf16.gmra.mxu1 %v8489_v8  ;;  %v6590_v8 = vld [vmem:[%s11663_s6 + $0xe0] sm:$0xf]  ;;  %v7263_v32 = vor.u32 %v7713_v49, %v7262_v21 }
 0x252   : > { %v2436_v22 = vmul.f32 %v9270_v62, %v2183_v45 }
 0x253   : > { %11710 = vst [vmem:[#allocation13_spill] sm:$0xff] %v9348_v44  ;;  %2235 = vmatmul.bf16.gmra.mxu0 %v8487_v7  ;;  %v7657_v7 = vld [vmem:[%s11663_s6 + $0x478] sm:$0xf0]  ;;  %4354 = vmatpush.bf16.msrb.mxu3 %v7263_v32 }
 0x254   : > { %v2510_v34 = vadd.f32 %v9289_v23, %v2436_v22  ;;  %v7039_v0 = vor.u32 %v7657_v7, %v7038_v39 }
 0x255   : > { %v2135_v15 = vpop.f32.mrf.mxu2  ;;  %v2184_v12 = vpop.f32.mrf.mxu3 }
 0x256   : > { %v2136_v13 = vadd.f32 %v2135_v15, %v2087_v56  ;;  %v2091_v3 = vpop.f32.mrf.mxu1  ;;  %v7545_v56 = vld [vmem:[%s11663_s6 + $0xf8] sm:$0xf0]  ;;  %4305 = vmatpush.bf16.msrb.mxu2 %v7039_v0  ;;  %v2638_v6 = vmul.f32 0.2, %v2510_v34  ;;  %vm2574_vm6 = vcmp.gt.f32.partialorder %v2510_v34, 0.0 }
 0x257   : > { %v6591_v17 = vor.u32 %v7545_v56, %v6590_v8  ;;  %v7010_v56 = vld [vmem:[%s11663_s6 + $0x428] sm:$0xf] }
 0x258   : > { %v2185_v28 = vadd.f32 %v2184_v12, %v2136_v13  ;;  %v2042_v27 = vpop.f32.mrf.mxu0  ;;  %v2702_v30 = vsel %vm2574_vm6, %v2510_v34, %v2638_v6  ;;  %v6814_v12 = vld [vmem:[%s11663_s6 + $0x2a0] sm:$0xf]  ;;  %v7601_v13 = vld [vmem:[%s11663_s6 + $0x2b8] sm:$0xf0] }
 0x259   : > { %v2092_v40 = vadd.f32 %v2091_v3, %v2042_v27  ;;  %4207 = vmatpush.bf16.msrb.mxu0 %v6591_v17  ;;  %v7706_v17 = vld [vmem:[%s11663_s6 + $0x600] sm:$0xf0] }
 0x25a   : > { %v2440_v29 = vmul.f32 %v9270_v62, %v2185_v28  ;;  %2333 = vmatmul.bf16.gmra.mxu2 %v8516_v41  ;;  %2382 = vmatmul.bf16.gmra.mxu3 %v8518_v42  ;;  %v6815_v28 = vor.u32 %v7601_v13, %v6814_v12 }
 0x25c   : > { %v2514_v33 = vadd.f32 %v9289_v23, %v2440_v29  ;;  %4256 = vmatpush.bf16.msrb.mxu1 %v6815_v28  ;;  %v7234_v29 = vld [vmem:[%s11663_s6 + $0x5e8] sm:$0xf] }
 0x25d   : > { %v2138_v54 = vpop.f32.mrf.mxu2  ;;  %v2187_v45 = vpop.f32.mrf.mxu3  ;;  %v6786_v28 = vld [vmem:[%s11663_s6 + $0x268] sm:$0xf] }
 0x25e   : > { %vm2578_vm7 = vcmp.gt.f32.partialorder %v2514_v33, 0.0  ;;  %v2642_v43 = vmul.f32 0.2, %v2514_v33  ;;  %v2139_v38 = vadd.f32 %v2138_v54, %v2090_v57  ;;  %v2094_v22 = vpop.f32.mrf.mxu1 }
 0x260   : > { %v2706_v31 = vsel %vm2578_vm7, %v2514_v33, %v2642_v43  ;;  %v2188_v52 = vadd.f32 %v2187_v45, %v2139_v38  ;;  %v2045_v41 = vpop.f32.mrf.mxu0  ;;  %v7235_v33 = vor.u32 %v7706_v17, %v7234_v29  ;;  %v7206_v29 = vld [vmem:[%s11663_s6 + $0x5b0] sm:$0xf] }
 0x261   : > { %v9382_v42 = vpack.c.bf16 %v2706_v31, %v2702_v30  ;;  %v2095_v15 = vadd.f32 %v2094_v22, %v2045_v41  ;;  %2289 = vmatmul.bf16.gmra.mxu1 %v8534_v10  ;;  %v6562_v10 = vld [vmem:[%s11663_s6 + $0xa8] sm:$0xf] }
 0x262   : > { %v2444_v57 = vmul.f32 %v9270_v62, %v2188_v52  ;;  %4355 = vmatpush.bf16.msrb.mxu3 %v7235_v33  ;;  %v7699_v33 = vld [vmem:[%s11663_s6 + $0x5c8] sm:$0xf0] }
 0x263   : > { %11711 = vst [vmem:[#allocation14_spill] sm:$0xff] %v9382_v42  ;;  %2240 = vmatmul.bf16.gmra.mxu0 %v8532_v9  ;;  %v7650_v9 = vld [vmem:[%s11663_s6 + $0x440] sm:$0xf0] }
 0x264   : > { %v2518_v39 = vadd.f32 %v9289_v23, %v2444_v57  ;;  %v7011_v49 = vor.u32 %v7650_v9, %v7010_v56  ;;  %v7594_v57 = vld [vmem:[%s11663_s6 + $0x280] sm:$0xf0] }
 0x265   : > { %v2140_v34 = vpop.f32.mrf.mxu2  ;;  %v2189_v27 = vpop.f32.mrf.mxu3 }
 0x266   : > { %v2141_v3 = vadd.f32 %v2140_v34, %v2092_v40  ;;  %v2096_v0 = vpop.f32.mrf.mxu1  ;;  %v7538_v40 = vld [vmem:[%s11663_s6 + $0xc0] sm:$0xf0]  ;;  %4306 = vmatpush.bf16.msrb.mxu2 %v7011_v49  ;;  %v2646_v54 = vmul.f32 0.2, %v2518_v39  ;;  %vm2582_vm8 = vcmp.gt.f32.partialorder %v2518_v39, 0.0  ;;  %v6787_v34 = vor.u32 %v7594_v57, %v6786_v28 }
 0x267   : > { %v6563_v6 = vor.u32 %v7538_v40, %v6562_v10  ;;  %v7643_v49 = vld [vmem:[%s11663_s6 + $0x408] sm:$0xf0]  ;;  %v6478_v57 = vld [vmem:[%s11663_s6] sm:$0xf] }
 0x268   : > { %v2190_v7 = vadd.f32 %v2189_v27, %v2141_v3  ;;  %v2047_v8 = vpop.f32.mrf.mxu0  ;;  %v2710_v52 = vsel %vm2582_vm8, %v2518_v39, %v2646_v54  ;;  %4257 = vmatpush.bf16.msrb.mxu1 %v6787_v34 }
 0x269   : > { %v2097_v21 = vadd.f32 %v2096_v0, %v2047_v8  ;;  %4208 = vmatpush.bf16.msrb.mxu0 %v6563_v6  ;;  %v7531_v0 = vld [vmem:[%s11663_s6 + $0x88] sm:$0xf0] }
 0x26a   : > { %v2448_v32 = vmul.f32 %v9270_v62, %v2190_v7  ;;  %2338 = vmatmul.bf16.gmra.mxu2 %v8561_v47  ;;  %2387 = vmatmul.bf16.gmra.mxu3 %v8563_v48  ;;  %v6534_v7 = vld [vmem:[%s11663_s6 + $0x70] sm:$0xf] }
 0x26b   : > { %v6535_v40 = vor.u32 %v7531_v0, %v6534_v7 }
 0x26c   : > { %v2522_v45 = vadd.f32 %v9289_v23, %v2448_v32 }
 0x26d   : > { %v2143_v43 = vpop.f32.mrf.mxu2  ;;  %v2192_v38 = vpop.f32.mrf.mxu3  ;;  %4209 = vmatpush.bf16.msrb.mxu0 %v6535_v40  ;;  %v6926_v40 = vld [vmem:[%s11663_s6 + $0x380] sm:$0xf] }
 0x26e   : > { %vm2586_vm9 = vcmp.gt.f32.partialorder %v2522_v45, 0.0  ;;  %v2650_v30 = vmul.f32 0.2, %v2522_v45  ;;  %v2144_v31 = vadd.f32 %v2143_v43, %v2095_v15  ;;  %v2099_v12 = vpop.f32.mrf.mxu1  ;;  %v6506_v43 = vld [vmem:[%s11663_s6 + $0x38] sm:$0xf] }
 0x270   : > { %v2714_v41 = vsel %vm2586_vm9, %v2522_v45, %v2650_v30  ;;  %v2193_v22 = vadd.f32 %v2192_v38, %v2144_v31  ;;  %v2050_v47 = vpop.f32.mrf.mxu0  ;;  %v7207_v45 = vor.u32 %v7699_v33, %v7206_v29  ;;  %v7524_v38 = vld [vmem:[%s11663_s6 + $0x50] sm:$0xf0]  ;;  %v6730_v30 = vld [vmem:[%s11663_s6 + $0x1f8] sm:$0xf]  ;;  %v7629_v29 = vld [vmem:[%s11663_s6 + $0x398] sm:$0xf0] }
 0x271   : > { %v9416_v48 = vpack.c.bf16 %v2714_v41, %v2710_v52  ;;  %v2100_v13 = vadd.f32 %v2099_v12, %v2050_v47  ;;  %2294 = vmatmul.bf16.gmra.mxu1 %v8579_v20  ;;  %v7587_v20 = vld [vmem:[%s11663_s6 + $0x248] sm:$0xf0]  ;;  %v6507_v52 = vor.u32 %v7524_v38, %v6506_v43  ;;  %v6927_v33 = vor.u32 %v7629_v29, %v6926_v40  ;;  %v7178_v38 = vld [vmem:[%s11663_s6 + $0x578] sm:$0xf] }
 0x272   : > { %v2452_v27 = vmul.f32 %v9270_v62, %v2193_v22  ;;  %4356 = vmatpush.bf16.msrb.mxu3 %v7207_v45 }
 0x273   : > { %2245 = vmatmul.bf16.gmra.mxu0 %v8577_v19  ;;  %v6758_v19 = vld [vmem:[%s11663_s6 + $0x230] sm:$0xf] }
 0x274   : > { %v2526_v8 = vadd.f32 %v9289_v23, %v2452_v27  ;;  %v6759_v17 = vor.u32 %v7587_v20, %v6758_v19  ;;  %4210 = vmatpush.bf16.msrb.mxu0 %v6507_v52  ;;  %v7517_v27 = vld [vmem:[%s11663_s6 + $0x18] sm:$0xf0]  ;;  %v6954_v20 = vld [vmem:[%s11663_s6 + $0x3b8] sm:$0xf] }
 0x275   : > { %v2145_v15 = vpop.f32.mrf.mxu2  ;;  %v2194_v3 = vpop.f32.mrf.mxu3  ;;  %v6479_v19 = vor.u32 %v7517_v27, %v6478_v57 }
 0x276   : > { %v2146_v39 = vadd.f32 %v2145_v15, %v2097_v21  ;;  %v2101_v10 = vpop.f32.mrf.mxu1  ;;  %v6982_v21 = vld [vmem:[%s11663_s6 + $0x3f0] sm:$0xf]  ;;  %v2654_v31 = vmul.f32 0.2, %v2526_v8  ;;  %vm2590_vm10 = vcmp.gt.f32.partialorder %v2526_v8, 0.0  ;;  %4258 = vmatpush.bf16.msrb.mxu1 %v6759_v17 }
 0x277   : > { %v6983_v6 = vor.u32 %v7643_v49, %v6982_v21  ;;  %v6702_v15 = vld [vmem:[%s11663_s6 + $0x1c0] sm:$0xf] }
 0x278   : > { %v2195_v56 = vadd.f32 %v2194_v3, %v2146_v39  ;;  %v2052_v9 = vpop.f32.mrf.mxu0  ;;  %v2718_v34 = vsel %vm2590_vm10, %v2526_v8, %v2654_v31  ;;  %v7573_v3 = vld [vmem:[%s11663_s6 + $0x1d8] sm:$0xf0]  ;;  %4211 = vmatpush.bf16.msrb.mxu0 %v6479_v19 }
 0x279   : > { %v2102_v32 = vadd.f32 %v2101_v10, %v2052_v9  ;;  %4307 = vmatpush.bf16.msrb.mxu2 %v6983_v6  ;;  %v6703_v8 = vor.u32 %v7573_v3, %v6702_v15 }
 0x27a   : > { %v2456_v54 = vmul.f32 %v9270_v62, %v2195_v56  ;;  %2343 = vmatmul.bf16.gmra.mxu2 %v8606_v58  ;;  %2392 = vmatmul.bf16.gmra.mxu3 %v8608_v63  ;;  %v7580_v58 = vld [vmem:[%s11663_s6 + $0x210] sm:$0xf0] }
 0x27b   : > { %v6731_v41 = vor.u32 %v7580_v58, %v6730_v30  ;;  %v7636_v56 = vld [vmem:[%s11663_s6 + $0x3d0] sm:$0xf0] }
 0x27c   : > { %v2530_v63 = vadd.f32 %v9289_v23, %v2456_v54  ;;  %v6955_v21 = vor.u32 %v7636_v56, %v6954_v20  ;;  %v7692_v30 = vld [vmem:[%s11663_s6 + $0x590] sm:$0xf0]  ;;  %v7150_v56 = vld [vmem:[%s11663_s6 + $0x540] sm:$0xf] }
 0x27d   : > { %v2148_v22 = vpop.f32.mrf.mxu2  ;;  %v2197_v47 = vpop.f32.mrf.mxu3  ;;  %4259 = vmatpush.bf16.msrb.mxu1 %v6731_v41  ;;  %v7179_v52 = vor.u32 %v7692_v30, %v7178_v38 }
 0x27e   : > { %vm2594_vm11 = vcmp.gt.f32.partialorder %v2530_v63, 0.0  ;;  %v2658_v12 = vmul.f32 0.2, %v2530_v63  ;;  %v2149_v28 = vadd.f32 %v2148_v22, %v2100_v13  ;;  %v2104_v0 = vpop.f32.mrf.mxu1  ;;  %4308 = vmatpush.bf16.msrb.mxu2 %v6955_v21 }
 0x27f   : > { %4357 = vmatpush.bf16.msrb.mxu3 %v7179_v52 }
 0x280   : > { %v2722_v39 = vsel %vm2594_vm11, %v2530_v63, %v2658_v12  ;;  %v2198_v13 = vadd.f32 %v2197_v47, %v2149_v28  ;;  %v2055_v7 = vpop.f32.mrf.mxu0 }
 0x281   : > { %v9486_v9 = vpack.c.bf16 %v2722_v39, %v2718_v34  ;;  %v2105_v10 = vadd.f32 %v2104_v0, %v2055_v7  ;;  %2299 = vmatmul.bf16.gmra.mxu1 %v8644_v53 }
 0x282   : > { %v2460_v49 = vmul.f32 %v9270_v62, %v2198_v13  ;;  %4260 = vmatpush.bf16.msrb.mxu1 %v6703_v8  ;;  %4309 = vmatpush.bf16.msrb.mxu2 %v6927_v33 }
 0x283   : > { %2250 = vmatmul.bf16.gmra.mxu0 %v8642_v51 }
 0x284   : > { %v2534_v51 = vadd.f32 %v9289_v23, %v2460_v49 }
 0x285   : > { %v2150_v17 = vpop.f32.mrf.mxu2  ;;  %v2199_v6 = vpop.f32.mrf.mxu3 }
 0x286   : > { %v2151_v54 = vadd.f32 %v2150_v17, %v2102_v32  ;;  %v2106_v43 = vpop.f32.mrf.mxu1  ;;  %v2662_v32 = vmul.f32 0.2, %v2534_v51  ;;  %vm2598_vm12 = vcmp.gt.f32.partialorder %v2534_v51, 0.0 }
 0x288   : > { %v2200_v53 = vadd.f32 %v2199_v6, %v2151_v54  ;;  %v2057_v45 = vpop.f32.mrf.mxu0  ;;  %v2726_v28 = vsel %vm2598_vm12, %v2534_v51, %v2662_v32 }
 0x289   : > { %v2107_v31 = vadd.f32 %v2106_v43, %v2057_v45 }
 0x28a   : > { %v2464_v58 = vmul.f32 %v9270_v62, %v2200_v53  ;;  %2348 = vmatmul.bf16.gmra.mxu2 %v8652_v16  ;;  %2397 = vmatmul.bf16.gmra.mxu3 %v8654_v18 }
 0x28c   : > { %v2538_v63 = vadd.f32 %v9289_v23, %v2464_v58 }
 0x28d   : > { %v2153_v41 = vpop.f32.mrf.mxu2  ;;  %v2202_v22 = vpop.f32.mrf.mxu3 }
 0x28e   : > { %vm2602_vm13 = vcmp.gt.f32.partialorder %v2538_v63, 0.0  ;;  %v2666_v47 = vmul.f32 0.2, %v2538_v63  ;;  %v2154_v12 = vadd.f32 %v2153_v41, %v2105_v10  ;;  %v2109_v15 = vpop.f32.mrf.mxu1  ;;  %v7675_v41 = vld [vmem:[%s11663_s6 + $0x50c] sm:$0xf] }
 0x290   : > { %v2730_v57 = vsel %vm2602_vm13, %v2538_v63, %v2666_v47  ;;  %v2203_v34 = vadd.f32 %v2202_v22, %v2154_v12  ;;  %v2060_v27 = vpop.f32.mrf.mxu0  ;;  %v7124_v22 = vld [vmem:[%s11663_s6 + $0x524] sm:$0xf0]  ;;  %v7563_v47 = vld [vmem:[%s11663_s6 + $0x18c] sm:$0xf] }
 0x291   : > { %v9508_v3 = vpack.c.bf16 %v2730_v57, %v2726_v28  ;;  %v2110_v16 = vadd.f32 %v2109_v15, %v2060_v27  ;;  %2304 = vmatmul.bf16.gmra.mxu1 %v8678_v60  ;;  %v7127_v12 = vor.u32 %v7675_v41, %v7124_v22  ;;  %v6676_v28 = vld [vmem:[%s11663_s6 + $0x1a4] sm:$0xf0]  ;;  %v7731_v57 = vld [vmem:[%s11663_s6 + $0x6cc] sm:$0xf] }
 0x292   : > { %v2468_v18 = vmul.f32 %v9270_v62, %v2203_v34  ;;  %v7348_v34 = vld [vmem:[%s11663_s6 + $0x6e4] sm:$0xf0]  ;;  %v6679_v15 = vor.u32 %v7563_v47, %v6676_v28 }
 0x293   : > { %2255 = vmatmul.bf16.gmra.mxu0 %v8676_v59  ;;  %v7685_v59 = vld [vmem:[%s11663_s6 + $0x558] sm:$0xf0]  ;;  %4498 = vmatpush.bf16.msra.mxu2 %v7127_v12 }
 0x294   : > { %v2542_v0 = vadd.f32 %v9289_v23, %v2468_v18  ;;  %v7151_v60 = vor.u32 %v7685_v59, %v7150_v56  ;;  %4400 = vmatpush.bf16.msra.mxu0 %v6679_v15  ;;  %v9552_v59 = vperm.slane %v9267_v61, 3 }
 0x295   : > { %v2155_v39 = vpop.f32.mrf.mxu2  ;;  %v2204_v13 = vpop.f32.mrf.mxu3 }
 0x296   : > { %v2156_v7 = vadd.f32 %v2155_v39, %v2107_v31  ;;  %v2111_v20 = vpop.f32.mrf.mxu1  ;;  %4358 = vmatpush.bf16.msrb.mxu3 %v7151_v60  ;;  %v2670_v49 = vmul.f32 0.2, %v2542_v0  ;;  %vm2606_vm14 = vcmp.gt.f32.partialorder %v2542_v0, 0.0 }
 0x298   : > { %v2205_v19 = vadd.f32 %v2204_v13, %v2156_v7  ;;  %v2062_v8 = vpop.f32.mrf.mxu0  ;;  %v2734_v54 = vsel %vm2606_vm14, %v2542_v0, %v2670_v49  ;;  %v6900_v49 = vld [vmem:[%s11663_s6 + $0x364] sm:$0xf0] }
 0x299   : > { %v2112_v10 = vadd.f32 %v2111_v20, %v2062_v8 }
 0x29a   : > { %v2472_v21 = vmul.f32 %v9270_v62, %v2205_v19  ;;  %2353 = vmatmul.bf16.gmra.mxu2 %v8684_v25  ;;  %2402 = vmatmul.bf16.gmra.mxu3 %v8686_v26 }
 0x29c   : > { %v2546_v40 = vadd.f32 %v9289_v23, %v2472_v21 }
 0x29d   : > { %v2158_v29 = vpop.f32.mrf.mxu2  ;;  %v2207_v17 = vpop.f32.mrf.mxu3 }
 0x29e   : > { %vm2610_vm15 = vcmp.gt.f32.partialorder %v2546_v40, 0.0  ;;  %v2674_v6 = vmul.f32 0.2, %v2546_v40  ;;  %v2159_v33 = vadd.f32 %v2158_v29, %v2110_v16  ;;  %v2270_v43 = vpop.f32.mrf.mxu1  ;;  %v7351_v16 = vor.u32 %v7731_v57, %v7348_v34 }
 0x2a0   : > { %v2738_v51 = vsel %vm2610_vm15, %v2546_v40, %v2674_v6  ;;  %v2208_v53 = vadd.f32 %v2207_v17, %v2159_v33  ;;  %v2221_v45 = vpop.f32.mrf.mxu0  ;;  %4547 = vmatpush.bf16.msra.mxu3 %v7351_v16  ;;  %v9566_v17 = vperm.slane %v9286_v4, 3  ;;  %v7556_v4 = vld [vmem:[%s11663_s6 + $0x154] sm:$0xf] }
 0x2a1   : > { %v9524_v38 = vpack.c.bf16 %v2738_v51, %v2734_v54  ;;  %4261 = vmatmul.bf16.vlgmr.msrb.gmra.mxu1 %v9056_v11  ;;  %v2271_v39 = vadd.f32 %v2270_v43, %v2221_v45 }
 0x2a2   : > { %v2476_v25 = vmul.f32 %v9270_v62, %v2208_v53 }
 0x2a3   : > { %4212 = vmatmul.bf16.vlgmr.msrb.gmra.mxu0 %v8778_v35 }
 0x2a4   : > { %v2550_v52 = vadd.f32 %v9289_v23, %v2476_v25  ;;  %v7668_v25 = vld [vmem:[%s11663_s6 + $0x4d4] sm:$0xf] }
 0x2a5   : > { %v2160_v26 = vpop.f32.mrf.mxu2  ;;  %v2209_v30 = vpop.f32.mrf.mxu3 }
 0x2a6   : > { %v2161_v31 = vadd.f32 %v2160_v26, %v2112_v10  ;;  %v2272_v63 = vpop.f32.mrf.mxu1  ;;  %v2678_v18 = vmul.f32 0.2, %v2550_v52  ;;  %vm2614_vm0 = vcmp.gt.f32.partialorder %v2550_v52, 0.0  ;;  %v7096_v26 = vld [vmem:[%s11663_s6 + $0x4ec] sm:$0xf0] }
 0x2a8   : > { %v2210_v58 = vadd.f32 %v2209_v30, %v2161_v31  ;;  %v2223_v32 = vpop.f32.mrf.mxu0  ;;  %v2742_v20 = vsel %vm2614_vm0, %v2550_v52, %v2678_v18  ;;  %v7099_v30 = vor.u32 %v7668_v25, %v7096_v26  ;;  %v6648_v31 = vld [vmem:[%s11663_s6 + $0x16c] sm:$0xf0]  ;;  %v7724_v52 = vld [vmem:[%s11663_s6 + $0x694] sm:$0xf] }
 0x2a9   : > { %v2273_v29 = vadd.f32 %v2272_v63, %v2223_v32  ;;  %v6651_v63 = vor.u32 %v7556_v4, %v6648_v31 }
 0x2aa   : > { %v2480_v27 = vmul.f32 %v9270_v62, %v2210_v58  ;;  %4310 = vmatmul.bf16.vlgmr.msrb.gmra.mxu2 %v9314_v50  ;;  %v7320_v58 = vld [vmem:[%s11663_s6 + $0x6ac] sm:$0xf0] }
 0x2ab   : > { %v7323_v41 = vor.u32 %v7724_v52, %v7320_v58  ;;  %4499 = vmatpush.bf16.msra.mxu2 %v7099_v30  ;;  %4401 = vmatpush.bf16.msra.mxu0 %v6651_v63 }
 0x2ac   : > { %v2554_v13 = vadd.f32 %v9289_v23, %v2480_v27  ;;  %v7619_v23 = vld [vmem:[%s11663_s6 + $0x34c] sm:$0xf] }
 0x2ad   : > { %v2319_v7 = vpop.f32.mrf.mxu2  ;;  %v2368_v0 = vpop.f32.mrf.mxu3  ;;  %v6903_v40 = vor.u32 %v7619_v23, %v6900_v49  ;;  %4548 = vmatpush.bf16.msra.mxu3 %v7323_v41 }
 0x2ae   : > { %vm2618_vm1 = vcmp.gt.f32.partialorder %v2554_v13, 0.0  ;;  %v2682_v19 = vmul.f32 0.2, %v2554_v13  ;;  %v2320_v8 = vadd.f32 %v2319_v7, %v2271_v39  ;;  %v2275_v60 = vpop.f32.mrf.mxu1 }
 0x2af   : > { %4449 = vmatpush.bf16.msra.mxu1 %v6903_v40 }
 0x2b0   : > { %v2746_v56 = vsel %vm2618_vm1, %v2554_v13, %v2682_v19  ;;  %v2369_v62 = vadd.f32 %v2368_v0, %v2320_v8  ;;  %v2226_v10 = vpop.f32.mrf.mxu0  ;;  %v7612_v0 = vld [vmem:[%s11663_s6 + $0x314] sm:$0xf]  ;;  %v6872_v19 = vld [vmem:[%s11663_s6 + $0x32c] sm:$0xf0] }
 0x2b1   : > { %v9554_v21 = vpack.c.bf16 %v2746_v56, %v2742_v20  ;;  %4266 = vmatmul.bf16.gmra.mxu1 %v9090_v37  ;;  %v2276_v47 = vadd.f32 %v2275_v60, %v2226_v10  ;;  %v6875_v8 = vor.u32 %v7612_v0, %v6872_v19 }
 0x2b2   : > { %v2421_v61 = vmul.f32 %v9552_v59, %v2369_v62 }
 0x2b3   : > { %4217 = vmatmul.bf16.gmra.mxu0 %v8812_v55  ;;  %4450 = vmatpush.bf16.msra.mxu1 %v6875_v8 }
 0x2b4   : > { %v2495_v51 = vadd.f32 %v9566_v17, %v2421_v61  ;;  %v7661_v61 = vld [vmem:[%s11663_s6 + $0x49c] sm:$0xf] }
 0x2b5   : > { %v2321_v6 = vpop.f32.mrf.mxu2  ;;  %v2370_v33 = vpop.f32.mrf.mxu3 }
 0x2b6   : > { %v2322_v54 = vadd.f32 %v2321_v6, %v2273_v29  ;;  %v2277_v43 = vpop.f32.mrf.mxu1  ;;  %v2623_v22 = vmul.f32 0.2, %v2495_v51  ;;  %vm2559_vm2 = vcmp.gt.f32.partialorder %v2495_v51, 0.0  ;;  %v7068_v6 = vld [vmem:[%s11663_s6 + $0x4b4] sm:$0xf0] }
 0x2b8   : > { %v2371_v53 = vadd.f32 %v2370_v33, %v2322_v54  ;;  %v2228_v45 = vpop.f32.mrf.mxu0  ;;  %v2687_v15 = vsel %vm2559_vm2, %v2495_v51, %v2623_v22  ;;  %v7549_v33 = vld [vmem:[%s11663_s6 + $0x11c] sm:$0xf]  ;;  %v7071_v54 = vor.u32 %v7661_v61, %v7068_v6  ;;  %v6620_v51 = vld [vmem:[%s11663_s6 + $0x134] sm:$0xf0]  ;;  %vm5755_vm2 = vcmask 125952  }
 0x2b9   : > { %v2278_v20 = vadd.f32 %v2277_v43, %v2228_v45  ;;  %v7292_v45 = vld [vmem:[%s11663_s6 + $0x674] sm:$0xf0]  ;;  %v6623_v25 = vor.u32 %v7549_v33, %v6620_v51 }
 0x2ba   : > { %v2425_v32 = vmul.f32 %v9552_v59, %v2371_v53  ;;  %4315 = vmatmul.bf16.gmra.mxu2 %v9348_v44  ;;  %v7717_v53 = vld [vmem:[%s11663_s6 + $0x65c] sm:$0xf] }
 0x2bb   : > { %v7295_v26 = vor.u32 %v7717_v53, %v7292_v45  ;;  %4500 = vmatpush.bf16.msra.mxu2 %v7071_v54  ;;  %4402 = vmatpush.bf16.msra.mxu0 %v6623_v25 }
 0x2bc   : > { %v2499_v12 = vadd.f32 %v9566_v17, %v2425_v32 }
 0x2bd   : > { %v2324_v28 = vpop.f32.mrf.mxu2  ;;  %v2373_v57 = vpop.f32.mrf.mxu3  ;;  %4549 = vmatpush.bf16.msra.mxu3 %v7295_v26 }
 0x2be   : > { %vm2563_vm3 = vcmp.gt.f32.partialorder %v2499_v12, 0.0  ;;  %v2627_v34 = vmul.f32 0.2, %v2499_v12  ;;  %v2325_v27 = vadd.f32 %v2324_v28, %v2276_v47  ;;  %v2280_v13 = vpop.f32.mrf.mxu1 }
 0x2c0   : > { %v2691_v16 = vsel %vm2563_vm3, %v2499_v12, %v2627_v34  ;;  %v2374_v18 = vadd.f32 %v2373_v57, %v2325_v27  ;;  %v2231_v39 = vpop.f32.mrf.mxu0  ;;  %v7605_v34 = vld [vmem:[%s11663_s6 + $0x2dc] sm:$0xf]  ;;  %v6844_v27 = vld [vmem:[%s11663_s6 + $0x2f4] sm:$0xf0] }
 0x2c1   : > { %v9590_v7 = vpack.c.bf16 %v2691_v16, %v2687_v15  ;;  %4271 = vmatmul.bf16.gmra.mxu1 %v9124_v5  ;;  %v2281_v30 = vadd.f32 %v2280_v13, %v2231_v39  ;;  %v6847_v15 = vor.u32 %v7605_v34, %v6844_v27 }
 0x2c2   : > { %v2429_v56 = vmul.f32 %v9552_v59, %v2374_v18 }
 0x2c3   : > { %4359 = vmatmul.bf16.vlgmr.msrb.gmra.mxu3 %v9590_v7  ;;  %4222 = vmatmul.bf16.gmra.mxu0 %v8846_v14 }
 0x2c4   : > { %v2503_v23 = vadd.f32 %v9566_v17, %v2429_v56  ;;  %4451 = vmatpush.bf16.msra.mxu1 %v6847_v15 }
 0x2c5   : > { %v2326_v62 = vpop.f32.mrf.mxu2  ;;  %v2375_v10 = vpop.f32.mrf.mxu3 }
 0x2c6   : > { %v2327_v60 = vadd.f32 %v2326_v62, %v2278_v20  ;;  %v2282_v29 = vpop.f32.mrf.mxu1  ;;  %v2631_v4 = vmul.f32 0.2, %v2503_v23  ;;  %vm2567_vm4 = vcmp.gt.f32.partialorder %v2503_v23, 0.0  ;;  %v7654_v62 = vld [vmem:[%s11663_s6 + $0x464] sm:$0xf] }
 0x2c8   : > { %v2376_v49 = vadd.f32 %v2375_v10, %v2327_v60  ;;  %v2233_v40 = vpop.f32.mrf.mxu0  ;;  %v2695_v41 = vsel %vm2567_vm4, %v2503_v23, %v2631_v4  ;;  %v7040_v10 = vld [vmem:[%s11663_s6 + $0x47c] sm:$0xf0]  ;;  %v7542_v60 = vld [vmem:[%s11663_s6 + $0xe4] sm:$0xf] }
 0x2c9   : > { %v2283_v16 = vadd.f32 %v2282_v29, %v2233_v40  ;;  %v7043_v23 = vor.u32 %v7654_v62, %v7040_v10  ;;  %v7710_v40 = vld [vmem:[%s11663_s6 + $0x624] sm:$0xf]  ;;  %v7264_v29 = vld [vmem:[%s11663_s6 + $0x63c] sm:$0xf0]  ;;  %v7703_v62 = vld [vmem:[%s11663_s6 + $0x5ec] sm:$0xf] }
 0x2ca   : > { %v2433_v43 = vmul.f32 %v9552_v59, %v2376_v49  ;;  %4320 = vmatmul.bf16.gmra.mxu2 %v9382_v42  ;;  %v6592_v49 = vld [vmem:[%s11663_s6 + $0xfc] sm:$0xf0]  ;;  %v7267_v33 = vor.u32 %v7710_v40, %v7264_v29  ;;  %v7236_v10 = vld [vmem:[%s11663_s6 + $0x604] sm:$0xf0] }
 0x2cb   : > { %v6595_v6 = vor.u32 %v7542_v60, %v6592_v49  ;;  %4501 = vmatpush.bf16.msra.mxu2 %v7043_v23  ;;  %v7239_v49 = vor.u32 %v7703_v62, %v7236_v10  ;;  %v7696_v62 = vld [vmem:[%s11663_s6 + $0x5b4] sm:$0xf] }
 0x2cc   : > { %v2507_v31 = vadd.f32 %v9566_v17, %v2433_v43  ;;  %4550 = vmatpush.bf16.msra.mxu3 %v7267_v33 }
 0x2cd   : > { %v2329_v52 = vpop.f32.mrf.mxu2  ;;  %v2378_v58 = vpop.f32.mrf.mxu3  ;;  %4403 = vmatpush.bf16.msra.mxu0 %v6595_v6 }
 0x2ce   : > { %vm2571_vm5 = vcmp.gt.f32.partialorder %v2507_v31, 0.0  ;;  %v2635_v32 = vmul.f32 0.2, %v2507_v31  ;;  %v2330_v63 = vadd.f32 %v2329_v52, %v2281_v30  ;;  %v2285_v28 = vpop.f32.mrf.mxu1 }
 0x2d0   : > { %v2699_v22 = vsel %vm2571_vm5, %v2507_v31, %v2635_v32  ;;  %v2379_v47 = vadd.f32 %v2378_v58, %v2330_v63  ;;  %v2236_v12 = vpop.f32.mrf.mxu0  ;;  %v7598_v63 = vld [vmem:[%s11663_s6 + $0x2a4] sm:$0xf]  ;;  %4551 = vmatpush.bf16.msra.mxu3 %v7239_v49 }
 0x2d1   : > { %v9624_v57 = vpack.c.bf16 %v2699_v22, %v2695_v41  ;;  %4276 = vmatmul.bf16.gmra.mxu1 %v9158_v2  ;;  %v2286_v51 = vadd.f32 %v2285_v28, %v2236_v12  ;;  %v6816_v41 = vld [vmem:[%s11663_s6 + $0x2bc] sm:$0xf0] }
 0x2d2   : > { %v2437_v18 = vmul.f32 %v9552_v59, %v2379_v47  ;;  %v6819_v22 = vor.u32 %v7598_v63, %v6816_v41  ;;  %v11712_v28 = vld [vmem:[#allocation10_spill] sm:$0xff] }
 0x2d3   : > { %4364 = vmatmul.bf16.gmra.mxu3 %v9624_v57  ;;  %4227 = vmatmul.bf16.gmra.mxu0 %v8880_v24 }
 0x2d4   : > { %v2511_v19 = vadd.f32 %v9566_v17, %v2437_v18  ;;  %4452 = vmatpush.bf16.msra.mxu1 %v6819_v22  ;;  %v11714_v22 = vld [vmem:[#allocation11_spill] sm:$0xff] }
 0x2d5   : > { %v2331_v39 = vpop.f32.mrf.mxu2  ;;  %v2380_v13 = vpop.f32.mrf.mxu3 }
 0x2d6   : > { %v2332_v0 = vadd.f32 %v2331_v39, %v2283_v16  ;;  %v2287_v56 = vpop.f32.mrf.mxu1  ;;  %v2639_v54 = vmul.f32 0.2, %v2511_v19  ;;  %vm2575_vm6 = vcmp.gt.f32.partialorder %v2511_v19, 0.0 }
 0x2d8   : > { %v2381_v8 = vadd.f32 %v2380_v13, %v2332_v0  ;;  %v2238_v20 = vpop.f32.mrf.mxu0  ;;  %v2703_v4 = vsel %vm2575_vm6, %v2511_v19, %v2639_v54  ;;  %v7647_v0 = vld [vmem:[%s11663_s6 + $0x42c] sm:$0xf]  ;;  %v7012_v19 = vld [vmem:[%s11663_s6 + $0x444] sm:$0xf0] }
 0x2d9   : > { %v2288_v47 = vadd.f32 %v2287_v56, %v2238_v20  ;;  %v7015_v20 = vor.u32 %v7647_v0, %v7012_v19  ;;  %v6564_v56 = vld [vmem:[%s11663_s6 + $0xc4] sm:$0xf0] }
 0x2da   : > { %v2441_v61 = vmul.f32 %v9552_v59, %v2381_v8  ;;  %4325 = vmatmul.bf16.gmra.mxu2 %v9416_v48  ;;  %v7535_v8 = vld [vmem:[%s11663_s6 + $0xac] sm:$0xf] }
 0x2db   : > { %v6567_v23 = vor.u32 %v7535_v8, %v6564_v56  ;;  %4502 = vmatpush.bf16.msra.mxu2 %v7015_v20  ;;  %v7640_v8 = vld [vmem:[%s11663_s6 + $0x3f4] sm:$0xf]  ;;  %v6984_v20 = vld [vmem:[%s11663_s6 + $0x40c] sm:$0xf0] }
 0x2dc   : > { %v2515_v53 = vadd.f32 %v9566_v17, %v2441_v61 }
 0x2dd   : > { %v2334_v45 = vpop.f32.mrf.mxu2  ;;  %v2383_v43 = vpop.f32.mrf.mxu3  ;;  %4404 = vmatpush.bf16.msra.mxu0 %v6567_v23  ;;  %v7208_v23 = vld [vmem:[%s11663_s6 + $0x5cc] sm:$0xf0] }
 0x2de   : > { %vm2579_vm7 = vcmp.gt.f32.partialorder %v2515_v53, 0.0  ;;  %v2643_v25 = vmul.f32 0.2, %v2515_v53  ;;  %v2335_v26 = vadd.f32 %v2334_v45, %v2286_v51  ;;  %v2290_v58 = vpop.f32.mrf.mxu1 }
 0x2e0   : > { %v2707_v30 = vsel %vm2579_vm7, %v2515_v53, %v2643_v25  ;;  %v2384_v31 = vadd.f32 %v2383_v43, %v2335_v26  ;;  %v2241_v52 = vpop.f32.mrf.mxu0 }
 0x2e1   : > { %v9658_v32 = vpack.c.bf16 %v2707_v30, %v2703_v4  ;;  %4281 = vmatmul.bf16.gmra.mxu1 %v11712_v28  ;;  %v2291_v29 = vadd.f32 %v2290_v58, %v2241_v52  ;;  %v7591_v30 = vld [vmem:[%s11663_s6 + $0x26c] sm:$0xf]  ;;  %v11713_v58 = vld [vmem:[#allocation4_spill] sm:$0xff] }
 0x2e2   : > { %v2445_v12 = vmul.f32 %v9552_v59, %v2384_v31  ;;  %v6788_v31 = vld [vmem:[%s11663_s6 + $0x284] sm:$0xf0] }
 0x2e3   : > { %4369 = vmatmul.bf16.gmra.mxu3 %v9658_v32  ;;  %4232 = vmatmul.bf16.gmra.mxu0 %v8926_v1  ;;  %v6791_v52 = vor.u32 %v7591_v30, %v6788_v31 }
 0x2e4   : > { %v2519_v16 = vadd.f32 %v9566_v17, %v2445_v12 }
 0x2e5   : > { %v2336_v34 = vpop.f32.mrf.mxu2  ;;  %v2385_v27 = vpop.f32.mrf.mxu3  ;;  %4453 = vmatpush.bf16.msra.mxu1 %v6791_v52 }
 0x2e6   : > { %v2337_v15 = vadd.f32 %v2336_v34, %v2288_v47  ;;  %v2292_v13 = vpop.f32.mrf.mxu1  ;;  %v2647_v40 = vmul.f32 0.2, %v2519_v16  ;;  %vm2583_vm8 = vcmp.gt.f32.partialorder %v2519_v16, 0.0 }
 0x2e8   : > { %v2386_v18 = vadd.f32 %v2385_v27, %v2337_v15  ;;  %v2243_v39 = vpop.f32.mrf.mxu0  ;;  %v2711_v53 = vsel %vm2583_vm8, %v2519_v16, %v2647_v40  ;;  %v7528_v27 = vld [vmem:[%s11663_s6 + $0x74] sm:$0xf]  ;;  %v6536_v15 = vld [vmem:[%s11663_s6 + $0x8c] sm:$0xf0]  ;;  %v7211_v40 = vor.u32 %v7696_v62, %v7208_v23  ;;  %v11715_v62 = vld [vmem:[#allocation5_spill] sm:$0xff] }
 0x2e9   : > { %v2293_v63 = vadd.f32 %v2292_v13, %v2243_v39  ;;  %v7584_v16 = vld [vmem:[%s11663_s6 + $0x234] sm:$0xf]  ;;  %v6539_v56 = vor.u32 %v7528_v27, %v6536_v15  ;;  %v7626_v23 = vld [vmem:[%s11663_s6 + $0x384] sm:$0xf] }
 0x2ea   : > { %v2449_v60 = vmul.f32 %v9552_v59, %v2386_v18  ;;  %4330 = vmatmul.bf16.gmra.mxu2 %v9486_v9  ;;  %v6760_v18 = vld [vmem:[%s11663_s6 + $0x24c] sm:$0xf0]  ;;  %4552 = vmatpush.bf16.msra.mxu3 %v7211_v40 }
 0x2eb   : > { %v6763_v10 = vor.u32 %v7584_v16, %v6760_v18  ;;  %4405 = vmatpush.bf16.msra.mxu0 %v6539_v56  ;;  %v6704_v18 = vld [vmem:[%s11663_s6 + $0x1dc] sm:$0xf0] }
 0x2ec   : > { %v2523_v61 = vadd.f32 %v9566_v17, %v2449_v60  ;;  %v6987_v60 = vor.u32 %v7640_v8, %v6984_v20 }
 0x2ed   : > { %v2339_v6 = vpop.f32.mrf.mxu2  ;;  %v2388_v33 = vpop.f32.mrf.mxu3  ;;  %4454 = vmatpush.bf16.msra.mxu1 %v6763_v10 }
 0x2ee   : > { %vm2587_vm9 = vcmp.gt.f32.partialorder %v2523_v61, 0.0  ;;  %v2651_v54 = vmul.f32 0.2, %v2523_v61  ;;  %v2340_v51 = vadd.f32 %v2339_v6, %v2291_v29  ;;  %v2295_v26 = vpop.f32.mrf.mxu1  ;;  %v7521_v29 = vld [vmem:[%s11663_s6 + $0x3c] sm:$0xf]  ;;  %4503 = vmatpush.bf16.msra.mxu2 %v6987_v60 }
 0x2ef   : > { %v7577_v6 = vld [vmem:[%s11663_s6 + $0x1fc] sm:$0xf] }
 0x2f0   : > { %v2715_v45 = vsel %vm2587_vm9, %v2523_v61, %v2651_v54  ;;  %v2389_v43 = vadd.f32 %v2388_v33, %v2340_v51  ;;  %v2246_v25 = vpop.f32.mrf.mxu0  ;;  %v6508_v61 = vld [vmem:[%s11663_s6 + $0x54] sm:$0xf0] }
 0x2f1   : > { %v9692_v4 = vpack.c.bf16 %v2715_v45, %v2711_v53  ;;  %4286 = vmatmul.bf16.gmra.mxu1 %v11714_v22  ;;  %v6511_v33 = vor.u32 %v7521_v29, %v6508_v61  ;;  %v6732_v54 = vld [vmem:[%s11663_s6 + $0x214] sm:$0xf0]  ;;  %v2296_v53 = vadd.f32 %v2295_v26, %v2246_v25  ;;  %v6480_v25 = vld [vmem:[%s11663_s6 + $0x1c] sm:$0xf0]  ;;  %v7570_v26 = vld [vmem:[%s11663_s6 + $0x1c4] sm:$0xf] }
 0x2f2   : > { %v2453_v41 = vmul.f32 %v9552_v59, %v2389_v43  ;;  %v6735_v43 = vor.u32 %v7577_v6, %v6732_v54  ;;  %v6707_v20 = vor.u32 %v7570_v26, %v6704_v18 }
 0x2f3   : > { %4374 = vmatmul.bf16.gmra.mxu3 %v9692_v4  ;;  %4237 = vmatmul.bf16.gmra.mxu0 %v11713_v58 }
 0x2f4   : > { %v2527_v39 = vadd.f32 %v9566_v17, %v2453_v41  ;;  %4406 = vmatpush.bf16.msra.mxu0 %v6511_v33  ;;  %v7514_v41 = vld [vmem:[%s11663_s6 + $0x4] sm:$0xf]  ;;  %4455 = vmatpush.bf16.msra.mxu1 %v6735_v43 }
 0x2f5   : > { %v2341_v47 = vpop.f32.mrf.mxu2  ;;  %v2390_v12 = vpop.f32.mrf.mxu3  ;;  %v6483_v16 = vor.u32 %v7514_v41, %v6480_v25 }
 0x2f6   : > { %v2342_v34 = vadd.f32 %v2341_v47, %v2293_v63  ;;  %v2297_v19 = vpop.f32.mrf.mxu1  ;;  %v2655_v51 = vmul.f32 0.2, %v2527_v39  ;;  %vm2591_vm10 = vcmp.gt.f32.partialorder %v2527_v39, 0.0 }
 0x2f8   : > { %v2391_v13 = vadd.f32 %v2390_v12, %v2342_v34  ;;  %v2248_v0 = vpop.f32.mrf.mxu0  ;;  %v2719_v47 = vsel %vm2591_vm10, %v2527_v39, %v2655_v51  ;;  %v6956_v39 = vld [vmem:[%s11663_s6 + $0x3d4] sm:$0xf0]  ;;  %4407 = vmatpush.bf16.msra.mxu0 %v6483_v16  ;;  %4456 = vmatpush.bf16.msra.mxu1 %v6707_v20  ;;  %v7689_v51 = vld [vmem:[%s11663_s6 + $0x57c] sm:$0xf]  ;;  %v11716_v20 = vld [vmem:[#allocation6_spill] sm:$0xff] }
 0x2f9   : > { %v2298_v10 = vadd.f32 %v2297_v19, %v2248_v0 }
 0x2fa   : > { %v2457_v49 = vmul.f32 %v9552_v59, %v2391_v13  ;;  %4335 = vmatmul.bf16.gmra.mxu2 %v9508_v3  ;;  %v7633_v13 = vld [vmem:[%s11663_s6 + $0x3bc] sm:$0xf] }
 0x2fb   : > { %v6959_v56 = vor.u32 %v7633_v13, %v6956_v39 }
 0x2fc   : > { %v2531_v45 = vadd.f32 %v9566_v17, %v2457_v49  ;;  %v6928_v49 = vld [vmem:[%s11663_s6 + $0x39c] sm:$0xf0] }
 0x2fd   : > { %v2344_v30 = vpop.f32.mrf.mxu2  ;;  %v2393_v31 = vpop.f32.mrf.mxu3  ;;  %4504 = vmatpush.bf16.msra.mxu2 %v6959_v56  ;;  %v6931_v61 = vor.u32 %v7626_v23, %v6928_v49 }
 0x2fe   : > { %vm2595_vm11 = vcmp.gt.f32.partialorder %v2531_v45, 0.0  ;;  %v2659_v52 = vmul.f32 0.2, %v2531_v45  ;;  %v2345_v63 = vadd.f32 %v2344_v30, %v2296_v53  ;;  %v2300_v15 = vpop.f32.mrf.mxu1  ;;  %v7180_v53 = vld [vmem:[%s11663_s6 + $0x594] sm:$0xf0] }
 0x300   : > { %v2723_v12 = vsel %vm2595_vm11, %v2531_v45, %v2659_v52  ;;  %v2394_v34 = vadd.f32 %v2393_v31, %v2345_v63  ;;  %v2251_v27 = vpop.f32.mrf.mxu0  ;;  %v7183_v45 = vor.u32 %v7689_v51, %v7180_v53 }
 0x301   : > { %v9759_v8 = vpack.c.bf16 %v2723_v12, %v2719_v47  ;;  %4291 = vmatmul.bf16.gmra.mxu1 %v9236_v46  ;;  %4505 = vmatpush.bf16.msra.mxu2 %v6931_v61  ;;  %v2301_v31 = vadd.f32 %v2300_v15, %v2251_v27  ;;  %v7682_v27 = vld [vmem:[%s11663_s6 + $0x544] sm:$0xf]  ;;  %v7152_v15 = vld [vmem:[%s11663_s6 + $0x55c] sm:$0xf0] }
 0x302   : > { %v2461_v60 = vmul.f32 %v9552_v59, %v2394_v34  ;;  %4553 = vmatpush.bf16.msra.mxu3 %v7183_v45 }
 0x303   : > { %4379 = vmatmul.bf16.gmra.mxu3 %v9759_v8  ;;  %4242 = vmatmul.bf16.gmra.mxu0 %v11715_v62 }
 0x304   : > { %v2535_v0 = vadd.f32 %v9566_v17, %v2461_v60 }
 0x305   : > { %v2346_v40 = vpop.f32.mrf.mxu2  ;;  %v2395_v29 = vpop.f32.mrf.mxu3 }
 0x306   : > { %v2347_v6 = vadd.f32 %v2346_v40, %v2298_v10  ;;  %v2302_v54 = vpop.f32.mrf.mxu1  ;;  %v2663_v30 = vmul.f32 0.2, %v2535_v0  ;;  %vm2599_vm12 = vcmp.gt.f32.partialorder %v2535_v0, 0.0  ;;  %v7155_v10 = vor.u32 %v7682_v27, %v7152_v15  ;;  %v6682_v27 = vld [vmem:[%s11663_s6 + $0x190] sm:$0xf] }
 0x308   : > { %v2396_v19 = vadd.f32 %v2395_v29, %v2347_v6  ;;  %v2253_v33 = vpop.f32.mrf.mxu0  ;;  %v2727_v47 = vsel %vm2599_vm12, %v2535_v0, %v2663_v30  ;;  %4554 = vmatpush.bf16.msra.mxu3 %v7155_v10  ;;  %v7567_v10 = vld [vmem:[%s11663_s6 + $0x1a8] sm:$0xf0] }
 0x309   : > { %v2303_v39 = vadd.f32 %v2302_v54, %v2253_v33 }
 0x30a   : > { %v2465_v43 = vmul.f32 %v9552_v59, %v2396_v19  ;;  %4340 = vmatmul.bf16.gmra.mxu2 %v9524_v38  ;;  %v9802_v19 = vld [vmem:[%s11664_s7] sm:$0x7f] }
 0x30c   : > { %v2539_v52 = vadd.f32 %v9566_v17, %v2465_v43  ;;  %v9806_v43 = vperm.slane %v9802_v19, 0 }
 0x30d   : > { %v2349_v63 = vpop.f32.mrf.mxu2  ;;  %v2398_v41 = vpop.f32.mrf.mxu3 }
 0x30e   : > { %vm2603_vm13 = vcmp.gt.f32.partialorder %v2539_v52, 0.0  ;;  %v2667_v25 = vmul.f32 0.2, %v2539_v52  ;;  %v2350_v26 = vadd.f32 %v2349_v63, %v2301_v31  ;;  %v2305_v18 = vpop.f32.mrf.mxu1 }
 0x310   : > { %v2731_v12 = vsel %vm2603_vm13, %v2539_v52, %v2667_v25  ;;  %v2399_v34 = vadd.f32 %v2398_v41, %v2350_v26  ;;  %v2256_v16 = vpop.f32.mrf.mxu0 }
 0x311   : > { %v9784_v13 = vpack.c.bf16 %v2731_v12, %v2727_v47  ;;  %4296 = vmatmul.bf16.gmra.mxu1 %v9272_v36  ;;  %v2306_v54 = vadd.f32 %v2305_v18, %v2256_v16  ;;  %v7130_v16 = vld [vmem:[%s11663_s6 + $0x510] sm:$0xf]  ;;  %v7679_v18 = vld [vmem:[%s11663_s6 + $0x528] sm:$0xf0] }
 0x312   : > { %v2469_v56 = vmul.f32 %v9552_v59, %v2399_v34 }
 0x313   : > { %4384 = vmatmul.bf16.gmra.mxu3 %v9784_v13  ;;  %4247 = vmatmul.bf16.gmra.mxu0 %v11716_v20 }
 0x314   : > { %v2543_v40 = vadd.f32 %v9566_v17, %v2469_v56  ;;  %v7131_v56 = vor.u32 %v7679_v18, %v7130_v16 }
 0x315   : > { %v2351_v60 = vpop.f32.mrf.mxu2  ;;  %v2400_v23 = vpop.f32.mrf.mxu3 }
 0x316   : > { %v2352_v49 = vadd.f32 %v2351_v60, %v2303_v39  ;;  %v2307_v6 = vpop.f32.mrf.mxu1  ;;  %v2671_v33 = vmul.f32 0.2, %v2543_v40  ;;  %vm2607_vm14 = vcmp.gt.f32.partialorder %v2543_v40, 0.0  ;;  %v7354_v60 = vld [vmem:[%s11663_s6 + $0x6d0] sm:$0xf]  ;;  %4694 = vmatpush.bf16.msrb.mxu2 %v7131_v56 }
 0x318   : > { %v2401_v29 = vadd.f32 %v2400_v23, %v2352_v49  ;;  %v2258_v61 = vpop.f32.mrf.mxu0  ;;  %v2735_v52 = vsel %vm2607_vm14, %v2543_v40, %v2671_v33  ;;  %v7735_v23 = vld [vmem:[%s11663_s6 + $0x6e8] sm:$0xf0]  ;;  %v6683_v40 = vor.u32 %v7567_v10, %v6682_v27 }
 0x319   : > { %v2308_v15 = vadd.f32 %v2307_v6, %v2258_v61  ;;  %v6906_v6 = vld [vmem:[%s11663_s6 + $0x350] sm:$0xf]  ;;  %v7623_v33 = vld [vmem:[%s11663_s6 + $0x368] sm:$0xf0] }
 0x31a   : > { %v2473_v0 = vmul.f32 %v9552_v59, %v2401_v29  ;;  %4345 = vmatmul.bf16.gmra.mxu2 %v9554_v21  ;;  %v7355_v29 = vor.u32 %v7735_v23, %v7354_v60  ;;  %4596 = vmatpush.bf16.msrb.mxu0 %v6683_v40  ;;  %v6654_v60 = vld [vmem:[%s11663_s6 + $0x158] sm:$0xf] }
 0x31b   : > { %v7326_v40 = vld [vmem:[%s11663_s6 + $0x698] sm:$0xf] }
 0x31c   : > { %v2547_v51 = vadd.f32 %v9566_v17, %v2473_v0  ;;  %4743 = vmatpush.bf16.msrb.mxu3 %v7355_v29  ;;  %v7728_v29 = vld [vmem:[%s11663_s6 + $0x6b0] sm:$0xf0] }
 0x31d   : > { %v2354_v53 = vpop.f32.mrf.mxu2  ;;  %v2403_v45 = vpop.f32.mrf.mxu3 }
 0x31e   : > { %vm2611_vm15 = vcmp.gt.f32.partialorder %v2547_v51, 0.0  ;;  %v2675_v30 = vmul.f32 0.2, %v2547_v51  ;;  %v2355_v31 = vadd.f32 %v2354_v53, %v2306_v54  ;;  %v4262_v26 = vpop.f32.mrf.mxu1 }
 0x320   : > { %v2739_v63 = vsel %vm2611_vm15, %v2547_v51, %v2675_v30  ;;  %v2404_v41 = vadd.f32 %v2403_v45, %v2355_v31  ;;  %v4213_v25 = vpop.f32.mrf.mxu0  ;;  %v6907_v30 = vor.u32 %v7623_v33, %v6906_v6 }
 0x321   : > { %v9808_v47 = vpack.c.bf16 %v2739_v63, %v2735_v52  ;;  %v4214_v12 = vadd.f32 %v4213_v25, %v9806_v43  ;;  %4457 = vmatmul.bf16.vlgmr.msra.gmra.mxu1 %v9056_v11 }
 0x322   : > { %v2477_v39 = vmul.f32 %v9552_v59, %v2404_v41  ;;  %4645 = vmatpush.bf16.msrb.mxu1 %v6907_v30 }
 0x323   : > { %v4263_v34 = vadd.f32 %v4262_v26, %v4214_v12  ;;  %4389 = vmatmul.bf16.gmra.mxu3 %v9808_v47  ;;  %4408 = vmatmul.bf16.vlgmr.msra.gmra.mxu0 %v8778_v35 }
 0x324   : > { %v2551_v54 = vadd.f32 %v9566_v17, %v2477_v39 }
 0x325   : > { %v2356_v49 = vpop.f32.mrf.mxu2  ;;  %v2405_v0 = vpop.f32.mrf.mxu3 }
 0x326   : > { %v2357_v61 = vadd.f32 %v2356_v49, %v2308_v15  ;;  %v4264_v45 = vpop.f32.mrf.mxu1  ;;  %v2679_v41 = vmul.f32 0.2, %v2551_v54  ;;  %vm2615_vm0 = vcmp.gt.f32.partialorder %v2551_v54, 0.0  ;;  %v7560_v49 = vld [vmem:[%s11663_s6 + $0x170] sm:$0xf0] }
 0x327   : > { %v6655_v6 = vor.u32 %v7560_v49, %v6654_v60 }
 0x328   : > { %v2406_v51 = vadd.f32 %v2405_v0, %v2357_v61  ;;  %v4215_v53 = vpop.f32.mrf.mxu0  ;;  %v2743_v18 = vsel %vm2615_vm0, %v2551_v54, %v2679_v41  ;;  %v7327_v0 = vor.u32 %v7728_v29, %v7326_v40  ;;  %v6878_v54 = vld [vmem:[%s11663_s6 + $0x318] sm:$0xf] }
 0x329   : > { %v4216_v31 = vadd.f32 %v4215_v53, %v9806_v43  ;;  %4597 = vmatpush.bf16.msrb.mxu0 %v6655_v6  ;;  %v7609_v6 = vld [vmem:[%s11663_s6 + $0x2f8] sm:$0xf0] }
 0x32a   : > { %v2481_v52 = vmul.f32 %v9552_v59, %v2406_v51  ;;  %4506 = vmatmul.bf16.vlgmr.msra.gmra.mxu2 %v9314_v50  ;;  %v7616_v51 = vld [vmem:[%s11663_s6 + $0x330] sm:$0xf0]  ;;  %4744 = vmatpush.bf16.msrb.mxu3 %v7327_v0 }
 0x32b   : > { %v4265_v63 = vadd.f32 %v4264_v45, %v4216_v31  ;;  %v6879_v53 = vor.u32 %v7616_v51, %v6878_v54 }
 0x32c   : > { %v2555_v25 = vadd.f32 %v9566_v17, %v2481_v52  ;;  %v7102_v17 = vld [vmem:[%s11663_s6 + $0x4d8] sm:$0xf] }
 0x32d   : > { %v4311_v26 = vpop.f32.mrf.mxu2  ;;  %4646 = vmatpush.bf16.msrb.mxu1 %v6879_v53 }
 0x32e   : > { %vm2619_vm1 = vcmp.gt.f32.partialorder %v2555_v25, 0.0  ;;  %v2683_v12 = vmul.f32 0.2, %v2555_v25  ;;  %v4312_v16 = vadd.f32 %v4311_v26, %v4263_v34  ;;  %v4267_v39 = vpop.f32.mrf.mxu1  ;;  %v7672_v34 = vld [vmem:[%s11663_s6 + $0x4f0] sm:$0xf0] }
 0x32f   : > { %v7103_v23 = vor.u32 %v7672_v34, %v7102_v17  ;;  %v7298_v17 = vld [vmem:[%s11663_s6 + $0x660] sm:$0xf]  ;;  %v7721_v34 = vld [vmem:[%s11663_s6 + $0x678] sm:$0xf0] }
 0x330   : > { %v2747_v27 = vsel %vm2619_vm1, %v2555_v25, %v2683_v12  ;;  %v4218_v15 = vpop.f32.mrf.mxu0  ;;  %v7299_v49 = vor.u32 %v7721_v34, %v7298_v17  ;;  %v7714_v17 = vld [vmem:[%s11663_s6 + $0x640] sm:$0xf0] }
 0x331   : > { %v9844_v56 = vpack.c.bf16 %v2747_v27, %v2743_v18  ;;  %v4219_v59 = vadd.f32 %v4218_v15, %v9806_v43  ;;  %4462 = vmatmul.bf16.gmra.mxu1 %v9090_v37  ;;  %4695 = vmatpush.bf16.msrb.mxu2 %v7103_v23  ;;  %v7074_v27 = vld [vmem:[%s11663_s6 + $0x4a0] sm:$0xf]  ;;  %v7665_v15 = vld [vmem:[%s11663_s6 + $0x4b8] sm:$0xf0] }
 0x332   : > { %4745 = vmatpush.bf16.msrb.mxu3 %v7299_v49 }
 0x333   : > { %11717 = vst [vmem:[#allocation10_spill] sm:$0xff] %v9844_v56  ;;  %v4268_v10 = vadd.f32 %v4267_v39, %v4219_v59  ;;  %4394 = vmatmul.bf16.gmra.mxu3 %v9844_v56  ;;  %4413 = vmatmul.bf16.gmra.mxu0 %v8812_v55  ;;  %v6626_v39 = vld [vmem:[%s11663_s6 + $0x120] sm:$0xf]  ;;  %v7075_v59 = vor.u32 %v7665_v15, %v7074_v27  ;;  %v7046_v15 = vld [vmem:[%s11663_s6 + $0x468] sm:$0xf] }
 0x335   : > { %v4313_v61 = vpop.f32.mrf.mxu2  ;;  %4696 = vmatpush.bf16.msrb.mxu2 %v7075_v59  ;;  %v7546_v59 = vld [vmem:[%s11663_s6 + $0x100] sm:$0xf0] }
 0x336   : > { %v4314_v33 = vadd.f32 %v4313_v61, %v4265_v63  ;;  %v4269_v30 = vpop.f32.mrf.mxu1  ;;  %v6850_v61 = vld [vmem:[%s11663_s6 + $0x2e0] sm:$0xf] }
 0x337   : > { %v6851_v54 = vor.u32 %v7609_v6, %v6850_v61  ;;  %v6822_v61 = vld [vmem:[%s11663_s6 + $0x2a8] sm:$0xf]  ;;  %v7602_v6 = vld [vmem:[%s11663_s6 + $0x2c0] sm:$0xf0] }
 0x338   : > { %v4220_v45 = vpop.f32.mrf.mxu0 }
 0x339   : > { %v4221_v31 = vadd.f32 %v4220_v45, %v9806_v43  ;;  %4647 = vmatpush.bf16.msrb.mxu1 %v6851_v54 }
 0x33a   : > { %4511 = vmatmul.bf16.gmra.mxu2 %v9348_v44 }
 0x33b   : > { %v4270_v52 = vadd.f32 %v4269_v30, %v4221_v31 }
 0x33d   : > { %v4316_v63 = vpop.f32.mrf.mxu2 }
 0x33e   : > { %v4317_v41 = vadd.f32 %v4316_v63, %v4268_v10  ;;  %v4272_v12 = vpop.f32.mrf.mxu1  ;;  %v7553_v10 = vld [vmem:[%s11663_s6 + $0x138] sm:$0xf0] }
 0x33f   : > { %v6627_v23 = vor.u32 %v7553_v10, %v6626_v39  ;;  %v7270_v10 = vld [vmem:[%s11663_s6 + $0x628] sm:$0xf] }
 0x340   : > { %v4223_v25 = vpop.f32.mrf.mxu0 }
 0x341   : > { %v4224_v26 = vadd.f32 %v4223_v25, %v9806_v43  ;;  %4467 = vmatmul.bf16.gmra.mxu1 %v9124_v5  ;;  %4598 = vmatpush.bf16.msrb.mxu0 %v6627_v23  ;;  %v7271_v23 = vor.u32 %v7714_v17, %v7270_v10  ;;  %v7539_v10 = vld [vmem:[%s11663_s6 + $0xc8] sm:$0xf0]  ;;  %v7242_v17 = vld [vmem:[%s11663_s6 + $0x5f0] sm:$0xf] }
 0x343   : > { %v4273_v18 = vadd.f32 %v4272_v12, %v4224_v26  ;;  %4555 = vmatmul.bf16.vlgmr.msra.gmra.mxu3 %v9590_v7  ;;  %4418 = vmatmul.bf16.gmra.mxu0 %v8846_v14 }
 0x344   : > { %4746 = vmatpush.bf16.msrb.mxu3 %v7271_v23 }
 0x345   : > { %v4318_v60 = vpop.f32.mrf.mxu2 }
 0x346   : > { %v4319_v40 = vadd.f32 %v4318_v60, %v4270_v52  ;;  %v4360_v29 = vpop.f32.mrf.mxu3  ;;  %v4274_v45 = vpop.f32.mrf.mxu1 }
 0x347   : > { %v9904_v0 = vadd.f32 %v4360_v29, %v4312_v16 }
 0x348   : > { %v4225_v51 = vpop.f32.mrf.mxu0 }
 0x349   : > { %v4226_v53 = vadd.f32 %v4225_v51, %v9806_v43  ;;  %v6823_v51 = vor.u32 %v7602_v6, %v6822_v61  ;;  %7747 = vtanh.f32 %v9904_v0 }
 0x34a   : > { %4516 = vmatmul.bf16.gmra.mxu2 %v9382_v42 }
 0x34b   : > { %v4275_v30 = vadd.f32 %v4274_v45, %v4226_v53  ;;  %4648 = vmatpush.bf16.msrb.mxu1 %v6823_v51  ;;  %v6794_v51 = vld [vmem:[%s11663_s6 + $0x270] sm:$0xf] }
 0x34d   : > { %v4321_v31 = vpop.f32.mrf.mxu2 }
 0x34e   : > { %v4322_v52 = vadd.f32 %v4321_v31, %v4273_v18  ;;  %v4362_v63 = vpop.f32.mrf.mxu3  ;;  %v4277_v12 = vpop.f32.mrf.mxu1  ;;  %v7658_v18 = vld [vmem:[%s11663_s6 + $0x480] sm:$0xf0] }
 0x34f   : > { %v9908_v25 = vadd.f32 %v4362_v63, %v4314_v33  ;;  %v6598_v33 = vld [vmem:[%s11663_s6 + $0xe8] sm:$0xf]  ;;  %v7047_v39 = vor.u32 %v7658_v18, %v7046_v15 }
 0x350   : > { %v4228_v26 = vpop.f32.mrf.mxu0  ;;  %v6599_v60 = vor.u32 %v7546_v59, %v6598_v33 }
 0x351   : > { %v4229_v16 = vadd.f32 %v4228_v26, %v9806_v43  ;;  %4472 = vmatmul.bf16.gmra.mxu1 %v9158_v2  ;;  %4697 = vmatpush.bf16.msrb.mxu2 %v7047_v39  ;;  %v7018_v39 = vld [vmem:[%s11663_s6 + $0x430] sm:$0xf] }
 0x352   : > { %4599 = vmatpush.bf16.msrb.mxu0 %v6599_v60 }
 0x353   : > { %v4278_v27 = vadd.f32 %v4277_v12, %v4229_v16  ;;  %4560 = vmatmul.bf16.gmra.mxu3 %v9624_v57  ;;  %4423 = vmatmul.bf16.gmra.mxu0 %v8880_v24 }
 0x355   : > { %v4323_v34 = vpop.f32.mrf.mxu2 }
 0x356   : > { %v4324_v49 = vadd.f32 %v4323_v34, %v4275_v30  ;;  %v4365_v29 = vpop.f32.mrf.mxu3  ;;  %v4279_v31 = vpop.f32.mrf.mxu1  ;;  %v7707_v34 = vld [vmem:[%s11663_s6 + $0x608] sm:$0xf0] }
 0x357   : > { %v9938_v54 = vadd.f32 %v4365_v29, %v4317_v41  ;;  %v7243_v29 = vor.u32 %v7707_v34, %v7242_v17  ;;  %v6990_v17 = vld [vmem:[%s11663_s6 + $0x3f8] sm:$0xf] }
 0x358   : > { %v4230_v53 = vpop.f32.mrf.mxu0 }
 0x359   : > { %v4231_v45 = vadd.f32 %v4230_v53, %v9806_v43  ;;  %v7595_v53 = vld [vmem:[%s11663_s6 + $0x288] sm:$0xf0]  ;;  %4747 = vmatpush.bf16.msrb.mxu3 %v7243_v29  ;;  %v7700_v29 = vld [vmem:[%s11663_s6 + $0x5d0] sm:$0xf0] }
 0x35a   : > { %4521 = vmatmul.bf16.gmra.mxu2 %v9416_v48 }
 0x35b   : > { %v4280_v30 = vadd.f32 %v4279_v31, %v4231_v45  ;;  %v6795_v31 = vor.u32 %v7595_v53, %v6794_v51 }
 0x35d   : > { %v4326_v63 = vpop.f32.mrf.mxu2  ;;  %4649 = vmatpush.bf16.msrb.mxu1 %v6795_v31 }
 0x35e   : > { %v4327_v26 = vadd.f32 %v4326_v63, %v4278_v27  ;;  %v4367_v16 = vpop.f32.mrf.mxu3  ;;  %v4282_v18 = vpop.f32.mrf.mxu1  ;;  %v7651_v27 = vld [vmem:[%s11663_s6 + $0x448] sm:$0xf0] }
 0x35f   : > { %v9942_v12 = vadd.f32 %v4367_v16, %v4319_v40  ;;  %v6570_v40 = vld [vmem:[%s11663_s6 + $0xb0] sm:$0xf]  ;;  %v7019_v59 = vor.u32 %v7651_v27, %v7018_v39 }
 0x360   : > { %v4233_v15 = vpop.f32.mrf.mxu0  ;;  %v6571_v23 = vor.u32 %v7539_v10, %v6570_v40 }
 0x361   : > { %v4234_v41 = vadd.f32 %v4233_v15, %v9806_v43  ;;  %4477 = vmatmul.bf16.gmra.mxu1 %v11712_v28  ;;  %4698 = vmatpush.bf16.msrb.mxu2 %v7019_v59 }
 0x362   : > { %4600 = vmatpush.bf16.msrb.mxu0 %v6571_v23  ;;  %v7214_v23 = vld [vmem:[%s11663_s6 + $0x5b8] sm:$0xf] }
 0x363   : > { %v4283_v33 = vadd.f32 %v4282_v18, %v4234_v41  ;;  %4565 = vmatmul.bf16.gmra.mxu3 %v9658_v32  ;;  %4428 = vmatmul.bf16.gmra.mxu0 %v8926_v1  ;;  %v7215_v53 = vor.u32 %v7700_v29, %v7214_v23 }
 0x365   : > { %v4328_v60 = vpop.f32.mrf.mxu2  ;;  %4748 = vmatpush.bf16.msrb.mxu3 %v7215_v53  ;;  %v7518_v53 = vld [vmem:[%s11663_s6 + $0x20] sm:$0xf0] }
 0x366   : > { %v9966_v61 = vadd.f32 %v4328_v60, %v4280_v30  ;;  %v4370_v6 = vpop.f32.mrf.mxu3  ;;  %v4284_v30 = vpop.f32.mrf.mxu1  ;;  %v7532_v60 = vld [vmem:[%s11663_s6 + $0x90] sm:$0xf0] }
 0x367   : > { %v9974_v45 = vadd.f32 %v4370_v6, %v4322_v52 }
 0x368   : > { %v4235_v63 = vpop.f32.mrf.mxu0 }
 0x369   : > { %v4236_v16 = vadd.f32 %v4235_v63, %v9806_v43 }
 0x36a   : > { %4526 = vmatmul.bf16.gmra.mxu2 %v9486_v9 }
 0x36b   : > { %v4285_v15 = vadd.f32 %v4284_v30, %v4236_v16  ;;  %v6766_v16 = vld [vmem:[%s11663_s6 + $0x238] sm:$0xf]  ;;  %v7588_v30 = vld [vmem:[%s11663_s6 + $0x250] sm:$0xf0] }
 0x36d   : > { %v4331_v41 = vpop.f32.mrf.mxu2 }
 0x36e   : > { %v9978_v18 = vadd.f32 %v4331_v41, %v4283_v33  ;;  %v4372_v39 = vpop.f32.mrf.mxu3  ;;  %v4287_v59 = vpop.f32.mrf.mxu1  ;;  %v7644_v33 = vld [vmem:[%s11663_s6 + $0x410] sm:$0xf0] }
 0x36f   : > { %v9980_v27 = vadd.f32 %v4372_v39, %v4324_v49  ;;  %v6542_v49 = vld [vmem:[%s11663_s6 + $0x78] sm:$0xf]  ;;  %v6991_v34 = vor.u32 %v7644_v33, %v6990_v17  ;;  %v6767_v39 = vor.u32 %v7588_v30, %v6766_v16  ;;  %v7525_v17 = vld [vmem:[%s11663_s6 + $0x58] sm:$0xf0] }
 0x370   : > { %v4238_v40 = vpop.f32.mrf.mxu0  ;;  %v6543_v51 = vor.u32 %v7532_v60, %v6542_v49 }
 0x371   : > { %v4239_v52 = vadd.f32 %v4238_v40, %v9806_v43  ;;  %4482 = vmatmul.bf16.gmra.mxu1 %v11714_v22  ;;  %4699 = vmatpush.bf16.msrb.mxu2 %v6991_v34  ;;  %v7581_v34 = vld [vmem:[%s11663_s6 + $0x218] sm:$0xf0] }
 0x372   : > { %4601 = vmatpush.bf16.msrb.mxu0 %v6543_v51  ;;  %4650 = vmatpush.bf16.msrb.mxu1 %v6767_v39  ;;  %v6486_v51 = vld [vmem:[%s11663_s6 + $0x8] sm:$0xf] }
 0x373   : > { %v4288_v10 = vadd.f32 %v4287_v59, %v4239_v52  ;;  %4570 = vmatmul.bf16.gmra.mxu3 %v9692_v4  ;;  %4433 = vmatmul.bf16.gmra.mxu0 %v11713_v58  ;;  %v6514_v59 = vld [vmem:[%s11663_s6 + $0x40] sm:$0xf]  ;;  %v6487_v30 = vor.u32 %v7518_v53, %v6486_v51 }
 0x374   : > { %v6515_v49 = vor.u32 %v7525_v17, %v6514_v59 }
 0x375   : > { %v4333_v6 = vpop.f32.mrf.mxu2 }
 0x376   : > { %v10004_v31 = vadd.f32 %v4333_v6, %v4285_v15  ;;  %v4375_v63 = vpop.f32.mrf.mxu3  ;;  %v4289_v15 = vpop.f32.mrf.mxu1  ;;  %4602 = vmatpush.bf16.msrb.mxu0 %v6515_v49  ;;  %v7186_v49 = vld [vmem:[%s11663_s6 + $0x580] sm:$0xf] }
 0x377   : > { %v10012_v41 = vadd.f32 %v4375_v63, %v4327_v26  ;;  %v6738_v26 = vld [vmem:[%s11663_s6 + $0x200] sm:$0xf]  ;;  %v6710_v63 = vld [vmem:[%s11663_s6 + $0x1c8] sm:$0xf] }
 0x378   : > { %v4240_v40 = vpop.f32.mrf.mxu0  ;;  %v6739_v60 = vor.u32 %v7581_v34, %v6738_v26  ;;  %v7693_v34 = vld [vmem:[%s11663_s6 + $0x598] sm:$0xf0] }
 0x379   : > { %v4241_v52 = vadd.f32 %v4240_v40, %v9806_v43 }
 0x37a   : > { %4531 = vmatmul.bf16.gmra.mxu2 %v9508_v3  ;;  %4651 = vmatpush.bf16.msrb.mxu1 %v6739_v60  ;;  %v7187_v60 = vor.u32 %v7693_v34, %v7186_v49 }
 0x37b   : > { %v4290_v33 = vadd.f32 %v4289_v15, %v4241_v52  ;;  %v6962_v52 = vld [vmem:[%s11663_s6 + $0x3c0] sm:$0xf]  ;;  %v7637_v15 = vld [vmem:[%s11663_s6 + $0x3d8] sm:$0xf0]  ;;  %4603 = vmatpush.bf16.msrb.mxu0 %v6487_v30 }
 0x37c   : > { %4749 = vmatpush.bf16.msrb.mxu3 %v7187_v60 }
 0x37d   : > { %v4336_v23 = vpop.f32.mrf.mxu2 }
 0x37e   : > { %v4337_v29 = vadd.f32 %v4336_v23, %v4288_v10  ;;  %v4377_v6 = vpop.f32.mrf.mxu3  ;;  %v7574_v10 = vld [vmem:[%s11663_s6 + $0x1e0] sm:$0xf0]  ;;  %v4292_v17 = vpop.f32.mrf.mxu1  ;;  %v6934_v23 = vld [vmem:[%s11663_s6 + $0x388] sm:$0xf] }
 0x37f   : > { %v10038_v16 = vadd.f32 %v4377_v6, %v9966_v61  ;;  %v6711_v40 = vor.u32 %v7574_v10, %v6710_v63  ;;  %v6963_v61 = vor.u32 %v7637_v15, %v6962_v52  ;;  %v7630_v6 = vld [vmem:[%s11663_s6 + $0x3a0] sm:$0xf0] }
 0x380   : > { %v4243_v39 = vpop.f32.mrf.mxu0  ;;  %v6935_v53 = vor.u32 %v7630_v6, %v6934_v23  ;;  %v7158_v23 = vld [vmem:[%s11663_s6 + $0x548] sm:$0xf] }
 0x381   : > { %v4244_v59 = vadd.f32 %v4243_v39, %v9806_v43  ;;  %4652 = vmatpush.bf16.msrb.mxu1 %v6711_v40  ;;  %4700 = vmatpush.bf16.msrb.mxu2 %v6963_v61 }
 0x382   : > { %4487 = vmatmul.bf16.gmra.mxu1 %v9236_v46 }
 0x383   : > { %v4293_v26 = vadd.f32 %v4292_v17, %v4244_v59  ;;  %4575 = vmatmul.bf16.gmra.mxu3 %v9759_v8  ;;  %4438 = vmatmul.bf16.gmra.mxu0 %v11715_v62 }
 0x385   : > { %v4338_v51 = vpop.f32.mrf.mxu2  ;;  %4701 = vmatpush.bf16.msrb.mxu2 %v6935_v53 }
 0x386   : > { %v4339_v63 = vadd.f32 %v4338_v51, %v4290_v33  ;;  %v4380_v30 = vpop.f32.mrf.mxu3  ;;  %v4294_v52 = vpop.f32.mrf.mxu1 }
 0x387   : > { %v10066_v10 = vadd.f32 %v4380_v30, %v9978_v18 }
 0x388   : > { %v4245_v39 = vpop.f32.mrf.mxu0 }
 0x389   : > { %v4246_v40 = vadd.f32 %v4245_v39, %v9806_v43 }
 0x38a   : > { %4536 = vmatmul.bf16.gmra.mxu2 %v9524_v38 }
 0x38b   : > { %v4295_v15 = vadd.f32 %v4294_v52, %v4246_v40 }
 0x38d   : > { %v4341_v59 = vpop.f32.mrf.mxu2 }
 0x38e   : > { %v4342_v17 = vadd.f32 %v4341_v59, %v4293_v26  ;;  %v4382_v61 = vpop.f32.mrf.mxu3  ;;  %v4297_v60 = vpop.f32.mrf.mxu1  ;;  %v7686_v26 = vld [vmem:[%s11663_s6 + $0x560] sm:$0xf0] }
 0x38f   : > { %v10071_v49 = vadd.f32 %v4382_v61, %v10004_v31  ;;  %v7159_v31 = vor.u32 %v7686_v26, %v7158_v23  ;;  %v7732_v26 = vld [vmem:[%s11663_s6 + $0x6d4] sm:$0xf] }
 0x390   : > { %v4248_v33 = vpop.f32.mrf.mxu0 }
 0x391   : > { %v4249_v34 = vadd.f32 %v4248_v33, %v9806_v43  ;;  %4750 = vmatpush.bf16.msrb.mxu3 %v7159_v31  ;;  %v7356_v31 = vld [vmem:[%s11663_s6 + $0x6ec] sm:$0xf0] }
 0x392   : > { %4492 = vmatmul.bf16.gmra.mxu1 %v9272_v36 }
 0x393   : > { %v4298_v18 = vadd.f32 %v4297_v60, %v4249_v34  ;;  %4580 = vmatmul.bf16.gmra.mxu3 %v9784_v13  ;;  %4443 = vmatmul.bf16.gmra.mxu0 %v11716_v20 }
 0x395   : > { %v4343_v6 = vpop.f32.mrf.mxu2 }
 0x396   : > { %v4344_v51 = vadd.f32 %v4343_v6, %v4295_v15  ;;  %v4385_v53 = vpop.f32.mrf.mxu3  ;;  %v4299_v52 = vpop.f32.mrf.mxu1 }
 0x397   : > { %v10083_v30 = vadd.f32 %v4385_v53, %v4337_v29  ;;  %v7132_v29 = vld [vmem:[%s11663_s6 + $0x52c] sm:$0xf0] }
 0x398   : > { %v4250_v39 = vpop.f32.mrf.mxu0 }
 0x399   : > { %v4251_v40 = vadd.f32 %v4250_v39, %v9806_v43  ;;  %v7676_v43 = vld [vmem:[%s11663_s6 + $0x514] sm:$0xf]  ;;  %v7359_v39 = vor.u32 %v7732_v26, %v7356_v31 }
 0x39a   : > { %4541 = vmatmul.bf16.gmra.mxu2 %v9554_v21  ;;  %v7135_v15 = vor.u32 %v7676_v43, %v7132_v29 }
 0x39b   : > { %v4300_v59 = vadd.f32 %v4299_v52, %v4251_v40  ;;  %4939 = vmatpush.bf16.msra.mxu3 %v7359_v39  ;;  %v10135_v39 = vperm.slane %v9802_v19, 1  ;;  %v6656_v19 = vld [vmem:[%s11663_s6 + $0x174] sm:$0xf0] }
 0x39c   : > { %4890 = vmatpush.bf16.msra.mxu2 %v7135_v15 }
 0x39d   : > { %v4346_v61 = vpop.f32.mrf.mxu2 }
 0x39e   : > { %v4347_v33 = vadd.f32 %v4346_v61, %v4298_v18  ;;  %v4387_v34 = vpop.f32.mrf.mxu3  ;;  %v10089_v23 = vpop.f32.mrf.mxu1  ;;  %v6684_v18 = vld [vmem:[%s11663_s6 + $0x1ac] sm:$0xf0]  ;;  %v7620_v61 = vld [vmem:[%s11663_s6 + $0x354] sm:$0xf] }
 0x39f   : > { %v10087_v60 = vadd.f32 %v4387_v34, %v4339_v63  ;;  %v7564_v63 = vld [vmem:[%s11663_s6 + $0x194] sm:$0xf]  ;;  %v6908_v34 = vld [vmem:[%s11663_s6 + $0x36c] sm:$0xf0] }
 0x3a0   : > { %v4409_v36 = vpop.f32.mrf.mxu0  ;;  %v6687_v53 = vor.u32 %v7564_v63, %v6684_v18  ;;  %v6911_v29 = vor.u32 %v7620_v61, %v6908_v34  ;;  %v7104_v61 = vld [vmem:[%s11663_s6 + $0x4f4] sm:$0xf0] }
 0x3a2   : > { %4653 = vmatmul.bf16.vlgmr.msrb.gmra.mxu1 %v9056_v11  ;;  %4792 = vmatpush.bf16.msra.mxu0 %v6687_v53 }
 0x3a3   : > { %4585 = vmatmul.bf16.gmra.mxu3 %v9808_v47  ;;  %4604 = vmatmul.bf16.vlgmr.msrb.gmra.mxu0 %v8778_v35 }
 0x3a4   : > { %4841 = vmatpush.bf16.msra.mxu1 %v6911_v29  ;;  %v7725_v29 = vld [vmem:[%s11663_s6 + $0x69c] sm:$0xf] }
 0x3a5   : > { %v4348_v6 = vpop.f32.mrf.mxu2 }
 0x3a6   : > { %v4349_v40 = vadd.f32 %v4348_v6, %v4300_v59  ;;  %v4390_v52 = vpop.f32.mrf.mxu3  ;;  %v4460_v35 = vpop.f32.mrf.mxu1 }
 0x3a7   : > { %v10118_v43 = vadd.f32 %v4390_v52, %v4342_v17  ;;  %v7669_v52 = vld [vmem:[%s11663_s6 + $0x4dc] sm:$0xf] }
 0x3a8   : > { %v4411_v11 = vpop.f32.mrf.mxu0  ;;  %v7107_v34 = vor.u32 %v7669_v52, %v7104_v61  ;;  %v6880_v52 = vld [vmem:[%s11663_s6 + $0x334] sm:$0xf0] }
 0x3aa   : > { %4702 = vmatmul.bf16.vlgmr.msrb.gmra.mxu2 %v9314_v50 }
 0x3ab   : > { %4891 = vmatpush.bf16.msra.mxu2 %v7107_v34 }
 0x3ad   : > { %v4507_v59 = vpop.f32.mrf.mxu2 }
 0x3ae   : > { %v4392_v63 = vpop.f32.mrf.mxu3  ;;  %v10125_v26 = vpop.f32.mrf.mxu1 }
 0x3af   : > { %v10121_v15 = vadd.f32 %v4392_v63, %v4344_v51  ;;  %v7328_v63 = vld [vmem:[%s11663_s6 + $0x6b4] sm:$0xf0] }
 0x3b0   : > { %v10123_v18 = vpop.f32.mrf.mxu0 }
 0x3b1   : > { %11718 = vst [vmem:[#allocation4_spill] sm:$0xff] %v10121_v15 }
 0x3b2   : > { %4658 = vmatmul.bf16.gmra.mxu1 %v9090_v37 }
 0x3b3   : > { %4590 = vmatmul.bf16.gmra.mxu3 %v9844_v56  ;;  %4609 = vmatmul.bf16.gmra.mxu0 %v8812_v55  ;;  %v4410_v56 = vadd.f32 %v4409_v36, %v10135_v39 }
 0x3b5   : > { %v4509_v17 = vpop.f32.mrf.mxu2 }
 0x3b6   : > { %v4395_v31 = vpop.f32.mrf.mxu3  ;;  %v10137_v51 = vpop.f32.mrf.mxu1 }
 0x3b7   : > { %v10130_v6 = vadd.f32 %v4395_v31, %v4347_v33  ;;  %v7557_v33 = vld [vmem:[%s11663_s6 + $0x15c] sm:$0xf] }
 0x3b8   : > { %v10132_v53 = vpop.f32.mrf.mxu0  ;;  %v6659_v31 = vor.u32 %v7557_v33, %v6656_v19 }
 0x3b9   : > { %11719 = vst [vmem:[#allocation11_spill] sm:$0xff] %v10130_v6  ;;  %v7613_v6 = vld [vmem:[%s11663_s6 + $0x31c] sm:$0xf] }
 0x3ba   : > { %4707 = vmatmul.bf16.gmra.mxu2 %v9348_v44  ;;  %v7331_v44 = vor.u32 %v7725_v29, %v7328_v63  ;;  %v6883_v37 = vor.u32 %v7613_v6, %v6880_v52  ;;  %4793 = vmatpush.bf16.msra.mxu0 %v6659_v31  ;;  %v4459_v29 = vadd.f32 %v10089_v23, %v4410_v56  ;;  %v7662_v23 = vld [vmem:[%s11663_s6 + $0x4a4] sm:$0xf]  ;;  %v6628_v63 = vld [vmem:[%s11663_s6 + $0x13c] sm:$0xf0] }
 0x3bb   : > { %v7718_v31 = vld [vmem:[%s11663_s6 + $0x664] sm:$0xf]  ;;  %v7300_v52 = vld [vmem:[%s11663_s6 + $0x67c] sm:$0xf0] }
 0x3bc   : > { %4940 = vmatpush.bf16.msra.mxu3 %v7331_v44  ;;  %4842 = vmatpush.bf16.msra.mxu1 %v6883_v37  ;;  %v4508_v6 = vadd.f32 %v4507_v59, %v4459_v29  ;;  %v7076_v59 = vld [vmem:[%s11663_s6 + $0x4bc] sm:$0xf0] }
 0x3bd   : > { %v4512_v61 = vpop.f32.mrf.mxu2  ;;  %v7079_v34 = vor.u32 %v7662_v23, %v7076_v59  ;;  %v7748_v59 = vpop.eup %7747 }
 0x3be   : > { %v4397_v55 = vpop.f32.mrf.mxu3  ;;  %v10169_v19 = vpop.f32.mrf.mxu1 }
 0x3bf   : > { %v10165_v15 = vadd.f32 %v4397_v55, %v4349_v40  ;;  %v4412_v55 = vadd.f32 %v4411_v11, %v10135_v39  ;;  %v7550_v11 = vld [vmem:[%s11663_s6 + $0x124] sm:$0xf]  ;;  %4892 = vmatpush.bf16.msra.mxu2 %v7079_v34 }
 0x3c0   : > { %v10167_v33 = vpop.f32.mrf.mxu0  ;;  %v6631_v29 = vor.u32 %v7550_v11, %v6628_v63  ;;  %v4415_v11 = vadd.f32 %v10123_v18, %v10135_v39 }
 0x3c1   : > { %v4461_v0 = vadd.f32 %v4460_v35, %v4412_v55  ;;  %v6852_v35 = vld [vmem:[%s11663_s6 + $0x2fc] sm:$0xf0] }
 0x3c2   : > { %4663 = vmatmul.bf16.gmra.mxu1 %v9124_v5  ;;  %4794 = vmatpush.bf16.msra.mxu0 %v6631_v29  ;;  %v4417_v29 = vadd.f32 %v10132_v53, %v10135_v39  ;;  %v7048_v53 = vld [vmem:[%s11663_s6 + $0x484] sm:$0xf0] }
 0x3c3   : > { %4751 = vmatmul.bf16.vlgmr.msrb.gmra.mxu3 %v9590_v7  ;;  %4614 = vmatmul.bf16.gmra.mxu0 %v8846_v14  ;;  %v4510_v55 = vadd.f32 %v4509_v17, %v4461_v0 }
 0x3c5   : > { %v10175_v44 = vpop.f32.mrf.mxu2 }
 0x3c6   : > { %v4556_v36 = vpop.f32.mrf.mxu3  ;;  %v10182_v56 = vpop.f32.mrf.mxu1 }
 0x3c7   : > { %v4557_v40 = vadd.f32 %v4556_v36, %v4508_v6  ;;  %v7303_v6 = vor.u32 %v7718_v31, %v7300_v52  ;;  %v7606_v36 = vld [vmem:[%s11663_s6 + $0x2e4] sm:$0xf]  ;;  %v4464_v31 = vadd.f32 %v10125_v26, %v4415_v11  ;;  %v7711_v11 = vld [vmem:[%s11663_s6 + $0x62c] sm:$0xf] }
 0x3c8   : > { %v10179_v37 = vpop.f32.mrf.mxu0  ;;  %v6855_v23 = vor.u32 %v7606_v36, %v6852_v35 }
 0x3c9   : > { %7749 = vtanh.f32 %v4557_v40  ;;  %4941 = vmatpush.bf16.msra.mxu3 %v7303_v6 }
 0x3ca   : > { %4712 = vmatmul.bf16.gmra.mxu2 %v9382_v42  ;;  %4843 = vmatpush.bf16.msra.mxu1 %v6855_v23  ;;  %7751 = vtanh.f32 %v9908_v25  ;;  %v7543_v23 = vld [vmem:[%s11663_s6 + $0xec] sm:$0xf] }
 0x3cd   : > { %v10209_v40 = vpop.f32.mrf.mxu2 }
 0x3ce   : > { %v4558_v42 = vpop.f32.mrf.mxu3  ;;  %v10221_v34 = vpop.f32.mrf.mxu1 }
 0x3cf   : > { %v7750_v5 = vpop.eup %7749  ;;  %v4559_v63 = vadd.f32 %v4558_v42, %v4510_v55  ;;  %v4513_v42 = vadd.f32 %v4512_v61, %v4464_v31  ;;  %v7655_v61 = vld [vmem:[%s11663_s6 + $0x46c] sm:$0xf]  ;;  %v4466_v55 = vadd.f32 %v10137_v51, %v4417_v29  ;;  %v6824_v31 = vld [vmem:[%s11663_s6 + $0x2c4] sm:$0xf0] }
 0x3d0   : > { %v5688_v17 = vpack.c.bf16 %v7750_v5, %v7748_v59  ;;  %v10219_v0 = vpop.f32.mrf.mxu0  ;;  %v7752_v25 = vpop.eup %7751  ;;  %v6600_v59 = vld [vmem:[%s11663_s6 + $0x104] sm:$0xf0]  ;;  %v7599_v51 = vld [vmem:[%s11663_s6 + $0x2ac] sm:$0xf] }
 0x3d1   : > { %7753 = vtanh.f32 %v4559_v63  ;;  %v6603_v63 = vor.u32 %v7543_v23, %v6600_v59 }
 0x3d2   : > { %5752 = vst [vmem:[%s10214_s10] sm:$0xff] %v5688_v17  ;;  %4668 = vmatmul.bf16.gmra.mxu1 %v9158_v2  ;;  %7755 = vtanh.f32 %v9938_v54  ;;  %v7051_v54 = vor.u32 %v7655_v61, %v7048_v53  ;;  %v7272_v17 = vld [vmem:[%s11663_s6 + $0x644] sm:$0xf0]  ;;  %v4420_v61 = vadd.f32 %v10167_v33, %v10135_v39 }
 0x3d3   : > { %4756 = vmatmul.bf16.gmra.mxu3 %v9624_v57  ;;  %4619 = vmatmul.bf16.gmra.mxu0 %v8880_v24 }
 0x3d4   : > { %4893 = vmatpush.bf16.msra.mxu2 %v7051_v54  ;;  %4795 = vmatpush.bf16.msra.mxu0 %v6603_v63  ;;  %v4469_v54 = vadd.f32 %v10169_v19, %v4420_v61  ;;  %v7244_v61 = vld [vmem:[%s11663_s6 + $0x60c] sm:$0xf0] }
 0x3d5   : > { %v10228_v18 = vpop.f32.mrf.mxu2 }
 0x3d6   : > { %v4561_v5 = vpop.f32.mrf.mxu3  ;;  %v10235_v35 = vpop.f32.mrf.mxu1  ;;  %v4518_v33 = vadd.f32 %v10209_v40, %v4469_v54  ;;  %v7648_v40 = vld [vmem:[%s11663_s6 + $0x434] sm:$0xf] }
 0x3d7   : > { %v7754_v52 = vpop.eup %7753  ;;  %v4562_v6 = vadd.f32 %v4561_v5, %v4513_v42  ;;  %v4515_v42 = vadd.f32 %v10175_v44, %v4466_v55  ;;  %v7275_v5 = vor.u32 %v7711_v11, %v7272_v17  ;;  %v4422_v17 = vadd.f32 %v10179_v37, %v10135_v39  ;;  %v7020_v37 = vld [vmem:[%s11663_s6 + $0x44c] sm:$0xf0] }
 0x3d8   : > { %v5692_v26 = vpack.c.bf16 %v7754_v52, %v7752_v25  ;;  %v10233_v36 = vpop.f32.mrf.mxu0  ;;  %v6827_v52 = vor.u32 %v7599_v51, %v6824_v31  ;;  %v7756_v29 = vpop.eup %7755 }
 0x3d9   : > { %7757 = vtanh.f32 %v4562_v6  ;;  %4942 = vmatpush.bf16.msra.mxu3 %v7275_v5  ;;  %v4471_v5 = vadd.f32 %v10182_v56, %v4422_v17  ;;  %v7592_v56 = vld [vmem:[%s11663_s6 + $0x274] sm:$0xf] }
 0x3da   : > { %5757 = vst [vmem:[%s10214_s10 + $0x1c] sm:$0xff] %v5692_v26  ;;  %4717 = vmatmul.bf16.gmra.mxu2 %v9416_v48  ;;  %4844 = vmatpush.bf16.msra.mxu1 %v6827_v52  ;;  %7759 = vtanh.f32 %v9942_v12  ;;  %v7536_v52 = vld [vmem:[%s11663_s6 + $0xb4] sm:$0xf] }
 0x3dd   : > { %v10265_v25 = vpop.f32.mrf.mxu2 }
 0x3de   : > { %v4563_v6 = vpop.f32.mrf.mxu3  ;;  %v10272_v55 = vpop.f32.mrf.mxu1 }
 0x3df   : > { %v7758_v26 = vpop.eup %7757  ;;  %v4564_v53 = vadd.f32 %v4563_v6, %v4515_v42  ;;  %v7704_v6 = vld [vmem:[%s11663_s6 + $0x5f4] sm:$0xf] }
 0x3e0   : > { %v5696_v23 = vpack.c.bf16 %v7758_v26, %v7756_v29  ;;  %v10270_v44 = vpop.f32.mrf.mxu0  ;;  %v7760_v12 = vpop.eup %7759  ;;  %v6572_v29 = vld [vmem:[%s11663_s6 + $0xcc] sm:$0xf0] }
 0x3e1   : > { %7761 = vtanh.f32 %v4564_v53  ;;  %v6575_v26 = vor.u32 %v7536_v52, %v6572_v29  ;;  %v6796_v53 = vld [vmem:[%s11663_s6 + $0x28c] sm:$0xf0]  ;;  %v7529_v29 = vld [vmem:[%s11663_s6 + $0x7c] sm:$0xf] }
 0x3e2   : > { %5761 = vst [vmem:[%s10214_s10 + $0x38] sm:$0xff] %v5696_v23  ;;  %4673 = vmatmul.bf16.gmra.mxu1 %v11712_v28  ;;  %7763 = vtanh.f32 %v9974_v45  ;;  %v7023_v45 = vor.u32 %v7648_v40, %v7020_v37  ;;  %v4520_v23 = vadd.f32 %v10228_v18, %v4471_v5 }
 0x3e3   : > { %4761 = vmatmul.bf16.gmra.mxu3 %v9658_v32  ;;  %4624 = vmatmul.bf16.gmra.mxu0 %v8926_v1 }
 0x3e4   : > { %4894 = vmatpush.bf16.msra.mxu2 %v7023_v45  ;;  %4796 = vmatpush.bf16.msra.mxu0 %v6575_v26 }
 0x3e5   : > { %v10280_v59 = vpop.f32.mrf.mxu2 }
 0x3e6   : > { %v4566_v11 = vpop.f32.mrf.mxu3  ;;  %v10287_v42 = vpop.f32.mrf.mxu1 }
 0x3e7   : > { %v7762_v63 = vpop.eup %7761  ;;  %v4567_v51 = vadd.f32 %v4566_v11, %v4518_v33  ;;  %v7247_v33 = vor.u32 %v7704_v6, %v7244_v61  ;;  %v7585_v6 = vld [vmem:[%s11663_s6 + $0x23c] sm:$0xf] }
 0x3e8   : > { %v5700_v19 = vpack.c.bf16 %v7762_v63, %v7760_v12  ;;  %v10285_v31 = vpop.f32.mrf.mxu0  ;;  %v6799_v12 = vor.u32 %v7592_v56, %v6796_v53  ;;  %v7764_v11 = vpop.eup %7763  ;;  %v6768_v53 = vld [vmem:[%s11663_s6 + $0x254] sm:$0xf0] }
 0x3e9   : > { %7765 = vtanh.f32 %v4567_v51  ;;  %v4425_v51 = vadd.f32 %v10219_v0, %v10135_v39  ;;  %4943 = vmatpush.bf16.msra.mxu3 %v7247_v33 }
 0x3ea   : > { %5765 = vst [vmem:[%s10214_s10 + $0x54] sm:$0xff] %v5700_v19  ;;  %4722 = vmatmul.bf16.gmra.mxu2 %v9486_v9  ;;  %4845 = vmatpush.bf16.msra.mxu1 %v6799_v12  ;;  %7767 = vtanh.f32 %v9980_v27  ;;  %v6771_v12 = vor.u32 %v7585_v6, %v6768_v53 }
 0x3eb   : > { %v4474_v5 = vadd.f32 %v10221_v34, %v4425_v51  ;;  %v6544_v34 = vld [vmem:[%s11663_s6 + $0x94] sm:$0xf0]  ;;  %v7697_v51 = vld [vmem:[%s11663_s6 + $0x5bc] sm:$0xf] }
 0x3ec   : > { %v6547_v56 = vor.u32 %v7529_v29, %v6544_v34 }
 0x3ed   : > { %v10317_v54 = vpop.f32.mrf.mxu2  ;;  %v4523_v0 = vadd.f32 %v10265_v25, %v4474_v5  ;;  %v4427_v25 = vadd.f32 %v10233_v36, %v10135_v39  ;;  %v7641_v36 = vld [vmem:[%s11663_s6 + $0x3fc] sm:$0xf] }
 0x3ee   : > { %v4568_v63 = vpop.f32.mrf.mxu3  ;;  %v10324_v37 = vpop.f32.mrf.mxu1  ;;  %4797 = vmatpush.bf16.msra.mxu0 %v6547_v56  ;;  %4846 = vmatpush.bf16.msra.mxu1 %v6771_v12  ;;  %v6488_v56 = vld [vmem:[%s11663_s6 + $0x24] sm:$0xf0] }
 0x3ef   : > { %v7766_v17 = vpop.eup %7765  ;;  %v4569_v19 = vadd.f32 %v4568_v63, %v4520_v23  ;;  %v6992_v63 = vld [vmem:[%s11663_s6 + $0x414] sm:$0xf0] }
 0x3f0   : > { %v5704_v40 = vpack.c.bf16 %v7766_v17, %v7764_v11  ;;  %v10322_v18 = vpop.f32.mrf.mxu0  ;;  %v7768_v27 = vpop.eup %7767  ;;  %v6995_v17 = vor.u32 %v7641_v36, %v6992_v63  ;;  %v6712_v36 = vld [vmem:[%s11663_s6 + $0x1e4] sm:$0xf0] }
 0x3f1   : > { %7769 = vtanh.f32 %v4569_v19  ;;  %v7216_v19 = vld [vmem:[%s11663_s6 + $0x5d4] sm:$0xf0] }
 0x3f2   : > { %5769 = vst [vmem:[%s10214_s10 + $0x70] sm:$0xff] %v5704_v40  ;;  %4678 = vmatmul.bf16.gmra.mxu1 %v11714_v22  ;;  %7771 = vtanh.f32 %v10012_v41  ;;  %v4476_v41 = vadd.f32 %v10235_v35, %v4427_v25  ;;  %v7522_v40 = vld [vmem:[%s11663_s6 + $0x44] sm:$0xf]  ;;  %v7219_v5 = vor.u32 %v7697_v51, %v7216_v19  ;;  %4895 = vmatpush.bf16.msra.mxu2 %v6995_v17 }
 0x3f3   : > { %4766 = vmatmul.bf16.gmra.mxu3 %v9692_v4  ;;  %4629 = vmatmul.bf16.gmra.mxu0 %v11713_v58  ;;  %v7578_v35 = vld [vmem:[%s11663_s6 + $0x204] sm:$0xf] }
 0x3f4   : > { %4944 = vmatpush.bf16.msra.mxu3 %v7219_v5  ;;  %v7634_v51 = vld [vmem:[%s11663_s6 + $0x3c4] sm:$0xf] }
 0x3f5   : > { %v10332_v45 = vpop.f32.mrf.mxu2 }
 0x3f6   : > { %v4571_v52 = vpop.f32.mrf.mxu3  ;;  %v10351_v11 = vpop.f32.mrf.mxu1 }
 0x3f7   : > { %v7770_v26 = vpop.eup %7769  ;;  %v4572_v61 = vadd.f32 %v4571_v52, %v4523_v0  ;;  %v6516_v0 = vld [vmem:[%s11663_s6 + $0x5c] sm:$0xf0]  ;;  %v4525_v52 = vadd.f32 %v10280_v59, %v4476_v41  ;;  %v7571_v59 = vld [vmem:[%s11663_s6 + $0x1cc] sm:$0xf] }
 0x3f8   : > { %v5708_v23 = vpack.c.bf16 %v7770_v26, %v7768_v27  ;;  %v10349_v33 = vpop.f32.mrf.mxu0  ;;  %v6740_v27 = vld [vmem:[%s11663_s6 + $0x21c] sm:$0xf0]  ;;  %v6519_v34 = vor.u32 %v7522_v40, %v6516_v0  ;;  %v7772_v26 = vpop.eup %7771  ;;  %v6715_v40 = vor.u32 %v7571_v59, %v6712_v36  ;;  %v7627_v0 = vld [vmem:[%s11663_s6 + $0x38c] sm:$0xf] }
 0x3f9   : > { %7773 = vtanh.f32 %v4572_v61  ;;  %v6743_v6 = vor.u32 %v7578_v35, %v6740_v27  ;;  %v7515_v61 = vld [vmem:[%s11663_s6 + $0xc] sm:$0xf]  ;;  %v6936_v35 = vld [vmem:[%s11663_s6 + $0x3a4] sm:$0xf0] }
 0x3fa   : > { %5773 = vst [vmem:[%s10214_s10 + $0x8c] sm:$0xff] %v5708_v23  ;;  %4727 = vmatmul.bf16.gmra.mxu2 %v9508_v3  ;;  %v4430_v23 = vadd.f32 %v10270_v44, %v10135_v39  ;;  %4798 = vmatpush.bf16.msra.mxu0 %v6519_v34  ;;  %7775 = vtanh.f32 %v10038_v16  ;;  %v6491_v17 = vor.u32 %v7515_v61, %v6488_v56  ;;  %v6964_v44 = vld [vmem:[%s11663_s6 + $0x3dc] sm:$0xf0] }
 0x3fb   : > { %4847 = vmatpush.bf16.msra.mxu1 %v6743_v6  ;;  %v6967_v5 = vor.u32 %v7634_v51, %v6964_v44  ;;  %v4435_v44 = vadd.f32 %v10322_v18, %v10135_v39 }
 0x3fc   : > { %v4479_v16 = vadd.f32 %v10272_v55, %v4430_v23  ;;  %v6939_v55 = vor.u32 %v7627_v0, %v6936_v35 }
 0x3fd   : > { %v10381_v29 = vpop.f32.mrf.mxu2  ;;  %4896 = vmatpush.bf16.msra.mxu2 %v6967_v5 }
 0x3fe   : > { %v4573_v25 = vpop.f32.mrf.mxu3  ;;  %4799 = vmatpush.bf16.msra.mxu0 %v6491_v17  ;;  %v4528_v27 = vadd.f32 %v10317_v54, %v4479_v16  ;;  %v7690_v54 = vld [vmem:[%s11663_s6 + $0x584] sm:$0xf] }
 0x3ff   : > { %v7774_v53 = vpop.eup %7773  ;;  %v4574_v12 = vadd.f32 %v4573_v25, %v4525_v52  ;;  %v10406_v19 = vpop.f32.mrf.mxu1  ;;  %4848 = vmatpush.bf16.msra.mxu1 %v6715_v40  ;;  %v4432_v25 = vadd.f32 %v10285_v31, %v10135_v39  ;;  %v7188_v31 = vld [vmem:[%s11663_s6 + $0x59c] sm:$0xf0] }
 0x400   : > { %v5712_v63 = vpack.c.bf16 %v7774_v53, %v7772_v26  ;;  %v10398_v41 = vpop.f32.mrf.mxu0  ;;  %v7776_v34 = vpop.eup %7775  ;;  %v7191_v23 = vor.u32 %v7690_v54, %v7188_v31  ;;  %v10473_v31 = vld [vmem:[%s11664_s7] sm:$0x7f] }
 0x401   : > { %7777 = vtanh.f32 %v4574_v12  ;;  %4897 = vmatpush.bf16.msra.mxu2 %v6939_v55 }
 0x402   : > { %5777 = vst [vmem:[%s10214_s10 + $0xa8] sm:$0xff] %v5712_v63  ;;  %4683 = vmatmul.bf16.gmra.mxu1 %v9236_v46  ;;  %7779 = vtanh.f32 %v10066_v10  ;;  %v4481_v10 = vadd.f32 %v10287_v42, %v4432_v25  ;;  %4945 = vmatpush.bf16.msra.mxu3 %v7191_v23  ;;  %v4484_v42 = vadd.f32 %v10324_v37, %v4435_v44 }
 0x403   : > { %4771 = vmatmul.bf16.gmra.mxu3 %v9759_v8  ;;  %4634 = vmatmul.bf16.gmra.mxu0 %v11715_v62 }
 0x404   : > { %v4530_v12 = vadd.f32 %v10332_v45, %v4481_v10  ;;  %v11720_v45 = vld [vmem:[#allocation12_spill] sm:$0xff]  ;;  %v4533_v18 = vadd.f32 %v10381_v29, %v4484_v42  ;;  %v7683_v29 = vld [vmem:[%s11663_s6 + $0x54c] sm:$0xf]  ;;  %v10476_v10 = vperm.slane %v10473_v31, 2 }
 0x405   : > { %v4534_v52 = vpop.f32.mrf.mxu2 }
 0x406   : > { %v4576_v6 = vpop.f32.mrf.mxu3 }
 0x407   : > { %v7778_v26 = vpop.eup %7777  ;;  %v4577_v61 = vadd.f32 %v4576_v6, %v4528_v27  ;;  %v10425_v53 = vpop.f32.mrf.mxu1 }
 0x408   : > { %v5716_v56 = vpack.c.bf16 %v7778_v26, %v7776_v34  ;;  %v10423_v59 = vpop.f32.mrf.mxu0  ;;  %v7780_v63 = vpop.eup %7779  ;;  %v4437_v34 = vadd.f32 %v10349_v33, %v10135_v39  ;;  %v7160_v33 = vld [vmem:[%s11663_s6 + $0x564] sm:$0xf0] }
 0x409   : > { %7781 = vtanh.f32 %v4577_v61 }
 0x40a   : > { %5781 = vst [vmem:[%s10214_s10 + $0xc4] sm:$0xff] %v5716_v56  ;;  %4732 = vmatmul.bf16.gmra.mxu2 %v9524_v38  ;;  %7783 = vtanh.f32 %v10071_v49  ;;  %v4486_v61 = vadd.f32 %v10351_v11, %v4437_v34  ;;  %v4440_v11 = vadd.f32 %v10398_v41, %v10135_v39 }
 0x40c   : > { %v4535_v56 = vadd.f32 %v4534_v52, %v4486_v61 }
 0x40d   : > { %v4537_v36 = vpop.f32.mrf.mxu2 }
 0x40e   : > { %v4578_v17 = vpop.f32.mrf.mxu3 }
 0x40f   : > { %v7782_v51 = vpop.eup %7781  ;;  %v4579_v40 = vadd.f32 %v4578_v17, %v4530_v12  ;;  %v10442_v0 = vpop.f32.mrf.mxu1 }
 0x410   : > { %v5720_v5 = vpack.c.bf16 %v7782_v51, %v7780_v63  ;;  %v10440_v16 = vpop.f32.mrf.mxu0  ;;  %v7784_v49 = vpop.eup %7783 }
 0x411   : > { %7785 = vtanh.f32 %v4579_v40 }
 0x412   : > { %5785 = vst [vmem:[%s10214_s10 + $0xe0] sm:$0xff] %v5720_v5  ;;  %4688 = vmatmul.bf16.gmra.mxu1 %v11720_v45  ;;  %7787 = vtanh.f32 %v10083_v30  ;;  %v7163_v30 = vor.u32 %v7683_v29, %v7160_v33  ;;  %v4489_v5 = vadd.f32 %v10406_v19, %v4440_v11 }
 0x413   : > { %4776 = vmatmul.bf16.gmra.mxu3 %v9784_v13  ;;  %4639 = vmatmul.bf16.gmra.mxu0 %v11716_v20 }
 0x414   : > { %4946 = vmatpush.bf16.msra.mxu3 %v7163_v30  ;;  %v4538_v41 = vadd.f32 %v4537_v36, %v4489_v5  ;;  %v7138_v36 = vld [vmem:[%s11663_s6 + $0x518] sm:$0xf] }
 0x415   : > { %v10450_v35 = vpop.f32.mrf.mxu2 }
 0x416   : > { %v4581_v27 = vpop.f32.mrf.mxu3 }
 0x417   : > { %v7786_v55 = vpop.eup %7785  ;;  %v4582_v6 = vadd.f32 %v4581_v27, %v4533_v18  ;;  %v10457_v25 = vpop.f32.mrf.mxu1  ;;  %v11721_v18 = vld [vmem:[#allocation2_spill] sm:$0xff] }
 0x418   : > { %v5724_v37 = vpack.c.bf16 %v7786_v55, %v7784_v49  ;;  %v10455_v26 = vpop.f32.mrf.mxu0  ;;  %v7788_v23 = vpop.eup %7787  ;;  %v11722_v49 = vld [vmem:[#allocation7_spill] sm:$0xff] }
 0x419   : > { %7789 = vtanh.f32 %v4582_v6  ;;  %v4442_v6 = vadd.f32 %v10423_v59, %v10135_v39  ;;  %v7680_v59 = vld [vmem:[%s11663_s6 + $0x530] sm:$0xf0] }
 0x41a   : > { %5789 = vst [vmem:[%s10214_s10 + $0xfc] sm:$0xff] %v5724_v37  ;;  %4737 = vmatmul.bf16.gmra.mxu2 %v9554_v21  ;;  %7791 = vtanh.f32 %v10087_v60 }
 0x41b   : > { %v4491_v30 = vadd.f32 %v10425_v53, %v4442_v6  ;;  %v6914_v53 = vld [vmem:[%s11663_s6 + $0x358] sm:$0xf]  ;;  %v4445_v6 = vadd.f32 %v10440_v16, %v10135_v39  ;;  %v7110_v16 = vld [vmem:[%s11663_s6 + $0x4e0] sm:$0xf] }
 0x41d   : > { %v10468_v54 = vpop.f32.mrf.mxu2 }
 0x41e   : > { %v4583_v12 = vpop.f32.mrf.mxu3 }
 0x41f   : > { %v7790_v63 = vpop.eup %7789  ;;  %v4584_v17 = vadd.f32 %v4583_v12, %v4535_v56  ;;  %v4654_v40 = vpop.f32.mrf.mxu1  ;;  %v7139_v56 = vor.u32 %v7680_v59, %v7138_v36  ;;  %v7568_v12 = vld [vmem:[%s11663_s6 + $0x1b0] sm:$0xf0]  ;;  %v11724_v59 = vld [vmem:[#allocation10_spill] sm:$0xff] }
 0x420   : > { %v5728_v52 = vpack.c.bf16 %v7790_v63, %v7788_v23  ;;  %v4605_v51 = vpop.f32.mrf.mxu0  ;;  %v7792_v60 = vpop.eup %7791  ;;  %v6690_v23 = vld [vmem:[%s11663_s6 + $0x198] sm:$0xf] }
 0x421   : > { %7793 = vtanh.f32 %v4584_v17  ;;  %v4606_v44 = vadd.f32 %v4605_v51, %v10476_v10  ;;  %v7362_v63 = vld [vmem:[%s11663_s6 + $0x6d8] sm:$0xf]  ;;  %v6691_v11 = vor.u32 %v7568_v12, %v6690_v23  ;;  %v7736_v17 = vld [vmem:[%s11663_s6 + $0x6f0] sm:$0xf0]  ;;  %v4540_v51 = vadd.f32 %v10450_v35, %v4491_v30  ;;  %5086 = vmatpush.bf16.msrb.mxu2 %v7139_v56  ;;  %v11725_v30 = vld [vmem:[#allocation3_spill] sm:$0xff] }
 0x422   : > { %5793 = vst [vmem:[%s10214_s10 + $0x118] sm:$0xff] %v5728_v52  ;;  %4849 = vmatmul.bf16.vlgmr.msra.gmra.mxu1 %v11722_v49  ;;  %7795 = vtanh.f32 %v10118_v43  ;;  %v7624_v52 = vld [vmem:[%s11663_s6 + $0x370] sm:$0xf0]  ;;  %v7673_v56 = vld [vmem:[%s11663_s6 + $0x4f8] sm:$0xf0] }
 0x423   : > { %v4655_v42 = vadd.f32 %v4654_v40, %v4606_v44  ;;  %4781 = vmatmul.bf16.gmra.mxu3 %v9808_v47  ;;  %4800 = vmatmul.bf16.vlgmr.msra.gmra.mxu0 %v11721_v18  ;;  %v7363_v40 = vor.u32 %v7736_v17, %v7362_v63  ;;  %v6915_v5 = vor.u32 %v7624_v52, %v6914_v53  ;;  %v6662_v23 = vld [vmem:[%s11663_s6 + $0x160] sm:$0xf]  ;;  %v11726_v12 = vld [vmem:[#allocation8_spill] sm:$0xff]  ;;  %v7561_v63 = vld [vmem:[%s11663_s6 + $0x178] sm:$0xf0] }
 0x424   : > { %4988 = vmatpush.bf16.msrb.mxu0 %v6691_v11  ;;  %v7334_v11 = vld [vmem:[%s11663_s6 + $0x6a0] sm:$0xf]  ;;  %v7729_v17 = vld [vmem:[%s11663_s6 + $0x6b8] sm:$0xf0] }
 0x425   : > { %v10487_v27 = vpop.f32.mrf.mxu2  ;;  %5135 = vmatpush.bf16.msrb.mxu3 %v7363_v40  ;;  %5037 = vmatpush.bf16.msrb.mxu1 %v6915_v5 }
 0x426   : > { %v4586_v55 = vpop.f32.mrf.mxu3 }
 0x427   : > { %v7794_v34 = vpop.eup %7793  ;;  %v4587_v37 = vadd.f32 %v4586_v55, %v4538_v41  ;;  %v4656_v61 = vpop.f32.mrf.mxu1 }
 0x428   : > { %v5732_v19 = vpack.c.bf16 %v7794_v34, %v7792_v60  ;;  %v4607_v29 = vpop.f32.mrf.mxu0  ;;  %v7796_v41 = vpop.eup %7795 }
 0x429   : > { %7797 = vtanh.f32 %v4587_v37  ;;  %v4608_v33 = vadd.f32 %v4607_v29, %v10476_v10 }
 0x42a   : > { %5797 = vst [vmem:[%s10214_s10 + $0x134] sm:$0xff] %v5732_v19  ;;  %4898 = vmatmul.bf16.vlgmr.msra.gmra.mxu2 %v9314_v50  ;;  %v11723_v19 = vld [vmem:[#allocation4_spill] sm:$0xff] }
 0x42b   : > { %v4657_v43 = vadd.f32 %v4656_v61, %v4608_v33  ;;  %7799 = vtanh.f32 %v11723_v19  ;;  %v11727_v19 = vld [vmem:[#allocation11_spill] sm:$0xff] }
 0x42d   : > { %v4703_v44 = vpop.f32.mrf.mxu2 }
 0x42e   : > { %v10521_v60 = vadd.f32 %v4703_v44, %v4655_v42  ;;  %v4588_v55 = vpop.f32.mrf.mxu3  ;;  %v4494_v42 = vadd.f32 %v10442_v0, %v4445_v6  ;;  %v7111_v0 = vor.u32 %v7673_v56, %v7110_v16  ;;  %v7335_v44 = vor.u32 %v7729_v17, %v7334_v11 }
 0x42f   : > { %v7798_v34 = vpop.eup %7797  ;;  %v4589_v37 = vadd.f32 %v4588_v55, %v4540_v51  ;;  %v4659_v61 = vpop.f32.mrf.mxu1  ;;  %v6663_v51 = vor.u32 %v7561_v63, %v6662_v23  ;;  %v6886_v55 = vld [vmem:[%s11663_s6 + $0x320] sm:$0xf] }
 0x430   : > { %v5736_v35 = vpack.c.bf16 %v7798_v34, %v7796_v41  ;;  %v4610_v29 = vpop.f32.mrf.mxu0  ;;  %v4543_v53 = vadd.f32 %v10468_v54, %v4494_v42  ;;  %5087 = vmatpush.bf16.msrb.mxu2 %v7111_v0  ;;  %v7617_v34 = vld [vmem:[%s11663_s6 + $0x338] sm:$0xf0]  ;;  %v4447_v54 = vadd.f32 %v10455_v26, %v10135_v39  ;;  %5136 = vmatpush.bf16.msrb.mxu3 %v7335_v44 }
 0x431   : > { %7801 = vtanh.f32 %v4589_v37  ;;  %v4611_v33 = vadd.f32 %v4610_v29, %v10476_v10  ;;  %v7800_v40 = vpop.eup %7799  ;;  %4989 = vmatpush.bf16.msrb.mxu0 %v6663_v51  ;;  %v11728_v42 = vld [vmem:[#allocation13_spill] sm:$0xff] }
 0x432   : > { %5801 = vst [vmem:[%s10214_s10 + $0x150] sm:$0xff] %v5736_v35  ;;  %4854 = vmatmul.bf16.gmra.mxu1 %v11726_v12  ;;  %7803 = vtanh.f32 %v11727_v19  ;;  %v4496_v16 = vadd.f32 %v10457_v25, %v4447_v54 }
 0x433   : > { %v4660_v36 = vadd.f32 %v4659_v61, %v4611_v33  ;;  %4786 = vmatmul.bf16.gmra.mxu3 %v11724_v59  ;;  %4805 = vmatmul.bf16.gmra.mxu0 %v11725_v30 }
 0x434   : > { %v4545_v26 = vadd.f32 %v10487_v27, %v4496_v16  ;;  %v7082_v27 = vld [vmem:[%s11663_s6 + $0x4a8] sm:$0xf] }
 0x435   : > { %v4705_v52 = vpop.f32.mrf.mxu2 }
 0x436   : > { %v10551_v5 = vadd.f32 %v4705_v52, %v4657_v43  ;;  %v4591_v41 = vpop.f32.mrf.mxu3  ;;  %v6887_v43 = vor.u32 %v7617_v34, %v6886_v55  ;;  %v7554_v55 = vld [vmem:[%s11663_s6 + $0x140] sm:$0xf0]  ;;  %v7306_v34 = vld [vmem:[%s11663_s6 + $0x668] sm:$0xf] }
 0x437   : > { %v7802_v6 = vpop.eup %7801  ;;  %v4592_v37 = vadd.f32 %v4591_v41, %v4543_v53  ;;  %v4661_v61 = vpop.f32.mrf.mxu1 }
 0x438   : > { %v5740_v35 = vpack.c.bf16 %v7802_v6, %v7800_v40  ;;  %v4612_v29 = vpop.f32.mrf.mxu0  ;;  %5038 = vmatpush.bf16.msrb.mxu1 %v6887_v43  ;;  %v7804_v23 = vpop.eup %7803  ;;  %v11729_v40 = vld [vmem:[#allocation9_spill] sm:$0xff]  ;;  %v7722_v6 = vld [vmem:[%s11663_s6 + $0x680] sm:$0xf0] }
 0x439   : > { %7805 = vtanh.f32 %v4592_v37  ;;  %v4613_v33 = vadd.f32 %v4612_v29, %v10476_v10  ;;  %v7307_v43 = vor.u32 %v7722_v6, %v7306_v34  ;;  %v7547_v6 = vld [vmem:[%s11663_s6 + $0x108] sm:$0xf0] }
 0x43a   : > { %5805 = vst [vmem:[%s10214_s10 + $0x16c] sm:$0xff] %v5740_v35  ;;  %4903 = vmatmul.bf16.gmra.mxu2 %v11728_v42  ;;  %7807 = vtanh.f32 %v10165_v15  ;;  %v7666_v15 = vld [vmem:[%s11663_s6 + $0x4c0] sm:$0xf0] }
 0x43b   : > { %v4662_v39 = vadd.f32 %v4661_v61, %v4613_v33  ;;  %v7083_v41 = vor.u32 %v7666_v15, %v7082_v27  ;;  %v6858_v33 = vld [vmem:[%s11663_s6 + $0x2e8] sm:$0xf]  ;;  %v7610_v61 = vld [vmem:[%s11663_s6 + $0x300] sm:$0xf0]  ;;  %5137 = vmatpush.bf16.msrb.mxu3 %v7307_v43 }
 0x43d   : > { %v4708_v56 = vpop.f32.mrf.mxu2  ;;  %5088 = vmatpush.bf16.msrb.mxu2 %v7083_v41 }
 0x43e   : > { %v10567_v0 = vadd.f32 %v4708_v56, %v4660_v36  ;;  %v4593_v63 = vpop.f32.mrf.mxu3  ;;  %v6634_v36 = vld [vmem:[%s11663_s6 + $0x128] sm:$0xf]  ;;  %v6859_v56 = vor.u32 %v7610_v61, %v6858_v33 }
 0x43f   : > { %v7806_v11 = vpop.eup %7805  ;;  %v4594_v17 = vadd.f32 %v4593_v63, %v4545_v26  ;;  %v4664_v44 = vpop.f32.mrf.mxu1  ;;  %v6635_v37 = vor.u32 %v7554_v55, %v6634_v36  ;;  %v7054_v55 = vld [vmem:[%s11663_s6 + $0x470] sm:$0xf] }
 0x440   : > { %v5744_v53 = vpack.c.bf16 %v7806_v11, %v7804_v23  ;;  %v4615_v52 = vpop.f32.mrf.mxu0  ;;  %v7808_v19 = vpop.eup %7807  ;;  %5039 = vmatpush.bf16.msrb.mxu1 %v6859_v56  ;;  %v7603_v56 = vld [vmem:[%s11663_s6 + $0x2c8] sm:$0xf0] }
 0x441   : > { %7809 = vtanh.f32 %v4594_v17  ;;  %v4616_v51 = vadd.f32 %v4615_v52, %v10476_v10  ;;  %4990 = vmatpush.bf16.msrb.mxu0 %v6635_v37  ;;  %v11730_v17 = vld [vmem:[#allocation14_spill] sm:$0xff]  ;;  %v7715_v37 = vld [vmem:[%s11663_s6 + $0x648] sm:$0xf0] }
 0x442   : > { %5809 = vst [vmem:[%s10214_s10 + $0x188] sm:$0xff] %v5744_v53  ;;  %4859 = vmatmul.bf16.gmra.mxu1 %v11729_v40 }
 0x443   : > { %v4665_v25 = vadd.f32 %v4664_v44, %v4616_v51  ;;  %4947 = vmatmul.bf16.vlgmr.msra.gmra.mxu3 %v9590_v7  ;;  %4810 = vmatmul.bf16.gmra.mxu0 %v8846_v14 }
 0x445   : > { %v4710_v54 = vpop.f32.mrf.mxu2 }
 0x446   : > { %v4711_v35 = vadd.f32 %v4710_v54, %v4662_v39  ;;  %v4752_v29 = vpop.f32.mrf.mxu3  ;;  %v7278_v54 = vld [vmem:[%s11663_s6 + $0x630] sm:$0xf] }
 0x447   : > { %v7810_v16 = vpop.eup %7809  ;;  %v10600_v26 = vadd.f32 %v4752_v29, %v10521_v60  ;;  %v4666_v11 = vpop.f32.mrf.mxu1  ;;  %v7279_v29 = vor.u32 %v7715_v37, %v7278_v54  ;;  %v7540_v54 = vld [vmem:[%s11663_s6 + $0xd0] sm:$0xf0]  ;;  %v7250_v37 = vld [vmem:[%s11663_s6 + $0x5f8] sm:$0xf] }
 0x448   : > { %v5748_v23 = vpack.c.bf16 %v7810_v16, %v7808_v19  ;;  %v4617_v63 = vpop.f32.mrf.mxu0  ;;  %v6830_v16 = vld [vmem:[%s11663_s6 + $0x2b0] sm:$0xf] }
 0x449   : > { %v4618_v39 = vadd.f32 %v4617_v63, %v10476_v10  ;;  %5138 = vmatpush.bf16.msrb.mxu3 %v7279_v29  ;;  %v6831_v63 = vor.u32 %v7603_v56, %v6830_v16  ;;  %7811 = vtanh.f32 %v10600_v26 }
 0x44a   : > { %5813 = vst [vmem:[%s10214_s10 + $0x1a4] sm:$0xff] %v5748_v23  ;;  %4908 = vmatmul.bf16.gmra.mxu2 %v11730_v17 }
 0x44b   : > { %v4667_v53 = vadd.f32 %v4666_v11, %v4618_v39  ;;  %5040 = vmatpush.bf16.msrb.mxu1 %v6831_v63  ;;  %v6802_v63 = vld [vmem:[%s11663_s6 + $0x278] sm:$0xf] }
 0x44d   : > { %v4713_v52 = vpop.f32.mrf.mxu2 }
 0x44e   : > { %v4714_v51 = vadd.f32 %v4713_v52, %v4665_v25  ;;  %v4754_v44 = vpop.f32.mrf.mxu3  ;;  %v7659_v25 = vld [vmem:[%s11663_s6 + $0x488] sm:$0xf0] }
 0x44f   : > { %v10606_v27 = vadd.f32 %v4754_v44, %v10551_v5  ;;  %v4669_v36 = vpop.f32.mrf.mxu1  ;;  %v6606_v5 = vld [vmem:[%s11663_s6 + $0xf0] sm:$0xf]  ;;  %v7055_v34 = vor.u32 %v7659_v25, %v7054_v55 }
 0x450   : > { %v4620_v60 = vpop.f32.mrf.mxu0  ;;  %v6607_v19 = vor.u32 %v7547_v6, %v6606_v5 }
 0x451   : > { %v4621_v15 = vadd.f32 %v4620_v60, %v10476_v10  ;;  %5089 = vmatpush.bf16.msrb.mxu2 %v7055_v34  ;;  %v7026_v34 = vld [vmem:[%s11663_s6 + $0x438] sm:$0xf] }
 0x452   : > { %4864 = vmatmul.bf16.gmra.mxu1 %v9158_v2  ;;  %4991 = vmatpush.bf16.msrb.mxu0 %v6607_v19 }
 0x453   : > { %v4670_v41 = vadd.f32 %v4669_v36, %v4621_v15  ;;  %4952 = vmatmul.bf16.gmra.mxu3 %v9624_v57  ;;  %4815 = vmatmul.bf16.gmra.mxu0 %v8880_v24 }
 0x455   : > { %v4715_v43 = vpop.f32.mrf.mxu2 }
 0x456   : > { %v4716_v33 = vadd.f32 %v4715_v43, %v4667_v53  ;;  %v4757_v61 = vpop.f32.mrf.mxu3  ;;  %v7708_v43 = vld [vmem:[%s11663_s6 + $0x610] sm:$0xf0] }
 0x457   : > { %v10637_v23 = vadd.f32 %v4757_v61, %v10567_v0  ;;  %v4671_v53 = vpop.f32.mrf.mxu1  ;;  %v7251_v61 = vor.u32 %v7708_v43, %v7250_v37  ;;  %v6998_v37 = vld [vmem:[%s11663_s6 + $0x400] sm:$0xf] }
 0x458   : > { %v4622_v39 = vpop.f32.mrf.mxu0 }
 0x459   : > { %v4623_v11 = vadd.f32 %v4622_v39, %v10476_v10  ;;  %v7596_v39 = vld [vmem:[%s11663_s6 + $0x290] sm:$0xf0]  ;;  %5139 = vmatpush.bf16.msrb.mxu3 %v7251_v61  ;;  %v7701_v61 = vld [vmem:[%s11663_s6 + $0x5d8] sm:$0xf0] }
 0x45a   : > { %4913 = vmatmul.bf16.gmra.mxu2 %v9416_v48 }
 0x45b   : > { %v4672_v52 = vadd.f32 %v4671_v53, %v4623_v11  ;;  %v6803_v53 = vor.u32 %v7596_v39, %v6802_v63 }
 0x45d   : > { %v4718_v44 = vpop.f32.mrf.mxu2  ;;  %5041 = vmatpush.bf16.msrb.mxu1 %v6803_v53 }
 0x45e   : > { %v4719_v60 = vadd.f32 %v4718_v44, %v4670_v41  ;;  %v4759_v15 = vpop.f32.mrf.mxu3  ;;  %v7652_v41 = vld [vmem:[%s11663_s6 + $0x450] sm:$0xf0] }
 0x45f   : > { %v10641_v36 = vadd.f32 %v4759_v15, %v4711_v35  ;;  %v4674_v25 = vpop.f32.mrf.mxu1  ;;  %v6578_v35 = vld [vmem:[%s11663_s6 + $0xb8] sm:$0xf]  ;;  %v7027_v6 = vor.u32 %v7652_v41, %v7026_v34 }
 0x460   : > { %v4625_v55 = vpop.f32.mrf.mxu0  ;;  %v6579_v29 = vor.u32 %v7540_v54, %v6578_v35 }
 0x461   : > { %v4626_v0 = vadd.f32 %v4625_v55, %v10476_v10  ;;  %5090 = vmatpush.bf16.msrb.mxu2 %v7027_v6 }
 0x462   : > { %4869 = vmatmul.bf16.gmra.mxu1 %v11712_v28  ;;  %4992 = vmatpush.bf16.msrb.mxu0 %v6579_v29  ;;  %v7222_v29 = vld [vmem:[%s11663_s6 + $0x5c0] sm:$0xf] }
 0x463   : > { %v4675_v5 = vadd.f32 %v4674_v25, %v4626_v0  ;;  %4957 = vmatmul.bf16.gmra.mxu3 %v9658_v32  ;;  %4820 = vmatmul.bf16.gmra.mxu0 %v8926_v1  ;;  %v7223_v39 = vor.u32 %v7701_v61, %v7222_v29 }
 0x465   : > { %v4720_v19 = vpop.f32.mrf.mxu2  ;;  %5140 = vmatpush.bf16.msrb.mxu3 %v7223_v39  ;;  %v7519_v39 = vld [vmem:[%s11663_s6 + $0x28] sm:$0xf0] }
 0x466   : > { %v10665_v16 = vadd.f32 %v4720_v19, %v4672_v52  ;;  %v4762_v56 = vpop.f32.mrf.mxu3  ;;  %v7533_v19 = vld [vmem:[%s11663_s6 + $0x98] sm:$0xf0] }
 0x467   : > { %v10673_v11 = vadd.f32 %v4762_v56, %v4714_v51  ;;  %v4676_v52 = vpop.f32.mrf.mxu1 }
 0x468   : > { %v4627_v44 = vpop.f32.mrf.mxu0 }
 0x469   : > { %v4628_v15 = vadd.f32 %v4627_v44, %v10476_v10 }
 0x46a   : > { %4918 = vmatmul.bf16.gmra.mxu2 %v9486_v9 }
 0x46b   : > { %v4677_v55 = vadd.f32 %v4676_v52, %v4628_v15  ;;  %v6774_v15 = vld [vmem:[%s11663_s6 + $0x240] sm:$0xf]  ;;  %v7589_v52 = vld [vmem:[%s11663_s6 + $0x258] sm:$0xf0] }
 0x46d   : > { %v4723_v0 = vpop.f32.mrf.mxu2 }
 0x46e   : > { %v10677_v25 = vadd.f32 %v4723_v0, %v4675_v5  ;;  %v4764_v34 = vpop.f32.mrf.mxu3  ;;  %v7645_v5 = vld [vmem:[%s11663_s6 + $0x418] sm:$0xf0] }
 0x46f   : > { %v10679_v41 = vadd.f32 %v4764_v34, %v4716_v33  ;;  %v4679_v6 = vpop.f32.mrf.mxu1  ;;  %v6550_v33 = vld [vmem:[%s11663_s6 + $0x80] sm:$0xf]  ;;  %v6999_v43 = vor.u32 %v7645_v5, %v6998_v37  ;;  %v6775_v34 = vor.u32 %v7589_v52, %v6774_v15  ;;  %v7526_v37 = vld [vmem:[%s11663_s6 + $0x60] sm:$0xf0] }
 0x470   : > { %v4630_v35 = vpop.f32.mrf.mxu0  ;;  %v6551_v63 = vor.u32 %v7533_v19, %v6550_v33 }
 0x471   : > { %v4631_v51 = vadd.f32 %v4630_v35, %v10476_v10  ;;  %5091 = vmatpush.bf16.msrb.mxu2 %v6999_v43  ;;  %5042 = vmatpush.bf16.msrb.mxu1 %v6775_v34  ;;  %v7582_v43 = vld [vmem:[%s11663_s6 + $0x220] sm:$0xf0] }
 0x472   : > { %4874 = vmatmul.bf16.gmra.mxu1 %v11714_v22  ;;  %4993 = vmatpush.bf16.msrb.mxu0 %v6551_v63  ;;  %v6494_v63 = vld [vmem:[%s11663_s6 + $0x10] sm:$0xf] }
 0x473   : > { %v4680_v54 = vadd.f32 %v4679_v6, %v4631_v51  ;;  %4962 = vmatmul.bf16.gmra.mxu3 %v9692_v4  ;;  %4825 = vmatmul.bf16.gmra.mxu0 %v11713_v58  ;;  %v6522_v6 = vld [vmem:[%s11663_s6 + $0x48] sm:$0xf]  ;;  %v6495_v52 = vor.u32 %v7519_v39, %v6494_v63 }
 0x474   : > { %v6523_v33 = vor.u32 %v7526_v37, %v6522_v6 }
 0x475   : > { %v4725_v56 = vpop.f32.mrf.mxu2 }
 0x476   : > { %v10703_v53 = vadd.f32 %v4725_v56, %v4677_v55  ;;  %v4767_v44 = vpop.f32.mrf.mxu3  ;;  %4994 = vmatpush.bf16.msrb.mxu0 %v6523_v33  ;;  %v7194_v33 = vld [vmem:[%s11663_s6 + $0x588] sm:$0xf] }
 0x477   : > { %v10711_v0 = vadd.f32 %v4767_v44, %v4719_v60  ;;  %v4681_v55 = vpop.f32.mrf.mxu1  ;;  %v6746_v60 = vld [vmem:[%s11663_s6 + $0x208] sm:$0xf]  ;;  %v6718_v44 = vld [vmem:[%s11663_s6 + $0x1d0] sm:$0xf] }
 0x478   : > { %v4632_v35 = vpop.f32.mrf.mxu0  ;;  %v6747_v19 = vor.u32 %v7582_v43, %v6746_v60  ;;  %v7694_v43 = vld [vmem:[%s11663_s6 + $0x5a0] sm:$0xf0] }
 0x479   : > { %v4633_v51 = vadd.f32 %v4632_v35, %v10476_v10 }
 0x47a   : > { %4923 = vmatmul.bf16.gmra.mxu2 %v9508_v3  ;;  %5043 = vmatpush.bf16.msrb.mxu1 %v6747_v19  ;;  %v7195_v19 = vor.u32 %v7694_v43, %v7194_v33 }
 0x47b   : > { %v4682_v5 = vadd.f32 %v4681_v55, %v4633_v51  ;;  %v6970_v51 = vld [vmem:[%s11663_s6 + $0x3c8] sm:$0xf]  ;;  %v7638_v55 = vld [vmem:[%s11663_s6 + $0x3e0] sm:$0xf0]  ;;  %4995 = vmatpush.bf16.msrb.mxu0 %v6495_v52 }
 0x47c   : > { %5141 = vmatpush.bf16.msrb.mxu3 %v7195_v19 }
 0x47d   : > { %v4728_v29 = vpop.f32.mrf.mxu2 }
 0x47e   : > { %v4729_v61 = vadd.f32 %v4728_v29, %v4680_v54  ;;  %v4769_v56 = vpop.f32.mrf.mxu3  ;;  %v7575_v54 = vld [vmem:[%s11663_s6 + $0x1e8] sm:$0xf0]  ;;  %v6942_v29 = vld [vmem:[%s11663_s6 + $0x390] sm:$0xf] }
 0x47f   : > { %v10737_v15 = vadd.f32 %v4769_v56, %v10665_v16  ;;  %v6719_v35 = vor.u32 %v7575_v54, %v6718_v44  ;;  %v4684_v37 = vpop.f32.mrf.mxu1  ;;  %v6971_v16 = vor.u32 %v7638_v55, %v6970_v51  ;;  %v7631_v56 = vld [vmem:[%s11663_s6 + $0x3a8] sm:$0xf0] }
 0x480   : > { %v4635_v34 = vpop.f32.mrf.mxu0  ;;  %v6943_v39 = vor.u32 %v7631_v56, %v6942_v29  ;;  %v7166_v29 = vld [vmem:[%s11663_s6 + $0x550] sm:$0xf] }
 0x481   : > { %v4636_v6 = vadd.f32 %v4635_v34, %v10476_v10  ;;  %5044 = vmatpush.bf16.msrb.mxu1 %v6719_v35  ;;  %5092 = vmatpush.bf16.msrb.mxu2 %v6971_v16 }
 0x482   : > { %4879 = vmatmul.bf16.gmra.mxu1 %v9236_v46 }
 0x483   : > { %v4685_v60 = vadd.f32 %v4684_v37, %v4636_v6  ;;  %4967 = vmatmul.bf16.gmra.mxu3 %v9759_v8  ;;  %4830 = vmatmul.bf16.gmra.mxu0 %v11715_v62 }
 0x485   : > { %v4730_v63 = vpop.f32.mrf.mxu2  ;;  %5093 = vmatpush.bf16.msrb.mxu2 %v6943_v39 }
 0x486   : > { %v4731_v44 = vadd.f32 %v4730_v63, %v4682_v5  ;;  %v4772_v52 = vpop.f32.mrf.mxu3 }
 0x487   : > { %v10765_v54 = vadd.f32 %v4772_v52, %v10677_v25  ;;  %v4686_v51 = vpop.f32.mrf.mxu1 }
 0x488   : > { %v4637_v34 = vpop.f32.mrf.mxu0 }
 0x489   : > { %v4638_v35 = vadd.f32 %v4637_v34, %v10476_v10 }
 0x48a   : > { %4928 = vmatmul.bf16.gmra.mxu2 %v9524_v38 }
 0x48b   : > { %v4687_v55 = vadd.f32 %v4686_v51, %v4638_v35 }
 0x48d   : > { %v4733_v6 = vpop.f32.mrf.mxu2 }
 0x48e   : > { %v4734_v37 = vadd.f32 %v4733_v6, %v4685_v60  ;;  %v4774_v16 = vpop.f32.mrf.mxu3  ;;  %v7687_v60 = vld [vmem:[%s11663_s6 + $0x568] sm:$0xf0] }
 0x48f   : > { %v10770_v33 = vadd.f32 %v4774_v16, %v10703_v53  ;;  %v4689_v19 = vpop.f32.mrf.mxu1  ;;  %v7167_v53 = vor.u32 %v7687_v60, %v7166_v29  ;;  %v7733_v60 = vld [vmem:[%s11663_s6 + $0x6dc] sm:$0xf] }
 0x490   : > { %v4640_v5 = vpop.f32.mrf.mxu0 }
 0x491   : > { %v4641_v43 = vadd.f32 %v4640_v5, %v10476_v10  ;;  %5142 = vmatpush.bf16.msrb.mxu3 %v7167_v53  ;;  %v7364_v53 = vld [vmem:[%s11663_s6 + $0x6f4] sm:$0xf0] }
 0x492   : > { %4884 = vmatmul.bf16.gmra.mxu1 %v11720_v45 }
 0x493   : > { %v4690_v25 = vadd.f32 %v4689_v19, %v4641_v43  ;;  %4972 = vmatmul.bf16.gmra.mxu3 %v9784_v13  ;;  %4835 = vmatmul.bf16.gmra.mxu0 %v11716_v20 }
 0x495   : > { %v4735_v56 = vpop.f32.mrf.mxu2 }
 0x496   : > { %v4736_v63 = vadd.f32 %v4735_v56, %v4687_v55  ;;  %v4777_v39 = vpop.f32.mrf.mxu3 }
 0x497   : > { %v10782_v52 = vadd.f32 %v4777_v39, %v4729_v61  ;;  %v4691_v51 = vpop.f32.mrf.mxu1  ;;  %v7140_v61 = vld [vmem:[%s11663_s6 + $0x534] sm:$0xf0] }
 0x498   : > { %v4642_v34 = vpop.f32.mrf.mxu0 }
 0x499   : > { %v4643_v35 = vadd.f32 %v4642_v34, %v10476_v10  ;;  %v7677_v10 = vld [vmem:[%s11663_s6 + $0x51c] sm:$0xf]  ;;  %v7367_v34 = vor.u32 %v7733_v60, %v7364_v53 }
 0x49a   : > { %4933 = vmatmul.bf16.gmra.mxu2 %v9554_v21  ;;  %v7143_v55 = vor.u32 %v7677_v10, %v7140_v61 }
 0x49b   : > { %v4692_v6 = vadd.f32 %v4691_v51, %v4643_v35  ;;  %5331 = vmatpush.bf16.msra.mxu3 %v7367_v34  ;;  %v10834_v34 = vperm.slane %v10473_v31, 3  ;;  %v6664_v31 = vld [vmem:[%s11663_s6 + $0x17c] sm:$0xf0] }
 0x49c   : > { %5282 = vmatpush.bf16.msra.mxu2 %v7143_v55 }
 0x49d   : > { %v4738_v16 = vpop.f32.mrf.mxu2 }
 0x49e   : > { %v4739_v5 = vadd.f32 %v4738_v16, %v4690_v25  ;;  %v4779_v43 = vpop.f32.mrf.mxu3  ;;  %v6692_v25 = vld [vmem:[%s11663_s6 + $0x1b4] sm:$0xf0]  ;;  %v7621_v16 = vld [vmem:[%s11663_s6 + $0x35c] sm:$0xf] }
 0x49f   : > { %v10786_v19 = vadd.f32 %v4779_v43, %v4731_v44  ;;  %v10788_v29 = vpop.f32.mrf.mxu1  ;;  %v7565_v44 = vld [vmem:[%s11663_s6 + $0x19c] sm:$0xf]  ;;  %v6916_v43 = vld [vmem:[%s11663_s6 + $0x374] sm:$0xf0] }
 0x4a0   : > { %v4801_v45 = vpop.f32.mrf.mxu0  ;;  %v6695_v39 = vor.u32 %v7565_v44, %v6692_v25  ;;  %v6919_v61 = vor.u32 %v7621_v16, %v6916_v43  ;;  %v7112_v16 = vld [vmem:[%s11663_s6 + $0x4fc] sm:$0xf0] }
 0x4a2   : > { %5045 = vmatmul.bf16.vlgmr.msrb.gmra.mxu1 %v11722_v49  ;;  %5184 = vmatpush.bf16.msra.mxu0 %v6695_v39 }
 0x4a3   : > { %4977 = vmatmul.bf16.gmra.mxu3 %v9808_v47  ;;  %4996 = vmatmul.bf16.vlgmr.msrb.gmra.mxu0 %v11721_v18 }
 0x4a4   : > { %5233 = vmatpush.bf16.msra.mxu1 %v6919_v61  ;;  %v7726_v61 = vld [vmem:[%s11663_s6 + $0x6a4] sm:$0xf] }
 0x4a5   : > { %v4740_v56 = vpop.f32.mrf.mxu2 }
 0x4a6   : > { %v4741_v35 = vadd.f32 %v4740_v56, %v4692_v6  ;;  %v4782_v51 = vpop.f32.mrf.mxu3 }
 0x4a7   : > { %v10817_v10 = vadd.f32 %v4782_v51, %v4734_v37  ;;  %v4852_v18 = vpop.f32.mrf.mxu1  ;;  %v7670_v51 = vld [vmem:[%s11663_s6 + $0x4e4] sm:$0xf] }
 0x4a8   : > { %v4803_v49 = vpop.f32.mrf.mxu0  ;;  %v7115_v43 = vor.u32 %v7670_v51, %v7112_v16  ;;  %v6888_v51 = vld [vmem:[%s11663_s6 + $0x33c] sm:$0xf0] }
 0x4aa   : > { %5094 = vmatmul.bf16.vlgmr.msrb.gmra.mxu2 %v9314_v50 }
 0x4ab   : > { %5283 = vmatpush.bf16.msra.mxu2 %v7115_v43 }
 0x4ad   : > { %v4899_v6 = vpop.f32.mrf.mxu2 }
 0x4ae   : > { %v4784_v44 = vpop.f32.mrf.mxu3 }
 0x4af   : > { %v10820_v55 = vadd.f32 %v4784_v44, %v4736_v63  ;;  %v10824_v60 = vpop.f32.mrf.mxu1  ;;  %v7336_v44 = vld [vmem:[%s11663_s6 + $0x6bc] sm:$0xf0] }
 0x4b0   : > { %v10822_v25 = vpop.f32.mrf.mxu0 }
 0x4b1   : > { %11731 = vst [vmem:[#allocation5_spill] sm:$0xff] %v10820_v55 }
 0x4b2   : > { %5050 = vmatmul.bf16.gmra.mxu1 %v11726_v12 }
 0x4b3   : > { %4982 = vmatmul.bf16.gmra.mxu3 %v11724_v59  ;;  %5001 = vmatmul.bf16.gmra.mxu0 %v11725_v30  ;;  %v4802_v59 = vadd.f32 %v4801_v45, %v10834_v34  ;;  %v4804_v45 = vadd.f32 %v4803_v49, %v10834_v34  ;;  %v7551_v49 = vld [vmem:[%s11663_s6 + $0x12c] sm:$0xf] }
 0x4b5   : > { %v4901_v37 = vpop.f32.mrf.mxu2  ;;  %v4853_v26 = vadd.f32 %v4852_v18, %v4804_v45  ;;  %v6860_v18 = vld [vmem:[%s11663_s6 + $0x304] sm:$0xf0] }
 0x4b6   : > { %v4787_v53 = vpop.f32.mrf.mxu3 }
 0x4b7   : > { %v10829_v56 = vadd.f32 %v4787_v53, %v4739_v5  ;;  %v10836_v63 = vpop.f32.mrf.mxu1  ;;  %v7558_v5 = vld [vmem:[%s11663_s6 + $0x164] sm:$0xf]  ;;  %v4902_v45 = vadd.f32 %v4901_v37, %v4853_v26 }
 0x4b8   : > { %v10831_v39 = vpop.f32.mrf.mxu0  ;;  %v6667_v53 = vor.u32 %v7558_v5, %v6664_v31 }
 0x4b9   : > { %11732 = vst [vmem:[#allocation6_spill] sm:$0xff] %v10829_v56  ;;  %v7614_v56 = vld [vmem:[%s11663_s6 + $0x324] sm:$0xf] }
 0x4ba   : > { %5099 = vmatmul.bf16.gmra.mxu2 %v11728_v42  ;;  %v7339_v42 = vor.u32 %v7726_v61, %v7336_v44  ;;  %v6891_v12 = vor.u32 %v7614_v56, %v6888_v51  ;;  %5185 = vmatpush.bf16.msra.mxu0 %v6667_v53  ;;  %v4851_v61 = vadd.f32 %v10788_v29, %v4802_v59  ;;  %v7663_v59 = vld [vmem:[%s11663_s6 + $0x4ac] sm:$0xf]  ;;  %v7084_v29 = vld [vmem:[%s11663_s6 + $0x4c4] sm:$0xf0] }
 0x4bb   : > { %v6636_v44 = vld [vmem:[%s11663_s6 + $0x144] sm:$0xf0]  ;;  %v7719_v53 = vld [vmem:[%s11663_s6 + $0x66c] sm:$0xf] }
 0x4bc   : > { %5332 = vmatpush.bf16.msra.mxu3 %v7339_v42  ;;  %5234 = vmatpush.bf16.msra.mxu1 %v6891_v12  ;;  %v4900_v56 = vadd.f32 %v4899_v6, %v4851_v61  ;;  %v7087_v6 = vor.u32 %v7663_v59, %v7084_v29  ;;  %v7308_v51 = vld [vmem:[%s11663_s6 + $0x684] sm:$0xf0]  ;;  %v6639_v61 = vor.u32 %v7551_v49, %v6636_v44  ;;  %v7812_v29 = vpop.eup %7811 }
 0x4bd   : > { %v4904_v16 = vpop.f32.mrf.mxu2  ;;  %v4807_v44 = vadd.f32 %v10822_v25, %v10834_v34 }
 0x4be   : > { %v4789_v30 = vpop.f32.mrf.mxu3  ;;  %5284 = vmatpush.bf16.msra.mxu2 %v7087_v6  ;;  %5186 = vmatpush.bf16.msra.mxu0 %v6639_v61 }
 0x4bf   : > { %v10864_v55 = vadd.f32 %v4789_v30, %v4741_v35  ;;  %v10868_v31 = vpop.f32.mrf.mxu1  ;;  %v4856_v26 = vadd.f32 %v10824_v60, %v4807_v44  ;;  %v7712_v44 = vld [vmem:[%s11663_s6 + $0x634] sm:$0xf] }
 0x4c0   : > { %v10866_v5 = vpop.f32.mrf.mxu0 }
 0x4c2   : > { %5055 = vmatmul.bf16.gmra.mxu1 %v11729_v40 }
 0x4c3   : > { %5143 = vmatmul.bf16.vlgmr.msrb.gmra.mxu3 %v9590_v7  ;;  %5006 = vmatmul.bf16.gmra.mxu0 %v8846_v14 }
 0x4c5   : > { %v10874_v43 = vpop.f32.mrf.mxu2 }
 0x4c6   : > { %v4948_v42 = vpop.f32.mrf.mxu3 }
 0x4c7   : > { %v4949_v30 = vadd.f32 %v4948_v42, %v4900_v56  ;;  %v10880_v35 = vpop.f32.mrf.mxu1  ;;  %v7311_v56 = vor.u32 %v7719_v53, %v7308_v51  ;;  %v7607_v42 = vld [vmem:[%s11663_s6 + $0x2ec] sm:$0xf] }
 0x4c8   : > { %v10878_v12 = vpop.f32.mrf.mxu0  ;;  %v6863_v59 = vor.u32 %v7607_v42, %v6860_v18 }
 0x4c9   : > { %7813 = vtanh.f32 %v4949_v30  ;;  %5333 = vmatpush.bf16.msra.mxu3 %v7311_v56  ;;  %v4809_v56 = vadd.f32 %v10831_v39, %v10834_v34  ;;  %v7056_v39 = vld [vmem:[%s11663_s6 + $0x48c] sm:$0xf0] }
 0x4ca   : > { %5104 = vmatmul.bf16.gmra.mxu2 %v11730_v17  ;;  %5235 = vmatpush.bf16.msra.mxu1 %v6863_v59  ;;  %7815 = vtanh.f32 %v10606_v27 }
 0x4cb   : > { %v4858_v59 = vadd.f32 %v10836_v63, %v4809_v56  ;;  %v7600_v63 = vld [vmem:[%s11663_s6 + $0x2b4] sm:$0xf] }
 0x4cd   : > { %v10907_v30 = vpop.f32.mrf.mxu2 }
 0x4ce   : > { %v4950_v17 = vpop.f32.mrf.mxu3 }
 0x4cf   : > { %v7814_v49 = vpop.eup %7813  ;;  %v4951_v53 = vadd.f32 %v4950_v17, %v4902_v45  ;;  %v10914_v37 = vpop.f32.mrf.mxu1  ;;  %v4905_v17 = vadd.f32 %v4904_v16, %v4856_v26  ;;  %v7656_v16 = vld [vmem:[%s11663_s6 + $0x474] sm:$0xf]  ;;  %v6832_v26 = vld [vmem:[%s11663_s6 + $0x2cc] sm:$0xf0] }
 0x4d0   : > { %v5689_v51 = vpack.c.bf16 %v7814_v49, %v7812_v29  ;;  %v10912_v40 = vpop.f32.mrf.mxu0  ;;  %v7816_v27 = vpop.eup %7815  ;;  %v7544_v29 = vld [vmem:[%s11663_s6 + $0xf4] sm:$0xf]  ;;  %v6608_v49 = vld [vmem:[%s11663_s6 + $0x10c] sm:$0xf0] }
 0x4d1   : > { %7817 = vtanh.f32 %v4951_v53  ;;  %v6611_v53 = vor.u32 %v7544_v29, %v6608_v49 }
 0x4d2   : > { %5753 = vst [vmem:[%s10214_s10 + $0x8] sm:$0xff] %v5689_v51  ;;  %5060 = vmatmul.bf16.gmra.mxu1 %v9158_v2  ;;  %7819 = vtanh.f32 %v10637_v23  ;;  %v7059_v23 = vor.u32 %v7656_v16, %v7056_v39  ;;  %v7280_v51 = vld [vmem:[%s11663_s6 + $0x64c] sm:$0xf0]  ;;  %v4812_v16 = vadd.f32 %v10866_v5, %v10834_v34 }
 0x4d3   : > { %5148 = vmatmul.bf16.gmra.mxu3 %v9624_v57  ;;  %5011 = vmatmul.bf16.gmra.mxu0 %v8880_v24 }
 0x4d4   : > { %5285 = vmatpush.bf16.msra.mxu2 %v7059_v23  ;;  %5187 = vmatpush.bf16.msra.mxu0 %v6611_v53  ;;  %v4861_v23 = vadd.f32 %v10868_v31, %v4812_v16  ;;  %v7252_v16 = vld [vmem:[%s11663_s6 + $0x614] sm:$0xf0] }
 0x4d5   : > { %v10921_v25 = vpop.f32.mrf.mxu2 }
 0x4d6   : > { %v4953_v6 = vpop.f32.mrf.mxu3  ;;  %v4910_v5 = vadd.f32 %v10907_v30, %v4861_v23  ;;  %v7649_v30 = vld [vmem:[%s11663_s6 + $0x43c] sm:$0xf] }
 0x4d7   : > { %v7818_v61 = vpop.eup %7817  ;;  %v4954_v42 = vadd.f32 %v4953_v6, %v4905_v17  ;;  %v10928_v45 = vpop.f32.mrf.mxu1  ;;  %v4907_v17 = vadd.f32 %v10874_v43, %v4858_v59  ;;  %v7283_v6 = vor.u32 %v7712_v44, %v7280_v51  ;;  %v4814_v51 = vadd.f32 %v10878_v12, %v10834_v34  ;;  %v7028_v12 = vld [vmem:[%s11663_s6 + $0x454] sm:$0xf0] }
 0x4d8   : > { %v5693_v60 = vpack.c.bf16 %v7818_v61, %v7816_v27  ;;  %v10926_v18 = vpop.f32.mrf.mxu0  ;;  %v6835_v61 = vor.u32 %v7600_v63, %v6832_v26  ;;  %v7820_v56 = vpop.eup %7819 }
 0x4d9   : > { %7821 = vtanh.f32 %v4954_v42  ;;  %5334 = vmatpush.bf16.msra.mxu3 %v7283_v6  ;;  %v4863_v6 = vadd.f32 %v10880_v35, %v4814_v51  ;;  %v7593_v35 = vld [vmem:[%s11663_s6 + $0x27c] sm:$0xf] }
 0x4da   : > { %5758 = vst [vmem:[%s10214_s10 + $0x24] sm:$0xff] %v5693_v60  ;;  %5109 = vmatmul.bf16.gmra.mxu2 %v9416_v48  ;;  %5236 = vmatpush.bf16.msra.mxu1 %v6835_v61  ;;  %7823 = vtanh.f32 %v10641_v36  ;;  %v7537_v61 = vld [vmem:[%s11663_s6 + $0xbc] sm:$0xf] }
 0x4dd   : > { %v10958_v27 = vpop.f32.mrf.mxu2 }
 0x4de   : > { %v4955_v42 = vpop.f32.mrf.mxu3 }
 0x4df   : > { %v7822_v60 = vpop.eup %7821  ;;  %v4956_v39 = vadd.f32 %v4955_v42, %v4907_v17  ;;  %v10965_v59 = vpop.f32.mrf.mxu1  ;;  %v7705_v42 = vld [vmem:[%s11663_s6 + $0x5fc] sm:$0xf] }
 0x4e0   : > { %v5697_v29 = vpack.c.bf16 %v7822_v60, %v7820_v56  ;;  %v10963_v43 = vpop.f32.mrf.mxu0  ;;  %v7824_v36 = vpop.eup %7823  ;;  %v6580_v56 = vld [vmem:[%s11663_s6 + $0xd4] sm:$0xf0] }
 0x4e1   : > { %7825 = vtanh.f32 %v4956_v39  ;;  %v6583_v60 = vor.u32 %v7537_v61, %v6580_v56  ;;  %v6804_v39 = vld [vmem:[%s11663_s6 + $0x294] sm:$0xf0]  ;;  %v7530_v56 = vld [vmem:[%s11663_s6 + $0x84] sm:$0xf] }
 0x4e2   : > { %5762 = vst [vmem:[%s10214_s10 + $0x40] sm:$0xff] %v5697_v29  ;;  %5065 = vmatmul.bf16.gmra.mxu1 %v11712_v28  ;;  %7827 = vtanh.f32 %v10673_v11  ;;  %v7031_v11 = vor.u32 %v7649_v30, %v7028_v12  ;;  %v4912_v29 = vadd.f32 %v10921_v25, %v4863_v6 }
 0x4e3   : > { %5153 = vmatmul.bf16.gmra.mxu3 %v9658_v32  ;;  %5016 = vmatmul.bf16.gmra.mxu0 %v8926_v1 }
 0x4e4   : > { %5286 = vmatpush.bf16.msra.mxu2 %v7031_v11  ;;  %5188 = vmatpush.bf16.msra.mxu0 %v6583_v60 }
 0x4e5   : > { %v10973_v49 = vpop.f32.mrf.mxu2 }
 0x4e6   : > { %v4958_v44 = vpop.f32.mrf.mxu3 }
 0x4e7   : > { %v7826_v53 = vpop.eup %7825  ;;  %v4959_v63 = vadd.f32 %v4958_v44, %v4910_v5  ;;  %v10980_v17 = vpop.f32.mrf.mxu1  ;;  %v7255_v5 = vor.u32 %v7705_v42, %v7252_v16  ;;  %v7586_v42 = vld [vmem:[%s11663_s6 + $0x244] sm:$0xf] }
 0x4e8   : > { %v5701_v31 = vpack.c.bf16 %v7826_v53, %v7824_v36  ;;  %v10978_v26 = vpop.f32.mrf.mxu0  ;;  %v6807_v36 = vor.u32 %v7593_v35, %v6804_v39  ;;  %v7828_v44 = vpop.eup %7827  ;;  %v6776_v39 = vld [vmem:[%s11663_s6 + $0x25c] sm:$0xf0] }
 0x4e9   : > { %7829 = vtanh.f32 %v4959_v63  ;;  %v4817_v63 = vadd.f32 %v10912_v40, %v10834_v34  ;;  %5335 = vmatpush.bf16.msra.mxu3 %v7255_v5 }
 0x4ea   : > { %5766 = vst [vmem:[%s10214_s10 + $0x5c] sm:$0xff] %v5701_v31  ;;  %5114 = vmatmul.bf16.gmra.mxu2 %v9486_v9  ;;  %5237 = vmatpush.bf16.msra.mxu1 %v6807_v36  ;;  %7831 = vtanh.f32 %v10679_v41  ;;  %v6779_v36 = vor.u32 %v7586_v42, %v6776_v39 }
 0x4eb   : > { %v4866_v6 = vadd.f32 %v10914_v37, %v4817_v63  ;;  %v6552_v37 = vld [vmem:[%s11663_s6 + $0x9c] sm:$0xf0]  ;;  %v7698_v63 = vld [vmem:[%s11663_s6 + $0x5c4] sm:$0xf] }
 0x4ec   : > { %v6555_v35 = vor.u32 %v7530_v56, %v6552_v37 }
 0x4ed   : > { %v11010_v23 = vpop.f32.mrf.mxu2  ;;  %v4915_v40 = vadd.f32 %v10958_v27, %v4866_v6  ;;  %v4819_v27 = vadd.f32 %v10926_v18, %v10834_v34  ;;  %v7642_v18 = vld [vmem:[%s11663_s6 + $0x404] sm:$0xf] }
 0x4ee   : > { %v4960_v53 = vpop.f32.mrf.mxu3  ;;  %5189 = vmatpush.bf16.msra.mxu0 %v6555_v35  ;;  %5238 = vmatpush.bf16.msra.mxu1 %v6779_v36  ;;  %v6496_v35 = vld [vmem:[%s11663_s6 + $0x2c] sm:$0xf0] }
 0x4ef   : > { %v7830_v51 = vpop.eup %7829  ;;  %v4961_v31 = vadd.f32 %v4960_v53, %v4912_v29  ;;  %v11017_v12 = vpop.f32.mrf.mxu1  ;;  %v7000_v53 = vld [vmem:[%s11663_s6 + $0x41c] sm:$0xf0] }
 0x4f0   : > { %v5705_v30 = vpack.c.bf16 %v7830_v51, %v7828_v44  ;;  %v11015_v25 = vpop.f32.mrf.mxu0  ;;  %v7832_v41 = vpop.eup %7831  ;;  %v7003_v51 = vor.u32 %v7642_v18, %v7000_v53  ;;  %v6720_v18 = vld [vmem:[%s11663_s6 + $0x1ec] sm:$0xf0] }
 0x4f1   : > { %7833 = vtanh.f32 %v4961_v31  ;;  %v7224_v31 = vld [vmem:[%s11663_s6 + $0x5dc] sm:$0xf0] }
 0x4f2   : > { %5770 = vst [vmem:[%s10214_s10 + $0x78] sm:$0xff] %v5705_v30  ;;  %5070 = vmatmul.bf16.gmra.mxu1 %v11714_v22  ;;  %7835 = vtanh.f32 %v10711_v0  ;;  %v4868_v0 = vadd.f32 %v10928_v45, %v4819_v27  ;;  %v7523_v30 = vld [vmem:[%s11663_s6 + $0x4c] sm:$0xf]  ;;  %v7227_v6 = vor.u32 %v7698_v63, %v7224_v31  ;;  %5287 = vmatpush.bf16.msra.mxu2 %v7003_v51 }
 0x4f3   : > { %5158 = vmatmul.bf16.gmra.mxu3 %v9692_v4  ;;  %5021 = vmatmul.bf16.gmra.mxu0 %v11713_v58  ;;  %v7579_v45 = vld [vmem:[%s11663_s6 + $0x20c] sm:$0xf] }
 0x4f4   : > { %5336 = vmatpush.bf16.msra.mxu3 %v7227_v6  ;;  %v7635_v63 = vld [vmem:[%s11663_s6 + $0x3cc] sm:$0xf] }
 0x4f5   : > { %v11025_v11 = vpop.f32.mrf.mxu2 }
 0x4f6   : > { %v4963_v61 = vpop.f32.mrf.mxu3 }
 0x4f7   : > { %v7834_v60 = vpop.eup %7833  ;;  %v4964_v16 = vadd.f32 %v4963_v61, %v4915_v40  ;;  %v11044_v44 = vpop.f32.mrf.mxu1  ;;  %v6524_v40 = vld [vmem:[%s11663_s6 + $0x64] sm:$0xf0]  ;;  %v4917_v61 = vadd.f32 %v10973_v49, %v4868_v0  ;;  %v7572_v49 = vld [vmem:[%s11663_s6 + $0x1d4] sm:$0xf] }
 0x4f8   : > { %v5709_v29 = vpack.c.bf16 %v7834_v60, %v7832_v41  ;;  %v11042_v5 = vpop.f32.mrf.mxu0  ;;  %v6748_v41 = vld [vmem:[%s11663_s6 + $0x224] sm:$0xf0]  ;;  %v6527_v37 = vor.u32 %v7523_v30, %v6524_v40  ;;  %v7836_v60 = vpop.eup %7835  ;;  %v6723_v30 = vor.u32 %v7572_v49, %v6720_v18  ;;  %v7628_v40 = vld [vmem:[%s11663_s6 + $0x394] sm:$0xf] }
 0x4f9   : > { %7837 = vtanh.f32 %v4964_v16  ;;  %v6751_v42 = vor.u32 %v7579_v45, %v6748_v41  ;;  %v7516_v16 = vld [vmem:[%s11663_s6 + $0x14] sm:$0xf]  ;;  %v6944_v45 = vld [vmem:[%s11663_s6 + $0x3ac] sm:$0xf0] }
 0x4fa   : > { %5774 = vst [vmem:[%s10214_s10 + $0x94] sm:$0xff] %v5709_v29  ;;  %5119 = vmatmul.bf16.gmra.mxu2 %v9508_v3  ;;  %v4822_v29 = vadd.f32 %v10963_v43, %v10834_v34  ;;  %5190 = vmatpush.bf16.msra.mxu0 %v6527_v37  ;;  %7839 = vtanh.f32 %v10737_v15  ;;  %v6499_v51 = vor.u32 %v7516_v16, %v6496_v35  ;;  %v6972_v43 = vld [vmem:[%s11663_s6 + $0x3e4] sm:$0xf0] }
 0x4fb   : > { %5239 = vmatpush.bf16.msra.mxu1 %v6751_v42  ;;  %v6975_v6 = vor.u32 %v7635_v63, %v6972_v43  ;;  %v4827_v43 = vadd.f32 %v11015_v25, %v10834_v34 }
 0x4fc   : > { %v4871_v15 = vadd.f32 %v10965_v59, %v4822_v29  ;;  %v6947_v59 = vor.u32 %v7628_v40, %v6944_v45 }
 0x4fd   : > { %v11074_v56 = vpop.f32.mrf.mxu2  ;;  %5288 = vmatpush.bf16.msra.mxu2 %v6975_v6 }
 0x4fe   : > { %v4965_v27 = vpop.f32.mrf.mxu3  ;;  %5191 = vmatpush.bf16.msra.mxu0 %v6499_v51  ;;  %v4920_v41 = vadd.f32 %v11010_v23, %v4871_v15  ;;  %v7691_v23 = vld [vmem:[%s11663_s6 + $0x58c] sm:$0xf] }
 0x4ff   : > { %v7838_v39 = vpop.eup %7837  ;;  %v4966_v36 = vadd.f32 %v4965_v27, %v4917_v61  ;;  %v11099_v31 = vpop.f32.mrf.mxu1  ;;  %5240 = vmatpush.bf16.msra.mxu1 %v6723_v30  ;;  %v4824_v27 = vadd.f32 %v10978_v26, %v10834_v34  ;;  %v7196_v26 = vld [vmem:[%s11663_s6 + $0x5a4] sm:$0xf0] }
 0x500   : > { %v5713_v53 = vpack.c.bf16 %v7838_v39, %v7836_v60  ;;  %v11091_v0 = vpop.f32.mrf.mxu0  ;;  %v7840_v37 = vpop.eup %7839  ;;  %v7199_v29 = vor.u32 %v7691_v23, %v7196_v26  ;;  %v11166_v26 = vld [vmem:[%s11664_s7] sm:$0x7f] }
 0x501   : > { %7841 = vtanh.f32 %v4966_v36  ;;  %5289 = vmatpush.bf16.msra.mxu2 %v6947_v59 }
 0x502   : > { %5778 = vst [vmem:[%s10214_s10 + $0xb0] sm:$0xff] %v5713_v53  ;;  %5075 = vmatmul.bf16.gmra.mxu1 %v9236_v46  ;;  %7843 = vtanh.f32 %v10765_v54  ;;  %v4873_v54 = vadd.f32 %v10980_v17, %v4824_v27  ;;  %5337 = vmatpush.bf16.msra.mxu3 %v7199_v29  ;;  %v4876_v17 = vadd.f32 %v11017_v12, %v4827_v43 }
 0x503   : > { %5163 = vmatmul.bf16.gmra.mxu3 %v9759_v8  ;;  %5026 = vmatmul.bf16.gmra.mxu0 %v11715_v62 }
 0x504   : > { %v4922_v36 = vadd.f32 %v11025_v11, %v4873_v54  ;;  %v11733_v11 = vld [vmem:[#allocation12_spill] sm:$0xff]  ;;  %v4925_v25 = vadd.f32 %v11074_v56, %v4876_v17  ;;  %v11169_v54 = vperm.slane %v11166_v26, 4 }
 0x505   : > { %v4926_v61 = vpop.f32.mrf.mxu2  ;;  %v7684_v56 = vld [vmem:[%s11663_s6 + $0x554] sm:$0xf] }
 0x506   : > { %v4968_v42 = vpop.f32.mrf.mxu3 }
 0x507   : > { %v7842_v60 = vpop.eup %7841  ;;  %v4969_v16 = vadd.f32 %v4968_v42, %v4920_v41  ;;  %v11118_v39 = vpop.f32.mrf.mxu1 }
 0x508   : > { %v5717_v35 = vpack.c.bf16 %v7842_v60, %v7840_v37  ;;  %v11116_v49 = vpop.f32.mrf.mxu0  ;;  %v7844_v53 = vpop.eup %7843  ;;  %v4829_v37 = vadd.f32 %v11042_v5, %v10834_v34  ;;  %v7168_v5 = vld [vmem:[%s11663_s6 + $0x56c] sm:$0xf0] }
 0x509   : > { %7845 = vtanh.f32 %v4969_v16 }
 0x50a   : > { %5782 = vst [vmem:[%s10214_s10 + $0xcc] sm:$0xff] %v5717_v35  ;;  %5124 = vmatmul.bf16.gmra.mxu2 %v9524_v38  ;;  %7847 = vtanh.f32 %v10770_v33  ;;  %v4878_v16 = vadd.f32 %v11044_v44, %v4829_v37  ;;  %v4832_v44 = vadd.f32 %v11091_v0, %v10834_v34 }
 0x50c   : > { %v4927_v35 = vadd.f32 %v4926_v61, %v4878_v16 }
 0x50d   : > { %v4929_v18 = vpop.f32.mrf.mxu2 }
 0x50e   : > { %v4970_v51 = vpop.f32.mrf.mxu3 }
 0x50f   : > { %v7846_v63 = vpop.eup %7845  ;;  %v4971_v30 = vadd.f32 %v4970_v51, %v4922_v36  ;;  %v11135_v40 = vpop.f32.mrf.mxu1 }
 0x510   : > { %v5721_v6 = vpack.c.bf16 %v7846_v63, %v7844_v53  ;;  %v11133_v15 = vpop.f32.mrf.mxu0  ;;  %v7848_v33 = vpop.eup %7847 }
 0x511   : > { %7849 = vtanh.f32 %v4971_v30 }
 0x512   : > { %5786 = vst [vmem:[%s10214_s10 + $0xe8] sm:$0xff] %v5721_v6  ;;  %5080 = vmatmul.bf16.gmra.mxu1 %v11733_v11  ;;  %7851 = vtanh.f32 %v10782_v52  ;;  %v7171_v52 = vor.u32 %v7684_v56, %v7168_v5  ;;  %v4881_v6 = vadd.f32 %v11099_v31, %v4832_v44 }
 0x513   : > { %5168 = vmatmul.bf16.gmra.mxu3 %v9784_v13  ;;  %5031 = vmatmul.bf16.gmra.mxu0 %v11716_v20 }
 0x514   : > { %5338 = vmatpush.bf16.msra.mxu3 %v7171_v52  ;;  %v4930_v0 = vadd.f32 %v4929_v18, %v4881_v6  ;;  %v7146_v18 = vld [vmem:[%s11663_s6 + $0x520] sm:$0xf] }
 0x515   : > { %v11143_v45 = vpop.f32.mrf.mxu2 }
 0x516   : > { %v4973_v41 = vpop.f32.mrf.mxu3 }
 0x517   : > { %v7850_v59 = vpop.eup %7849  ;;  %v4974_v42 = vadd.f32 %v4973_v41, %v4925_v25  ;;  %v11150_v27 = vpop.f32.mrf.mxu1  ;;  %v11734_v25 = vld [vmem:[#allocation2_spill] sm:$0xff] }
 0x518   : > { %v5725_v12 = vpack.c.bf16 %v7850_v59, %v7848_v33  ;;  %v11148_v60 = vpop.f32.mrf.mxu0  ;;  %v7852_v29 = vpop.eup %7851  ;;  %v11735_v33 = vld [vmem:[#allocation7_spill] sm:$0xff] }
 0x519   : > { %7853 = vtanh.f32 %v4974_v42  ;;  %v4834_v42 = vadd.f32 %v11116_v49, %v10834_v34  ;;  %v7681_v49 = vld [vmem:[%s11663_s6 + $0x538] sm:$0xf0] }
 0x51a   : > { %5790 = vst [vmem:[%s10214_s10 + $0x104] sm:$0xff] %v5725_v12  ;;  %5129 = vmatmul.bf16.gmra.mxu2 %v9554_v21  ;;  %7855 = vtanh.f32 %v10786_v19 }
 0x51b   : > { %v4883_v52 = vadd.f32 %v11118_v39, %v4834_v42  ;;  %v6922_v39 = vld [vmem:[%s11663_s6 + $0x360] sm:$0xf]  ;;  %v4837_v42 = vadd.f32 %v11133_v15, %v10834_v34  ;;  %v7118_v15 = vld [vmem:[%s11663_s6 + $0x4e8] sm:$0xf] }
 0x51d   : > { %v11161_v23 = vpop.f32.mrf.mxu2 }
 0x51e   : > { %v4975_v36 = vpop.f32.mrf.mxu3 }
 0x51f   : > { %v7854_v53 = vpop.eup %7853  ;;  %v4976_v51 = vadd.f32 %v4975_v36, %v4927_v35  ;;  %v5046_v30 = vpop.f32.mrf.mxu1  ;;  %v7147_v35 = vor.u32 %v7681_v49, %v7146_v18  ;;  %v7569_v36 = vld [vmem:[%s11663_s6 + $0x1b8] sm:$0xf0]  ;;  %v11737_v49 = vld [vmem:[#allocation10_spill] sm:$0xff] }
 0x520   : > { %v5729_v61 = vpack.c.bf16 %v7854_v53, %v7852_v29  ;;  %v4997_v63 = vpop.f32.mrf.mxu0  ;;  %v7856_v19 = vpop.eup %7855  ;;  %v6698_v29 = vld [vmem:[%s11663_s6 + $0x1a0] sm:$0xf] }
 0x521   : > { %7857 = vtanh.f32 %v4976_v51  ;;  %v4998_v43 = vadd.f32 %v4997_v63, %v11169_v54  ;;  %v7370_v53 = vld [vmem:[%s11663_s6 + $0x6e0] sm:$0xf]  ;;  %v6699_v44 = vor.u32 %v7569_v36, %v6698_v29  ;;  %v7737_v51 = vld [vmem:[%s11663_s6 + $0x6f8] sm:$0xf0]  ;;  %v4932_v63 = vadd.f32 %v11143_v45, %v4883_v52  ;;  %5478 = vmatpush.bf16.msrb.mxu2 %v7147_v35  ;;  %v11738_v52 = vld [vmem:[#allocation3_spill] sm:$0xff] }
 0x522   : > { %5794 = vst [vmem:[%s10214_s10 + $0x120] sm:$0xff] %v5729_v61  ;;  %5241 = vmatmul.bf16.vlgmr.msra.gmra.mxu1 %v11735_v33  ;;  %7859 = vtanh.f32 %v10817_v10  ;;  %v7625_v61 = vld [vmem:[%s11663_s6 + $0x378] sm:$0xf0]  ;;  %v7674_v35 = vld [vmem:[%s11663_s6 + $0x500] sm:$0xf0]  ;;  %v11739_v36 = vld [vmem:[#allocation8_spill] sm:$0xff] }
 0x523   : > { %v5047_v17 = vadd.f32 %v5046_v30, %v4998_v43  ;;  %5173 = vmatmul.bf16.gmra.mxu3 %v9808_v47  ;;  %5192 = vmatmul.bf16.vlgmr.msra.gmra.mxu0 %v11734_v25  ;;  %v7371_v30 = vor.u32 %v7737_v51, %v7370_v53  ;;  %v6923_v6 = vor.u32 %v7625_v61, %v6922_v39  ;;  %v6670_v29 = vld [vmem:[%s11663_s6 + $0x168] sm:$0xf]  ;;  %v7562_v53 = vld [vmem:[%s11663_s6 + $0x180] sm:$0xf0] }
 0x524   : > { %5380 = vmatpush.bf16.msrb.mxu0 %v6699_v44  ;;  %v7342_v44 = vld [vmem:[%s11663_s6 + $0x6a8] sm:$0xf]  ;;  %v7730_v51 = vld [vmem:[%s11663_s6 + $0x6c0] sm:$0xf0] }
 0x525   : > { %v11180_v41 = vpop.f32.mrf.mxu2  ;;  %5527 = vmatpush.bf16.msrb.mxu3 %v7371_v30  ;;  %5429 = vmatpush.bf16.msrb.mxu1 %v6923_v6 }
 0x526   : > { %v4978_v59 = vpop.f32.mrf.mxu3 }
 0x527   : > { %v7858_v37 = vpop.eup %7857  ;;  %v4979_v12 = vadd.f32 %v4978_v59, %v4930_v0  ;;  %v5048_v16 = vpop.f32.mrf.mxu1 }
 0x528   : > { %v5733_v31 = vpack.c.bf16 %v7858_v37, %v7856_v19  ;;  %v4999_v56 = vpop.f32.mrf.mxu0  ;;  %v7860_v0 = vpop.eup %7859 }
 0x529   : > { %7861 = vtanh.f32 %v4979_v12  ;;  %v5000_v5 = vadd.f32 %v4999_v56, %v11169_v54 }
 0x52a   : > { %5798 = vst [vmem:[%s10214_s10 + $0x13c] sm:$0xff] %v5733_v31  ;;  %5290 = vmatmul.bf16.vlgmr.msra.gmra.mxu2 %v9314_v50  ;;  %v11736_v31 = vld [vmem:[#allocation5_spill] sm:$0xff] }
 0x52b   : > { %v5049_v10 = vadd.f32 %v5048_v16, %v5000_v5  ;;  %7863 = vtanh.f32 %v11736_v31  ;;  %v11740_v31 = vld [vmem:[#allocation6_spill] sm:$0xff] }
 0x52d   : > { %v5095_v43 = vpop.f32.mrf.mxu2 }
 0x52e   : > { %v11214_v19 = vadd.f32 %v5095_v43, %v5047_v17  ;;  %v4980_v59 = vpop.f32.mrf.mxu3  ;;  %v4886_v17 = vadd.f32 %v11135_v40, %v4837_v42  ;;  %v7119_v40 = vor.u32 %v7674_v35, %v7118_v15  ;;  %v7343_v43 = vor.u32 %v7730_v51, %v7342_v44 }
 0x52f   : > { %v7862_v37 = vpop.eup %7861  ;;  %v4981_v12 = vadd.f32 %v4980_v59, %v4932_v63  ;;  %v5051_v16 = vpop.f32.mrf.mxu1  ;;  %v6671_v63 = vor.u32 %v7562_v53, %v6670_v29  ;;  %v6894_v59 = vld [vmem:[%s11663_s6 + $0x328] sm:$0xf] }
 0x530   : > { %v5737_v45 = vpack.c.bf16 %v7862_v37, %v7860_v0  ;;  %v5002_v56 = vpop.f32.mrf.mxu0  ;;  %v4935_v39 = vadd.f32 %v11161_v23, %v4886_v17  ;;  %5479 = vmatpush.bf16.msrb.mxu2 %v7119_v40  ;;  %v7618_v37 = vld [vmem:[%s11663_s6 + $0x340] sm:$0xf0]  ;;  %v4839_v23 = vadd.f32 %v11148_v60, %v10834_v34  ;;  %5528 = vmatpush.bf16.msrb.mxu3 %v7343_v43  ;;  %v11741_v17 = vld [vmem:[#allocation13_spill] sm:$0xff] }
 0x531   : > { %7865 = vtanh.f32 %v4981_v12  ;;  %v5003_v5 = vadd.f32 %v5002_v56, %v11169_v54  ;;  %v7864_v30 = vpop.eup %7863  ;;  %5381 = vmatpush.bf16.msrb.mxu0 %v6671_v63 }
 0x532   : > { %5802 = vst [vmem:[%s10214_s10 + $0x158] sm:$0xff] %v5737_v45  ;;  %5246 = vmatmul.bf16.gmra.mxu1 %v11739_v36  ;;  %7867 = vtanh.f32 %v11740_v31  ;;  %v4888_v15 = vadd.f32 %v11150_v27, %v4839_v23 }
 0x533   : > { %v5052_v18 = vadd.f32 %v5051_v16, %v5003_v5  ;;  %5178 = vmatmul.bf16.gmra.mxu3 %v11737_v49  ;;  %5197 = vmatmul.bf16.gmra.mxu0 %v11738_v52 }
 0x534   : > { %v4937_v60 = vadd.f32 %v11180_v41, %v4888_v15  ;;  %v7090_v41 = vld [vmem:[%s11663_s6 + $0x4b0] sm:$0xf] }
 0x535   : > { %v5097_v61 = vpop.f32.mrf.mxu2 }
 0x536   : > { %v11244_v6 = vadd.f32 %v5097_v61, %v5049_v10  ;;  %v4983_v0 = vpop.f32.mrf.mxu3  ;;  %v6895_v10 = vor.u32 %v7618_v37, %v6894_v59  ;;  %v7555_v59 = vld [vmem:[%s11663_s6 + $0x148] sm:$0xf0]  ;;  %v7314_v37 = vld [vmem:[%s11663_s6 + $0x670] sm:$0xf] }
 0x537   : > { %v7866_v42 = vpop.eup %7865  ;;  %v4984_v12 = vadd.f32 %v4983_v0, %v4935_v39  ;;  %v5053_v16 = vpop.f32.mrf.mxu1 }
 0x538   : > { %v5741_v45 = vpack.c.bf16 %v7866_v42, %v7864_v30  ;;  %v5004_v56 = vpop.f32.mrf.mxu0  ;;  %5430 = vmatpush.bf16.msrb.mxu1 %v6895_v10  ;;  %v7868_v29 = vpop.eup %7867  ;;  %v11742_v30 = vld [vmem:[#allocation9_spill] sm:$0xff]  ;;  %v7723_v42 = vld [vmem:[%s11663_s6 + $0x688] sm:$0xf0] }
 0x539   : > { %7869 = vtanh.f32 %v4984_v12  ;;  %v5005_v5 = vadd.f32 %v5004_v56, %v11169_v54  ;;  %v7315_v10 = vor.u32 %v7723_v42, %v7314_v37  ;;  %v7548_v42 = vld [vmem:[%s11663_s6 + $0x110] sm:$0xf0] }
 0x53a   : > { %5806 = vst [vmem:[%s10214_s10 + $0x174] sm:$0xff] %v5741_v45  ;;  %5295 = vmatmul.bf16.gmra.mxu2 %v11741_v17  ;;  %7871 = vtanh.f32 %v10864_v55  ;;  %v7667_v55 = vld [vmem:[%s11663_s6 + $0x4c8] sm:$0xf0] }
 0x53b   : > { %v5054_v34 = vadd.f32 %v5053_v16, %v5005_v5  ;;  %v7091_v0 = vor.u32 %v7667_v55, %v7090_v41  ;;  %v6866_v5 = vld [vmem:[%s11663_s6 + $0x2f0] sm:$0xf]  ;;  %v7611_v16 = vld [vmem:[%s11663_s6 + $0x308] sm:$0xf0]  ;;  %5529 = vmatpush.bf16.msrb.mxu3 %v7315_v10 }
 0x53d   : > { %v5100_v35 = vpop.f32.mrf.mxu2  ;;  %5480 = vmatpush.bf16.msrb.mxu2 %v7091_v0 }
 0x53e   : > { %v11260_v40 = vadd.f32 %v5100_v35, %v5052_v18  ;;  %v4985_v53 = vpop.f32.mrf.mxu3  ;;  %v6642_v18 = vld [vmem:[%s11663_s6 + $0x130] sm:$0xf]  ;;  %v6867_v35 = vor.u32 %v7611_v16, %v6866_v5 }
 0x53f   : > { %v7870_v44 = vpop.eup %7869  ;;  %v4986_v51 = vadd.f32 %v4985_v53, %v4937_v60  ;;  %v5056_v43 = vpop.f32.mrf.mxu1  ;;  %v6643_v12 = vor.u32 %v7555_v59, %v6642_v18  ;;  %v7062_v59 = vld [vmem:[%s11663_s6 + $0x478] sm:$0xf] }
 0x540   : > { %v5745_v39 = vpack.c.bf16 %v7870_v44, %v7868_v29  ;;  %v5007_v61 = vpop.f32.mrf.mxu0  ;;  %v7872_v31 = vpop.eup %7871  ;;  %5431 = vmatpush.bf16.msrb.mxu1 %v6867_v35  ;;  %v7604_v35 = vld [vmem:[%s11663_s6 + $0x2d0] sm:$0xf0] }
 0x541   : > { %7873 = vtanh.f32 %v4986_v51  ;;  %v5008_v63 = vadd.f32 %v5007_v61, %v11169_v54  ;;  %5382 = vmatpush.bf16.msrb.mxu0 %v6643_v12  ;;  %v11743_v51 = vld [vmem:[#allocation14_spill] sm:$0xff]  ;;  %v7716_v12 = vld [vmem:[%s11663_s6 + $0x650] sm:$0xf0] }
 0x542   : > { %5810 = vst [vmem:[%s10214_s10 + $0x190] sm:$0xff] %v5745_v39  ;;  %5251 = vmatmul.bf16.gmra.mxu1 %v11742_v30 }
 0x543   : > { %v5057_v27 = vadd.f32 %v5056_v43, %v5008_v63  ;;  %5339 = vmatmul.bf16.vlgmr.msra.gmra.mxu3 %v9590_v7  ;;  %5202 = vmatmul.bf16.gmra.mxu0 %v8846_v14 }
 0x545   : > { %v5102_v23 = vpop.f32.mrf.mxu2 }
 0x546   : > { %v5103_v45 = vadd.f32 %v5102_v23, %v5054_v34  ;;  %v5144_v56 = vpop.f32.mrf.mxu3  ;;  %v7286_v23 = vld [vmem:[%s11663_s6 + $0x638] sm:$0xf] }
 0x547   : > { %v7874_v15 = vpop.eup %7873  ;;  %v11293_v60 = vadd.f32 %v5144_v56, %v11214_v19  ;;  %v5058_v44 = vpop.f32.mrf.mxu1  ;;  %v7287_v56 = vor.u32 %v7716_v12, %v7286_v23  ;;  %v7541_v23 = vld [vmem:[%s11663_s6 + $0xd8] sm:$0xf0]  ;;  %v7258_v12 = vld [vmem:[%s11663_s6 + $0x600] sm:$0xf] }
 0x548   : > { %v5749_v29 = vpack.c.bf16 %v7874_v15, %v7872_v31  ;;  %v5009_v53 = vpop.f32.mrf.mxu0  ;;  %v6838_v15 = vld [vmem:[%s11663_s6 + $0x2b8] sm:$0xf] }
 0x549   : > { %v5010_v34 = vadd.f32 %v5009_v53, %v11169_v54  ;;  %5530 = vmatpush.bf16.msrb.mxu3 %v7287_v56  ;;  %v6839_v53 = vor.u32 %v7604_v35, %v6838_v15  ;;  %7875 = vtanh.f32 %v11293_v60 }
 0x54a   : > { %5814 = vst [vmem:[%s10214_s10 + $0x1ac] sm:$0xff] %v5749_v29  ;;  %5300 = vmatmul.bf16.gmra.mxu2 %v11743_v51 }
 0x54b   : > { %v5059_v39 = vadd.f32 %v5058_v44, %v5010_v34  ;;  %5432 = vmatpush.bf16.msrb.mxu1 %v6839_v53  ;;  %v6810_v53 = vld [vmem:[%s11663_s6 + $0x280] sm:$0xf] }
 0x54d   : > { %v5105_v61 = vpop.f32.mrf.mxu2 }
 0x54e   : > { %v5106_v63 = vadd.f32 %v5105_v61, %v5057_v27  ;;  %v5146_v43 = vpop.f32.mrf.mxu3  ;;  %v7660_v27 = vld [vmem:[%s11663_s6 + $0x490] sm:$0xf0] }
 0x54f   : > { %v11299_v41 = vadd.f32 %v5146_v43, %v11244_v6  ;;  %v5061_v18 = vpop.f32.mrf.mxu1  ;;  %v6614_v6 = vld [vmem:[%s11663_s6 + $0xf8] sm:$0xf]  ;;  %v7063_v37 = vor.u32 %v7660_v27, %v7062_v59 }
 0x550   : > { %v5012_v19 = vpop.f32.mrf.mxu0  ;;  %v6615_v31 = vor.u32 %v7548_v42, %v6614_v6 }
 0x551   : > { %v5013_v55 = vadd.f32 %v5012_v19, %v11169_v54  ;;  %5481 = vmatpush.bf16.msrb.mxu2 %v7063_v37  ;;  %v7034_v37 = vld [vmem:[%s11663_s6 + $0x440] sm:$0xf] }
 0x552   : > { %5256 = vmatmul.bf16.gmra.mxu1 %v9158_v2  ;;  %5383 = vmatpush.bf16.msrb.mxu0 %v6615_v31 }
 0x553   : > { %v5062_v0 = vadd.f32 %v5061_v18, %v5013_v55  ;;  %5344 = vmatmul.bf16.gmra.mxu3 %v9624_v57  ;;  %5207 = vmatmul.bf16.gmra.mxu0 %v8880_v24 }
 0x555   : > { %v5107_v10 = vpop.f32.mrf.mxu2 }
 0x556   : > { %v5108_v5 = vadd.f32 %v5107_v10, %v5059_v39  ;;  %v5149_v16 = vpop.f32.mrf.mxu3  ;;  %v7709_v10 = vld [vmem:[%s11663_s6 + $0x618] sm:$0xf0] }
 0x557   : > { %v11330_v29 = vadd.f32 %v5149_v16, %v11260_v40  ;;  %v5063_v39 = vpop.f32.mrf.mxu1  ;;  %v7259_v16 = vor.u32 %v7709_v10, %v7258_v12  ;;  %v7006_v12 = vld [vmem:[%s11663_s6 + $0x408] sm:$0xf] }
 0x558   : > { %v5014_v34 = vpop.f32.mrf.mxu0 }
 0x559   : > { %v5015_v44 = vadd.f32 %v5014_v34, %v11169_v54  ;;  %v7597_v34 = vld [vmem:[%s11663_s6 + $0x298] sm:$0xf0]  ;;  %5531 = vmatpush.bf16.msrb.mxu3 %v7259_v16  ;;  %v7702_v16 = vld [vmem:[%s11663_s6 + $0x5e0] sm:$0xf0] }
 0x55a   : > { %5305 = vmatmul.bf16.gmra.mxu2 %v9416_v48 }
 0x55b   : > { %v5064_v61 = vadd.f32 %v5063_v39, %v5015_v44  ;;  %v6811_v39 = vor.u32 %v7597_v34, %v6810_v53 }
 0x55d   : > { %v5110_v43 = vpop.f32.mrf.mxu2  ;;  %5433 = vmatpush.bf16.msrb.mxu1 %v6811_v39 }
 0x55e   : > { %v5111_v19 = vadd.f32 %v5110_v43, %v5062_v0  ;;  %v5151_v55 = vpop.f32.mrf.mxu3  ;;  %v7653_v0 = vld [vmem:[%s11663_s6 + $0x458] sm:$0xf0] }
 0x55f   : > { %v11334_v18 = vadd.f32 %v5151_v55, %v5103_v45  ;;  %v5066_v27 = vpop.f32.mrf.mxu1  ;;  %v6586_v45 = vld [vmem:[%s11663_s6 + $0xc0] sm:$0xf]  ;;  %v7035_v42 = vor.u32 %v7653_v0, %v7034_v37 }
 0x560   : > { %v5017_v59 = vpop.f32.mrf.mxu0  ;;  %v6587_v56 = vor.u32 %v7541_v23, %v6586_v45 }
 0x561   : > { %v5018_v40 = vadd.f32 %v5017_v59, %v11169_v54  ;;  %5482 = vmatpush.bf16.msrb.mxu2 %v7035_v42 }
 0x562   : > { %5261 = vmatmul.bf16.gmra.mxu1 %v11712_v28  ;;  %5384 = vmatpush.bf16.msrb.mxu0 %v6587_v56  ;;  %v7230_v56 = vld [vmem:[%s11663_s6 + $0x5c8] sm:$0xf] }
 0x563   : > { %v5067_v6 = vadd.f32 %v5066_v27, %v5018_v40  ;;  %5349 = vmatmul.bf16.gmra.mxu3 %v9658_v32  ;;  %5212 = vmatmul.bf16.gmra.mxu0 %v8926_v1  ;;  %v7231_v34 = vor.u32 %v7702_v16, %v7230_v56 }
 0x565   : > { %v5112_v31 = vpop.f32.mrf.mxu2  ;;  %5532 = vmatpush.bf16.msrb.mxu3 %v7231_v34  ;;  %v7520_v34 = vld [vmem:[%s11663_s6 + $0x30] sm:$0xf0] }
 0x566   : > { %v11358_v15 = vadd.f32 %v5112_v31, %v5064_v61  ;;  %v5154_v35 = vpop.f32.mrf.mxu3  ;;  %v7534_v31 = vld [vmem:[%s11663_s6 + $0xa0] sm:$0xf0] }
 0x567   : > { %v11366_v44 = vadd.f32 %v5154_v35, %v5106_v63  ;;  %v5068_v61 = vpop.f32.mrf.mxu1 }
 0x568   : > { %v5019_v43 = vpop.f32.mrf.mxu0 }
 0x569   : > { %v5020_v55 = vadd.f32 %v5019_v43, %v11169_v54 }
 0x56a   : > { %5310 = vmatmul.bf16.gmra.mxu2 %v9486_v9 }
 0x56b   : > { %v5069_v59 = vadd.f32 %v5068_v61, %v5020_v55  ;;  %v6782_v55 = vld [vmem:[%s11663_s6 + $0x248] sm:$0xf]  ;;  %v7590_v61 = vld [vmem:[%s11663_s6 + $0x260] sm:$0xf0] }
 0x56d   : > { %v5115_v40 = vpop.f32.mrf.mxu2 }
 0x56e   : > { %v11370_v27 = vadd.f32 %v5115_v40, %v5067_v6  ;;  %v5156_v37 = vpop.f32.mrf.mxu3  ;;  %v7646_v6 = vld [vmem:[%s11663_s6 + $0x420] sm:$0xf0] }
 0x56f   : > { %v11372_v0 = vadd.f32 %v5156_v37, %v5108_v5  ;;  %v5071_v42 = vpop.f32.mrf.mxu1  ;;  %v6558_v5 = vld [vmem:[%s11663_s6 + $0x88] sm:$0xf]  ;;  %v7007_v10 = vor.u32 %v7646_v6, %v7006_v12  ;;  %v6783_v37 = vor.u32 %v7590_v61, %v6782_v55  ;;  %v7527_v12 = vld [vmem:[%s11663_s6 + $0x68] sm:$0xf0] }
 0x570   : > { %v5022_v45 = vpop.f32.mrf.mxu0  ;;  %v6559_v53 = vor.u32 %v7534_v31, %v6558_v5 }
 0x571   : > { %v5023_v63 = vadd.f32 %v5022_v45, %v11169_v54  ;;  %5483 = vmatpush.bf16.msrb.mxu2 %v7007_v10  ;;  %5434 = vmatpush.bf16.msrb.mxu1 %v6783_v37  ;;  %v7583_v10 = vld [vmem:[%s11663_s6 + $0x228] sm:$0xf0] }
 0x572   : > { %5266 = vmatmul.bf16.gmra.mxu1 %v11714_v22  ;;  %5385 = vmatpush.bf16.msrb.mxu0 %v6559_v53  ;;  %v6502_v53 = vld [vmem:[%s11663_s6 + $0x18] sm:$0xf] }
 0x573   : > { %v5072_v23 = vadd.f32 %v5071_v42, %v5023_v63  ;;  %5354 = vmatmul.bf16.gmra.mxu3 %v9692_v4  ;;  %5217 = vmatmul.bf16.gmra.mxu0 %v11713_v58  ;;  %v6530_v42 = vld [vmem:[%s11663_s6 + $0x50] sm:$0xf]  ;;  %v6503_v61 = vor.u32 %v7520_v34, %v6502_v53 }
 0x574   : > { %v6531_v5 = vor.u32 %v7527_v12, %v6530_v42 }
 0x575   : > { %v5117_v35 = vpop.f32.mrf.mxu2 }
 0x576   : > { %v11396_v39 = vadd.f32 %v5117_v35, %v5069_v59  ;;  %v5159_v43 = vpop.f32.mrf.mxu3  ;;  %5386 = vmatpush.bf16.msrb.mxu0 %v6531_v5  ;;  %v7202_v5 = vld [vmem:[%s11663_s6 + $0x590] sm:$0xf] }
 0x577   : > { %v11404_v40 = vadd.f32 %v5159_v43, %v5111_v19  ;;  %v5073_v59 = vpop.f32.mrf.mxu1  ;;  %v6754_v19 = vld [vmem:[%s11663_s6 + $0x210] sm:$0xf]  ;;  %v6726_v43 = vld [vmem:[%s11663_s6 + $0x1d8] sm:$0xf] }
 0x578   : > { %v5024_v45 = vpop.f32.mrf.mxu0  ;;  %v6755_v31 = vor.u32 %v7583_v10, %v6754_v19  ;;  %v7695_v10 = vld [vmem:[%s11663_s6 + $0x5a8] sm:$0xf0] }
 0x579   : > { %v5025_v63 = vadd.f32 %v5024_v45, %v11169_v54 }
 0x57a   : > { %5315 = vmatmul.bf16.gmra.mxu2 %v9508_v3  ;;  %5435 = vmatpush.bf16.msrb.mxu1 %v6755_v31  ;;  %v7203_v31 = vor.u32 %v7695_v10, %v7202_v5 }
 0x57b   : > { %v5074_v6 = vadd.f32 %v5073_v59, %v5025_v63  ;;  %v6978_v63 = vld [vmem:[%s11663_s6 + $0x3d0] sm:$0xf]  ;;  %v7639_v59 = vld [vmem:[%s11663_s6 + $0x3e8] sm:$0xf0]  ;;  %5387 = vmatpush.bf16.msrb.mxu0 %v6503_v61 }
 0x57c   : > { %5533 = vmatpush.bf16.msrb.mxu3 %v7203_v31 }
 0x57d   : > { %v5120_v56 = vpop.f32.mrf.mxu2 }
 0x57e   : > { %v5121_v16 = vadd.f32 %v5120_v56, %v5072_v23  ;;  %v5161_v35 = vpop.f32.mrf.mxu3  ;;  %v7576_v23 = vld [vmem:[%s11663_s6 + $0x1f0] sm:$0xf0]  ;;  %v6950_v56 = vld [vmem:[%s11663_s6 + $0x398] sm:$0xf] }
 0x57f   : > { %v11430_v55 = vadd.f32 %v5161_v35, %v11358_v15  ;;  %v6727_v45 = vor.u32 %v7576_v23, %v6726_v43  ;;  %v5076_v12 = vpop.f32.mrf.mxu1  ;;  %v6979_v15 = vor.u32 %v7639_v59, %v6978_v63  ;;  %v7632_v35 = vld [vmem:[%s11663_s6 + $0x3b0] sm:$0xf0] }
 0x580   : > { %v5027_v37 = vpop.f32.mrf.mxu0  ;;  %v6951_v34 = vor.u32 %v7632_v35, %v6950_v56  ;;  %v7174_v56 = vld [vmem:[%s11663_s6 + $0x558] sm:$0xf] }
 0x581   : > { %v5028_v42 = vadd.f32 %v5027_v37, %v11169_v54  ;;  %5436 = vmatpush.bf16.msrb.mxu1 %v6727_v45  ;;  %5484 = vmatpush.bf16.msrb.mxu2 %v6979_v15 }
 0x582   : > { %5271 = vmatmul.bf16.gmra.mxu1 %v9236_v46 }
 0x583   : > { %v5077_v19 = vadd.f32 %v5076_v12, %v5028_v42  ;;  %5359 = vmatmul.bf16.gmra.mxu3 %v9759_v8  ;;  %5222 = vmatmul.bf16.gmra.mxu0 %v11715_v62 }
 0x585   : > { %v5122_v53 = vpop.f32.mrf.mxu2  ;;  %5485 = vmatpush.bf16.msrb.mxu2 %v6951_v34 }
 0x586   : > { %v5123_v43 = vadd.f32 %v5122_v53, %v5074_v6  ;;  %v5164_v61 = vpop.f32.mrf.mxu3 }
 0x587   : > { %v11458_v23 = vadd.f32 %v5164_v61, %v11370_v27  ;;  %v5078_v63 = vpop.f32.mrf.mxu1 }
 0x588   : > { %v5029_v37 = vpop.f32.mrf.mxu0 }
 0x589   : > { %v5030_v45 = vadd.f32 %v5029_v37, %v11169_v54 }
 0x58a   : > { %5320 = vmatmul.bf16.gmra.mxu2 %v9524_v38 }
 0x58b   : > { %v5079_v59 = vadd.f32 %v5078_v63, %v5030_v45 }
 0x58d   : > { %v5125_v42 = vpop.f32.mrf.mxu2 }
 0x58e   : > { %v5126_v12 = vadd.f32 %v5125_v42, %v5077_v19  ;;  %v5166_v15 = vpop.f32.mrf.mxu3  ;;  %v7688_v19 = vld [vmem:[%s11663_s6 + $0x570] sm:$0xf0] }
 0x58f   : > { %v11463_v5 = vadd.f32 %v5166_v15, %v11396_v39  ;;  %v5081_v31 = vpop.f32.mrf.mxu1  ;;  %v7175_v39 = vor.u32 %v7688_v19, %v7174_v56 }
 0x590   : > { %v5032_v6 = vpop.f32.mrf.mxu0 }
 0x591   : > { %v5033_v10 = vadd.f32 %v5032_v6, %v11169_v54  ;;  %5534 = vmatpush.bf16.msrb.mxu3 %v7175_v39 }
 0x592   : > { %5276 = vmatmul.bf16.gmra.mxu1 %v11733_v11 }
 0x593   : > { %v5082_v27 = vadd.f32 %v5081_v31, %v5033_v10  ;;  %5364 = vmatmul.bf16.gmra.mxu3 %v9784_v13  ;;  %5227 = vmatmul.bf16.gmra.mxu0 %v11716_v20 }
 0x595   : > { %v5127_v35 = vpop.f32.mrf.mxu2 }
 0x596   : > { %v5128_v53 = vadd.f32 %v5127_v35, %v5079_v59  ;;  %v5169_v34 = vpop.f32.mrf.mxu3 }
 0x597   : > { %v11475_v61 = vadd.f32 %v5169_v34, %v5121_v16  ;;  %v5083_v63 = vpop.f32.mrf.mxu1 }
 0x598   : > { %v5034_v37 = vpop.f32.mrf.mxu0 }
 0x599   : > { %v5035_v45 = vadd.f32 %v5034_v37, %v11169_v54 }
 0x59a   : > { %5325 = vmatmul.bf16.gmra.mxu2 %v9554_v21 }
 0x59b   : > { %v5084_v42 = vadd.f32 %v5083_v63, %v5035_v45 }
 0x59d   : > { %v5130_v15 = vpop.f32.mrf.mxu2 }
 0x59e   : > { %v5131_v6 = vadd.f32 %v5130_v15, %v5082_v27  ;;  %v5171_v10 = vpop.f32.mrf.mxu3 }
 0x59f   : > { %v11479_v31 = vadd.f32 %v5171_v10, %v5123_v43  ;;  %v5242_v56 = vpop.f32.mrf.mxu1 }
 0x5a0   : > { %v5193_v11 = vpop.f32.mrf.mxu0 }
 0x5a2   : > { %5437 = vmatmul.bf16.vlgmr.msrb.gmra.mxu1 %v11735_v33 }
 0x5a3   : > { %5369 = vmatmul.bf16.gmra.mxu3 %v9808_v47  ;;  %5388 = vmatmul.bf16.vlgmr.msrb.gmra.mxu0 %v11734_v25 }
 0x5a5   : > { %v5132_v16 = vpop.f32.mrf.mxu2 }
 0x5a6   : > { %v5133_v59 = vadd.f32 %v5132_v16, %v5084_v42  ;;  %v5174_v54 = vpop.f32.mrf.mxu3 }
 0x5a7   : > { %v11484_v19 = vadd.f32 %v5174_v54, %v5126_v12  ;;  %v5244_v35 = vpop.f32.mrf.mxu1 }
 0x5a8   : > { %v5195_v39 = vpop.f32.mrf.mxu0 }
 0x5aa   : > { %5486 = vmatmul.bf16.vlgmr.msrb.gmra.mxu2 %v9314_v50  ;;  %v11496_v50 = vperm.slane %v11166_v26, 5 }
 0x5ac   : > { %v5194_v10 = vadd.f32 %v5193_v11, %v11496_v50  ;;  %v5196_v26 = vadd.f32 %v5195_v39, %v11496_v50 }
 0x5ad   : > { %v5291_v27 = vpop.f32.mrf.mxu2 }
 0x5ae   : > { %v5176_v43 = vpop.f32.mrf.mxu3 }
 0x5af   : > { %v11487_v34 = vadd.f32 %v5176_v43, %v5128_v53  ;;  %v5247_v45 = vpop.f32.mrf.mxu1 }
 0x5b0   : > { %v5198_v37 = vpop.f32.mrf.mxu0 }
 0x5b2   : > { %5442 = vmatmul.bf16.gmra.mxu1 %v11739_v36  ;;  %v5243_v36 = vadd.f32 %v5242_v56, %v5194_v10  ;;  %v5199_v10 = vadd.f32 %v5198_v37, %v11496_v50 }
 0x5b3   : > { %5374 = vmatmul.bf16.gmra.mxu3 %v11737_v49  ;;  %5393 = vmatmul.bf16.gmra.mxu0 %v11738_v52 }
 0x5b5   : > { %v5293_v25 = vpop.f32.mrf.mxu2 }
 0x5b6   : > { %v5179_v33 = vpop.f32.mrf.mxu3 }
 0x5b7   : > { %v11492_v12 = vadd.f32 %v5179_v33, %v5131_v6  ;;  %v5249_v42 = vpop.f32.mrf.mxu1  ;;  %v5292_v6 = vadd.f32 %v5291_v27, %v5243_v36 }
 0x5b8   : > { %v5200_v63 = vpop.f32.mrf.mxu0 }
 0x5ba   : > { %5491 = vmatmul.bf16.gmra.mxu2 %v11741_v17 }
 0x5bd   : > { %v5296_v53 = vpop.f32.mrf.mxu2 }
 0x5be   : > { %v5181_v15 = vpop.f32.mrf.mxu3 }
 0x5bf   : > { %v11499_v16 = vadd.f32 %v5181_v15, %v5133_v59  ;;  %v5252_v54 = vpop.f32.mrf.mxu1  ;;  %v7876_v15 = vpop.eup %7875 }
 0x5c0   : > { %v5203_v52 = vpop.f32.mrf.mxu0 }
 0x5c2   : > { %5447 = vmatmul.bf16.gmra.mxu1 %v11742_v30 }
 0x5c3   : > { %5535 = vmatmul.bf16.vlgmr.msrb.gmra.mxu3 %v9590_v7  ;;  %5398 = vmatmul.bf16.gmra.mxu0 %v8846_v14  ;;  %v5245_v7 = vadd.f32 %v5244_v35, %v5196_v26 }
 0x5c5   : > { %v5298_v17 = vpop.f32.mrf.mxu2  ;;  %v5294_v56 = vadd.f32 %v5293_v25, %v5245_v7 }
 0x5c6   : > { %v5340_v43 = vpop.f32.mrf.mxu3 }
 0x5c7   : > { %v5341_v33 = vadd.f32 %v5340_v43, %v5292_v6  ;;  %v11506_v59 = vpop.f32.mrf.mxu1  ;;  %v5248_v43 = vadd.f32 %v5247_v45, %v5199_v10 }
 0x5c8   : > { %v5205_v11 = vpop.f32.mrf.mxu0 }
 0x5c9   : > { %7877 = vtanh.f32 %v5341_v33 }
 0x5ca   : > { %5496 = vmatmul.bf16.gmra.mxu2 %v11743_v51  ;;  %7879 = vtanh.f32 %v11299_v41  ;;  %v5297_v51 = vadd.f32 %v5296_v53, %v5248_v43  ;;  %v5201_v41 = vadd.f32 %v5200_v63, %v11496_v50  ;;  %v5204_v63 = vadd.f32 %v5203_v52, %v11496_v50 }
 0x5cd   : > { %v5301_v14 = vpop.f32.mrf.mxu2 }
 0x5ce   : > { %v5342_v30 = vpop.f32.mrf.mxu3 }
 0x5cf   : > { %v7878_v27 = vpop.eup %7877  ;;  %v5343_v36 = vadd.f32 %v5342_v30, %v5294_v56  ;;  %v11511_v6 = vpop.f32.mrf.mxu1 }
 0x5d0   : > { %v5690_v39 = vpack.c.bf16 %v7878_v27, %v7876_v15  ;;  %v5208_v60 = vpop.f32.mrf.mxu0  ;;  %v7880_v37 = vpop.eup %7879 }
 0x5d1   : > { %7881 = vtanh.f32 %v5343_v36 }
 0x5d2   : > { %5754 = vst [vmem:[%s10214_s10 + $0x10] sm:$0xff] %v5690_v39  ;;  %5452 = vmatmul.bf16.gmra.mxu1 %v9158_v2  ;;  %7883 = vtanh.f32 %v11330_v29  ;;  %v5253_v39 = vadd.f32 %v5252_v54, %v5204_v63 }
 0x5d3   : > { %5540 = vmatmul.bf16.gmra.mxu3 %v9624_v57  ;;  %5403 = vmatmul.bf16.gmra.mxu0 %v8880_v24  ;;  %v5250_v24 = vadd.f32 %v5249_v42, %v5201_v41 }
 0x5d5   : > { %v5303_v35 = vpop.f32.mrf.mxu2  ;;  %v5299_v2 = vadd.f32 %v5298_v17, %v5250_v24 }
 0x5d6   : > { %v5345_v25 = vpop.f32.mrf.mxu3 }
 0x5d7   : > { %v7882_v26 = vpop.eup %7881  ;;  %v5346_v33 = vadd.f32 %v5345_v25, %v5297_v51  ;;  %v11519_v45 = vpop.f32.mrf.mxu1 }
 0x5d8   : > { %v5694_v7 = vpack.c.bf16 %v7882_v26, %v7880_v37  ;;  %v5210_v56 = vpop.f32.mrf.mxu0  ;;  %v7884_v53 = vpop.eup %7883 }
 0x5d9   : > { %7885 = vtanh.f32 %v5346_v33 }
 0x5da   : > { %5759 = vst [vmem:[%s10214_s10 + $0x2c] sm:$0xff] %v5694_v7  ;;  %5501 = vmatmul.bf16.gmra.mxu2 %v9416_v48  ;;  %7887 = vtanh.f32 %v11334_v18  ;;  %v5302_v48 = vadd.f32 %v5301_v14, %v5253_v39  ;;  %v5206_v18 = vadd.f32 %v5205_v11, %v11496_v50  ;;  %v5209_v11 = vadd.f32 %v5208_v60, %v11496_v50 }
 0x5dd   : > { %v5306_v57 = vpop.f32.mrf.mxu2 }
 0x5de   : > { %v5347_v15 = vpop.f32.mrf.mxu3 }
 0x5df   : > { %v7886_v30 = vpop.eup %7885  ;;  %v5348_v27 = vadd.f32 %v5347_v15, %v5299_v2  ;;  %v11525_v36 = vpop.f32.mrf.mxu1 }
 0x5e0   : > { %v5698_v29 = vpack.c.bf16 %v7886_v30, %v7884_v53  ;;  %v5213_v10 = vpop.f32.mrf.mxu0  ;;  %v7888_v52 = vpop.eup %7887  ;;  %v5211_v53 = vadd.f32 %v5210_v56, %v11496_v50 }
 0x5e1   : > { %7889 = vtanh.f32 %v5348_v27  ;;  %v5214_v56 = vadd.f32 %v5213_v10, %v11496_v50 }
 0x5e2   : > { %5763 = vst [vmem:[%s10214_s10 + $0x48] sm:$0xff] %v5698_v29  ;;  %5457 = vmatmul.bf16.gmra.mxu1 %v11712_v28  ;;  %7891 = vtanh.f32 %v11366_v44 }
 0x5e3   : > { %5545 = vmatmul.bf16.gmra.mxu3 %v9658_v32  ;;  %5408 = vmatmul.bf16.gmra.mxu0 %v8926_v1  ;;  %v5255_v1 = vadd.f32 %v11506_v59, %v5206_v18 }
 0x5e5   : > { %v5308_v42 = vpop.f32.mrf.mxu2  ;;  %v5304_v32 = vadd.f32 %v5303_v35, %v5255_v1 }
 0x5e6   : > { %v5350_v17 = vpop.f32.mrf.mxu3 }
 0x5e7   : > { %v7890_v43 = vpop.eup %7889  ;;  %v5351_v51 = vadd.f32 %v5350_v17, %v5302_v48  ;;  %v11533_v54 = vpop.f32.mrf.mxu1 }
 0x5e8   : > { %v5702_v37 = vpack.c.bf16 %v7890_v43, %v7888_v52  ;;  %v5215_v25 = vpop.f32.mrf.mxu0  ;;  %v7892_v14 = vpop.eup %7891 }
 0x5e9   : > { %7893 = vtanh.f32 %v5351_v51  ;;  %v5216_v43 = vadd.f32 %v5215_v25, %v11496_v50 }
 0x5ea   : > { %5767 = vst [vmem:[%s10214_s10 + $0x64] sm:$0xff] %v5702_v37  ;;  %5506 = vmatmul.bf16.gmra.mxu2 %v9486_v9  ;;  %7895 = vtanh.f32 %v11372_v0  ;;  %v5258_v9 = vadd.f32 %v11511_v6, %v5209_v11 }
 0x5ec   : > { %v5307_v59 = vadd.f32 %v5306_v57, %v5258_v9 }
 0x5ed   : > { %v5311_v28 = vpop.f32.mrf.mxu2 }
 0x5ee   : > { %v5352_v26 = vpop.f32.mrf.mxu3 }
 0x5ef   : > { %v7894_v41 = vpop.eup %7893  ;;  %v5353_v33 = vadd.f32 %v5352_v26, %v5304_v32  ;;  %v11540_v24 = vpop.f32.mrf.mxu1 }
 0x5f0   : > { %v5706_v44 = vpack.c.bf16 %v7894_v41, %v7892_v14  ;;  %v5218_v7 = vpop.f32.mrf.mxu0  ;;  %v7896_v35 = vpop.eup %7895 }
 0x5f1   : > { %7897 = vtanh.f32 %v5353_v33  ;;  %v5219_v25 = vadd.f32 %v5218_v7, %v11496_v50 }
 0x5f2   : > { %5771 = vst [vmem:[%s10214_s10 + $0x80] sm:$0xff] %v5706_v44  ;;  %5462 = vmatmul.bf16.gmra.mxu1 %v11714_v22  ;;  %7899 = vtanh.f32 %v11404_v40 }
 0x5f3   : > { %5550 = vmatmul.bf16.gmra.mxu3 %v9692_v4  ;;  %5413 = vmatmul.bf16.gmra.mxu0 %v11713_v58  ;;  %v5260_v4 = vadd.f32 %v11519_v45, %v5211_v53  ;;  %v5268_v11 = vadd.f32 %v11540_v24, %v5219_v25 }
 0x5f5   : > { %v5313_v60 = vpop.f32.mrf.mxu2  ;;  %v5309_v58 = vadd.f32 %v5308_v42, %v5260_v4 }
 0x5f6   : > { %v5355_v2 = vpop.f32.mrf.mxu3 }
 0x5f7   : > { %v7898_v0 = vpop.eup %7897  ;;  %v5356_v15 = vadd.f32 %v5355_v2, %v5307_v59  ;;  %v11549_v6 = vpop.f32.mrf.mxu1 }
 0x5f8   : > { %v5710_v30 = vpack.c.bf16 %v7898_v0, %v7896_v35  ;;  %v5220_v63 = vpop.f32.mrf.mxu0  ;;  %v7900_v57 = vpop.eup %7899 }
 0x5f9   : > { %7901 = vtanh.f32 %v5356_v15 }
 0x5fa   : > { %5775 = vst [vmem:[%s10214_s10 + $0x9c] sm:$0xff] %v5710_v30  ;;  %5511 = vmatmul.bf16.gmra.mxu2 %v9508_v3  ;;  %7903 = vtanh.f32 %v11430_v55  ;;  %v5263_v3 = vadd.f32 %v11525_v36, %v5214_v56 }
 0x5fc   : > { %v5312_v45 = vadd.f32 %v5311_v28, %v5263_v3 }
 0x5fd   : > { %v5316_v22 = vpop.f32.mrf.mxu2 }
 0x5fe   : > { %v5357_v27 = vpop.f32.mrf.mxu3 }
 0x5ff   : > { %v7902_v29 = vpop.eup %7901  ;;  %v5358_v39 = vadd.f32 %v5357_v27, %v5309_v58  ;;  %v11556_v52 = vpop.f32.mrf.mxu1 }
 0x600   : > { %v5714_v40 = vpack.c.bf16 %v7902_v29, %v7900_v57  ;;  %v5223_v48 = vpop.f32.mrf.mxu0  ;;  %v7904_v42 = vpop.eup %7903 }
 0x601   : > { %7905 = vtanh.f32 %v5358_v39  ;;  %v5224_v30 = vadd.f32 %v5223_v48, %v11496_v50 }
 0x602   : > { %5779 = vst [vmem:[%s10214_s10 + $0xb8] sm:$0xff] %v5714_v40  ;;  %5467 = vmatmul.bf16.gmra.mxu1 %v9236_v46  ;;  %7907 = vtanh.f32 %v11458_v23  ;;  %v5265_v46 = vadd.f32 %v11533_v54, %v5216_v43  ;;  %v5317_v54 = vadd.f32 %v5316_v22, %v5268_v11 }
 0x603   : > { %5555 = vmatmul.bf16.gmra.mxu3 %v9759_v8  ;;  %5418 = vmatmul.bf16.gmra.mxu0 %v11715_v62  ;;  %v5273_v58 = vadd.f32 %v11556_v52, %v5224_v30 }
 0x604   : > { %v5314_v8 = vadd.f32 %v5313_v60, %v5265_v46 }
 0x605   : > { %v5318_v10 = vpop.f32.mrf.mxu2 }
 0x606   : > { %v5360_v17 = vpop.f32.mrf.mxu3 }
 0x607   : > { %v7906_v55 = vpop.eup %7905  ;;  %v5361_v18 = vadd.f32 %v5360_v17, %v5312_v45  ;;  %v11565_v36 = vpop.f32.mrf.mxu1 }
 0x608   : > { %v5718_v51 = vpack.c.bf16 %v7906_v55, %v7904_v42  ;;  %v5225_v37 = vpop.f32.mrf.mxu0  ;;  %v7908_v1 = vpop.eup %7907 }
 0x609   : > { %7909 = vtanh.f32 %v5361_v18  ;;  %v5226_v56 = vadd.f32 %v5225_v37, %v11496_v50 }
 0x60a   : > { %5783 = vst [vmem:[%s10214_s10 + $0xd4] sm:$0xff] %v5718_v51  ;;  %5516 = vmatmul.bf16.gmra.mxu2 %v9524_v38  ;;  %7911 = vtanh.f32 %v11463_v5  ;;  %v11744_v38 = vld [vmem:[#allocation12_spill] sm:$0xff]  ;;  %v5221_v5 = vadd.f32 %v5220_v63, %v11496_v50 }
 0x60b   : > { %v5275_v48 = vadd.f32 %v11565_v36, %v5226_v56 }
 0x60d   : > { %v5321_v62 = vpop.f32.mrf.mxu2 }
 0x60e   : > { %v5362_v32 = vpop.f32.mrf.mxu3 }
 0x60f   : > { %v7910_v28 = vpop.eup %7909  ;;  %v5363_v14 = vadd.f32 %v5362_v32, %v5314_v8  ;;  %v5277_v41 = vpop.f32.mrf.mxu1 }
 0x610   : > { %v5722_v23 = vpack.c.bf16 %v7910_v28, %v7908_v1  ;;  %v5228_v26 = vpop.f32.mrf.mxu0  ;;  %v7912_v44 = vpop.eup %7911 }
 0x611   : > { %7913 = vtanh.f32 %v5363_v14  ;;  %v5229_v17 = vadd.f32 %v5228_v26, %v11496_v50 }
 0x612   : > { %5787 = vst [vmem:[%s10214_s10 + $0xf0] sm:$0xff] %v5722_v23  ;;  %5472 = vmatmul.bf16.gmra.mxu1 %v11744_v38  ;;  %7915 = vtanh.f32 %v11475_v61 }
 0x613   : > { %5560 = vmatmul.bf16.gmra.mxu3 %v9784_v13  ;;  %5423 = vmatmul.bf16.gmra.mxu0 %v11716_v20  ;;  %v5270_v13 = vadd.f32 %v11549_v6, %v5221_v5  ;;  %v5322_v6 = vadd.f32 %v5321_v62, %v5273_v58  ;;  %v5278_v18 = vadd.f32 %v5277_v41, %v5229_v17 }
 0x615   : > { %v5323_v33 = vpop.f32.mrf.mxu2  ;;  %v5319_v20 = vadd.f32 %v5318_v10, %v5270_v13 }
 0x616   : > { %v5365_v7 = vpop.f32.mrf.mxu3  ;;  %v5324_v52 = vadd.f32 %v5323_v33, %v5275_v48 }
 0x617   : > { %v7914_v9 = vpop.eup %7913  ;;  %v5366_v59 = vadd.f32 %v5365_v7, %v5317_v54  ;;  %v5279_v24 = vpop.f32.mrf.mxu1 }
 0x618   : > { %v5726_v60 = vpack.c.bf16 %v7914_v9, %v7912_v44  ;;  %v5230_v35 = vpop.f32.mrf.mxu0  ;;  %v7916_v0 = vpop.eup %7915 }
 0x619   : > { %7917 = vtanh.f32 %v5366_v59  ;;  %v5231_v62 = vadd.f32 %v5230_v35, %v11496_v50 }
 0x61a   : > { %5791 = vst [vmem:[%s10214_s10 + $0x10c] sm:$0xff] %v5726_v60  ;;  %5521 = vmatmul.bf16.gmra.mxu2 %v9554_v21  ;;  %7919 = vtanh.f32 %v11479_v31 }
 0x61b   : > { %v5280_v28 = vadd.f32 %v5279_v24, %v5231_v62 }
 0x61d   : > { %v5326_v2 = vpop.f32.mrf.mxu2 }
 0x61e   : > { %v5367_v53 = vpop.f32.mrf.mxu3  ;;  %v5327_v51 = vadd.f32 %v5326_v2, %v5278_v18 }
 0x61f   : > { %v7918_v15 = vpop.eup %7917  ;;  %v5368_v63 = vadd.f32 %v5367_v53, %v5319_v20  ;;  %v5438_v21 = vpop.f32.mrf.mxu1 }
 0x620   : > { %v5730_v61 = vpack.c.bf16 %v7918_v15, %v7916_v0  ;;  %v5389_v4 = vpop.f32.mrf.mxu0  ;;  %v7920_v57 = vpop.eup %7919 }
 0x621   : > { %7921 = vtanh.f32 %v5368_v63 }
 0x622   : > { %5795 = vst [vmem:[%s10214_s10 + $0x128] sm:$0xff] %v5730_v61  ;;  %7923 = vtanh.f32 %v11484_v19 }
 0x623   : > { %5565 = vmatmul.bf16.gmra.mxu3 %v9808_v47 }
 0x625   : > { %v5328_v22 = vpop.f32.mrf.mxu2 }
 0x626   : > { %v5370_v27 = vpop.f32.mrf.mxu3  ;;  %v5329_v23 = vadd.f32 %v5328_v22, %v5280_v28 }
 0x627   : > { %v7922_v29 = vpop.eup %7921  ;;  %v5371_v39 = vadd.f32 %v5370_v27, %v5322_v6  ;;  %v5440_v3 = vpop.f32.mrf.mxu1 }
 0x628   : > { %v5734_v31 = vpack.c.bf16 %v7922_v29, %v7920_v57  ;;  %v5391_v40 = vpop.f32.mrf.mxu0  ;;  %v7924_v45 = vpop.eup %7923 }
 0x629   : > { %7925 = vtanh.f32 %v5371_v39 }
 0x62a   : > { %5799 = vst [vmem:[%s10214_s10 + $0x144] sm:$0xff] %v5734_v31  ;;  %7927 = vtanh.f32 %v11487_v34 }
 0x62d   : > { %v5487_v47 = vpop.f32.mrf.mxu2 }
 0x62e   : > { %v5372_v10 = vpop.f32.mrf.mxu3 }
 0x62f   : > { %v7926_v42 = vpop.eup %7925  ;;  %v5373_v55 = vadd.f32 %v5372_v10, %v5324_v52  ;;  %v5443_v1 = vpop.f32.mrf.mxu1 }
 0x630   : > { %v5738_v43 = vpack.c.bf16 %v7926_v42, %v7924_v45  ;;  %v5394_v19 = vpop.f32.mrf.mxu0  ;;  %v7928_v36 = vpop.eup %7927 }
 0x631   : > { %7929 = vtanh.f32 %v5373_v55 }
 0x632   : > { %5803 = vst [vmem:[%s10214_s10 + $0x160] sm:$0xff] %v5738_v43  ;;  %7931 = vtanh.f32 %v11492_v12 }
 0x633   : > { %5570 = vmatmul.bf16.gmra.mxu3 %v11737_v49  ;;  %v7975_v49 = vld [vmem:[%s11664_s7] sm:$0x7f] }
 0x634   : > { %v11601_v25 = vperm.slane %v7975_v49, 6 }
 0x635   : > { %v5489_v37 = vpop.f32.mrf.mxu2 }
 0x636   : > { %v5375_v46 = vpop.f32.mrf.mxu3  ;;  %v5390_v38 = vadd.f32 %v5389_v4, %v11601_v25  ;;  %v5392_v24 = vadd.f32 %v5391_v40, %v11601_v25  ;;  %v5395_v63 = vadd.f32 %v5394_v19, %v11601_v25 }
 0x637   : > { %v7930_v8 = vpop.eup %7929  ;;  %v5376_v32 = vadd.f32 %v5375_v46, %v5327_v51  ;;  %v5445_v33 = vpop.f32.mrf.mxu1 }
 0x638   : > { %v5742_v34 = vpack.c.bf16 %v7930_v8, %v7928_v36  ;;  %v5396_v14 = vpop.f32.mrf.mxu0  ;;  %v7932_v41 = vpop.eup %7931  ;;  %v5439_v44 = vadd.f32 %v5438_v21, %v5390_v38  ;;  %v5444_v21 = vadd.f32 %v5443_v1, %v5395_v63 }
 0x639   : > { %7933 = vtanh.f32 %v5376_v32  ;;  %v5397_v56 = vadd.f32 %v5396_v14, %v11601_v25 }
 0x63a   : > { %5807 = vst [vmem:[%s10214_s10 + $0x17c] sm:$0xff] %v5742_v34  ;;  %7935 = vtanh.f32 %v11499_v16  ;;  %v5488_v7 = vadd.f32 %v5487_v47, %v5439_v44  ;;  %v5441_v16 = vadd.f32 %v5440_v3, %v5392_v24 }
 0x63b   : > { %v5446_v48 = vadd.f32 %v5445_v33, %v5397_v56 }
 0x63c   : > { %v5490_v0 = vadd.f32 %v5489_v37, %v5441_v16 }
 0x63d   : > { %v5492_v26 = vpop.f32.mrf.mxu2 }
 0x63e   : > { %v5377_v50 = vpop.f32.mrf.mxu3  ;;  %v5493_v6 = vadd.f32 %v5492_v26, %v5444_v21 }
 0x63f   : > { %v7934_v11 = vpop.eup %7933  ;;  %v5378_v12 = vadd.f32 %v5377_v50, %v5329_v23  ;;  %v5448_v2 = vpop.f32.mrf.mxu1 }
 0x640   : > { %v5746_v54 = vpack.c.bf16 %v7934_v11, %v7932_v41  ;;  %v7936_v5 = vpop.eup %7935  ;;  %v5399_v59 = vpop.f32.mrf.mxu0 }
 0x641   : > { %7937 = vtanh.f32 %v5378_v12  ;;  %v5400_v45 = vadd.f32 %v5399_v59, %v11601_v25 }
 0x642   : > { %5811 = vst [vmem:[%s10214_s10 + $0x198] sm:$0xff] %v5746_v54 }
 0x643   : > { %v5449_v43 = vadd.f32 %v5448_v2, %v5400_v45 }
 0x645   : > { %v5494_v9 = vpop.f32.mrf.mxu2 }
 0x646   : > { %v5536_v60 = vpop.f32.mrf.mxu3  ;;  %v5495_v52 = vadd.f32 %v5494_v9, %v5446_v48 }
 0x647   : > { %v7938_v35 = vpop.eup %7937  ;;  %v5537_v13 = vadd.f32 %v5536_v60, %v5488_v7  ;;  %v5450_v22 = vpop.f32.mrf.mxu1 }
 0x648   : > { %v5750_v20 = vpack.c.bf16 %v7938_v35, %v7936_v5  ;;  %v5401_v58 = vpop.f32.mrf.mxu0 }
 0x649   : > { %7939 = vtanh.f32 %v5537_v13  ;;  %v5402_v36 = vadd.f32 %v5401_v58, %v11601_v25 }
 0x64a   : > { %5815 = vst [vmem:[%s10214_s10 + $0x1b4] sm:$0xff] %v5750_v20 }
 0x64b   : > { %v5451_v32 = vadd.f32 %v5450_v22, %v5402_v36 }
 0x64d   : > { %v5497_v53 = vpop.f32.mrf.mxu2 }
 0x64e   : > { %v5538_v15 = vpop.f32.mrf.mxu3  ;;  %v5498_v18 = vadd.f32 %v5497_v53, %v5449_v43 }
 0x64f   : > { %v7940_v30 = vpop.eup %7939  ;;  %v5539_v61 = vadd.f32 %v5538_v15, %v5490_v0  ;;  %v5453_v10 = vpop.f32.mrf.mxu1 }
 0x650   : > { %v5691_v4 = vpack.c.bf16 %v7940_v30, %v7940_v30  ;;  %v5404_v40 = vpop.f32.mrf.mxu0 }
 0x651   : > { %7941 = vtanh.f32 %v5539_v61  ;;  %v5405_v23 = vadd.f32 %v5404_v40, %v11601_v25 }
 0x652   : > { %5756 = vst.msk [vmem:[%s10214_s10 + $0x18] sm:$0xf] %vm5755_vm2, %v5691_v4 }
 0x653   : > { %v5454_v50 = vadd.f32 %v5453_v10, %v5405_v23 }
 0x655   : > { %v5499_v57 = vpop.f32.mrf.mxu2 }
 0x656   : > { %v5541_v27 = vpop.f32.mrf.mxu3  ;;  %v5500_v34 = vadd.f32 %v5499_v57, %v5451_v32 }
 0x657   : > { %v7942_v29 = vpop.eup %7941  ;;  %v5542_v39 = vadd.f32 %v5541_v27, %v5493_v6  ;;  %v5455_v62 = vpop.f32.mrf.mxu1 }
 0x658   : > { %v5695_v31 = vpack.c.bf16 %v7942_v29, %v7942_v29  ;;  %v5406_v19 = vpop.f32.mrf.mxu0 }
 0x659   : > { %7943 = vtanh.f32 %v5542_v39  ;;  %v5407_v44 = vadd.f32 %v5406_v19, %v11601_v25 }
 0x65a   : > { %5760 = vst.msk [vmem:[%s10214_s10 + $0x34] sm:$0xf] %vm5755_vm2, %v5695_v31 }
 0x65b   : > { %v5456_v59 = vadd.f32 %v5455_v62, %v5407_v44 }
 0x65d   : > { %v5502_v55 = vpop.f32.mrf.mxu2 }
 0x65e   : > { %v5543_v3 = vpop.f32.mrf.mxu3  ;;  %v5503_v12 = vadd.f32 %v5502_v55, %v5454_v50 }
 0x65f   : > { %v7944_v47 = vpop.eup %7943  ;;  %v5544_v42 = vadd.f32 %v5543_v3, %v5495_v52  ;;  %v5458_v11 = vpop.f32.mrf.mxu1 }
 0x660   : > { %v5699_v17 = vpack.c.bf16 %v7944_v47, %v7944_v47  ;;  %v5409_v28 = vpop.f32.mrf.mxu0 }
 0x661   : > { %7945 = vtanh.f32 %v5544_v42  ;;  %v5410_v16 = vadd.f32 %v5409_v28, %v11601_v25 }
 0x662   : > { %5764 = vst.msk [vmem:[%s10214_s10 + $0x50] sm:$0xf] %vm5755_vm2, %v5699_v17 }
 0x663   : > { %v5459_v15 = vadd.f32 %v5458_v11, %v5410_v16 }
 0x665   : > { %v5504_v1 = vpop.f32.mrf.mxu2 }
 0x666   : > { %v5546_v51 = vpop.f32.mrf.mxu3  ;;  %v5505_v60 = vadd.f32 %v5504_v1, %v5456_v59 }
 0x667   : > { %v7946_v37 = vpop.eup %7945  ;;  %v5547_v46 = vadd.f32 %v5546_v51, %v5498_v18  ;;  %v5460_v35 = vpop.f32.mrf.mxu1 }
 0x668   : > { %v5703_v8 = vpack.c.bf16 %v7946_v37, %v7946_v37  ;;  %v5411_v9 = vpop.f32.mrf.mxu0 }
 0x669   : > { %7947 = vtanh.f32 %v5547_v46  ;;  %v5412_v4 = vadd.f32 %v5411_v9, %v11601_v25 }
 0x66a   : > { %5768 = vst.msk [vmem:[%s10214_s10 + $0x6c] sm:$0xf] %vm5755_vm2, %v5703_v8 }
 0x66b   : > { %v5461_v57 = vadd.f32 %v5460_v35, %v5412_v4 }
 0x66d   : > { %v5507_v38 = vpop.f32.mrf.mxu2 }
 0x66e   : > { %v5548_v49 = vpop.f32.mrf.mxu3  ;;  %v5508_v30 = vadd.f32 %v5507_v38, %v5459_v15 }
 0x66f   : > { %v7948_v14 = vpop.eup %7947  ;;  %v5549_v26 = vadd.f32 %v5548_v49, %v5500_v34  ;;  %v5463_v58 = vpop.f32.mrf.mxu1 }
 0x670   : > { %v5707_v41 = vpack.c.bf16 %v7948_v14, %v7948_v14  ;;  %v5414_v53 = vpop.f32.mrf.mxu0 }
 0x671   : > { %7949 = vtanh.f32 %v5549_v26  ;;  %v5415_v31 = vadd.f32 %v5414_v53, %v11601_v25 }
 0x672   : > { %5772 = vst.msk [vmem:[%s10214_s10 + $0x88] sm:$0xf] %vm5755_vm2, %v5707_v41 }
 0x673   : > { %v5464_v47 = vadd.f32 %v5463_v58, %v5415_v31 }
 0x675   : > { %v5509_v24 = vpop.f32.mrf.mxu2 }
 0x676   : > { %v5551_v54 = vpop.f32.mrf.mxu3  ;;  %v5510_v29 = vadd.f32 %v5509_v24, %v5461_v57 }
 0x677   : > { %v7950_v33 = vpop.eup %7949  ;;  %v5552_v7 = vadd.f32 %v5551_v54, %v5503_v12  ;;  %v5465_v52 = vpop.f32.mrf.mxu1 }
 0x678   : > { %v5711_v5 = vpack.c.bf16 %v7950_v33, %v7950_v33  ;;  %v5416_v27 = vpop.f32.mrf.mxu0 }
 0x679   : > { %7951 = vtanh.f32 %v5552_v7  ;;  %v5417_v55 = vadd.f32 %v5416_v27, %v11601_v25 }
 0x67a   : > { %5776 = vst.msk [vmem:[%s10214_s10 + $0xa4] sm:$0xf] %vm5755_vm2, %v5711_v5 }
 0x67b   : > { %v5466_v18 = vadd.f32 %v5465_v52, %v5417_v55 }
 0x67d   : > { %v5512_v6 = vpop.f32.mrf.mxu2 }
 0x67e   : > { %v5553_v13 = vpop.f32.mrf.mxu3  ;;  %v5513_v45 = vadd.f32 %v5512_v6, %v5464_v47 }
 0x67f   : > { %v7952_v20 = vpop.eup %7951  ;;  %v5554_v2 = vadd.f32 %v5553_v13, %v5505_v60  ;;  %v5468_v51 = vpop.f32.mrf.mxu1 }
 0x680   : > { %v5715_v0 = vpack.c.bf16 %v7952_v20, %v7952_v20  ;;  %v5419_v10 = vpop.f32.mrf.mxu0 }
 0x681   : > { %7953 = vtanh.f32 %v5554_v2  ;;  %v5420_v62 = vadd.f32 %v5419_v10, %v11601_v25 }
 0x682   : > { %5780 = vst.msk [vmem:[%s10214_s10 + $0xc0] sm:$0xf] %vm5755_vm2, %v5715_v0 }
 0x683   : > { %v5469_v28 = vadd.f32 %v5468_v51, %v5420_v62 }
 0x685   : > { %v5514_v3 = vpop.f32.mrf.mxu2 }
 0x686   : > { %v5556_v63 = vpop.f32.mrf.mxu3  ;;  %v5515_v36 = vadd.f32 %v5514_v3, %v5466_v18 }
 0x687   : > { %v7954_v61 = vpop.eup %7953  ;;  %v5557_v21 = vadd.f32 %v5556_v63, %v5508_v30  ;;  %v5470_v49 = vpop.f32.mrf.mxu1 }
 0x688   : > { %v5719_v22 = vpack.c.bf16 %v7954_v61, %v7954_v61  ;;  %v5421_v32 = vpop.f32.mrf.mxu0 }
 0x689   : > { %7955 = vtanh.f32 %v5557_v21  ;;  %v5422_v50 = vadd.f32 %v5421_v32, %v11601_v25 }
 0x68a   : > { %5784 = vst.msk [vmem:[%s10214_s10 + $0xdc] sm:$0xf] %vm5755_vm2, %v5719_v22 }
 0x68b   : > { %v5471_v54 = vadd.f32 %v5470_v49, %v5422_v50 }
 0x68d   : > { %v5517_v37 = vpop.f32.mrf.mxu2 }
 0x68e   : > { %v5558_v56 = vpop.f32.mrf.mxu3  ;;  %v5518_v14 = vadd.f32 %v5517_v37, %v5469_v28 }
 0x68f   : > { %v7956_v39 = vpop.eup %7955  ;;  %v5559_v40 = vadd.f32 %v5558_v56, %v5510_v29  ;;  %v5473_v59 = vpop.f32.mrf.mxu1 }
 0x690   : > { %v5723_v48 = vpack.c.bf16 %v7956_v39, %v7956_v39  ;;  %v5424_v12 = vpop.f32.mrf.mxu0 }
 0x691   : > { %7957 = vtanh.f32 %v5559_v40  ;;  %v5425_v9 = vadd.f32 %v5424_v12, %v11601_v25 }
 0x692   : > { %5788 = vst.msk [vmem:[%s10214_s10 + $0xf8] sm:$0xf] %vm5755_vm2, %v5723_v48 }
 0x693   : > { %v5474_v24 = vadd.f32 %v5473_v59, %v5425_v9 }
 0x695   : > { %v5519_v23 = vpop.f32.mrf.mxu2 }
 0x696   : > { %v5561_v42 = vpop.f32.mrf.mxu3  ;;  %v5520_v33 = vadd.f32 %v5519_v23, %v5471_v54 }
 0x697   : > { %v7958_v17 = vpop.eup %7957  ;;  %v5562_v43 = vadd.f32 %v5561_v42, %v5513_v45  ;;  %v5475_v30 = vpop.f32.mrf.mxu1 }
 0x698   : > { %v5727_v19 = vpack.c.bf16 %v7958_v17, %v7958_v17  ;;  %v5426_v13 = vpop.f32.mrf.mxu0 }
 0x699   : > { %7959 = vtanh.f32 %v5562_v43  ;;  %v5427_v0 = vadd.f32 %v5426_v13, %v11601_v25 }
 0x69a   : > { %5792 = vst.msk [vmem:[%s10214_s10 + $0x114] sm:$0xf] %vm5755_vm2, %v5727_v19 }
 0x69b   : > { %v5476_v61 = vadd.f32 %v5475_v30, %v5427_v0 }
 0x69d   : > { %v5522_v60 = vpop.f32.mrf.mxu2 }
 0x69e   : > { %v5563_v46 = vpop.f32.mrf.mxu3  ;;  %v5523_v20 = vadd.f32 %v5522_v60, %v5474_v24 }
 0x69f   : > { %v7960_v8 = vpop.eup %7959  ;;  %v5564_v1 = vadd.f32 %v5563_v46, %v5515_v36 }
 0x6a0   : > { %v5731_v34 = vpack.c.bf16 %v7960_v8, %v7960_v8 }
 0x6a1   : > { %7961 = vtanh.f32 %v5564_v1 }
 0x6a2   : > { %5796 = vst.msk [vmem:[%s10214_s10 + $0x130] sm:$0xf] %vm5755_vm2, %v5731_v34 }
 0x6a5   : > { %v5524_v63 = vpop.f32.mrf.mxu2 }
 0x6a6   : > { %v5566_v26 = vpop.f32.mrf.mxu3  ;;  %v5525_v4 = vadd.f32 %v5524_v63, %v5476_v61 }
 0x6a7   : > { %v7962_v41 = vpop.eup %7961  ;;  %v5567_v11 = vadd.f32 %v5566_v26, %v5518_v14 }
 0x6a8   : > { %v5735_v38 = vpack.c.bf16 %v7962_v41, %v7962_v41 }
 0x6a9   : > { %7963 = vtanh.f32 %v5567_v11 }
 0x6aa   : > { %5800 = vst.msk [vmem:[%s10214_s10 + $0x14c] sm:$0xf] %vm5755_vm2, %v5735_v38 }
 0x6ae   : > { %v5568_v44 = vpop.f32.mrf.mxu3 }
 0x6af   : > { %v7964_v7 = vpop.eup %7963  ;;  %v5569_v5 = vadd.f32 %v5568_v44, %v5520_v33 }
 0x6b0   : > { %v5739_v35 = vpack.c.bf16 %v7964_v7, %v7964_v7 }
 0x6b1   : > { %7965 = vtanh.f32 %v5569_v5 }
 0x6b2   : > { %5804 = vst.msk [vmem:[%s10214_s10 + $0x168] sm:$0xf] %vm5755_vm2, %v5739_v35 }
 0x6b6   : > { %v5571_v16 = vpop.f32.mrf.mxu3 }
 0x6b7   : > { %v7966_v2 = vpop.eup %7965  ;;  %v5572_v53 = vadd.f32 %v5571_v16, %v5523_v20 }
 0x6b8   : > { %v5743_v15 = vpack.c.bf16 %v7966_v2, %v7966_v2 }
 0x6b9   : > { %7967 = vtanh.f32 %v5572_v53 }
 0x6ba   : > { %5808 = vst.msk [vmem:[%s10214_s10 + $0x184] sm:$0xf] %vm5755_vm2, %v5743_v15 }
 0x6be   : > { %v5573_v58 = vpop.f32.mrf.mxu3 }
 0x6bf   : > { %v7968_v21 = vpop.eup %7967  ;;  %v5574_v6 = vadd.f32 %v5573_v58, %v5525_v4 }
 0x6c0   : > { %v5747_v22 = vpack.c.bf16 %v7968_v21, %v7968_v21 }
 0x6c1   : > { %7969 = vtanh.f32 %v5574_v6 }
 0x6c2   : > { %5812 = vst.msk [vmem:[%s10214_s10 + $0x1a0] sm:$0xf] %vm5755_vm2, %v5747_v22 }
 0x6c7   : > { %v7970_v57 = vpop.eup %7969 }
 0x6c8   : > { %v5751_v27 = vpack.c.bf16 %v7970_v57, %v7970_v57 }
 0x6ca   : > { %5816 = vst.msk [vmem:[%s10214_s10 + $0x1bc] sm:$0xf] %vm5755_vm2, %v5751_v27 }
 0x6cb PF: > { %s18_s27 = sadd.s32 1, %s7982_s27  }
 0x6cc   : > { %p15_p4 = scmp.ge.s32.totalorder %s18_s27, 4  }
 0x6ce   :  { %17 = sbr.rel (!%p15_p4) target bundleno = 1 (0x1), region = 82 }

</bundles_post_ra>
